<compile_context>
chip_gen: v7x
topology: tpu7x:2x2x1
jax: 0.10.0
libtpu: 0.0.40
codegen_flags: <defaults>
</compile_context>

<pallas_src>
import functools

import jax
import jax.numpy as jnp
from jax import lax
from jax.experimental import pallas as pl
from jax.experimental.pallas import tpu as pltpu


_VMEM = pl.BlockSpec(memory_space=pltpu.MemorySpace.VMEM)


# ---------------------------------------------------------------------------
# Pallas kernels
# ---------------------------------------------------------------------------

def _conv_block_kernel(p_ref, w_ref, b_ref, o_ref, *, batch, spatial,
                       use_norm, use_act, neg_slope, eps):
    """Fused im2col-conv (single MXU GEMM) + InstanceNorm + LeakyReLU.

    p_ref: (batch*spatial, K)   im2col patches, K = kh*kw*Cin
    w_ref: (K, Cout)            flattened conv weight
    b_ref: (1, Cout)            bias (zeros when the conv has no bias)
    o_ref: (batch, spatial, Cout)
    """
    y = jnp.dot(p_ref[...], w_ref[...], preferred_element_type=jnp.float32)
    y = y + b_ref[...]
    cout = y.shape[-1]
    y = y.reshape(batch, spatial, cout)
    if use_norm:
        # InstanceNorm2d(affine=False, eps=1e-5): per-(batch, channel) stats
        # over the spatial axis, biased variance (PyTorch semantics).
        mean = jnp.mean(y, axis=1, keepdims=True)
        var = jnp.mean(jnp.square(y - mean), axis=1, keepdims=True)
        y = (y - mean) * lax.rsqrt(var + eps)
    if use_act:
        y = jnp.where(y > 0, y, neg_slope * y)
    o_ref[...] = y.astype(o_ref.dtype)


def _avg_pool_kernel(win_ref, invc_ref, o_ref):
    """AvgPool2d(3, stride=2, padding=1, count_include_pad=False).

    win_ref:  (9, M, C)  the 9 shifted stride-2 windows of the zero-padded input
    invc_ref: (M, 1)     1 / (#non-padded elements in each window)
    o_ref:    (M, C)
    """
    o_ref[...] = jnp.sum(win_ref[...], axis=0) * invc_ref[...]


# ---------------------------------------------------------------------------
# Wrappers (layout plumbing only: padding, window extraction, transposes)
# ---------------------------------------------------------------------------

def _extract_windows(x_pad, k, stride, ho, wo):
    """Return the k*k shifted strided views of x_pad, each (B, ho, wo, C)."""
    b, _, _, c = x_pad.shape
    views = []
    for ky in range(k):
        for kx in range(k):
            v = lax.slice(
                x_pad,
                (0, ky, kx, 0),
                (b, ky + stride * (ho - 1) + 1, kx + stride * (wo - 1) + 1, c),
                (1, stride, stride, 1))
            views.append(v)
    return views


def conv_block(x_nhwc, w_oihw, bias, *, stride, use_norm, use_act):
    """Conv2dBlock (reflection pad 1, kernel 4) as one fused pallas_call."""
    b, h, w, cin = x_nhwc.shape
    cout, _, kh, kw = w_oihw.shape
    x_pad = jnp.pad(x_nhwc, ((0, 0), (1, 1), (1, 1), (0, 0)), mode="reflect")
    hp, wp = h + 2, w + 2
    ho = (hp - kh) // stride + 1
    wo = (wp - kw) // stride + 1

    # im2col: (B*ho*wo, kh*kw*Cin) with (ky, kx, cin) ordering, matching w_flat.
    views = _extract_windows(x_pad, kh, stride, ho, wo)
    patches = jnp.concatenate(views, axis=-1).reshape(b * ho * wo, kh * kw * cin)
    w_flat = jnp.transpose(w_oihw, (2, 3, 1, 0)).reshape(kh * kw * cin, cout)
    if bias is None:
        bias2d = jnp.zeros((1, cout), jnp.float32)
    else:
        bias2d = bias.reshape(1, cout).astype(jnp.float32)

    spatial = ho * wo
    kernel = functools.partial(
        _conv_block_kernel, batch=b, spatial=spatial,
        use_norm=use_norm, use_act=use_act, neg_slope=0.2, eps=1e-5)
    y = pl.pallas_call(
        kernel,
        out_shape=jax.ShapeDtypeStruct((b, spatial, cout), jnp.float32),
        in_specs=[_VMEM, _VMEM, _VMEM],
        out_specs=_VMEM,
    )(patches.astype(jnp.float32), w_flat.astype(jnp.float32), bias2d)
    return y.reshape(b, ho, wo, cout)


def avg_pool_3x3_s2(x_nhwc):
    """nn.AvgPool2d(3, stride=2, padding=1, count_include_pad=False)."""
    b, h, w, c = x_nhwc.shape
    x_pad = jnp.pad(x_nhwc, ((0, 0), (1, 1), (1, 1), (0, 0)))  # zero pad
    ho = (h + 2 - 3) // 2 + 1
    wo = (w + 2 - 3) // 2 + 1
    m = b * ho * wo
    views = _extract_windows(x_pad, 3, 2, ho, wo)
    windows = jnp.stack([v.reshape(m, c) for v in views], axis=0)    # (9, M, C)

    ones = jnp.pad(jnp.ones((1, h, w, 1), jnp.float32),
                   ((0, 0), (1, 1), (1, 1), (0, 0)))
    cnt = sum(_extract_windows(ones, 3, 2, ho, wo))                  # (1,ho,wo,1)
    inv_cnt = jnp.broadcast_to(1.0 / cnt.reshape(1, ho * wo, 1),
                               (b, ho * wo, 1)).reshape(m, 1)

    y = pl.pallas_call(
        _avg_pool_kernel,
        out_shape=jax.ShapeDtypeStruct((m, c), jnp.float32),
        in_specs=[_VMEM, _VMEM],
        out_specs=_VMEM,
    )(windows, inv_cnt)
    return y.reshape(b, ho, wo, c)


def d_net_forward(x_nhwc, p):
    h = conv_block(x_nhwc, p["conv0_w"], None, stride=2, use_norm=False, use_act=True)
    h = conv_block(h, p["conv1_w"], None, stride=2, use_norm=True, use_act=True)
    h = conv_block(h, p["conv2_w"], None, stride=2, use_norm=True, use_act=True)
    x_code = h
    pre = conv_block(h, p["pre_w"], p["pre_b"], stride=1, use_norm=False, use_act=False)
    return pre, x_code


def d_net_multi_forward(x_nchw, params):
    """Forward of D_NET_Multi with c=None (so c_pre outputs are None)."""
    # TODO(synk): the c-conditioned branch (c_con1 -> CBINorm2d -> c_con2)
    # cannot be implemented: CBINorm2d is referenced but not defined in the
    # spec.  With c=None the PyTorch module returns c_pre=None (reproduced).
    x_nhwc = jnp.transpose(x_nchw, (0, 2, 3, 1))
    pre1, code1 = d_net_forward(x_nhwc, params["model_1"])
    x_down = avg_pool_3x3_s2(x_nhwc)
    pre2, code2 = d_net_forward(x_down, params["model_2"])
    nchw = lambda t: jnp.transpose(t, (0, 3, 1, 2))
    return ([nchw(pre1), nchw(pre2)], [None, None], [nchw(code1), nchw(code2)])


# ---------------------------------------------------------------------------
# Deterministic synthetic parameters (nn.Conv2d OIHW layout)
# ---------------------------------------------------------------------------

def init_dnet_params(key, input_nc, ndf):
    ks = jax.random.split(key, 5)

    def conv_w(k, co, ci):
        return 0.02 * jax.random.normal(k, (co, ci, 4, 4), jnp.float32)

    c1 = min(ndf * 2, ndf * 8)
    c2 = min(c1 * 2, ndf * 8)
    return {
        "conv0_w": conv_w(ks[0], ndf, input_nc),
        "conv1_w": conv_w(ks[1], c1, ndf),
        "conv2_w": conv_w(ks[2], c2, c1),
        "pre_w": conv_w(ks[3], 1, c2),
        "pre_b": 0.02 * jax.random.normal(ks[4], (1,), jnp.float32),
    }


def init_params(key, input_nc=3, ndf=32):
    k1, k2 = jax.random.split(key)
    return {"model_1": init_dnet_params(k1, input_nc, ndf),
            "model_2": init_dnet_params(k2, input_nc, ndf // 2)}


# ---------------------------------------------------------------------------
# Pure-JAX reference (for validation)
# ---------------------------------------------------------------------------

def _ref_conv_block(x_nchw, w, bias, stride, use_norm, use_act):
    xp = jnp.pad(x_nchw, ((0, 0), (0, 0), (1, 1), (1, 1)), mode="reflect")
    y = lax.conv_general_dilated(
        xp, w, (stride, stride), "VALID",
        dimension_numbers=("NCHW", "OIHW", "NCHW"),
        precision=lax.Precision.HIGHEST)
    if bias is not None:
        y = y + bias.reshape(1, -1, 1, 1)
    if use_norm:
        mean = jnp.mean(y, axis=(2, 3), keepdims=True)
        var = jnp.mean(jnp.square(y - mean), axis=(2, 3), keepdims=True)
        y = (y - mean) * lax.rsqrt(var + 1e-5)
    if use_act:
        y = jnp.where(y > 0, y, 0.2 * y)
    return y


def _ref_avg_pool(x_nchw):
    xp = jnp.pad(x_nchw, ((0, 0), (0, 0), (1, 1), (1, 1)))
    s = lax.reduce_window(xp, 0.0, lax.add, (1, 1, 3, 3), (1, 1, 2, 2), "VALID")
    op = jnp.pad(jnp.ones_like(x_nchw[:, :1]), ((0, 0), (0, 0), (1, 1), (1, 1)))
    cnt = lax.reduce_window(op, 0.0, lax.add, (1, 1, 3, 3), (1, 1, 2, 2), "VALID")
    return s / cnt


def _ref_d_net(x, p):
    h = _ref_conv_block(x, p["conv0_w"], None, 2, False, True)
    h = _ref_conv_block(h, p["conv1_w"], None, 2, True, True)
    h = _ref_conv_block(h, p["conv2_w"], None, 2, True, True)
    pre = _ref_conv_block(h, p["pre_w"], p["pre_b"], 1, False, False)
    return pre, h


def reference_forward(x, params):
    pre1, code1 = _ref_d_net(x, params["model_1"])
    pre2, code2 = _ref_d_net(_ref_avg_pool(x), params["model_2"])
    return [pre1, pre2], [None, None], [code1, code2]


# ---------------------------------------------------------------------------

if __name__ == "__main__":
    key = jax.random.PRNGKey(0)
    pkey, xkey = jax.random.split(key)
    params = init_params(pkey, input_nc=3, ndf=32)
    x = jax.random.normal(xkey, (2, 3, 32, 32), jnp.float32)

    fwd = jax.jit(d_net_multi_forward)
    (pre1, pre2), (c_pre1, c_pre2), (code1, code2) = fwd(x, params)
    jax.block_until_ready((pre1, pre2, code1, code2))

    # Shape checks (match the PyTorch module at this input size).
    assert pre1.shape == (2, 1, 3, 3)
    assert pre2.shape == (2, 1, 1, 1)
    assert code1.shape == (2, 128, 4, 4)
    assert code2.shape == (2, 64, 2, 2)
    assert c_pre1 is None and c_pre2 is None

    # Numerical check against the pure-JAX reference.
    (rp1, rp2), _, (rc1, rc2) = reference_forward(x, params)
    for got, ref in ((pre1, rp1), (pre2, rp2), (code1, rc1), (code2, rc2)):
        err = float(jnp.max(jnp.abs(got - ref)))
        assert jnp.allclose(got, ref, atol=2e-3, rtol=2e-3), err

    print("KERNEL_OK")
</pallas_src>

<mosaic_0001>
module attributes {stable_mosaic.version = 11 : i64} {
  func.func @_avg_pool_kernel(%arg0: memref<9x512x3xf32, #tpu.memory_space<vmem>>, %arg1: memref<512x1xf32, #tpu.memory_space<vmem>>, %arg2: memref<512x3xf32, #tpu.memory_space<vmem>>) attributes {dimension_semantics = [], scalar_prefetch = 0 : i64, scratch_operands = 0 : i64, tpu.core_type = #tpu.core_type<tc>} {
    %c0 = arith.constant 0 : index
    %c0_0 = arith.constant 0 : index
    %c0_1 = arith.constant 0 : index
    %0 = vector.load %arg0[%c0, %c0_0, %c0_1] : memref<9x512x3xf32, #tpu.memory_space<vmem>>, vector<9x512x3xf32>
    %cst = arith.constant dense<0.000000e+00> : vector<512x3xf32>
    %1 = vector.multi_reduction <add>, %0, %cst [0] : vector<9x512x3xf32> to vector<512x3xf32>
    %c0_2 = arith.constant 0 : index
    %c0_3 = arith.constant 0 : index
    %2 = vector.load %arg1[%c0_2, %c0_3] : memref<512x1xf32, #tpu.memory_space<vmem>>, vector<512x1xf32>
    %3 = vector.broadcast %2 : vector<512x1xf32> to vector<512x3xf32>
    %4 = arith.mulf %1, %3 : vector<512x3xf32>
    %c0_4 = arith.constant 0 : index
    %c0_5 = arith.constant 0 : index
    %5 = vector.load %arg2[%c0_4, %c0_5] : memref<512x3xf32, #tpu.memory_space<vmem>>, vector<512x3xf32>
    tpu.vector_store %arg2[%c0_4, %c0_5], %4 {strides = array<i32>} : memref<512x3xf32, #tpu.memory_space<vmem>>, vector<512x3xf32>,
    return
  }
}

module attributes {stable_mosaic.version = 11 : i64} {
  func.func @_conv_block_kernel(%arg0: memref<128x48xf32, #tpu.memory_space<vmem>>, %arg1: memref<48x16xf32, #tpu.memory_space<vmem>>, %arg2: memref<1x16xf32, #tpu.memory_space<vmem>>, %arg3: memref<2x64x16xf32, #tpu.memory_space<vmem>>) attributes {dimension_semantics = [], scalar_prefetch = 0 : i64, scratch_operands = 0 : i64, tpu.core_type = #tpu.core_type<tc>} {
    %c0 = arith.constant 0 : index
    %c0_0 = arith.constant 0 : index
    %0 = vector.load %arg0[%c0, %c0_0] : memref<128x48xf32, #tpu.memory_space<vmem>>, vector<128x48xf32>
    %c0_1 = arith.constant 0 : index
    %c0_2 = arith.constant 0 : index
    %1 = vector.load %arg1[%c0_1, %c0_2] : memref<48x16xf32, #tpu.memory_space<vmem>>, vector<48x16xf32>
    %cst = arith.constant dense<0.000000e+00> : vector<128x16xf32>
    %2 = tpu.matmul %0, %1, %cst {dimension_numbers = #tpu.dot_dimension_numbers<[1], [0], [0], [1], [0, 0, 1, 1], [], []>} : vector<128x48xf32>, vector<48x16xf32>, vector<128x16xf32> -> vector<128x16xf32>
    %c0_3 = arith.constant 0 : index
    %c0_4 = arith.constant 0 : index
    %3 = vector.load %arg2[%c0_3, %c0_4] : memref<1x16xf32, #tpu.memory_space<vmem>>, vector<1x16xf32>
    %4 = vector.broadcast %3 : vector<1x16xf32> to vector<128x16xf32>
    %5 = arith.addf %2, %4 : vector<128x16xf32>
    %6 = vector.shape_cast %5 : vector<128x16xf32> to vector<2x64x16xf32>
    %cst_5 = arith.constant 0.000000e+00 : f32
    %7 = vector.broadcast %cst_5 : f32 to vector<2x64x16xf32>
    %8 = arith.cmpf ogt, %6, %7 : vector<2x64x16xf32>
    %cst_6 = arith.constant 2.000000e-01 : f32
    %9 = vector.broadcast %cst_6 : f32 to vector<2x64x16xf32>
    %10 = arith.mulf %9, %6 : vector<2x64x16xf32>
    %11 = arith.select %8, %6, %10 : vector<2x64x16xi1>, vector<2x64x16xf32>
    %c0_7 = arith.constant 0 : index
    %c0_8 = arith.constant 0 : index
    %c0_9 = arith.constant 0 : index
    %12 = vector.load %arg3[%c0_7, %c0_8, %c0_9] : memref<2x64x16xf32, #tpu.memory_space<vmem>>, vector<2x64x16xf32>
    tpu.vector_store %arg3[%c0_7, %c0_8, %c0_9], %11 {strides = array<i32>} : memref<2x64x16xf32, #tpu.memory_space<vmem>>, vector<2x64x16xf32>,
    return
  }
}

module attributes {stable_mosaic.version = 11 : i64} {
  func.func @_conv_block_kernel(%arg0: memref<32x256xf32, #tpu.memory_space<vmem>>, %arg1: memref<256x32xf32, #tpu.memory_space<vmem>>, %arg2: memref<1x32xf32, #tpu.memory_space<vmem>>, %arg3: memref<2x16x32xf32, #tpu.memory_space<vmem>>) attributes {dimension_semantics = [], scalar_prefetch = 0 : i64, scratch_operands = 0 : i64, tpu.core_type = #tpu.core_type<tc>} {
    %c0 = arith.constant 0 : index
    %c0_0 = arith.constant 0 : index
    %0 = vector.load %arg0[%c0, %c0_0] : memref<32x256xf32, #tpu.memory_space<vmem>>, vector<32x256xf32>
    %c0_1 = arith.constant 0 : index
    %c0_2 = arith.constant 0 : index
    %1 = vector.load %arg1[%c0_1, %c0_2] : memref<256x32xf32, #tpu.memory_space<vmem>>, vector<256x32xf32>
    %cst = arith.constant dense<0.000000e+00> : vector<32x32xf32>
    %2 = tpu.matmul %0, %1, %cst {dimension_numbers = #tpu.dot_dimension_numbers<[1], [0], [0], [1], [0, 0, 1, 1], [], []>} : vector<32x256xf32>, vector<256x32xf32>, vector<32x32xf32> -> vector<32x32xf32>
    %c0_3 = arith.constant 0 : index
    %c0_4 = arith.constant 0 : index
    %3 = vector.load %arg2[%c0_3, %c0_4] : memref<1x32xf32, #tpu.memory_space<vmem>>, vector<1x32xf32>
    %4 = vector.broadcast %3 : vector<1x32xf32> to vector<32x32xf32>
    %5 = arith.addf %2, %4 : vector<32x32xf32>
    %6 = vector.shape_cast %5 : vector<32x32xf32> to vector<2x16x32xf32>
    %cst_5 = arith.constant dense<0.000000e+00> : vector<2x32xf32>
    %7 = vector.multi_reduction <add>, %6, %cst_5 [1] : vector<2x16x32xf32> to vector<2x32xf32>
    %8 = vector.shape_cast %7 : vector<2x32xf32> to vector<2x1x32xf32>
    %cst_6 = arith.constant 1.600000e+01 : f32
    %9 = vector.broadcast %cst_6 : f32 to vector<2x1x32xf32>
    %10 = arith.divf %8, %9 : vector<2x1x32xf32>
    %11 = vector.broadcast %10 : vector<2x1x32xf32> to vector<2x16x32xf32>
    %12 = arith.subf %6, %11 : vector<2x16x32xf32>
    %13 = arith.mulf %12, %12 : vector<2x16x32xf32>
    %cst_7 = arith.constant dense<0.000000e+00> : vector<2x32xf32>
    %14 = vector.multi_reduction <add>, %13, %cst_7 [1] : vector<2x16x32xf32> to vector<2x32xf32>
    %15 = vector.shape_cast %14 : vector<2x32xf32> to vector<2x1x32xf32>
    %cst_8 = arith.constant 1.600000e+01 : f32
    %16 = vector.broadcast %cst_8 : f32 to vector<2x1x32xf32>
    %17 = arith.divf %15, %16 : vector<2x1x32xf32>
    %18 = vector.broadcast %10 : vector<2x1x32xf32> to vector<2x16x32xf32>
    %19 = arith.subf %6, %18 : vector<2x16x32xf32>
    %cst_9 = arith.constant 9.99999974E-6 : f32
    %20 = vector.broadcast %cst_9 : f32 to vector<2x1x32xf32>
    %21 = arith.addf %17, %20 : vector<2x1x32xf32>
    %22 = math.rsqrt %21 : vector<2x1x32xf32>
    %23 = vector.broadcast %22 : vector<2x1x32xf32> to vector<2x16x32xf32>
    %24 = arith.mulf %19, %23 : vector<2x16x32xf32>
    %cst_10 = arith.constant 0.000000e+00 : f32
    %25 = vector.broadcast %cst_10 : f32 to vector<2x16x32xf32>
    %26 = arith.cmpf ogt, %24, %25 : vector<2x16x32xf32>
    %cst_11 = arith.constant 2.000000e-01 : f32
    %27 = vector.broadcast %cst_11 : f32 to vector<2x16x32xf32>
    %28 = arith.mulf %27, %24 : vector<2x16x32xf32>
    %29 = arith.select %26, %24, %28 : vector<2x16x32xi1>, vector<2x16x32xf32>
    %c0_12 = arith.constant 0 : index
    %c0_13 = arith.constant 0 : index
    %c0_14 = arith.constant 0 : index
    %30 = vector.load %arg3[%c0_12, %c0_13, %c0_14] : memref<2x16x32xf32, #tpu.memory_space<vmem>>, vector<2x16x32xf32>
    tpu.vector_store %arg3[%c0_12, %c0_13, %c0_14], %29 {strides = array<i32>} : memref<2x16x32xf32, #tpu.memory_space<vmem>>, vector<2x16x32xf32>,
    return
  }
}

module attributes {stable_mosaic.version = 11 : i64} {
  func.func @_conv_block_kernel(%arg0: memref<8x512xf32, #tpu.memory_space<vmem>>, %arg1: memref<512x64xf32, #tpu.memory_space<vmem>>, %arg2: memref<1x64xf32, #tpu.memory_space<vmem>>, %arg3: memref<2x4x64xf32, #tpu.memory_space<vmem>>) attributes {dimension_semantics = [], scalar_prefetch = 0 : i64, scratch_operands = 0 : i64, tpu.core_type = #tpu.core_type<tc>} {
    %c0 = arith.constant 0 : index
    %c0_0 = arith.constant 0 : index
    %0 = vector.load %arg0[%c0, %c0_0] : memref<8x512xf32, #tpu.memory_space<vmem>>, vector<8x512xf32>
    %c0_1 = arith.constant 0 : index
    %c0_2 = arith.constant 0 : index
    %1 = vector.load %arg1[%c0_1, %c0_2] : memref<512x64xf32, #tpu.memory_space<vmem>>, vector<512x64xf32>
    %cst = arith.constant dense<0.000000e+00> : vector<8x64xf32>
    %2 = tpu.matmul %0, %1, %cst {dimension_numbers = #tpu.dot_dimension_numbers<[1], [0], [0], [1], [0, 0, 1, 1], [], []>} : vector<8x512xf32>, vector<512x64xf32>, vector<8x64xf32> -> vector<8x64xf32>
    %c0_3 = arith.constant 0 : index
    %c0_4 = arith.constant 0 : index
    %3 = vector.load %arg2[%c0_3, %c0_4] : memref<1x64xf32, #tpu.memory_space<vmem>>, vector<1x64xf32>
    %4 = vector.broadcast %3 : vector<1x64xf32> to vector<8x64xf32>
    %5 = arith.addf %2, %4 : vector<8x64xf32>
    %6 = vector.shape_cast %5 : vector<8x64xf32> to vector<2x4x64xf32>
    %cst_5 = arith.constant dense<0.000000e+00> : vector<2x64xf32>
    %7 = vector.multi_reduction <add>, %6, %cst_5 [1] : vector<2x4x64xf32> to vector<2x64xf32>
    %8 = vector.shape_cast %7 : vector<2x64xf32> to vector<2x1x64xf32>
    %cst_6 = arith.constant 4.000000e+00 : f32
    %9 = vector.broadcast %cst_6 : f32 to vector<2x1x64xf32>
    %10 = arith.divf %8, %9 : vector<2x1x64xf32>
    %11 = vector.broadcast %10 : vector<2x1x64xf32> to vector<2x4x64xf32>
    %12 = arith.subf %6, %11 : vector<2x4x64xf32>
    %13 = arith.mulf %12, %12 : vector<2x4x64xf32>
    %cst_7 = arith.constant dense<0.000000e+00> : vector<2x64xf32>
    %14 = vector.multi_reduction <add>, %13, %cst_7 [1] : vector<2x4x64xf32> to vector<2x64xf32>
    %15 = vector.shape_cast %14 : vector<2x64xf32> to vector<2x1x64xf32>
    %cst_8 = arith.constant 4.000000e+00 : f32
    %16 = vector.broadcast %cst_8 : f32 to vector<2x1x64xf32>
    %17 = arith.divf %15, %16 : vector<2x1x64xf32>
    %18 = vector.broadcast %10 : vector<2x1x64xf32> to vector<2x4x64xf32>
    %19 = arith.subf %6, %18 : vector<2x4x64xf32>
    %cst_9 = arith.constant 9.99999974E-6 : f32
    %20 = vector.broadcast %cst_9 : f32 to vector<2x1x64xf32>
    %21 = arith.addf %17, %20 : vector<2x1x64xf32>
    %22 = math.rsqrt %21 : vector<2x1x64xf32>
    %23 = vector.broadcast %22 : vector<2x1x64xf32> to vector<2x4x64xf32>
    %24 = arith.mulf %19, %23 : vector<2x4x64xf32>
    %cst_10 = arith.constant 0.000000e+00 : f32
    %25 = vector.broadcast %cst_10 : f32 to vector<2x4x64xf32>
    %26 = arith.cmpf ogt, %24, %25 : vector<2x4x64xf32>
    %cst_11 = arith.constant 2.000000e-01 : f32
    %27 = vector.broadcast %cst_11 : f32 to vector<2x4x64xf32>
    %28 = arith.mulf %27, %24 : vector<2x4x64xf32>
    %29 = arith.select %26, %24, %28 : vector<2x4x64xi1>, vector<2x4x64xf32>
    %c0_12 = arith.constant 0 : index
    %c0_13 = arith.constant 0 : index
    %c0_14 = arith.constant 0 : index
    %30 = vector.load %arg3[%c0_12, %c0_13, %c0_14] : memref<2x4x64xf32, #tpu.memory_space<vmem>>, vector<2x4x64xf32>
    tpu.vector_store %arg3[%c0_12, %c0_13, %c0_14], %29 {strides = array<i32>} : memref<2x4x64xf32, #tpu.memory_space<vmem>>, vector<2x4x64xf32>,
    return
  }
}

module attributes {stable_mosaic.version = 11 : i64} {
  func.func @_conv_block_kernel(%arg0: memref<2x1024xf32, #tpu.memory_space<vmem>>, %arg1: memref<1024x1xf32, #tpu.memory_space<vmem>>, %arg2: memref<1x1xf32, #tpu.memory_space<vmem>>, %arg3: memref<2x1x1xf32, #tpu.memory_space<vmem>>) attributes {dimension_semantics = [], scalar_prefetch = 0 : i64, scratch_operands = 0 : i64, tpu.core_type = #tpu.core_type<tc>} {
    %c0 = arith.constant 0 : index
    %c0_0 = arith.constant 0 : index
    %0 = vector.load %arg0[%c0, %c0_0] : memref<2x1024xf32, #tpu.memory_space<vmem>>, vector<2x1024xf32>
    %c0_1 = arith.constant 0 : index
    %c0_2 = arith.constant 0 : index
    %1 = vector.load %arg1[%c0_1, %c0_2] : memref<1024x1xf32, #tpu.memory_space<vmem>>, vector<1024x1xf32>
    %cst = arith.constant dense<0.000000e+00> : vector<2x1xf32>
    %2 = tpu.matmul %0, %1, %cst {dimension_numbers = #tpu.dot_dimension_numbers<[1], [0], [0], [1], [0, 0, 1, 1], [], []>} : vector<2x1024xf32>, vector<1024x1xf32>, vector<2x1xf32> -> vector<2x1xf32>
    %c0_3 = arith.constant 0 : index
    %c0_4 = arith.constant 0 : index
    %3 = vector.load %arg2[%c0_3, %c0_4] : memref<1x1xf32, #tpu.memory_space<vmem>>, vector<1x1xf32>
    %4 = vector.broadcast %3 : vector<1x1xf32> to vector<2x1xf32>
    %5 = arith.addf %2, %4 : vector<2x1xf32>
    %6 = vector.shape_cast %5 : vector<2x1xf32> to vector<2x1x1xf32>
    %c0_5 = arith.constant 0 : index
    %c0_6 = arith.constant 0 : index
    %c0_7 = arith.constant 0 : index
    %7 = vector.load %arg3[%c0_5, %c0_6, %c0_7] : memref<2x1x1xf32, #tpu.memory_space<vmem>>, vector<2x1x1xf32>
    tpu.vector_store %arg3[%c0_5, %c0_6, %c0_7], %6 {strides = array<i32>} : memref<2x1x1xf32, #tpu.memory_space<vmem>>, vector<2x1x1xf32>,
    return
  }
}

module attributes {stable_mosaic.version = 11 : i64} {
  func.func @_conv_block_kernel(%arg0: memref<512x48xf32, #tpu.memory_space<vmem>>, %arg1: memref<48x32xf32, #tpu.memory_space<vmem>>, %arg2: memref<1x32xf32, #tpu.memory_space<vmem>>, %arg3: memref<2x256x32xf32, #tpu.memory_space<vmem>>) attributes {dimension_semantics = [], scalar_prefetch = 0 : i64, scratch_operands = 0 : i64, tpu.core_type = #tpu.core_type<tc>} {
    %c0 = arith.constant 0 : index
    %c0_0 = arith.constant 0 : index
    %0 = vector.load %arg0[%c0, %c0_0] : memref<512x48xf32, #tpu.memory_space<vmem>>, vector<512x48xf32>
    %c0_1 = arith.constant 0 : index
    %c0_2 = arith.constant 0 : index
    %1 = vector.load %arg1[%c0_1, %c0_2] : memref<48x32xf32, #tpu.memory_space<vmem>>, vector<48x32xf32>
    %cst = arith.constant dense<0.000000e+00> : vector<512x32xf32>
    %2 = tpu.matmul %0, %1, %cst {dimension_numbers = #tpu.dot_dimension_numbers<[1], [0], [0], [1], [0, 0, 1, 1], [], []>} : vector<512x48xf32>, vector<48x32xf32>, vector<512x32xf32> -> vector<512x32xf32>
    %c0_3 = arith.constant 0 : index
    %c0_4 = arith.constant 0 : index
    %3 = vector.load %arg2[%c0_3, %c0_4] : memref<1x32xf32, #tpu.memory_space<vmem>>, vector<1x32xf32>
    %4 = vector.broadcast %3 : vector<1x32xf32> to vector<512x32xf32>
    %5 = arith.addf %2, %4 : vector<512x32xf32>
    %6 = vector.shape_cast %5 : vector<512x32xf32> to vector<2x256x32xf32>
    %cst_5 = arith.constant 0.000000e+00 : f32
    %7 = vector.broadcast %cst_5 : f32 to vector<2x256x32xf32>
    %8 = arith.cmpf ogt, %6, %7 : vector<2x256x32xf32>
    %cst_6 = arith.constant 2.000000e-01 : f32
    %9 = vector.broadcast %cst_6 : f32 to vector<2x256x32xf32>
    %10 = arith.mulf %9, %6 : vector<2x256x32xf32>
    %11 = arith.select %8, %6, %10 : vector<2x256x32xi1>, vector<2x256x32xf32>
    %c0_7 = arith.constant 0 : index
    %c0_8 = arith.constant 0 : index
    %c0_9 = arith.constant 0 : index
    %12 = vector.load %arg3[%c0_7, %c0_8, %c0_9] : memref<2x256x32xf32, #tpu.memory_space<vmem>>, vector<2x256x32xf32>
    tpu.vector_store %arg3[%c0_7, %c0_8, %c0_9], %11 {strides = array<i32>} : memref<2x256x32xf32, #tpu.memory_space<vmem>>, vector<2x256x32xf32>,
    return
  }
}

module attributes {stable_mosaic.version = 11 : i64} {
  func.func @_conv_block_kernel(%arg0: memref<128x512xf32, #tpu.memory_space<vmem>>, %arg1: memref<512x64xf32, #tpu.memory_space<vmem>>, %arg2: memref<1x64xf32, #tpu.memory_space<vmem>>, %arg3: memref<2x64x64xf32, #tpu.memory_space<vmem>>) attributes {dimension_semantics = [], scalar_prefetch = 0 : i64, scratch_operands = 0 : i64, tpu.core_type = #tpu.core_type<tc>} {
    %c0 = arith.constant 0 : index
    %c0_0 = arith.constant 0 : index
    %0 = vector.load %arg0[%c0, %c0_0] : memref<128x512xf32, #tpu.memory_space<vmem>>, vector<128x512xf32>
    %c0_1 = arith.constant 0 : index
    %c0_2 = arith.constant 0 : index
    %1 = vector.load %arg1[%c0_1, %c0_2] : memref<512x64xf32, #tpu.memory_space<vmem>>, vector<512x64xf32>
    %cst = arith.constant dense<0.000000e+00> : vector<128x64xf32>
    %2 = tpu.matmul %0, %1, %cst {dimension_numbers = #tpu.dot_dimension_numbers<[1], [0], [0], [1], [0, 0, 1, 1], [], []>} : vector<128x512xf32>, vector<512x64xf32>, vector<128x64xf32> -> vector<128x64xf32>
    %c0_3 = arith.constant 0 : index
    %c0_4 = arith.constant 0 : index
    %3 = vector.load %arg2[%c0_3, %c0_4] : memref<1x64xf32, #tpu.memory_space<vmem>>, vector<1x64xf32>
    %4 = vector.broadcast %3 : vector<1x64xf32> to vector<128x64xf32>
    %5 = arith.addf %2, %4 : vector<128x64xf32>
    %6 = vector.shape_cast %5 : vector<128x64xf32> to vector<2x64x64xf32>
    %cst_5 = arith.constant dense<0.000000e+00> : vector<2x64xf32>
    %7 = vector.multi_reduction <add>, %6, %cst_5 [1] : vector<2x64x64xf32> to vector<2x64xf32>
    %8 = vector.shape_cast %7 : vector<2x64xf32> to vector<2x1x64xf32>
    %cst_6 = arith.constant 6.400000e+01 : f32
    %9 = vector.broadcast %cst_6 : f32 to vector<2x1x64xf32>
    %10 = arith.divf %8, %9 : vector<2x1x64xf32>
    %11 = vector.broadcast %10 : vector<2x1x64xf32> to vector<2x64x64xf32>
    %12 = arith.subf %6, %11 : vector<2x64x64xf32>
    %13 = arith.mulf %12, %12 : vector<2x64x64xf32>
    %cst_7 = arith.constant dense<0.000000e+00> : vector<2x64xf32>
    %14 = vector.multi_reduction <add>, %13, %cst_7 [1] : vector<2x64x64xf32> to vector<2x64xf32>
    %15 = vector.shape_cast %14 : vector<2x64xf32> to vector<2x1x64xf32>
    %cst_8 = arith.constant 6.400000e+01 : f32
    %16 = vector.broadcast %cst_8 : f32 to vector<2x1x64xf32>
    %17 = arith.divf %15, %16 : vector<2x1x64xf32>
    %18 = vector.broadcast %10 : vector<2x1x64xf32> to vector<2x64x64xf32>
    %19 = arith.subf %6, %18 : vector<2x64x64xf32>
    %cst_9 = arith.constant 9.99999974E-6 : f32
    %20 = vector.broadcast %cst_9 : f32 to vector<2x1x64xf32>
    %21 = arith.addf %17, %20 : vector<2x1x64xf32>
    %22 = math.rsqrt %21 : vector<2x1x64xf32>
    %23 = vector.broadcast %22 : vector<2x1x64xf32> to vector<2x64x64xf32>
    %24 = arith.mulf %19, %23 : vector<2x64x64xf32>
    %cst_10 = arith.constant 0.000000e+00 : f32
    %25 = vector.broadcast %cst_10 : f32 to vector<2x64x64xf32>
    %26 = arith.cmpf ogt, %24, %25 : vector<2x64x64xf32>
    %cst_11 = arith.constant 2.000000e-01 : f32
    %27 = vector.broadcast %cst_11 : f32 to vector<2x64x64xf32>
    %28 = arith.mulf %27, %24 : vector<2x64x64xf32>
    %29 = arith.select %26, %24, %28 : vector<2x64x64xi1>, vector<2x64x64xf32>
    %c0_12 = arith.constant 0 : index
    %c0_13 = arith.constant 0 : index
    %c0_14 = arith.constant 0 : index
    %30 = vector.load %arg3[%c0_12, %c0_13, %c0_14] : memref<2x64x64xf32, #tpu.memory_space<vmem>>, vector<2x64x64xf32>
    tpu.vector_store %arg3[%c0_12, %c0_13, %c0_14], %29 {strides = array<i32>} : memref<2x64x64xf32, #tpu.memory_space<vmem>>, vector<2x64x64xf32>,
    return
  }
}

module attributes {stable_mosaic.version = 11 : i64} {
  func.func @_conv_block_kernel(%arg0: memref<32x1024xf32, #tpu.memory_space<vmem>>, %arg1: memref<1024x128xf32, #tpu.memory_space<vmem>>, %arg2: memref<1x128xf32, #tpu.memory_space<vmem>>, %arg3: memref<2x16x128xf32, #tpu.memory_space<vmem>>) attributes {dimension_semantics = [], scalar_prefetch = 0 : i64, scratch_operands = 0 : i64, tpu.core_type = #tpu.core_type<tc>} {
    %c0 = arith.constant 0 : index
    %c0_0 = arith.constant 0 : index
    %0 = vector.load %arg0[%c0, %c0_0] : memref<32x1024xf32, #tpu.memory_space<vmem>>, vector<32x1024xf32>
    %c0_1 = arith.constant 0 : index
    %c0_2 = arith.constant 0 : index
    %1 = vector.load %arg1[%c0_1, %c0_2] : memref<1024x128xf32, #tpu.memory_space<vmem>>, vector<1024x128xf32>
    %cst = arith.constant dense<0.000000e+00> : vector<32x128xf32>
    %2 = tpu.matmul %0, %1, %cst {dimension_numbers = #tpu.dot_dimension_numbers<[1], [0], [0], [1], [0, 0, 1, 1], [], []>} : vector<32x1024xf32>, vector<1024x128xf32>, vector<32x128xf32> -> vector<32x128xf32>
    %c0_3 = arith.constant 0 : index
    %c0_4 = arith.constant 0 : index
    %3 = vector.load %arg2[%c0_3, %c0_4] : memref<1x128xf32, #tpu.memory_space<vmem>>, vector<1x128xf32>
    %4 = vector.broadcast %3 : vector<1x128xf32> to vector<32x128xf32>
    %5 = arith.addf %2, %4 : vector<32x128xf32>
    %6 = vector.shape_cast %5 : vector<32x128xf32> to vector<2x16x128xf32>
    %cst_5 = arith.constant dense<0.000000e+00> : vector<2x128xf32>
    %7 = vector.multi_reduction <add>, %6, %cst_5 [1] : vector<2x16x128xf32> to vector<2x128xf32>
    %8 = vector.shape_cast %7 : vector<2x128xf32> to vector<2x1x128xf32>
    %cst_6 = arith.constant 1.600000e+01 : f32
    %9 = vector.broadcast %cst_6 : f32 to vector<2x1x128xf32>
    %10 = arith.divf %8, %9 : vector<2x1x128xf32>
    %11 = vector.broadcast %10 : vector<2x1x128xf32> to vector<2x16x128xf32>
    %12 = arith.subf %6, %11 : vector<2x16x128xf32>
    %13 = arith.mulf %12, %12 : vector<2x16x128xf32>
    %cst_7 = arith.constant dense<0.000000e+00> : vector<2x128xf32>
    %14 = vector.multi_reduction <add>, %13, %cst_7 [1] : vector<2x16x128xf32> to vector<2x128xf32>
    %15 = vector.shape_cast %14 : vector<2x128xf32> to vector<2x1x128xf32>
    %cst_8 = arith.constant 1.600000e+01 : f32
    %16 = vector.broadcast %cst_8 : f32 to vector<2x1x128xf32>
    %17 = arith.divf %15, %16 : vector<2x1x128xf32>
    %18 = vector.broadcast %10 : vector<2x1x128xf32> to vector<2x16x128xf32>
    %19 = arith.subf %6, %18 : vector<2x16x128xf32>
    %cst_9 = arith.constant 9.99999974E-6 : f32
    %20 = vector.broadcast %cst_9 : f32 to vector<2x1x128xf32>
    %21 = arith.addf %17, %20 : vector<2x1x128xf32>
    %22 = math.rsqrt %21 : vector<2x1x128xf32>
    %23 = vector.broadcast %22 : vector<2x1x128xf32> to vector<2x16x128xf32>
    %24 = arith.mulf %19, %23 : vector<2x16x128xf32>
    %cst_10 = arith.constant 0.000000e+00 : f32
    %25 = vector.broadcast %cst_10 : f32 to vector<2x16x128xf32>
    %26 = arith.cmpf ogt, %24, %25 : vector<2x16x128xf32>
    %cst_11 = arith.constant 2.000000e-01 : f32
    %27 = vector.broadcast %cst_11 : f32 to vector<2x16x128xf32>
    %28 = arith.mulf %27, %24 : vector<2x16x128xf32>
    %29 = arith.select %26, %24, %28 : vector<2x16x128xi1>, vector<2x16x128xf32>
    %c0_12 = arith.constant 0 : index
    %c0_13 = arith.constant 0 : index
    %c0_14 = arith.constant 0 : index
    %30 = vector.load %arg3[%c0_12, %c0_13, %c0_14] : memref<2x16x128xf32, #tpu.memory_space<vmem>>, vector<2x16x128xf32>
    tpu.vector_store %arg3[%c0_12, %c0_13, %c0_14], %29 {strides = array<i32>} : memref<2x16x128xf32, #tpu.memory_space<vmem>>, vector<2x16x128xf32>,
    return
  }
}

module attributes {stable_mosaic.version = 11 : i64} {
  func.func @_conv_block_kernel(%arg0: memref<18x2048xf32, #tpu.memory_space<vmem>>, %arg1: memref<2048x1xf32, #tpu.memory_space<vmem>>, %arg2: memref<1x1xf32, #tpu.memory_space<vmem>>, %arg3: memref<2x9x1xf32, #tpu.memory_space<vmem>>) attributes {dimension_semantics = [], scalar_prefetch = 0 : i64, scratch_operands = 0 : i64, tpu.core_type = #tpu.core_type<tc>} {
    %c0 = arith.constant 0 : index
    %c0_0 = arith.constant 0 : index
    %0 = vector.load %arg0[%c0, %c0_0] : memref<18x2048xf32, #tpu.memory_space<vmem>>, vector<18x2048xf32>
    %c0_1 = arith.constant 0 : index
    %c0_2 = arith.constant 0 : index
    %1 = vector.load %arg1[%c0_1, %c0_2] : memref<2048x1xf32, #tpu.memory_space<vmem>>, vector<2048x1xf32>
    %cst = arith.constant dense<0.000000e+00> : vector<18x1xf32>
    %2 = tpu.matmul %0, %1, %cst {dimension_numbers = #tpu.dot_dimension_numbers<[1], [0], [0], [1], [0, 0, 1, 1], [], []>} : vector<18x2048xf32>, vector<2048x1xf32>, vector<18x1xf32> -> vector<18x1xf32>
    %c0_3 = arith.constant 0 : index
    %c0_4 = arith.constant 0 : index
    %3 = vector.load %arg2[%c0_3, %c0_4] : memref<1x1xf32, #tpu.memory_space<vmem>>, vector<1x1xf32>
    %4 = vector.broadcast %3 : vector<1x1xf32> to vector<18x1xf32>
    %5 = arith.addf %2, %4 : vector<18x1xf32>
    %6 = vector.shape_cast %5 : vector<18x1xf32> to vector<2x9x1xf32>
    %c0_5 = arith.constant 0 : index
    %c0_6 = arith.constant 0 : index
    %c0_7 = arith.constant 0 : index
    %7 = vector.load %arg3[%c0_5, %c0_6, %c0_7] : memref<2x9x1xf32, #tpu.memory_space<vmem>>, vector<2x9x1xf32>
    tpu.vector_store %arg3[%c0_5, %c0_6, %c0_7], %6 {strides = array<i32>} : memref<2x9x1xf32, #tpu.memory_space<vmem>>, vector<2x9x1xf32>,
    return
  }
}

</mosaic_0001>

<bundles_post_ra>
// kernel: d_net_multi_forward.14
= control target key start
LH: loop header
LB: loop body
LE: loop exit
PB: predicated region body
PF: predicated region fallthrough
CT: control target
= control target key end

     0   :  { %vm43_vm0 = vcmask 392192   ;;  %vm285_vm1 = vcmask 130048   ;;  %s586_s1 = inlined_call_operand.vmem [shape: f32[48,16], index: 1, kind: input, shape index: {}]   ;;  %s587_s0 = inlined_call_operand.vmem [shape: f32[128,48], index: 0, kind: input, shape index: {}]   ;;  %s588_s2 = inlined_call_operand.vmem [shape: f32[1,16], index: 2, kind: input, shape index: {}]   ;;  %s589_s3 = inlined_call_operand.vmem [shape: f32[2,64,16], index: 3, kind: output, shape index: {}]  }
   0x1   :  { %v30_v0 = vld [vmem:[%s586_s1] sm:$0xff]  ;;  %v31_v1 = vld [vmem:[%s586_s1 + $0x8] sm:$0xff]  ;;  %v32_v2 = vld [vmem:[%s586_s1 + $0x10] sm:$0xff] }
   0x2   :  { %v381_v3 = vpack.c.bf16 %v31_v1, %v30_v0  ;;  %v33_v4 = vld [vmem:[%s586_s1 + $0x18] sm:$0xff]  ;;  %v34_v6 = vld [vmem:[%s586_s1 + $0x20] sm:$0xff]  ;;  %v35_v7 = vld [vmem:[%s586_s1 + $0x28] sm:$0xff] }
   0x3   :  { %v385_v5 = vpack.c.bf16 %v33_v4, %v32_v2  ;;  %v14_v8 = vld [vmem:[%s587_s0] sm:$0xff]  ;;  %v389_v10 = vpack.c.bf16 %v35_v7, %v34_v6  ;;  %v15_v11 = vld [vmem:[%s587_s0 + $0x8] sm:$0xff]  ;;  %v16_v13 = vld [vmem:[%s587_s0 + $0x10] sm:$0xff] }
   0x4   :  { %382 = vmatprep.subr.bf16.mxu0 %v381_v3  ;;  %393 = vmatprep.subr.bf16.mxu1 %v381_v3  ;;  %v22_v9 = vld [vmem:[%s587_s0 + $0x40] sm:$0xff]  ;;  %v23_v12 = vld [vmem:[%s587_s0 + $0x48] sm:$0xff]  ;;  %v24_v14 = vld [vmem:[%s587_s0 + $0x50] sm:$0xff] }
   0x5   :  { %384 = vmatpush3.bf16.msra.mxu0 %v381_v3  ;;  %396 = vmatpush3.bf16.msra.mxu1 %v381_v3  ;;  %v17_v15 = vld [vmem:[%s587_s0 + $0x18] sm:$0xff]  ;;  %v18_v17 = vld [vmem:[%s587_s0 + $0x20] sm:$0xff]  ;;  %v19_v19 = vld [vmem:[%s587_s0 + $0x28] sm:$0xff] }
   0x6   :  { %386 = vmatprep.subr.bf16.mxu0 %v385_v5  ;;  %394 = vmatprep.subr.bf16.mxu1 %v385_v5  ;;  %v25_v16 = vld [vmem:[%s587_s0 + $0x58] sm:$0xff]  ;;  %v26_v18 = vld [vmem:[%s587_s0 + $0x60] sm:$0xff]  ;;  %v27_v20 = vld [vmem:[%s587_s0 + $0x68] sm:$0xff] }
   0x7   :  { %357 = vmatprep.mubr.msk.f32.mxu0 %vm43_vm0, %v14_v8  ;;  %369 = vmatprep.mubr.msk.f32.mxu1 %vm43_vm0, %v22_v9  ;;  %v20_v21 = vld [vmem:[%s587_s0 + $0x30] sm:$0xff]  ;;  %v21_v23 = vld [vmem:[%s587_s0 + $0x38] sm:$0xff]  ;;  %v504_v25 = vld [vmem:[%s588_s2] ss:$0 sm:$0xff] }
   0x8   :  { %v28_v22 = vld [vmem:[%s587_s0 + $0x70] sm:$0xff]  ;;  %v29_v24 = vld [vmem:[%s587_s0 + $0x78] sm:$0xff] }
   0x9   :  { %388 = vmatpush3.bf16.msra.mxu0 %v385_v5  ;;  %397 = vmatpush3.bf16.msra.mxu1 %v385_v5 }
   0xa   :  { %390 = vmatprep.subr.bf16.mxu0 %v389_v10  ;;  %395 = vmatprep.subr.bf16.mxu1 %v389_v10 }
   0xd   :  { %392 = vmatpush3.bf16.msra.mxu0 %v389_v10  ;;  %398 = vmatpush3.bf16.msra.mxu1 %v389_v10 }
  0x10   :  { %358 = vmatmul.mubr.msk.f32.vlgmr.msra.gmra.mrb[0].mxu0 %vm43_vm0, %v15_v11  ;;  %370 = vmatmul.mubr.msk.f32.vlgmr.msra.gmra.mrb[0].mxu1 %vm43_vm0, %v23_v12 }
  0x11   :  { %360 = vmatprep.mubr.msk.f32.mxu0 %vm43_vm0, %v16_v13  ;;  %372 = vmatprep.mubr.msk.f32.mxu1 %vm43_vm0, %v24_v14 }
  0x14   :  { %361 = vmatmul.mubr.msk.f32.gmra.mrb[2].mxu0 %vm43_vm0, %v17_v15  ;;  %373 = vmatmul.mubr.msk.f32.gmra.mrb[2].mxu1 %vm43_vm0, %v25_v16 }
  0x15   :  { %363 = vmatprep.mubr.msk.f32.mxu0 %vm43_vm0, %v18_v17  ;;  %375 = vmatprep.mubr.msk.f32.mxu1 %vm43_vm0, %v26_v18 }
  0x18   :  { %364 = vmatmul.mubr.msk.f32.gmra.mrb[4].mxu0 %vm43_vm0, %v19_v19  ;;  %376 = vmatmul.mubr.msk.f32.gmra.mrb[4].mxu1 %vm43_vm0, %v27_v20 }
  0x19   :  { %366 = vmatprep.mubr.msk.f32.mxu0 %vm43_vm0, %v20_v21  ;;  %378 = vmatprep.mubr.msk.f32.mxu1 %vm43_vm0, %v28_v22 }
  0x1c   :  { %367 = vmatmul.mubr.msk.f32.gmra.mrb[6].mxu0 %vm43_vm0, %v21_v23  ;;  %379 = vmatmul.mubr.msk.f32.gmra.mrb[6].mxu1 %vm43_vm0, %v29_v24 }
  0xe3   :  { %v359_v26 = vpop.f32.mrb[0].mxu0  ;;  %v371_v27 = vpop.f32.mrb[0].mxu1 }
  0xe4   :  { %v164_v28 = vadd.f32 %v359_v26, %v504_v25  ;;  %v204_v29 = vadd.f32 %v371_v27, %v504_v25  ;;  %v158_v30 = vpop.f32.mrb[1].mxu0  ;;  %v198_v31 = vpop.f32.mrb[1].mxu1 }
  0xe5   :  { %v159_v32 = vadd.f32 %v504_v25, %v158_v30  ;;  %v199_v33 = vadd.f32 %v504_v25, %v198_v31 }
  0xe6   :  { %vm238_vm2 = vcmp.gt.f32.partialorder %v164_v28, 0.0  ;;  %v254_v34 = vmul.f32 0.2, %v164_v28  ;;  %vm246_vm3 = vcmp.gt.f32.partialorder %v204_v29, 0.0  ;;  %v262_v35 = vmul.f32 0.2, %v204_v29 }
  0xe7   :  { %vm237_vm4 = vcmp.gt.f32.partialorder %v159_v32, 0.0  ;;  %v253_v36 = vmul.f32 0.2, %v159_v32  ;;  %vm245_vm5 = vcmp.gt.f32.partialorder %v199_v33, 0.0  ;;  %v261_v37 = vmul.f32 0.2, %v199_v33 }
  0xe8   :  { %v270_v38 = vsel %vm238_vm2, %v164_v28, %v254_v34  ;;  %v278_v39 = vsel %vm246_vm3, %v204_v29, %v262_v35  ;;  %v362_v40 = vpop.f32.mrb[2].mxu0  ;;  %v374_v41 = vpop.f32.mrb[2].mxu1 }
  0xe9   :  { %287 = vst.msk [vmem:[%s589_s3 + $0x8] sm:$0xff] %vm285_vm1, %v270_v38  ;;  %295 = vst.msk [vmem:[%s589_s3 + $0x48] sm:$0xff] %vm285_vm1, %v278_v39  ;;  %v269_v42 = vsel %vm237_vm4, %v159_v32, %v253_v36  ;;  %v277_v43 = vsel %vm245_vm5, %v199_v33, %v261_v37  ;;  %v174_v44 = vadd.f32 %v362_v40, %v504_v25  ;;  %v168_v46 = vpop.f32.mrb[3].mxu0  ;;  %v208_v47 = vpop.f32.mrb[3].mxu1 }
  0xea   :  { %v214_v45 = vadd.f32 %v374_v41, %v504_v25  ;;  %286 = vst.msk [vmem:[%s589_s3] sm:$0xff] %vm285_vm1, %v269_v42  ;;  %294 = vst.msk [vmem:[%s589_s3 + $0x40] sm:$0xff] %vm285_vm1, %v277_v43  ;;  %v169_v48 = vadd.f32 %v504_v25, %v168_v46  ;;  %v209_v49 = vadd.f32 %v504_v25, %v208_v47 }
  0xeb   :  { %vm240_vm6 = vcmp.gt.f32.partialorder %v174_v44, 0.0  ;;  %v256_v50 = vmul.f32 0.2, %v174_v44  ;;  %v365_v56 = vpop.f32.mrb[4].mxu0  ;;  %v377_v57 = vpop.f32.mrb[4].mxu1 }
  0xec   :  { %vm248_vm7 = vcmp.gt.f32.partialorder %v214_v45, 0.0  ;;  %v264_v51 = vmul.f32 0.2, %v214_v45  ;;  %vm239_vm8 = vcmp.gt.f32.partialorder %v169_v48, 0.0  ;;  %v255_v52 = vmul.f32 0.2, %v169_v48 }
  0xed   :  { %vm247_vm9 = vcmp.gt.f32.partialorder %v209_v49, 0.0  ;;  %v263_v53 = vmul.f32 0.2, %v209_v49  ;;  %v272_v54 = vsel %vm240_vm6, %v174_v44, %v256_v50  ;;  %v184_v60 = vadd.f32 %v365_v56, %v504_v25  ;;  %v178_v62 = vpop.f32.mrb[5].mxu0  ;;  %v218_v63 = vpop.f32.mrb[5].mxu1 }
  0xee   :  { %v280_v55 = vsel %vm248_vm7, %v214_v45, %v264_v51  ;;  %289 = vst.msk [vmem:[%s589_s3 + $0x18] sm:$0xff] %vm285_vm1, %v272_v54  ;;  %v271_v58 = vsel %vm239_vm8, %v169_v48, %v255_v52  ;;  %v224_v61 = vadd.f32 %v377_v57, %v504_v25  ;;  %v179_v0 = vadd.f32 %v504_v25, %v178_v62 }
  0xef   :  { %297 = vst.msk [vmem:[%s589_s3 + $0x58] sm:$0xff] %vm285_vm1, %v280_v55  ;;  %v279_v59 = vsel %vm247_vm9, %v209_v49, %v263_v53  ;;  %288 = vst.msk [vmem:[%s589_s3 + $0x10] sm:$0xff] %vm285_vm1, %v271_v58  ;;  %v219_v1 = vadd.f32 %v504_v25, %v218_v63  ;;  %v368_v2 = vpop.f32.mrb[6].mxu0  ;;  %v380_v3 = vpop.f32.mrb[6].mxu1  ;;  %vm242_vm10 = vcmp.gt.f32.partialorder %v184_v60, 0.0 }
  0xf0   :  { %296 = vst.msk [vmem:[%s589_s3 + $0x50] sm:$0xff] %vm285_vm1, %v279_v59  ;;  %v258_v4 = vmul.f32 0.2, %v184_v60  ;;  %vm250_vm11 = vcmp.gt.f32.partialorder %v224_v61, 0.0  ;;  %v266_v5 = vmul.f32 0.2, %v224_v61  ;;  %v194_v10 = vadd.f32 %v368_v2, %v504_v25 }
  0xf1   :  { %vm241_vm12 = vcmp.gt.f32.partialorder %v179_v0, 0.0  ;;  %v257_v6 = vmul.f32 0.2, %v179_v0  ;;  %vm249_vm13 = vcmp.gt.f32.partialorder %v219_v1, 0.0  ;;  %v265_v7 = vmul.f32 0.2, %v219_v1 }
  0xf2   :  { %v274_v8 = vsel %vm242_vm10, %v184_v60, %v258_v4  ;;  %v282_v9 = vsel %vm250_vm11, %v224_v61, %v266_v5  ;;  %v234_v11 = vadd.f32 %v380_v3, %v504_v25  ;;  %v188_v12 = vpop.f32.mrb[7].mxu0  ;;  %v228_v13 = vpop.f32.mrb[7].mxu1  ;;  %vm244_vm14 = vcmp.gt.f32.partialorder %v194_v10, 0.0 }
  0xf3   :  { %291 = vst.msk [vmem:[%s589_s3 + $0x28] sm:$0xff] %vm285_vm1, %v274_v8  ;;  %299 = vst.msk [vmem:[%s589_s3 + $0x68] sm:$0xff] %vm285_vm1, %v282_v9  ;;  %v273_v14 = vsel %vm241_vm12, %v179_v0, %v257_v6  ;;  %v281_v15 = vsel %vm249_vm13, %v219_v1, %v265_v7  ;;  %v189_v16 = vadd.f32 %v504_v25, %v188_v12  ;;  %v260_v18 = vmul.f32 0.2, %v194_v10 }
  0xf4   :  { %v229_v17 = vadd.f32 %v504_v25, %v228_v13  ;;  %290 = vst.msk [vmem:[%s589_s3 + $0x20] sm:$0xff] %vm285_vm1, %v273_v14  ;;  %298 = vst.msk [vmem:[%s589_s3 + $0x60] sm:$0xff] %vm285_vm1, %v281_v15  ;;  %vm252_vm15 = vcmp.gt.f32.partialorder %v234_v11, 0.0  ;;  %v268_v19 = vmul.f32 0.2, %v234_v11 }
  0xf5   :  { %vm243_vm0 = vcmp.gt.f32.partialorder %v189_v16, 0.0  ;;  %v259_v20 = vmul.f32 0.2, %v189_v16  ;;  %v276_v22 = vsel %vm244_vm14, %v194_v10, %v260_v18 }
  0xf6   :  { %vm251_vm2 = vcmp.gt.f32.partialorder %v229_v17, 0.0  ;;  %v267_v21 = vmul.f32 0.2, %v229_v17  ;;  %v284_v23 = vsel %vm252_vm15, %v234_v11, %v268_v19  ;;  %293 = vst.msk [vmem:[%s589_s3 + $0x38] sm:$0xff] %vm285_vm1, %v276_v22 }
  0xf7   :  { %301 = vst.msk [vmem:[%s589_s3 + $0x78] sm:$0xff] %vm285_vm1, %v284_v23  ;;  %v275_v24 = vsel %vm243_vm0, %v189_v16, %v259_v20 }
  0xf8   :  { %v283_v25 = vsel %vm251_vm2, %v229_v17, %v267_v21  ;;  %292 = vst.msk [vmem:[%s589_s3 + $0x30] sm:$0xff] %vm285_vm1, %v275_v24 }
  0xf9   :  { %300 = vst.msk [vmem:[%s589_s3 + $0x70] sm:$0xff] %vm285_vm1, %v283_v25 }

// kernel: d_net_multi_forward.15
= control target key start
LH: loop header
LB: loop body
LE: loop exit
PB: predicated region body
PF: predicated region fallthrough
CT: control target
= control target key end

     0   :  { %vm146_vm0 = vcmask 261120   ;;  %s488_s1 = inlined_call_operand.vmem [shape: f32[256,32], index: 1, kind: input, shape index: {}]   ;;  %s489_s0 = inlined_call_operand.vmem [shape: f32[32,256], index: 0, kind: input, shape index: {}]   ;;  %s490_s2 = inlined_call_operand.vmem [shape: f32[1,32], index: 2, kind: input, shape index: {}]   ;;  %s491_s3 = inlined_call_operand.vmem [shape: f32[2,16,32], index: 3, kind: output, shape index: {}]  }
   0x1   :  { %v38_v0 = vld [vmem:[%s488_s1 + $0x80] sm:$0xff]  ;;  %v39_v1 = vld [vmem:[%s488_s1 + $0x88] sm:$0xff]  ;;  %v40_v5 = vld [vmem:[%s488_s1 + $0x90] sm:$0xff] }
   0x2   :  { %v22_v2 = vld [vmem:[%s488_s1] sm:$0xff]  ;;  %v269_v3 = vpack.c.bf16 %v39_v1, %v38_v0  ;;  %v23_v4 = vld [vmem:[%s488_s1 + $0x8] sm:$0xff]  ;;  %v41_v6 = vld [vmem:[%s488_s1 + $0x98] sm:$0xff] }
   0x3   :  { %v271_v7 = vpack.c.bf16 %v23_v4, %v22_v2  ;;  %v273_v8 = vpack.c.bf16 %v41_v6, %v40_v5  ;;  %v24_v9 = vld [vmem:[%s488_s1 + $0x10] sm:$0xff]  ;;  %v25_v10 = vld [vmem:[%s488_s1 + $0x18] sm:$0xff]  ;;  %v42_v11 = vld [vmem:[%s488_s1 + $0xa0] sm:$0xff] }
   0x4   :  { %270 = vmatprep.subr.bf16.mxu0 %v269_v3  ;;  %301 = vmatprep.subr.bf16.mxu1 %v269_v3  ;;  %v43_v12 = vld [vmem:[%s488_s1 + $0xa8] sm:$0xff]  ;;  %v275_v13 = vpack.c.bf16 %v25_v10, %v24_v9  ;;  %v26_v15 = vld [vmem:[%s488_s1 + $0x20] sm:$0xff]  ;;  %v44_v17 = vld [vmem:[%s488_s1 + $0xb0] sm:$0xff] }
   0x5   :  { %272 = vmatpush3.bf16.msra.mxu0 %v271_v7  ;;  %309 = vmatpush3.bf16.msra.mxu1 %v271_v7  ;;  %v277_v14 = vpack.c.bf16 %v43_v12, %v42_v11  ;;  %v27_v16 = vld [vmem:[%s488_s1 + $0x28] sm:$0xff]  ;;  %v45_v18 = vld [vmem:[%s488_s1 + $0xb8] sm:$0xff]  ;;  %v28_v21 = vld [vmem:[%s488_s1 + $0x30] sm:$0xff] }
   0x6   :  { %274 = vmatprep.subr.bf16.mxu0 %v273_v8  ;;  %302 = vmatprep.subr.bf16.mxu1 %v273_v8  ;;  %v279_v19 = vpack.c.bf16 %v27_v16, %v26_v15  ;;  %v281_v20 = vpack.c.bf16 %v45_v18, %v44_v17  ;;  %v29_v22 = vld [vmem:[%s488_s1 + $0x38] sm:$0xff]  ;;  %v46_v23 = vld [vmem:[%s488_s1 + $0xc0] sm:$0xff]  ;;  %v47_v24 = vld [vmem:[%s488_s1 + $0xc8] sm:$0xff] }
   0x7   :  { %v15_v25 = vld [vmem:[%s489_s0 + $0x8] sm:$0xff]  ;;  %v283_v27 = vpack.c.bf16 %v29_v22, %v28_v21  ;;  %v285_v28 = vpack.c.bf16 %v47_v24, %v46_v23  ;;  %v30_v29 = vld [vmem:[%s488_s1 + $0x40] sm:$0xff]  ;;  %v48_v31 = vld [vmem:[%s488_s1 + $0xd0] sm:$0xff] }
   0x8   :  { %125 = vmatprep.mubr.f32.mxu0 %v15_v25  ;;  %v19_v26 = vld [vmem:[%s489_s0 + $0x28] sm:$0xff]  ;;  %v49_v32 = vld [vmem:[%s488_s1 + $0xd8] sm:$0xff]  ;;  %v32_v35 = vld [vmem:[%s488_s1 + $0x50] sm:$0xff] }
   0x9   :  { %276 = vmatpush3.bf16.msra.mxu0 %v275_v13  ;;  %310 = vmatpush3.bf16.msra.mxu1 %v275_v13  ;;  %v31_v30 = vld [vmem:[%s488_s1 + $0x48] sm:$0xff]  ;;  %v289_v34 = vpack.c.bf16 %v49_v32, %v48_v31  ;;  %v33_v36 = vld [vmem:[%s488_s1 + $0x58] sm:$0xff]  ;;  %v50_v37 = vld [vmem:[%s488_s1 + $0xe0] sm:$0xff] }
   0xa   :  { %278 = vmatprep.subr.bf16.mxu0 %v277_v14  ;;  %303 = vmatprep.subr.bf16.mxu1 %v277_v14  ;;  %v287_v33 = vpack.c.bf16 %v31_v30, %v30_v29  ;;  %v51_v38 = vld [vmem:[%s488_s1 + $0xe8] sm:$0xff]  ;;  %v291_v39 = vpack.c.bf16 %v33_v36, %v32_v35  ;;  %v34_v41 = vld [vmem:[%s488_s1 + $0x60] sm:$0xff]  ;;  %v52_v43 = vld [vmem:[%s488_s1 + $0xf0] sm:$0xff] }
   0xb   :  { %135 = vmatprep.mubr.f32.mxu1 %v19_v26  ;;  %v293_v40 = vpack.c.bf16 %v51_v38, %v50_v37  ;;  %v35_v42 = vld [vmem:[%s488_s1 + $0x68] sm:$0xff]  ;;  %v53_v44 = vld [vmem:[%s488_s1 + $0xf8] sm:$0xff]  ;;  %v36_v47 = vld [vmem:[%s488_s1 + $0x70] sm:$0xff] }
   0xc   :  { %v295_v45 = vpack.c.bf16 %v35_v42, %v34_v41  ;;  %v297_v46 = vpack.c.bf16 %v53_v44, %v52_v43  ;;  %v37_v48 = vld [vmem:[%s488_s1 + $0x78] sm:$0xff]  ;;  %v14_v50 = vld [vmem:[%s489_s0] sm:$0xff]  ;;  %v16_v54 = vld [vmem:[%s489_s0 + $0x10] sm:$0xff] }
   0xd   :  { %280 = vmatpush3.bf16.msra.mxu0 %v279_v19  ;;  %311 = vmatpush3.bf16.msra.mxu1 %v279_v19  ;;  %v299_v49 = vpack.c.bf16 %v37_v48, %v36_v47  ;;  %v18_v51 = vld [vmem:[%s489_s0 + $0x20] sm:$0xff]  ;;  %v17_v52 = vld [vmem:[%s489_s0 + $0x18] sm:$0xff]  ;;  %v20_v55 = vld [vmem:[%s489_s0 + $0x30] sm:$0xff] }
   0xe   :  { %282 = vmatprep.subr.bf16.mxu0 %v281_v20  ;;  %304 = vmatprep.subr.bf16.mxu1 %v281_v20  ;;  %v21_v53 = vld [vmem:[%s489_s0 + $0x38] sm:$0xff]  ;;  %v224_v62 = vld [vmem:[%s490_s2] ss:$0 sm:$0xff] }
  0x11   :  { %284 = vmatpush3.bf16.msra.mxu0 %v283_v27  ;;  %312 = vmatpush3.bf16.msra.mxu1 %v283_v27 }
  0x12   :  { %286 = vmatprep.subr.bf16.mxu0 %v285_v28  ;;  %305 = vmatprep.subr.bf16.mxu1 %v285_v28 }
  0x15   :  { %288 = vmatpush3.bf16.msra.mxu0 %v287_v33  ;;  %313 = vmatpush3.bf16.msra.mxu1 %v287_v33 }
  0x16   :  { %290 = vmatprep.subr.bf16.mxu0 %v289_v34  ;;  %306 = vmatprep.subr.bf16.mxu1 %v289_v34 }
  0x19   :  { %292 = vmatpush3.bf16.msra.mxu0 %v291_v39  ;;  %314 = vmatpush3.bf16.msra.mxu1 %v291_v39 }
  0x1a   :  { %294 = vmatprep.subr.bf16.mxu0 %v293_v40  ;;  %307 = vmatprep.subr.bf16.mxu1 %v293_v40 }
  0x1d   :  { %296 = vmatpush3.bf16.msra.mxu0 %v295_v45  ;;  %315 = vmatpush3.bf16.msra.mxu1 %v295_v45 }
  0x1e   :  { %298 = vmatprep.subr.bf16.mxu0 %v297_v46  ;;  %308 = vmatprep.subr.bf16.mxu1 %v297_v46 }
  0x21   :  { %300 = vmatpush3.bf16.msra.mxu0 %v299_v49  ;;  %316 = vmatpush3.bf16.msra.mxu1 %v299_v49 }
  0x24   :  { %126 = vmatmul.mubr.f32.vlgmr.msra.gmra.mrb[0].mxu0 %v14_v50  ;;  %136 = vmatmul.mubr.f32.vlgmr.msra.gmra.mrb[0].mxu1 %v18_v51 }
  0x25   :  { %130 = vmatprep.mubr.f32.mxu0 %v17_v52  ;;  %140 = vmatprep.mubr.f32.mxu1 %v21_v53 }
  0x28   :  { %131 = vmatmul.mubr.f32.gmra.mrb[2].mxu0 %v16_v54  ;;  %141 = vmatmul.mubr.f32.gmra.mrb[2].mxu1 %v20_v55 }
  0xf7   :  { %v257_v56 = vpop.f32.mrb[0].mxu0  ;;  %v263_v57 = vpop.f32.mrb[0].mxu1 }
  0xf8   :  { %v258_v58 = vpop.f32.mrb[1].mxu0  ;;  %v264_v59 = vpop.f32.mrb[1].mxu1 }
  0xf9   :  { %v259_v60 = vadd.f32 %v258_v58, %v257_v56  ;;  %v265_v61 = vadd.f32 %v264_v59, %v263_v57 }
  0xfb   :  { %v260_v63 = vpop.f32.mrb[2].mxu0  ;;  %v266_v0 = vpop.f32.mrb[2].mxu1  ;;  %v128_v3 = vadd.f32 %v259_v60, %v224_v62  ;;  %v138_v4 = vadd.f32 %v265_v61, %v224_v62 }
  0xfc   :  { %v261_v1 = vpop.f32.mrb[3].mxu0  ;;  %v267_v2 = vpop.f32.mrb[3].mxu1 }
  0xfd   :  { %v262_v5 = vadd.f32 %v261_v1, %v260_v63  ;;  %v268_v6 = vadd.f32 %v267_v2, %v266_v0  ;;  %v147_v9 = vsel %vm146_vm0, %v128_v3, 0.0  ;;  %v156_v10 = vsel %vm146_vm0, %v138_v4, 0.0 }
  0xff   :  { %v133_v7 = vadd.f32 %v262_v5, %v224_v62  ;;  %v143_v8 = vadd.f32 %v268_v6, %v224_v62 }
 0x101   :  { %v148_v11 = vsel %vm146_vm0, %v133_v7, 0.0  ;;  %v157_v12 = vsel %vm146_vm0, %v143_v8, 0.0 }
 0x102   :  { %v149_v13 = vadd.f32 %v148_v11, %v147_v9  ;;  %v158_v14 = vadd.f32 %v157_v12, %v156_v10 }
 0x104   :  { %v150_v15 = vrot.slane %v149_v13, 4  ;;  %v159_v16 = vrot.slane %v158_v14, 4 }
 0x106   :  { %v151_v17 = vadd.f32 %v150_v15, %v149_v13  ;;  %v160_v18 = vadd.f32 %v159_v16, %v158_v14 }
 0x108   :  { %v152_v19 = vrot.slane %v151_v17, 2  ;;  %v161_v20 = vrot.slane %v160_v18, 2 }
 0x10a   :  { %v153_v21 = vadd.f32 %v152_v19, %v151_v17  ;;  %v162_v22 = vadd.f32 %v161_v20, %v160_v18 }
 0x10c   :  { %v154_v23 = vrot.slane %v153_v21, 1  ;;  %v163_v24 = vrot.slane %v162_v22, 1 }
 0x10e   :  { %v155_v25 = vadd.f32 %v154_v23, %v153_v21  ;;  %v164_v26 = vadd.f32 %v163_v24, %v162_v22 }
 0x110   :  { %v166_v27 = vmul.f32 0.0625, %v155_v25  ;;  %v167_v28 = vmul.f32 0.0625, %v164_v26 }
 0x112   :  { %v168_v29 = vsub.f32 %v128_v3, %v166_v27  ;;  %v169_v30 = vsub.f32 %v133_v7, %v166_v27  ;;  %v170_v31 = vsub.f32 %v138_v4, %v167_v28  ;;  %v171_v32 = vsub.f32 %v143_v8, %v167_v28 }
 0x114   :  { %v172_v33 = vmul.f32 %v168_v29, %v168_v29  ;;  %v173_v34 = vmul.f32 %v169_v30, %v169_v30  ;;  %v174_v35 = vmul.f32 %v170_v31, %v170_v31  ;;  %v175_v36 = vmul.f32 %v171_v32, %v171_v32 }
 0x116   :  { %v176_v37 = vsel %vm146_vm0, %v172_v33, 0.0  ;;  %v177_v38 = vsel %vm146_vm0, %v173_v34, 0.0  ;;  %v185_v39 = vsel %vm146_vm0, %v174_v35, 0.0  ;;  %v186_v40 = vsel %vm146_vm0, %v175_v36, 0.0 }
 0x117   :  { %v178_v41 = vadd.f32 %v177_v38, %v176_v37  ;;  %v187_v42 = vadd.f32 %v186_v40, %v185_v39 }
 0x119   :  { %v179_v43 = vrot.slane %v178_v41, 4  ;;  %v188_v44 = vrot.slane %v187_v42, 4 }
 0x11b   :  { %v180_v45 = vadd.f32 %v179_v43, %v178_v41  ;;  %v189_v46 = vadd.f32 %v188_v44, %v187_v42 }
 0x11d   :  { %v181_v47 = vrot.slane %v180_v45, 2  ;;  %v190_v48 = vrot.slane %v189_v46, 2 }
 0x11f   :  { %v182_v49 = vadd.f32 %v181_v47, %v180_v45  ;;  %v191_v50 = vadd.f32 %v190_v48, %v189_v46 }
 0x121   :  { %v183_v51 = vrot.slane %v182_v49, 1  ;;  %v192_v52 = vrot.slane %v191_v50, 1 }
 0x123   :  { %v184_v53 = vadd.f32 %v183_v51, %v182_v49  ;;  %v193_v54 = vadd.f32 %v192_v52, %v191_v50 }
 0x125   :  { %v194_v55 = vmul.f32 0.0625, %v184_v53  ;;  %v195_v56 = vmul.f32 0.0625, %v193_v54 }
 0x127   :  { %v196_v57 = vadd.f32 1e-05, %v194_v55  ;;  %v197_v58 = vadd.f32 1e-05, %v195_v56 }
 0x129   :  { %317 = vrsqrt.f32 %v196_v57 }
 0x12a   :  { %319 = vrsqrt.f32 %v197_v58 }
 0x133   :  { %v318_v59 = vpop.eup %317 }
 0x134   :  { %v320_v60 = vpop.eup %319  ;;  %v200_v61 = vmul.f32 %v318_v59, %v168_v29  ;;  %v201_v62 = vmul.f32 %v318_v59, %v169_v30 }
 0x135   :  { %v202_v63 = vmul.f32 %v320_v60, %v170_v31  ;;  %v203_v0 = vmul.f32 %v320_v60, %v171_v32 }
 0x136   :  { %vm204_vm1 = vcmp.gt.f32.partialorder %v200_v61, 0.0  ;;  %vm205_vm2 = vcmp.gt.f32.partialorder %v201_v62, 0.0  ;;  %v208_v1 = vmul.f32 0.2, %v200_v61  ;;  %v209_v2 = vmul.f32 0.2, %v201_v62 }
 0x137   :  { %vm206_vm3 = vcmp.gt.f32.partialorder %v202_v63, 0.0  ;;  %vm207_vm4 = vcmp.gt.f32.partialorder %v203_v0, 0.0  ;;  %v210_v3 = vmul.f32 0.2, %v202_v63  ;;  %v211_v4 = vmul.f32 0.2, %v203_v0 }
 0x138   :  { %v212_v5 = vsel %vm204_vm1, %v200_v61, %v208_v1  ;;  %v213_v6 = vsel %vm205_vm2, %v201_v62, %v209_v2 }
 0x139   :  { %216 = vst.msk [vmem:[%s491_s3] sm:$0xff] %vm146_vm0, %v212_v5  ;;  %217 = vst.msk [vmem:[%s491_s3 + $0x8] sm:$0xff] %vm146_vm0, %v213_v6  ;;  %v214_v7 = vsel %vm206_vm3, %v202_v63, %v210_v3  ;;  %v215_v8 = vsel %vm207_vm4, %v203_v0, %v211_v4 }
 0x13a   :  { %218 = vst.msk [vmem:[%s491_s3 + $0x10] sm:$0xff] %vm146_vm0, %v214_v7  ;;  %219 = vst.msk [vmem:[%s491_s3 + $0x18] sm:$0xff] %vm146_vm0, %v215_v8 }

// kernel: d_net_multi_forward.13
= control target key start
LH: loop header
LB: loop body
LE: loop exit
PB: predicated region body
PF: predicated region fallthrough
CT: control target
= control target key end

     0   :  { %v2195_v0 = vmov 0   ;;  %vm587_vm0 = vcmask 23552   ;;  %s5176_s1 = inlined_call_operand.vmem [shape: f32[512,1], index: 1, kind: input, shape index: {}]   ;;  %s5177_s0 = inlined_call_operand.vmem [shape: f32[9,512,3], index: 0, kind: input, shape index: {}]   ;;  %s5178_s2 = inlined_call_operand.vmem [shape: f32[512,3], index: 2, kind: output, shape index: {}]  }
   0x1   :  { %2194 = vset.pattern.permute.xlu1 %v2195_v0  ;;  %2193 = vset.pattern.permute.xlu0 %v2195_v0  ;;  %v1678_v1 = vld [vmem:[%s5176_s1 + $0x10] sm:$0xff]  ;;  %v1676_v2 = vld [vmem:[%s5176_s1] sm:$0xff]  ;;  %v1679_v3 = vld [vmem:[%s5176_s1 + $0x18] sm:$0xff] }
   0x2   :  { %1752 = vperm.xlu1 %2194, %v1678_v1   ;;  %1742 = vperm.xlu0 %2193, %v1676_v2   ;;  %v1677_v4 = vld [vmem:[%s5176_s1 + $0x8] sm:$0xff]  ;;  %v1680_v6 = vld [vmem:[%s5176_s1 + $0x20] sm:$0xff]  ;;  %v1683_v7 = vld [vmem:[%s5176_s1 + $0x38] sm:$0xff] }
   0x3   :  { %v1681_v5 = vld [vmem:[%s5176_s1 + $0x28] sm:$0xff]  ;;  %v1682_v8 = vld [vmem:[%s5176_s1 + $0x30] sm:$0xff]  ;;  %v1684_v10 = vld [vmem:[%s5176_s1 + $0x40] sm:$0xff] }
   0x4   :  { %v1685_v9 = vld [vmem:[%s5176_s1 + $0x48] sm:$0xff]  ;;  %v1687_v11 = vld [vmem:[%s5176_s1 + $0x58] sm:$0xff]  ;;  %v1686_v12 = vld [vmem:[%s5176_s1 + $0x50] sm:$0xff] }
   0x5   :  { %v1689_v13 = vld [vmem:[%s5176_s1 + $0x68] sm:$0xff]  ;;  %v13_v14 = vld [vmem:[%s5177_s0 + $0x10] sm:$0xff]  ;;  %v1688_v16 = vld [vmem:[%s5176_s1 + $0x60] sm:$0xff] }
   0x6   :  { %1757 = vperm.xlu1 %2194, %v1679_v3   ;;  %1747 = vperm.xlu0 %2193, %v1677_v4   ;;  %v77_v15 = vld [vmem:[%s5177_s0 + $0x210] sm:$0xff]  ;;  %v622_v19 = vsel %vm587_vm0, %v13_v14, 0.0  ;;  %v1691_v25 = vld [vmem:[%s5176_s1 + $0x78] sm:$0xff]  ;;  %v11_v29 = vld [vmem:[%s5177_s0] sm:$0xff] }
   0x7   :  { %v141_v17 = vld [vmem:[%s5177_s0 + $0x410] sm:$0xff]  ;;  %v623_v20 = vsel %vm587_vm0, %v77_v15, 0.0  ;;  %v75_v30 = vld [vmem:[%s5177_s0 + $0x200] sm:$0xff]  ;;  %v588_v35 = vsel %vm587_vm0, %v11_v29, 0.0  ;;  %v14_v48 = vld [vmem:[%s5177_s0 + $0x18] sm:$0xff] }
   0x8   :  { %v205_v18 = vld [vmem:[%s5177_s0 + $0x610] sm:$0xff]  ;;  %v624_v23 = vadd.f32 %v623_v20, %v622_v19  ;;  %v625_v24 = vsel %vm587_vm0, %v141_v17, 0.0  ;;  %v139_v33 = vld [vmem:[%s5177_s0 + $0x400] sm:$0xff]  ;;  %v589_v36 = vsel %vm587_vm0, %v75_v30, 0.0  ;;  %v78_v49 = vld [vmem:[%s5177_s0 + $0x218] sm:$0xff]  ;;  %v639_v55 = vsel %vm587_vm0, %v14_v48, 0.0 }
   0x9   :  { %v269_v21 = vld [vmem:[%s5177_s0 + $0x810] sm:$0xff]  ;;  %v627_v28 = vsel %vm587_vm0, %v205_v18, 0.0  ;;  %v203_v34 = vld [vmem:[%s5177_s0 + $0x600] sm:$0xff]  ;;  %v590_v41 = vadd.f32 %v589_v36, %v588_v35  ;;  %v591_v42 = vsel %vm587_vm0, %v139_v33, 0.0  ;;  %v142_v52 = vld [vmem:[%s5177_s0 + $0x418] sm:$0xff]  ;;  %v640_v56 = vsel %vm587_vm0, %v78_v49, 0.0 }
   0xa   :  { %1767 = vperm.xlu1 %2194, %v1681_v5   ;;  %1762 = vperm.xlu0 %2193, %v1680_v6   ;;  %v333_v22 = vld [vmem:[%s5177_s0 + $0xa10] sm:$0xff]  ;;  %v626_v32 = vadd.f32 %v625_v24, %v624_v23  ;;  %v629_v38 = vsel %vm587_vm0, %v269_v21, 0.0  ;;  %v267_v39 = vld [vmem:[%s5177_s0 + $0x800] sm:$0xff]  ;;  %v593_v47 = vsel %vm587_vm0, %v203_v34, 0.0  ;;  %v206_v53 = vld [vmem:[%s5177_s0 + $0x618] sm:$0xff]  ;;  %v641_v62 = vadd.f32 %v640_v56, %v639_v55 }
   0xb   :  { %v1690_v26 = vld [vmem:[%s5176_s1 + $0x70] sm:$0xff]  ;;  %v331_v40 = vld [vmem:[%s5177_s0 + $0xa00] sm:$0xff]  ;;  %v631_v44 = vsel %vm587_vm0, %v333_v22, 0.0  ;;  %v592_v51 = vadd.f32 %v591_v42, %v590_v41  ;;  %v270_v54 = vld [vmem:[%s5177_s0 + $0x818] sm:$0xff]  ;;  %v595_v61 = vsel %vm587_vm0, %v267_v39, 0.0  ;;  %v642_v63 = vsel %vm587_vm0, %v142_v52, 0.0 }
   0xc   :  { %v397_v27 = vld [vmem:[%s5177_s0 + $0xc10] sm:$0xff]  ;;  %v628_v43 = vadd.f32 %v627_v28, %v626_v32  ;;  %v395_v46 = vld [vmem:[%s5177_s0 + $0xc00] sm:$0xff]  ;;  %v1693_v57 = vld [vmem:[%s5176_s1 + $0x88] sm:$0xff]  ;;  %v597_v3 = vsel %vm587_vm0, %v331_v40, 0.0  ;;  %v644_v4 = vsel %vm587_vm0, %v206_v53, 0.0 }
   0xd   :  { %v461_v31 = vld [vmem:[%s5177_s0 + $0xe10] sm:$0xff]  ;;  %v633_v45 = vsel %vm587_vm0, %v397_v27, 0.0  ;;  %v1692_v58 = vld [vmem:[%s5176_s1 + $0x80] sm:$0xff]  ;;  %v594_v2 = vadd.f32 %v593_v47, %v592_v51  ;;  %v12_v5 = vld [vmem:[%s5177_s0 + $0x8] sm:$0xff] }
   0xe   :  { %1777 = vperm.xlu1 %2194, %v1683_v7   ;;  %1772 = vperm.xlu0 %2193, %v1682_v8   ;;  %v525_v37 = vld [vmem:[%s5177_s0 + $0x1010] sm:$0xff]  ;;  %v635_v50 = vsel %vm587_vm0, %v461_v31, 0.0  ;;  %v630_v59 = vadd.f32 %v629_v38, %v628_v43  ;;  %v459_v60 = vld [vmem:[%s5177_s0 + $0xe00] sm:$0xff]  ;;  %v76_v6 = vld [vmem:[%s5177_s0 + $0x208] sm:$0xff]  ;;  %v599_v8 = vsel %vm587_vm0, %v395_v46, 0.0  ;;  %v605_v17 = vsel %vm587_vm0, %v12_v5, 0.0 }
   0xf   :  { %v2348_v0 = vsel %vm587_vm0, %v525_v37, 0.0  ;;  %v523_v1 = vld [vmem:[%s5177_s0 + $0x1000] sm:$0xff]  ;;  %v596_v14 = vadd.f32 %v595_v61, %v594_v2  ;;  %v398_v15 = vld [vmem:[%s5177_s0 + $0xc18] sm:$0xff]  ;;  %v606_v18 = vsel %vm587_vm0, %v76_v6, 0.0  ;;  %v601_v22 = vsel %vm587_vm0, %v459_v60, 0.0  ;;  %v1694_v27 = vld [vmem:[%s5176_s1 + $0x90] sm:$0xff] }
  0x10   :  { %v632_v7 = vadd.f32 %v631_v44, %v630_v59  ;;  %v1695_v20 = vld [vmem:[%s5176_s1 + $0x98] sm:$0xff]  ;;  %v607_v24 = vadd.f32 %v606_v18, %v605_v17  ;;  %v2395_v29 = vsel %vm587_vm0, %v523_v1, 0.0  ;;  %v144_v33 = vld [vmem:[%s5177_s0 + $0x428] sm:$0xff]  ;;  %v650_v36 = vsel %vm587_vm0, %v398_v15, 0.0  ;;  %v1696_v48 = vld [vmem:[%s5176_s1 + $0xa0] sm:$0xff] }
  0x11   :  { %v598_v28 = vadd.f32 %v597_v3, %v596_v14  ;;  %v462_v30 = vld [vmem:[%s5177_s0 + $0xe18] sm:$0xff]  ;;  %v332_v37 = vld [vmem:[%s5177_s0 + $0xa08] sm:$0xff]  ;;  %v676_v53 = vsel %vm587_vm0, %v144_v33, 0.0  ;;  %v15_v59 = vld [vmem:[%s5177_s0 + $0x20] sm:$0xff] }
  0x12   :  { %1787 = vperm.xlu1 %2194, %v1685_v9   ;;  %1782 = vperm.xlu0 %2193, %v1684_v10   ;;  %v334_v9 = vld [vmem:[%s5177_s0 + $0xa18] sm:$0xff]  ;;  %v643_v10 = vadd.f32 %v642_v63, %v641_v62  ;;  %v634_v21 = vadd.f32 %v633_v45, %v632_v7  ;;  %v396_v38 = vld [vmem:[%s5177_s0 + $0xc08] sm:$0xff]  ;;  %v614_v55 = vsel %vm587_vm0, %v332_v37, 0.0  ;;  %v79_v60 = vld [vmem:[%s5177_s0 + $0x220] sm:$0xff]  ;;  %v656_v15 = vsel %vm587_vm0, %v15_v59, 0.0 }
  0x13   :  { %v648_v31 = vsel %vm587_vm0, %v334_v9, 0.0  ;;  %v526_v34 = vld [vmem:[%s5177_s0 + $0x1018] sm:$0xff]  ;;  %v600_v42 = vadd.f32 %v599_v8, %v598_v28  ;;  %v460_v43 = vld [vmem:[%s5177_s0 + $0xe08] sm:$0xff]  ;;  %v616_v56 = vsel %vm587_vm0, %v396_v38, 0.0  ;;  %v143_v3 = vld [vmem:[%s5177_s0 + $0x420] sm:$0xff] }
  0x14   :  { %v645_v23 = vadd.f32 %v644_v4, %v643_v10  ;;  %v636_v41 = vadd.f32 %v635_v50, %v634_v21  ;;  %v208_v44 = vld [vmem:[%s5177_s0 + $0x628] sm:$0xff]  ;;  %v652_v50 = vsel %vm587_vm0, %v462_v30, 0.0  ;;  %v618_v63 = vsel %vm587_vm0, %v460_v43, 0.0  ;;  %v1699_v4 = vld [vmem:[%s5176_s1 + $0xb8] sm:$0xff]  ;;  %v207_v10 = vld [vmem:[%s5177_s0 + $0x620] sm:$0xff] }
  0x15   :  { %v1697_v47 = vld [vmem:[%s5176_s1 + $0xa8] sm:$0xff]  ;;  %v678_v2 = vsel %vm587_vm0, %v208_v44, 0.0  ;;  %v602_v6 = vadd.f32 %v601_v22, %v600_v42  ;;  %v659_v21 = vsel %vm587_vm0, %v143_v3, 0.0  ;;  %v18_v22 = vld [vmem:[%s5177_s0 + $0x38] sm:$0xff] }
  0x16   :  { %1797 = vperm.xlu1 %2194, %v1687_v11   ;;  %1792 = vperm.xlu0 %2193, %v1686_v12   ;;  %v646_v11 = vsel %vm587_vm0, %v270_v54, 0.0  ;;  %v140_v12 = vld [vmem:[%s5177_s0 + $0x408] sm:$0xff]  ;;  %v2436_v54 = vsel %vm587_vm0, %v526_v34, 0.0  ;;  %v2461_v5 = vadd.f32 %v2348_v0, %v636_v41  ;;  %v1698_v0 = vld [vmem:[%s5176_s1 + $0xb0] sm:$0xff]  ;;  %v146_v28 = vld [vmem:[%s5177_s0 + $0x438] sm:$0xff]  ;;  %v707_v41 = vsel %vm587_vm0, %v18_v22, 0.0 }
  0x17   :  { %v608_v19 = vsel %vm587_vm0, %v140_v12, 0.0  ;;  %v647_v35 = vadd.f32 %v646_v11, %v645_v23  ;;  %v524_v51 = vld [vmem:[%s5177_s0 + $0x1008] sm:$0xff]  ;;  %v82_v23 = vld [vmem:[%s5177_s0 + $0x238] sm:$0xff] }
  0x18   :  { %v609_v39 = vadd.f32 %v608_v19, %v607_v24  ;;  %v336_v1 = vld [vmem:[%s5177_s0 + $0xa28] sm:$0xff]  ;;  %v2464_v7 = vsel %vm587_vm0, %v524_v51, 0.0  ;;  %v271_v19 = vld [vmem:[%s5177_s0 + $0x820] sm:$0xff]  ;;  %v210_v37 = vld [vmem:[%s5177_s0 + $0x638] sm:$0xff]  ;;  %v708_v42 = vsel %vm587_vm0, %v82_v23, 0.0 }
  0x19   :  { %v649_v49 = vadd.f32 %v648_v31, %v647_v35  ;;  %v400_v8 = vld [vmem:[%s5177_s0 + $0xc28] sm:$0xff]  ;;  %v682_v18 = vsel %vm587_vm0, %v336_v1, 0.0  ;;  %v1700_v31 = vld [vmem:[%s5176_s1 + $0xc0] sm:$0xff]  ;;  %v337_v23 = vld [vmem:[%s5177_s0 + $0xa30] sm:$0xff] }
  0x1a   :  { %1807 = vperm.xlu1 %2194, %v1689_v13   ;;  %1802 = vperm.xlu0 %2193, %v1688_v16   ;;  %v204_v13 = vld [vmem:[%s5177_s0 + $0x608] sm:$0xff]  ;;  %v335_v35 = vld [vmem:[%s5177_s0 + $0xa20] sm:$0xff] }
  0x1b   :  { %v268_v16 = vld [vmem:[%s5177_s0 + $0x808] sm:$0xff]  ;;  %v610_v32 = vsel %vm587_vm0, %v204_v13, 0.0  ;;  %v651_v61 = vadd.f32 %v650_v36, %v649_v49  ;;  %v81_v49 = vld [vmem:[%s5177_s0 + $0x230] sm:$0xff] }
  0x1c   :  { %v612_v40 = vsel %vm587_vm0, %v268_v16, 0.0  ;;  %v611_v52 = vadd.f32 %v610_v32, %v609_v39  ;;  %v464_v12 = vld [vmem:[%s5177_s0 + $0xe28] sm:$0xff]  ;;  %v657_v16 = vsel %vm587_vm0, %v79_v60, 0.0  ;;  %v2507_v32 = vadd.f32 %v2395_v29, %v602_v6  ;;  %v399_v29 = vld [vmem:[%s5177_s0 + $0xc20] sm:$0xff] }
  0x1d   :  { %v528_v13 = vld [vmem:[%s5177_s0 + $0x1028] sm:$0xff]  ;;  %v653_v24 = vadd.f32 %v652_v50, %v651_v61  ;;  %v686_v34 = vsel %vm587_vm0, %v464_v12, 0.0  ;;  %v463_v39 = vld [vmem:[%s5177_s0 + $0xe20] sm:$0xff]  ;;  %v667_v59 = vsel %vm587_vm0, %v399_v29, 0.0  ;;  %v145_v61 = vld [vmem:[%s5177_s0 + $0x430] sm:$0xff]  ;;  %v691_v6 = vsel %vm587_vm0, %v81_v49, 0.0 }
  0x1e   :  { %1817 = vperm.xlu1 %2194, %v1691_v25   ;;  %1812 = vperm.xlu0 %2193, %v1690_v26   ;;  %v16_v25 = vld [vmem:[%s5177_s0 + $0x28] sm:$0xff]  ;;  %v613_v62 = vadd.f32 %v612_v40, %v611_v52  ;;  %v2517_v38 = vsel %vm587_vm0, %v528_v13, 0.0  ;;  %v663_v40 = vsel %vm587_vm0, %v271_v19, 0.0  ;;  %v527_v52 = vld [vmem:[%s5177_s0 + $0x1020] sm:$0xff]  ;;  %v669_v1 = vsel %vm587_vm0, %v463_v39, 0.0  ;;  %v529_v29 = vld [vmem:[%s5177_s0 + $0x1030] sm:$0xff] }
  0x1f   :  { %v80_v26 = vld [vmem:[%s5177_s0 + $0x228] sm:$0xff]  ;;  %v673_v45 = vsel %vm587_vm0, %v16_v25, 0.0  ;;  %v2539_v50 = vadd.f32 %v2436_v54, %v653_v24  ;;  %v338_v54 = vld [vmem:[%s5177_s0 + $0xa38] sm:$0xff] }
  0x20   :  { %v674_v46 = vsel %vm587_vm0, %v80_v26, 0.0  ;;  %v615_v11 = vadd.f32 %v614_v55, %v613_v62  ;;  %v684_v26 = vsel %vm587_vm0, %v400_v8, 0.0  ;;  %v1701_v30 = vld [vmem:[%s5176_s1 + $0xc8] sm:$0xff]  ;;  %v712_v55 = vsel %vm587_vm0, %v210_v37, 0.0  ;;  %v209_v62 = vld [vmem:[%s5177_s0 + $0x630] sm:$0xff] }
  0x21   :  { %v20_v13 = vld [vmem:[%s5177_s0 + $0x48] sm:$0xff]  ;;  %v465_v37 = vld [vmem:[%s5177_s0 + $0xe30] sm:$0xff] }
  0x22   :  { %1827 = vperm.xlu1 %2194, %v1693_v57   ;;  %1822 = vperm.xlu0 %2193, %v1692_v58   ;;  %v272_v57 = vld [vmem:[%s5177_s0 + $0x828] sm:$0xff]  ;;  %v675_v58 = vadd.f32 %v674_v46, %v673_v45  ;;  %v617_v25 = vadd.f32 %v616_v56, %v615_v11  ;;  %v274_v45 = vld [vmem:[%s5177_s0 + $0x838] sm:$0xff]  ;;  %v709_v46 = vadd.f32 %v708_v42, %v707_v41  ;;  %v273_v11 = vld [vmem:[%s5177_s0 + $0x830] sm:$0xff]  ;;  %v699_v42 = vsel %vm587_vm0, %v337_v23, 0.0 }
  0x23   :  { %v680_v14 = vsel %vm587_vm0, %v272_v57, 0.0  ;;  %v1703_v56 = vld [vmem:[%s5176_s1 + $0xd8] sm:$0xff]  ;;  %v714_v3 = vsel %vm587_vm0, %v274_v45, 0.0  ;;  %v84_v19 = vld [vmem:[%s5177_s0 + $0x248] sm:$0xff]  ;;  %v339_v23 = vld [vmem:[%s5177_s0 + $0xa40] sm:$0xff] }
  0x24   :  { %v677_v9 = vadd.f32 %v676_v53, %v675_v58  ;;  %v619_v51 = vadd.f32 %v618_v63, %v617_v25  ;;  %v665_v53 = vsel %vm587_vm0, %v335_v35, 0.0  ;;  %v1702_v63 = vld [vmem:[%s5176_s1 + $0xd0] sm:$0xff]  ;;  %v148_v25 = vld [vmem:[%s5177_s0 + $0x448] sm:$0xff] }
  0x25   :  { %v744_v45 = vsel %vm587_vm0, %v148_v25, 0.0  ;;  %v214_v25 = vld [vmem:[%s5177_s0 + $0x658] sm:$0xff] }
  0x26   :  { %1837 = vperm.xlu1 %2194, %v1695_v20   ;;  %1832 = vperm.xlu0 %2193, %v1694_v27   ;;  %v679_v17 = vadd.f32 %v678_v2, %v677_v9  ;;  %v658_v20 = vadd.f32 %v657_v16, %v656_v15  ;;  %v661_v27 = vsel %vm587_vm0, %v207_v10, 0.0  ;;  %v402_v2 = vld [vmem:[%s5177_s0 + $0xc38] sm:$0xff]  ;;  %v2570_v9 = vsel %vm587_vm0, %v527_v52, 0.0 }
  0x27   :  { %v466_v10 = vld [vmem:[%s5177_s0 + $0xe38] sm:$0xff]  ;;  %v716_v16 = vsel %vm587_vm0, %v338_v54, 0.0 }
  0x28   :  { %v681_v33 = vadd.f32 %v680_v14, %v679_v17  ;;  %v660_v36 = vadd.f32 %v659_v21, %v658_v20  ;;  %v2582_v14 = vadd.f32 %v2464_v7, %v619_v51  ;;  %v530_v15 = vld [vmem:[%s5177_s0 + $0x1038] sm:$0xff]  ;;  %v693_v17 = vsel %vm587_vm0, %v145_v61, 0.0  ;;  %v1705_v20 = vld [vmem:[%s5176_s1 + $0xe8] sm:$0xff] }
  0x29   :  { %v2613_v35 = vsel %vm587_vm0, %v530_v15, 0.0 }
  0x2a   :  { %1847 = vperm.xlu1 %2194, %v1697_v47   ;;  %1842 = vperm.xlu0 %2193, %v1696_v48   ;;  %v683_v43 = vadd.f32 %v682_v18, %v681_v33  ;;  %v662_v44 = vadd.f32 %v661_v27, %v660_v36  ;;  %v710_v47 = vsel %vm587_vm0, %v146_v28, 0.0  ;;  %v17_v48 = vld [vmem:[%s5177_s0 + $0x30] sm:$0xff]  ;;  %v695_v18 = vsel %vm587_vm0, %v209_v62, 0.0  ;;  %v404_v62 = vld [vmem:[%s5177_s0 + $0xc48] sm:$0xff] }
  0x2b   :  { %v711_v60 = vadd.f32 %v710_v47, %v709_v46  ;;  %v718_v27 = vsel %vm587_vm0, %v402_v2, 0.0  ;;  %v720_v28 = vsel %vm587_vm0, %v466_v10, 0.0  ;;  %v741_v33 = vsel %vm587_vm0, %v20_v13, 0.0  ;;  %v401_v36 = vld [vmem:[%s5177_s0 + $0xc30] sm:$0xff]  ;;  %v19_v46 = vld [vmem:[%s5177_s0 + $0x40] sm:$0xff]  ;;  %v86_v13 = vld [vmem:[%s5177_s0 + $0x258] sm:$0xff] }
  0x2c   :  { %v685_v57 = vadd.f32 %v684_v26, %v683_v43  ;;  %v664_v58 = vadd.f32 %v663_v40, %v662_v44  ;;  %v1704_v26 = vld [vmem:[%s5176_s1 + $0xe0] sm:$0xff]  ;;  %v742_v40 = vsel %vm587_vm0, %v84_v19, 0.0  ;;  %v276_v43 = vld [vmem:[%s5177_s0 + $0x848] sm:$0xff]  ;;  %v150_v19 = vld [vmem:[%s5177_s0 + $0x458] sm:$0xff] }
  0x2d   :  { %v743_v44 = vadd.f32 %v742_v40, %v741_v33  ;;  %v83_v47 = vld [vmem:[%s5177_s0 + $0x240] sm:$0xff]  ;;  %v748_v2 = vsel %vm587_vm0, %v276_v43, 0.0  ;;  %v776_v33 = vsel %vm587_vm0, %v86_v13, 0.0  ;;  %v21_v40 = vld [vmem:[%s5177_s0 + $0x50] sm:$0xff] }
  0x2e   :  { %1857 = vperm.xlu1 %2194, %v1699_v4   ;;  %1852 = vperm.xlu0 %2193, %v1698_v0   ;;  %v690_v4 = vsel %vm587_vm0, %v17_v48, 0.0  ;;  %v666_v8 = vadd.f32 %v665_v53, %v664_v58  ;;  %v713_v0 = vadd.f32 %v712_v55, %v711_v60  ;;  %v687_v7 = vadd.f32 %v686_v34, %v685_v57  ;;  %v1707_v48 = vld [vmem:[%s5176_s1 + $0xf8] sm:$0xff]  ;;  %v147_v55 = vld [vmem:[%s5177_s0 + $0x440] sm:$0xff] }
  0x2f   :  { %v692_v12 = vadd.f32 %v691_v6, %v690_v4  ;;  %v701_v57 = vsel %vm587_vm0, %v401_v36, 0.0  ;;  %v703_v58 = vsel %vm587_vm0, %v465_v37, 0.0  ;;  %v745_v54 = vadd.f32 %v744_v45, %v743_v44  ;;  %v211_v60 = vld [vmem:[%s5177_s0 + $0x640] sm:$0xff]  ;;  %v278_v37 = vld [vmem:[%s5177_s0 + $0x858] sm:$0xff] }
  0x30   :  { %v668_v21 = vadd.f32 %v667_v59, %v666_v8  ;;  %v715_v22 = vadd.f32 %v714_v3, %v713_v0  ;;  %v2640_v49 = vadd.f32 %v2517_v38, %v687_v7  ;;  %v2652_v38 = vsel %vm587_vm0, %v529_v29, 0.0  ;;  %v340_v59 = vld [vmem:[%s5177_s0 + $0xa48] sm:$0xff]  ;;  %v275_v10 = vld [vmem:[%s5177_s0 + $0x840] sm:$0xff] }
  0x31   :  { %v694_v24 = vadd.f32 %v693_v17, %v692_v12  ;;  %v724_v3 = vsel %vm587_vm0, %v19_v46, 0.0  ;;  %v725_v4 = vsel %vm587_vm0, %v83_v47, 0.0  ;;  %v22_v12 = vld [vmem:[%s5177_s0 + $0x58] sm:$0xff]  ;;  %v750_v17 = vsel %vm587_vm0, %v340_v59, 0.0  ;;  %v531_v45 = vld [vmem:[%s5177_s0 + $0x1040] sm:$0xff] }
  0x32   :  { %1867 = vperm.xlu1 %2194, %v1701_v30   ;;  %1862 = vperm.xlu0 %2193, %v1700_v31   ;;  %v697_v30 = vsel %vm587_vm0, %v273_v11, 0.0  ;;  %v212_v31 = vld [vmem:[%s5177_s0 + $0x648] sm:$0xff]  ;;  %v717_v34 = vadd.f32 %v716_v16, %v715_v22  ;;  %v670_v41 = vadd.f32 %v669_v1, %v668_v21  ;;  %v726_v0 = vadd.f32 %v725_v4, %v724_v3 }
  0x33   :  { %v696_v39 = vadd.f32 %v695_v18, %v694_v24  ;;  %v746_v53 = vsel %vm587_vm0, %v212_v31, 0.0  ;;  %v532_v1 = vld [vmem:[%s5177_s0 + $0x1048] sm:$0xff]  ;;  %v727_v11 = vsel %vm587_vm0, %v147_v55, 0.0  ;;  %v729_v18 = vsel %vm587_vm0, %v211_v60, 0.0 }
  0x34   :  { %v719_v51 = vadd.f32 %v718_v27, %v717_v34  ;;  %v2673_v6 = vadd.f32 %v2570_v9, %v670_v41  ;;  %v747_v8 = vadd.f32 %v746_v53, %v745_v54  ;;  %v1709_v9 = vld [vmem:[%s5176_s1 + $0x108] sm:$0xff]  ;;  %v752_v21 = vsel %vm587_vm0, %v404_v62, 0.0  ;;  %v403_v27 = vld [vmem:[%s5177_s0 + $0xc40] sm:$0xff]  ;;  %v85_v41 = vld [vmem:[%s5177_s0 + $0x250] sm:$0xff] }
  0x35   :  { %v698_v52 = vadd.f32 %v697_v30, %v696_v39  ;;  %v728_v24 = vadd.f32 %v727_v11, %v726_v0  ;;  %v731_v30 = vsel %vm587_vm0, %v275_v10, 0.0  ;;  %v775_v31 = vsel %vm587_vm0, %v22_v12, 0.0  ;;  %v406_v53 = vld [vmem:[%s5177_s0 + $0xc58] sm:$0xff]  ;;  %v213_v54 = vld [vmem:[%s5177_s0 + $0x650] sm:$0xff] }
  0x36   :  { %1877 = vperm.xlu1 %2194, %v1703_v56   ;;  %1872 = vperm.xlu0 %2193, %v1702_v63   ;;  %v1706_v56 = vld [vmem:[%s5176_s1 + $0xf0] sm:$0xff]  ;;  %v468_v63 = vld [vmem:[%s5177_s0 + $0xe48] sm:$0xff]  ;;  %v721_v15 = vadd.f32 %v720_v28, %v719_v51  ;;  %v749_v7 = vadd.f32 %v748_v2, %v747_v8  ;;  %v467_v28 = vld [vmem:[%s5177_s0 + $0xe40] sm:$0xff]  ;;  %v777_v29 = vadd.f32 %v776_v33, %v775_v31  ;;  %v778_v39 = vsel %vm587_vm0, %v150_v19, 0.0 }
  0x37   :  { %v700_v61 = vadd.f32 %v699_v42, %v698_v52  ;;  %v754_v22 = vsel %vm587_vm0, %v468_v63, 0.0  ;;  %v730_v36 = vadd.f32 %v729_v18, %v728_v24  ;;  %v1711_v42 = vld [vmem:[%s5176_s1 + $0x118] sm:$0xff]  ;;  %v733_v46 = vsel %vm587_vm0, %v339_v23, 0.0  ;;  %v24_v8 = vld [vmem:[%s5177_s0 + $0x68] sm:$0xff]  ;;  %v277_v12 = vld [vmem:[%s5177_s0 + $0x850] sm:$0xff] }
  0x38   :  { %v751_v34 = vadd.f32 %v750_v17, %v749_v7  ;;  %v2730_v43 = vadd.f32 %v2613_v35, %v721_v15  ;;  %v780_v47 = vsel %vm587_vm0, %v214_v25, 0.0  ;;  %v735_v52 = vsel %vm587_vm0, %v403_v27, 0.0  ;;  %v342_v35 = vld [vmem:[%s5177_s0 + $0xa58] sm:$0xff]  ;;  %v152_v15 = vld [vmem:[%s5177_s0 + $0x468] sm:$0xff]  ;;  %v341_v19 = vld [vmem:[%s5177_s0 + $0xa50] sm:$0xff] }
  0x39   :  { %v702_v16 = vadd.f32 %v701_v57, %v700_v61  ;;  %v732_v51 = vadd.f32 %v731_v30, %v730_v36  ;;  %v779_v55 = vadd.f32 %v778_v39, %v777_v29  ;;  %v1710_v57 = vld [vmem:[%s5176_s1 + $0x110] sm:$0xff]  ;;  %v782_v59 = vsel %vm587_vm0, %v278_v37, 0.0  ;;  %v534_v2 = vld [vmem:[%s5177_s0 + $0x1058] sm:$0xff]  ;;  %v1712_v7 = vld [vmem:[%s5176_s1 + $0x120] sm:$0xff] }
  0x3a   :  { %1887 = vperm.xlu1 %2194, %v1705_v20   ;;  %1882 = vperm.xlu0 %2193, %v1704_v26   ;;  %v1708_v20 = vld [vmem:[%s5176_s1 + $0x100] sm:$0xff]  ;;  %v2705_v26 = vsel %vm587_vm0, %v532_v1, 0.0  ;;  %v758_v60 = vsel %vm587_vm0, %v21_v40, 0.0  ;;  %v759_v61 = vsel %vm587_vm0, %v85_v41, 0.0  ;;  %v2758_v63 = vsel %vm587_vm0, %v531_v45, 0.0  ;;  %v470_v1 = vld [vmem:[%s5177_s0 + $0xe58] sm:$0xff] }
  0x3b   :  { %v704_v44 = vadd.f32 %v703_v58, %v702_v16  ;;  %v737_v58 = vsel %vm587_vm0, %v467_v28, 0.0  ;;  %v734_v62 = vadd.f32 %v733_v46, %v732_v51  ;;  %v781_v3 = vadd.f32 %v780_v47, %v779_v55  ;;  %v216_v25 = vld [vmem:[%s5177_s0 + $0x668] sm:$0xff]  ;;  %v469_v30 = vld [vmem:[%s5177_s0 + $0xe50] sm:$0xff]  ;;  %v151_v45 = vld [vmem:[%s5177_s0 + $0x460] sm:$0xff] }
  0x3c   :  { %v760_v4 = vadd.f32 %v759_v61, %v758_v60  ;;  %v784_v0 = vsel %vm587_vm0, %v342_v35, 0.0  ;;  %v786_v11 = vsel %vm587_vm0, %v406_v53, 0.0  ;;  %v2796_v23 = vsel %vm587_vm0, %v534_v2, 0.0  ;;  %v533_v31 = vld [vmem:[%s5177_s0 + $0x1050] sm:$0xff]  ;;  %v1715_v46 = vld [vmem:[%s5176_s1 + $0x138] sm:$0xff]  ;;  %v279_v61 = vld [vmem:[%s5177_s0 + $0x860] sm:$0xff] }
  0x3d   :  { %v2770_v10 = vadd.f32 %v2652_v38, %v704_v44  ;;  %v1713_v38 = vld [vmem:[%s5176_s1 + $0x128] sm:$0xff]  ;;  %v736_v17 = vadd.f32 %v735_v52, %v734_v62  ;;  %v783_v18 = vadd.f32 %v782_v59, %v781_v3  ;;  %v809_v27 = vsel %vm587_vm0, %v24_v8, 0.0  ;;  %v87_v44 = vld [vmem:[%s5177_s0 + $0x260] sm:$0xff]  ;;  %v1714_v47 = vld [vmem:[%s5176_s1 + $0x130] sm:$0xff] }
  0x3e   :  { %1897 = vperm.xlu1 %2194, %v1707_v48   ;;  %1892 = vperm.xlu0 %2193, %v1706_v56   ;;  %v753_v48 = vadd.f32 %v752_v21, %v751_v34  ;;  %v149_v56 = vld [vmem:[%s5177_s0 + $0x450] sm:$0xff]  ;;  %v788_v21 = vsel %vm587_vm0, %v470_v1, 0.0  ;;  %v765_v33 = vsel %vm587_vm0, %v277_v12, 0.0  ;;  %v280_v34 = vld [vmem:[%s5177_s0 + $0x868] sm:$0xff]  ;;  %v812_v37 = vsel %vm587_vm0, %v152_v15, 0.0  ;;  %v215_v59 = vld [vmem:[%s5177_s0 + $0x660] sm:$0xff] }
  0x3f   :  { %v761_v13 = vsel %vm587_vm0, %v149_v56, 0.0  ;;  %v785_v28 = vadd.f32 %v784_v0, %v783_v18  ;;  %v738_v29 = vadd.f32 %v737_v58, %v736_v17  ;;  %v767_v40 = vsel %vm587_vm0, %v341_v19, 0.0  ;;  %v90_v12 = vld [vmem:[%s5177_s0 + $0x278] sm:$0xff] }
  0x40   :  { %v755_v16 = vadd.f32 %v754_v22, %v753_v48  ;;  %v405_v22 = vld [vmem:[%s5177_s0 + $0xc50] sm:$0xff]  ;;  %v762_v24 = vadd.f32 %v761_v13, %v760_v4  ;;  %v814_v35 = vsel %vm587_vm0, %v216_v25, 0.0  ;;  %v2839_v55 = vsel %vm587_vm0, %v469_v30, 0.0  ;;  %v154_v13 = vld [vmem:[%s5177_s0 + $0x478] sm:$0xff] }
  0x41   :  { %v787_v51 = vadd.f32 %v786_v11, %v785_v28  ;;  %v769_v52 = vsel %vm587_vm0, %v405_v22, 0.0  ;;  %v2842_v56 = vsel %vm587_vm0, %v533_v31, 0.0  ;;  %v816_v60 = vsel %vm587_vm0, %v280_v34, 0.0  ;;  %v26_v11 = vld [vmem:[%s5177_s0 + $0x78] sm:$0xff]  ;;  %v471_v28 = vld [vmem:[%s5177_s0 + $0xe60] sm:$0xff] }
  0x42   :  { %1907 = vperm.xlu1 %2194, %v1709_v9   ;;  %1902 = vperm.xlu0 %2193, %v1708_v20   ;;  %v88_v9 = vld [vmem:[%s5177_s0 + $0x268] sm:$0xff]  ;;  %v763_v20 = vsel %vm587_vm0, %v213_v54, 0.0  ;;  %v2834_v48 = vadd.f32 %v2705_v26, %v755_v16  ;;  %v793_v1 = vsel %vm587_vm0, %v87_v44, 0.0  ;;  %v795_v2 = vsel %vm587_vm0, %v151_v45, 0.0  ;;  %v218_v25 = vld [vmem:[%s5177_s0 + $0x678] sm:$0xff]  ;;  %v1718_v44 = vld [vmem:[%s5176_s1 + $0x150] sm:$0xff] }
  0x43   :  { %v810_v36 = vsel %vm587_vm0, %v88_v9, 0.0  ;;  %v764_v39 = vadd.f32 %v763_v20, %v762_v24  ;;  %v408_v26 = vld [vmem:[%s5177_s0 + $0xc68] sm:$0xff]  ;;  %v2864_v3 = vadd.f32 %v2758_v63, %v738_v29  ;;  %v1716_v9 = vld [vmem:[%s5176_s1 + $0x140] sm:$0xff]  ;;  %v789_v15 = vadd.f32 %v788_v21, %v787_v51  ;;  %v1719_v34 = vld [vmem:[%s5176_s1 + $0x158] sm:$0xff] }
  0x44   :  { %v811_v41 = vadd.f32 %v810_v36, %v809_v27  ;;  %v472_v54 = vld [vmem:[%s5177_s0 + $0xe68] sm:$0xff]  ;;  %v820_v17 = vsel %vm587_vm0, %v408_v26, 0.0  ;;  %v797_v18 = vsel %vm587_vm0, %v215_v59, 0.0  ;;  %v407_v21 = vld [vmem:[%s5177_s0 + $0xc60] sm:$0xff]  ;;  %v799_v24 = vsel %vm587_vm0, %v279_v61, 0.0  ;;  %v153_v59 = vld [vmem:[%s5177_s0 + $0x470] sm:$0xff] }
  0x45   :  { %v766_v53 = vadd.f32 %v765_v33, %v764_v39  ;;  %v1717_v63 = vld [vmem:[%s5176_s1 + $0x148] sm:$0xff]  ;;  %v822_v20 = vsel %vm587_vm0, %v472_v54, 0.0  ;;  %v843_v30 = vsel %vm587_vm0, %v26_v11, 0.0  ;;  %v844_v31 = vsel %vm587_vm0, %v90_v12, 0.0  ;;  %v282_v39 = vld [vmem:[%s5177_s0 + $0x878] sm:$0xff]  ;;  %v217_v54 = vld [vmem:[%s5177_s0 + $0x670] sm:$0xff] }
  0x46   :  { %1917 = vperm.xlu1 %2194, %v1711_v42   ;;  %1912 = vperm.xlu0 %2193, %v1710_v57   ;;  %v23_v42 = vld [vmem:[%s5177_s0 + $0x60] sm:$0xff]  ;;  %v344_v57 = vld [vmem:[%s5177_s0 + $0xa68] sm:$0xff]  ;;  %v813_v58 = vadd.f32 %v812_v37, %v811_v41  ;;  %v846_v33 = vsel %vm587_vm0, %v154_v13, 0.0  ;;  %v25_v41 = vld [vmem:[%s5177_s0 + $0x70] sm:$0xff]  ;;  %v2923_v45 = vadd.f32 %v2796_v23, %v789_v15  ;;  %v803_v51 = vsel %vm587_vm0, %v407_v21, 0.0 }
  0x47   :  { %v792_v62 = vsel %vm587_vm0, %v23_v42, 0.0  ;;  %v768_v4 = vadd.f32 %v767_v40, %v766_v53  ;;  %v818_v16 = vsel %vm587_vm0, %v344_v57, 0.0  ;;  %v845_v40 = vadd.f32 %v844_v31, %v843_v30  ;;  %v89_v42 = vld [vmem:[%s5177_s0 + $0x270] sm:$0xff]  ;;  %v410_v23 = vld [vmem:[%s5177_s0 + $0xc78] sm:$0xff]  ;;  %v28_v13 = vld [vmem:[%s5177_s0 + $0x88] sm:$0xff] }
  0x48   :  { %v815_v8 = vadd.f32 %v814_v35, %v813_v58  ;;  %v794_v0 = vadd.f32 %v793_v1, %v792_v62  ;;  %v848_v35 = vsel %vm587_vm0, %v218_v25, 0.0  ;;  %v805_v26 = vsel %vm587_vm0, %v471_v28, 0.0  ;;  %v156_v25 = vld [vmem:[%s5177_s0 + $0x488] sm:$0xff] }
  0x49   :  { %v770_v27 = vadd.f32 %v769_v52, %v768_v4  ;;  %v346_v52 = vld [vmem:[%s5177_s0 + $0xa78] sm:$0xff]  ;;  %v847_v58 = vadd.f32 %v846_v33, %v845_v40  ;;  %v850_v61 = vsel %vm587_vm0, %v282_v39, 0.0  ;;  %v826_v62 = vsel %vm587_vm0, %v25_v41, 0.0 }
  0x4a   :  { %1927 = vperm.xlu1 %2194, %v1713_v38   ;;  %1922 = vperm.xlu0 %2193, %v1712_v7   ;;  %v536_v38 = vld [vmem:[%s5177_s0 + $0x1068] sm:$0xff]  ;;  %v817_v19 = vadd.f32 %v816_v60, %v815_v8  ;;  %v343_v7 = vld [vmem:[%s5177_s0 + $0xa60] sm:$0xff]  ;;  %v796_v22 = vadd.f32 %v795_v2, %v794_v0  ;;  %v827_v1 = vsel %vm587_vm0, %v89_v42, 0.0  ;;  %v474_v0 = vld [vmem:[%s5177_s0 + $0xe78] sm:$0xff]  ;;  %v854_v15 = vsel %vm587_vm0, %v410_v23, 0.0 }
  0x4b   :  { %v2908_v37 = vsel %vm587_vm0, %v536_v38, 0.0  ;;  %v772_v60 = vadd.f32 %v2839_v55, %v770_v27  ;;  %v1721_v2 = vld [vmem:[%s5176_s1 + $0x168] sm:$0xff]  ;;  %v849_v11 = vadd.f32 %v848_v35, %v847_v58  ;;  %v281_v55 = vld [vmem:[%s5177_s0 + $0x870] sm:$0xff]  ;;  %v828_v12 = vadd.f32 %v827_v1, %v826_v62  ;;  %v1723_v35 = vld [vmem:[%s5176_s1 + $0x178] sm:$0xff] }
  0x4c   :  { %v819_v36 = vadd.f32 %v818_v16, %v817_v19  ;;  %v798_v29 = vadd.f32 %v797_v18, %v796_v22  ;;  %v829_v38 = vsel %vm587_vm0, %v153_v59, 0.0  ;;  %v831_v16 = vsel %vm587_vm0, %v217_v54, 0.0  ;;  %v1720_v18 = vld [vmem:[%s5176_s1 + $0x160] sm:$0xff]  ;;  %v345_v22 = vld [vmem:[%s5177_s0 + $0xa70] sm:$0xff] }
  0x4d   :  { %v851_v21 = vadd.f32 %v850_v61, %v849_v11  ;;  %v2983_v27 = vadd.f32 %v2842_v56, %v772_v60  ;;  %v856_v28 = vsel %vm587_vm0, %v474_v0, 0.0  ;;  %v833_v30 = vsel %vm587_vm0, %v281_v55, 0.0  ;;  %v473_v56 = vld [vmem:[%s5177_s0 + $0xe70] sm:$0xff]  ;;  %v155_v59 = vld [vmem:[%s5177_s0 + $0x480] sm:$0xff]  ;;  %v476_v0 = vld [vmem:[%s5177_s0 + $0xe88] sm:$0xff] }
  0x4e   :  { %1937 = vperm.xlu1 %2194, %v1715_v46   ;;  %1932 = vperm.xlu0 %2193, %v1714_v47   ;;  %v535_v46 = vld [vmem:[%s5177_s0 + $0x1060] sm:$0xff]  ;;  %v801_v47 = vsel %vm587_vm0, %v343_v7, 0.0  ;;  %v821_v53 = vadd.f32 %v820_v17, %v819_v36  ;;  %v800_v57 = vadd.f32 %v799_v24, %v798_v29  ;;  %v92_v17 = vld [vmem:[%s5177_s0 + $0x288] sm:$0xff]  ;;  %v830_v24 = vadd.f32 %v829_v38, %v828_v12  ;;  %v409_v36 = vld [vmem:[%s5177_s0 + $0xc70] sm:$0xff] }
  0x4f   :  { %v2952_v8 = vsel %vm587_vm0, %v535_v46, 0.0  ;;  %v877_v31 = vsel %vm587_vm0, %v28_v13, 0.0  ;;  %v537_v29 = vld [vmem:[%s5177_s0 + $0x1070] sm:$0xff]  ;;  %v878_v40 = vsel %vm587_vm0, %v92_v17, 0.0  ;;  %v835_v42 = vsel %vm587_vm0, %v345_v22, 0.0  ;;  %v219_v1 = vld [vmem:[%s5177_s0 + $0x680] sm:$0xff] }
  0x50   :  { %v802_v4 = vadd.f32 %v801_v47, %v800_v57  ;;  %v823_v19 = vadd.f32 %v822_v20, %v821_v53  ;;  %v220_v20 = vld [vmem:[%s5177_s0 + $0x688] sm:$0xff]  ;;  %v832_v39 = vadd.f32 %v831_v16, %v830_v24  ;;  %v879_v46 = vadd.f32 %v878_v40, %v877_v31  ;;  %v1722_v53 = vld [vmem:[%s5176_s1 + $0x170] sm:$0xff]  ;;  %v30_v17 = vld [vmem:[%s5177_s0 + $0x98] sm:$0xff] }
  0x51   :  { %v880_v47 = vsel %vm587_vm0, %v156_v25, 0.0  ;;  %v882_v58 = vsel %vm587_vm0, %v220_v20, 0.0  ;;  %v837_v54 = vsel %vm587_vm0, %v409_v36, 0.0  ;;  %v839_v60 = vsel %vm587_vm0, %v473_v56, 0.0  ;;  %v540_v11 = vld [vmem:[%s5177_s0 + $0x1088] sm:$0xff]  ;;  %v158_v25 = vld [vmem:[%s5177_s0 + $0x498] sm:$0xff] }
  0x52   :  { %1947 = vperm.xlu1 %2194, %v1717_v63   ;;  %1942 = vperm.xlu0 %2193, %v1716_v9   ;;  %v538_v63 = vld [vmem:[%s5177_s0 + $0x1078] sm:$0xff]  ;;  %v852_v9 = vsel %vm587_vm0, %v346_v52, 0.0  ;;  %v804_v7 = vadd.f32 %v803_v51, %v802_v4  ;;  %v27_v51 = vld [vmem:[%s5177_s0 + $0x80] sm:$0xff]  ;;  %v3022_v57 = vadd.f32 %v2908_v37, %v823_v19  ;;  %v834_v23 = vadd.f32 %v833_v30, %v832_v39  ;;  %v348_v37 = vld [vmem:[%s5177_s0 + $0xa88] sm:$0xff] }
  0x53   :  { %v853_v33 = vadd.f32 %v852_v9, %v851_v21  ;;  %v91_v52 = vld [vmem:[%s5177_s0 + $0x280] sm:$0xff]  ;;  %v3031_v61 = vsel %vm587_vm0, %v537_v29, 0.0  ;;  %v881_v62 = vadd.f32 %v880_v47, %v879_v46  ;;  %v412_v4 = vld [vmem:[%s5177_s0 + $0xc88] sm:$0xff]  ;;  %v860_v12 = vsel %vm587_vm0, %v27_v51, 0.0  ;;  %v1727_v56 = vld [vmem:[%s5176_s1 + $0x198] sm:$0xff] }
  0x54   :  { %v806_v41 = vadd.f32 %v805_v26, %v804_v7  ;;  %v861_v13 = vsel %vm587_vm0, %v91_v52, 0.0  ;;  %v863_v16 = vsel %vm587_vm0, %v155_v59, 0.0  ;;  %v1724_v19 = vld [vmem:[%s5176_s1 + $0x180] sm:$0xff]  ;;  %v886_v22 = vsel %vm587_vm0, %v348_v37, 0.0  ;;  %v286_v51 = vld [vmem:[%s5177_s0 + $0x898] sm:$0xff] }
  0x55   :  { %v855_v26 = vadd.f32 %v854_v15, %v853_v33  ;;  %v883_v9 = vadd.f32 %v882_v58, %v881_v62  ;;  %v283_v15 = vld [vmem:[%s5177_s0 + $0x880] sm:$0xff]  ;;  %v862_v38 = vadd.f32 %v861_v13, %v860_v12  ;;  %v865_v24 = vsel %vm587_vm0, %v219_v1, 0.0  ;;  %v157_v1 = vld [vmem:[%s5177_s0 + $0x490] sm:$0xff] }
  0x56   :  { %1957 = vperm.xlu1 %2194, %v1719_v34   ;;  %1952 = vperm.xlu0 %2193, %v1718_v44   ;;  %v2992_v34 = vsel %vm587_vm0, %v538_v63, 0.0  ;;  %v284_v44 = vld [vmem:[%s5177_s0 + $0x888] sm:$0xff]  ;;  %v3052_v63 = vadd.f32 %v2952_v8, %v806_v41  ;;  %v888_v20 = vsel %vm587_vm0, %v412_v4, 0.0  ;;  %v890_v31 = vsel %vm587_vm0, %v476_v0, 0.0  ;;  %v347_v33 = vld [vmem:[%s5177_s0 + $0xa80] sm:$0xff] }
  0x57   :  { %v884_v55 = vsel %vm587_vm0, %v284_v44, 0.0  ;;  %v1725_v8 = vld [vmem:[%s5176_s1 + $0x188] sm:$0xff]  ;;  %v857_v7 = vadd.f32 %v856_v28, %v855_v26  ;;  %v864_v36 = vadd.f32 %v863_v16, %v862_v38  ;;  %v222_v28 = vld [vmem:[%s5177_s0 + $0x698] sm:$0xff]  ;;  %v3087_v29 = vsel %vm587_vm0, %v540_v11, 0.0  ;;  %v411_v39 = vld [vmem:[%s5177_s0 + $0xc80] sm:$0xff] }
  0x58   :  { %v885_v30 = vadd.f32 %v884_v55, %v883_v9  ;;  %v475_v40 = vld [vmem:[%s5177_s0 + $0xe80] sm:$0xff]  ;;  %v867_v41 = vsel %vm587_vm0, %v283_v15, 0.0  ;;  %v93_v26 = vld [vmem:[%s5177_s0 + $0x290] sm:$0xff]  ;;  %v869_v37 = vsel %vm587_vm0, %v347_v33, 0.0  ;;  %v916_v62 = vsel %vm587_vm0, %v222_v28, 0.0  ;;  %v1729_v55 = vld [vmem:[%s5176_s1 + $0x1a8] sm:$0xff] }
  0x59   :  { %v866_v47 = vadd.f32 %v865_v24, %v864_v36  ;;  %v3112_v58 = vadd.f32 %v2992_v34, %v857_v7  ;;  %v871_v0 = vsel %vm587_vm0, %v411_v39, 0.0  ;;  %v350_v34 = vld [vmem:[%s5177_s0 + $0xa98] sm:$0xff]  ;;  %v1728_v12 = vld [vmem:[%s5176_s1 + $0x1a0] sm:$0xff]  ;;  %v873_v13 = vsel %vm587_vm0, %v475_v40, 0.0  ;;  %v221_v15 = vld [vmem:[%s5177_s0 + $0x690] sm:$0xff] }
  0x5a   :  { %1967 = vperm.xlu1 %2194, %v1721_v2   ;;  %1962 = vperm.xlu0 %2193, %v1720_v18   ;;  %v836_v2 = vadd.f32 %v835_v42, %v834_v23  ;;  %v94_v18 = vld [vmem:[%s5177_s0 + $0x298] sm:$0xff]  ;;  %v911_v42 = vsel %vm587_vm0, %v30_v17, 0.0  ;;  %v887_v46 = vadd.f32 %v886_v22, %v885_v30  ;;  %v1726_v23 = vld [vmem:[%s5176_s1 + $0x190] sm:$0xff]  ;;  %v918_v9 = vsel %vm587_vm0, %v286_v51, 0.0  ;;  %v32_v22 = vld [vmem:[%s5177_s0 + $0xa8] sm:$0xff] }
  0x5b   :  { %v912_v44 = vsel %vm587_vm0, %v94_v18, 0.0  ;;  %v868_v4 = vadd.f32 %v867_v41, %v866_v47  ;;  %v895_v16 = vsel %vm587_vm0, %v93_v26, 0.0  ;;  %v96_v36 = vld [vmem:[%s5177_s0 + $0x2a8] sm:$0xff]  ;;  %v349_v40 = vld [vmem:[%s5177_s0 + $0xa90] sm:$0xff]  ;;  %v899_v41 = vsel %vm587_vm0, %v221_v15, 0.0 }
  0x5c   :  { %v838_v21 = vadd.f32 %v837_v54, %v836_v2  ;;  %v913_v52 = vadd.f32 %v912_v44, %v911_v42  ;;  %v539_v54 = vld [vmem:[%s5177_s0 + $0x1080] sm:$0xff]  ;;  %v889_v2 = vadd.f32 %v888_v20, %v887_v46  ;;  %v285_v20 = vld [vmem:[%s5177_s0 + $0x890] sm:$0xff]  ;;  %v160_v28 = vld [vmem:[%s5177_s0 + $0x4a8] sm:$0xff] }
  0x5d   :  { %v870_v17 = vadd.f32 %v869_v37, %v868_v4  ;;  %v3143_v18 = vsel %vm587_vm0, %v539_v54, 0.0  ;;  %v1731_v42 = vld [vmem:[%s5176_s1 + $0x1b8] sm:$0xff]  ;;  %v1730_v44 = vld [vmem:[%s5176_s1 + $0x1b0] sm:$0xff]  ;;  %v288_v54 = vld [vmem:[%s5177_s0 + $0x8a8] sm:$0xff]  ;;  %v946_v37 = vsel %vm587_vm0, %v96_v36, 0.0  ;;  %v903_v4 = vsel %vm587_vm0, %v349_v40, 0.0 }
  0x5e   :  { %1977 = vperm.xlu1 %2194, %v1723_v35   ;;  %1972 = vperm.xlu0 %2193, %v1722_v53   ;;  %v914_v35 = vsel %vm587_vm0, %v158_v25, 0.0  ;;  %v29_v53 = vld [vmem:[%s5177_s0 + $0x90] sm:$0xff]  ;;  %v840_v59 = vadd.f32 %v839_v60, %v838_v21  ;;  %v414_v60 = vld [vmem:[%s5177_s0 + $0xc98] sm:$0xff]  ;;  %v897_v21 = vsel %vm587_vm0, %v157_v1, 0.0  ;;  %v920_v25 = vsel %vm587_vm0, %v350_v34, 0.0  ;;  %v31_v34 = vld [vmem:[%s5177_s0 + $0xa0] sm:$0xff] }
  0x5f   :  { %v915_v11 = vadd.f32 %v914_v35, %v913_v52  ;;  %v894_v38 = vsel %vm587_vm0, %v29_v53, 0.0  ;;  %v922_v30 = vsel %vm587_vm0, %v414_v60, 0.0  ;;  %v413_v47 = vld [vmem:[%s5177_s0 + $0xc90] sm:$0xff]  ;;  %v224_v52 = vld [vmem:[%s5177_s0 + $0x6a8] sm:$0xff]  ;;  %v945_v35 = vsel %vm587_vm0, %v32_v22, 0.0  ;;  %v95_v60 = vld [vmem:[%s5177_s0 + $0x2a0] sm:$0xff] }
  0x60   :  { %v3156_v24 = vadd.f32 %v3031_v61, %v840_v59  ;;  %v896_v33 = vadd.f32 %v895_v16, %v894_v38  ;;  %v872_v61 = vadd.f32 %v871_v0, %v870_v17  ;;  %v477_v26 = vld [vmem:[%s5177_s0 + $0xe90] sm:$0xff]  ;;  %v901_v59 = vsel %vm587_vm0, %v285_v20, 0.0  ;;  %v1733_v15 = vld [vmem:[%s5176_s1 + $0x1c8] sm:$0xff]  ;;  %v1732_v38 = vld [vmem:[%s5176_s1 + $0x1c0] sm:$0xff] }
  0x61   :  { %v917_v7 = vadd.f32 %v916_v62, %v915_v11  ;;  %v948_v62 = vsel %vm587_vm0, %v160_v28, 0.0  ;;  %v947_v0 = vadd.f32 %v946_v37, %v945_v35  ;;  %v159_v11 = vld [vmem:[%s5177_s0 + $0x4a0] sm:$0xff]  ;;  %v3224_v17 = vsel %vm587_vm0, %v477_v26, 0.0  ;;  %v480_v22 = vld [vmem:[%s5177_s0 + $0xea8] sm:$0xff]  ;;  %v34_v40 = vld [vmem:[%s5177_s0 + $0xb8] sm:$0xff] }
  0x62   :  { %1987 = vperm.xlu1 %2194, %v1725_v8   ;;  %1982 = vperm.xlu0 %2193, %v1724_v19   ;;  %v478_v8 = vld [vmem:[%s5177_s0 + $0xe98] sm:$0xff]  ;;  %v898_v51 = vadd.f32 %v897_v21, %v896_v33  ;;  %v874_v1 = vadd.f32 %v873_v13, %v872_v61  ;;  %v905_v13 = vsel %vm587_vm0, %v413_v47, 0.0  ;;  %v223_v21 = vld [vmem:[%s5177_s0 + $0x6a0] sm:$0xff]  ;;  %v928_v20 = vsel %vm587_vm0, %v31_v34, 0.0 }
  0x63   :  { %v542_v19 = vld [vmem:[%s5177_s0 + $0x1098] sm:$0xff]  ;;  %v919_v39 = vadd.f32 %v918_v9, %v917_v7  ;;  %v924_v46 = vsel %vm587_vm0, %v478_v8, 0.0  ;;  %v950_v9 = vsel %vm587_vm0, %v224_v52, 0.0  ;;  %v352_v8 = vld [vmem:[%s5177_s0 + $0xaa8] sm:$0xff]  ;;  %v949_v7 = vadd.f32 %v948_v62, %v947_v0  ;;  %v351_v26 = vld [vmem:[%s5177_s0 + $0xaa0] sm:$0xff] }
  0x64   :  { %v929_v33 = vsel %vm587_vm0, %v95_v60, 0.0  ;;  %v931_v36 = vsel %vm587_vm0, %v159_v11, 0.0  ;;  %v3249_v28 = vadd.f32 %v3143_v18, %v874_v1  ;;  %v544_v18 = vld [vmem:[%s5177_s0 + $0x10a8] sm:$0xff]  ;;  %v954_v47 = vsel %vm587_vm0, %v352_v8, 0.0  ;;  %v1735_v37 = vld [vmem:[%s5176_s1 + $0x1d8] sm:$0xff]  ;;  %v1734_v62 = vld [vmem:[%s5176_s1 + $0x1d0] sm:$0xff] }
  0x65   :  { %v921_v53 = vadd.f32 %v920_v25, %v919_v39  ;;  %v952_v25 = vsel %vm587_vm0, %v288_v54, 0.0  ;;  %v951_v61 = vadd.f32 %v950_v9, %v949_v7  ;;  %v930_v39 = vadd.f32 %v929_v33, %v928_v20  ;;  %v226_v54 = vld [vmem:[%s5177_s0 + $0x6b8] sm:$0xff]  ;;  %v543_v8 = vld [vmem:[%s5177_s0 + $0x10a0] sm:$0xff] }
  0x66   :  { %1997 = vperm.xlu1 %2194, %v1727_v56   ;;  %1992 = vperm.xlu0 %2193, %v1726_v23   ;;  %v891_v56 = vadd.f32 %v890_v31, %v889_v2  ;;  %v3181_v31 = vsel %vm587_vm0, %v542_v19, 0.0  ;;  %v541_v23 = vld [vmem:[%s5177_s0 + $0x1090] sm:$0xff]  ;;  %v900_v2 = vadd.f32 %v899_v41, %v898_v51  ;;  %v416_v19 = vld [vmem:[%s5177_s0 + $0xca8] sm:$0xff]  ;;  %v98_v41 = vld [vmem:[%s5177_s0 + $0x2b8] sm:$0xff]  ;;  %v933_v52 = vsel %vm587_vm0, %v223_v21, 0.0 }
  0x67   :  { %v956_v51 = vsel %vm587_vm0, %v416_v19, 0.0  ;;  %v953_v35 = vadd.f32 %v952_v25, %v951_v61  ;;  %v980_v0 = vsel %vm587_vm0, %v98_v41, 0.0  ;;  %v3290_v11 = vsel %vm587_vm0, %v544_v18, 0.0  ;;  %v290_v9 = vld [vmem:[%s5177_s0 + $0x8b8] sm:$0xff]  ;;  %v1737_v61 = vld [vmem:[%s5176_s1 + $0x1e8] sm:$0xff] }
  0x68   :  { %v902_v16 = vadd.f32 %v901_v59, %v900_v2  ;;  %v479_v2 = vld [vmem:[%s5177_s0 + $0xea0] sm:$0xff]  ;;  %v937_v19 = vsel %vm587_vm0, %v351_v26, 0.0  ;;  %v354_v21 = vld [vmem:[%s5177_s0 + $0xab8] sm:$0xff]  ;;  %v986_v41 = vsel %vm587_vm0, %v290_v9, 0.0  ;;  %v1738_v9 = vld [vmem:[%s5176_s1 + $0x1f0] sm:$0xff] }
  0x69   :  { %v955_v60 = vadd.f32 %v954_v47, %v953_v35  ;;  %v941_v20 = vsel %vm587_vm0, %v479_v2, 0.0  ;;  %v943_v47 = vsel %vm587_vm0, %v543_v8, 0.0  ;;  %v289_v35 = vld [vmem:[%s5177_s0 + $0x8b0] sm:$0xff]  ;;  %v228_v8 = vld [vmem:[%s5177_s0 + $0x6c8] sm:$0xff] }
  0x6a   :  { %2007 = vperm.xlu1 %2194, %v1729_v55   ;;  %2002 = vperm.xlu0 %2193, %v1728_v12   ;;  %v3213_v55 = vadd.f32 %v3087_v29, %v891_v56  ;;  %v923_v12 = vadd.f32 %v922_v30, %v921_v53  ;;  %v3227_v29 = vsel %vm587_vm0, %v541_v23, 0.0  ;;  %v287_v30 = vld [vmem:[%s5177_s0 + $0x8a0] sm:$0xff]  ;;  %v904_v56 = vadd.f32 %v903_v4, %v902_v16 }
  0x6b   :  { %v958_v53 = vsel %vm587_vm0, %v480_v22, 0.0  ;;  %v932_v23 = vadd.f32 %v931_v36, %v930_v39  ;;  %v935_v59 = vsel %vm587_vm0, %v287_v30, 0.0  ;;  %v979_v4 = vsel %vm587_vm0, %v34_v40, 0.0  ;;  %v161_v36 = vld [vmem:[%s5177_s0 + $0x4b0] sm:$0xff]  ;;  %v1736_v39 = vld [vmem:[%s5176_s1 + $0x1e0] sm:$0xff] }
  0x6c   :  { %v906_v1 = vadd.f32 %v905_v13, %v904_v56  ;;  %v981_v13 = vadd.f32 %v980_v0, %v979_v4  ;;  %v984_v22 = vsel %vm587_vm0, %v226_v54, 0.0  ;;  %v957_v25 = vadd.f32 %v956_v51, %v955_v60  ;;  %v225_v56 = vld [vmem:[%s5177_s0 + $0x6b0] sm:$0xff]  ;;  %v482_v51 = vld [vmem:[%s5177_s0 + $0xeb8] sm:$0xff] }
  0x6d   :  { %v965_v54 = vsel %vm587_vm0, %v161_v36, 0.0 }
  0x6e   :  { %2017 = vperm.xlu1 %2194, %v1731_v42   ;;  %2012 = vperm.xlu0 %2193, %v1730_v44   ;;  %v162_v42 = vld [vmem:[%s5177_s0 + $0x4b8] sm:$0xff]  ;;  %v925_v44 = vadd.f32 %v924_v46, %v923_v12  ;;  %v415_v46 = vld [vmem:[%s5177_s0 + $0xca0] sm:$0xff]  ;;  %v934_v12 = vadd.f32 %v933_v52, %v932_v23  ;;  %v908_v40 = vadd.f32 %v3224_v17, %v906_v1  ;;  %v36_v17 = vld [vmem:[%s5177_s0 + $0xc8] sm:$0xff]  ;;  %v988_v23 = vsel %vm587_vm0, %v354_v21, 0.0 }
  0x6f   :  { %v982_v34 = vsel %vm587_vm0, %v162_v42, 0.0  ;;  %v939_v7 = vsel %vm587_vm0, %v415_v46, 0.0  ;;  %v546_v46 = vld [vmem:[%s5177_s0 + $0x10b8] sm:$0xff]  ;;  %v959_v2 = vadd.f32 %v958_v53, %v957_v25  ;;  %v992_v53 = vsel %vm587_vm0, %v482_v51, 0.0  ;;  %v163_v51 = vld [vmem:[%s5177_s0 + $0x4c0] sm:$0xff] }
  0x70   :  { %v3302_v16 = vadd.f32 %v3181_v31, %v925_v44  ;;  %v936_v30 = vadd.f32 %v935_v59, %v934_v12  ;;  %v418_v31 = vld [vmem:[%s5177_s0 + $0xcb8] sm:$0xff]  ;;  %v983_v33 = vadd.f32 %v982_v34, %v981_v13  ;;  %v353_v34 = vld [vmem:[%s5177_s0 + $0xab0] sm:$0xff]  ;;  %v164_v12 = vld [vmem:[%s5177_s0 + $0x4c8] sm:$0xff]  ;;  %v3366_v13 = vadd.f32 %v3227_v29, %v908_v40 }
  0x71   :  { %v990_v59 = vsel %vm587_vm0, %v418_v31, 0.0  ;;  %v1739_v1 = vld [vmem:[%s5176_s1 + $0x1f8] sm:$0xff]  ;;  %v3378_v21 = vsel %vm587_vm0, %v546_v46, 0.0  ;;  %v481_v29 = vld [vmem:[%s5177_s0 + $0xeb0] sm:$0xff]  ;;  %v971_v36 = vsel %vm587_vm0, %v353_v34, 0.0  ;;  %v99_v40 = vld [vmem:[%s5177_s0 + $0x2c0] sm:$0xff] }
  0x72   :  { %2027 = vperm.xlu1 %2194, %v1733_v15   ;;  %2022 = vperm.xlu0 %2193, %v1732_v38   ;;  %v33_v15 = vld [vmem:[%s5177_s0 + $0xb0] sm:$0xff]  ;;  %v938_v18 = vadd.f32 %v937_v19, %v936_v30  ;;  %v985_v52 = vadd.f32 %v984_v22, %v983_v33  ;;  %v1013_v19 = vsel %vm587_vm0, %v36_v17, 0.0  ;;  %v292_v30 = vld [vmem:[%s5177_s0 + $0x8c8] sm:$0xff]  ;;  %v291_v34 = vld [vmem:[%s5177_s0 + $0x8c0] sm:$0xff] }
  0x73   :  { %v97_v38 = vld [vmem:[%s5177_s0 + $0x2b0] sm:$0xff]  ;;  %v962_v42 = vsel %vm587_vm0, %v33_v15, 0.0  ;;  %v1020_v46 = vsel %vm587_vm0, %v292_v30, 0.0  ;;  %v355_v30 = vld [vmem:[%s5177_s0 + $0xac0] sm:$0xff] }
  0x74   :  { %v963_v44 = vsel %vm587_vm0, %v97_v38, 0.0  ;;  %v940_v4 = vadd.f32 %v939_v7, %v938_v18  ;;  %v987_v0 = vadd.f32 %v986_v41, %v985_v52  ;;  %v417_v15 = vld [vmem:[%s5177_s0 + $0xcb0] sm:$0xff]  ;;  %v969_v38 = vsel %vm587_vm0, %v289_v35, 0.0  ;;  %v420_v35 = vld [vmem:[%s5177_s0 + $0xcc8] sm:$0xff] }
  0x75   :  { %v964_v26 = vadd.f32 %v963_v44, %v962_v42  ;;  %v545_v22 = vld [vmem:[%s5177_s0 + $0x10b0] sm:$0xff]  ;;  %v3399_v41 = vadd.f32 %v3290_v11, %v959_v2  ;;  %v973_v44 = vsel %vm587_vm0, %v417_v15, 0.0  ;;  %v1018_v18 = vsel %vm587_vm0, %v228_v8, 0.0 }
  0x76   :  { %2037 = vperm.xlu1 %2194, %v1735_v37   ;;  %2032 = vperm.xlu0 %2193, %v1734_v62   ;;  %v967_v37 = vsel %vm587_vm0, %v225_v56, 0.0  ;;  %v100_v62 = vld [vmem:[%s5177_s0 + $0x2c8] sm:$0xff]  ;;  %v989_v7 = vadd.f32 %v988_v23, %v987_v0  ;;  %v942_v33 = vadd.f32 %v941_v20, %v940_v4  ;;  %v975_v52 = vsel %vm587_vm0, %v481_v29, 0.0  ;;  %v227_v23 = vld [vmem:[%s5177_s0 + $0x6c0] sm:$0xff] }
  0x77   :  { %v966_v60 = vadd.f32 %v965_v54, %v964_v26  ;;  %v1014_v31 = vsel %vm587_vm0, %v100_v62, 0.0  ;;  %v356_v20 = vld [vmem:[%s5177_s0 + $0xac8] sm:$0xff]  ;;  %v3411_v11 = vsel %vm587_vm0, %v545_v22, 0.0  ;;  %v1001_v8 = vsel %vm587_vm0, %v227_v23, 0.0 }
  0x78   :  { %v1015_v56 = vadd.f32 %v1014_v31, %v1013_v19  ;;  %v484_v26 = vld [vmem:[%s5177_s0 + $0xec8] sm:$0xff]  ;;  %v991_v54 = vadd.f32 %v990_v59, %v989_v7  ;;  %v3425_v2 = vadd.f32 %v943_v47, %v942_v33  ;;  %v1022_v15 = vsel %vm587_vm0, %v356_v20, 0.0  ;;  %v38_v19 = vld [vmem:[%s5177_s0 + $0xd8] sm:$0xff] }
  0x79   :  { %v968_v25 = vadd.f32 %v967_v37, %v966_v60  ;;  %v548_v4 = vld [vmem:[%s5177_s0 + $0x10c8] sm:$0xff]  ;;  %v1026_v47 = vsel %vm587_vm0, %v484_v26, 0.0  ;;  %v102_v7 = vld [vmem:[%s5177_s0 + $0x2d8] sm:$0xff]  ;;  %v1005_v26 = vsel %vm587_vm0, %v355_v30, 0.0 }
  0x7a   :  { %2047 = vperm.xlu1 %2194, %v1737_v61   ;;  %2042 = vperm.xlu0 %2193, %v1736_v39   ;;  %v1016_v61 = vsel %vm587_vm0, %v164_v12, 0.0  ;;  %v35_v39 = vld [vmem:[%s5177_s0 + $0xc0] sm:$0xff]  ;;  %v999_v12 = vsel %vm587_vm0, %v163_v51, 0.0  ;;  %v166_v33 = vld [vmem:[%s5177_s0 + $0x4d8] sm:$0xff] }
  0x7b   :  { %v970_v42 = vadd.f32 %v969_v38, %v968_v25  ;;  %v1017_v17 = vadd.f32 %v1016_v61, %v1015_v56  ;;  %v996_v62 = vsel %vm587_vm0, %v35_v39, 0.0  ;;  %v1024_v38 = vsel %vm587_vm0, %v420_v35, 0.0  ;;  %v483_v51 = vld [vmem:[%s5177_s0 + $0xec0] sm:$0xff] }
  0x7c   :  { %v993_v56 = vadd.f32 %v992_v53, %v991_v54  ;;  %v419_v53 = vld [vmem:[%s5177_s0 + $0xcc0] sm:$0xff]  ;;  %v1050_v23 = vsel %vm587_vm0, %v166_v33, 0.0 }
  0x7d   :  { %v972_v37 = vadd.f32 %v971_v36, %v970_v42  ;;  %v1019_v0 = vadd.f32 %v1018_v18, %v1017_v17  ;;  %v230_v36 = vld [vmem:[%s5177_s0 + $0x6d8] sm:$0xff]  ;;  %v1047_v42 = vsel %vm587_vm0, %v38_v19, 0.0  ;;  %v547_v35 = vld [vmem:[%s5177_s0 + $0x10c0] sm:$0xff] }
  0x7e   :  { %2057 = vperm.xlu1 %2194, %v1739_v1   ;;  %2052 = vperm.xlu0 %2193, %v1738_v9   ;;  %v997_v1 = vsel %vm587_vm0, %v99_v40, 0.0  ;;  %v294_v17 = vld [vmem:[%s5177_s0 + $0x8d8] sm:$0xff]  ;;  %v1052_v54 = vsel %vm587_vm0, %v230_v36, 0.0 }
  0x7f   :  { %v998_v60 = vadd.f32 %v997_v1, %v996_v62  ;;  %v1021_v25 = vadd.f32 %v1020_v46, %v1019_v0  ;;  %v974_v61 = vadd.f32 %v973_v44, %v972_v37  ;;  %v1048_v44 = vsel %vm587_vm0, %v102_v7, 0.0  ;;  %v37_v0 = vld [vmem:[%s5177_s0 + $0xd0] sm:$0xff] }
  0x80   :  { %v1049_v46 = vadd.f32 %v1048_v44, %v1047_v42  ;;  %v1030_v33 = vsel %vm587_vm0, %v37_v0, 0.0  ;;  %v293_v44 = vld [vmem:[%s5177_s0 + $0x8d0] sm:$0xff] }
  0x81   :  { %v1753_v59 = vpop.permute.xlu1 %1752  ;;  %v1743_v9 = vpop.permute.xlu0 %1742  ;;  %v1000_v31 = vadd.f32 %v999_v12, %v998_v60  ;;  %v1023_v39 = vadd.f32 %v1022_v15, %v1021_v25  ;;  %v3493_v60 = vadd.f32 %v3378_v21, %v993_v56  ;;  %v976_v12 = vadd.f32 %v975_v52, %v974_v61  ;;  %v550_v25 = vld [vmem:[%s5177_s0 + $0x10d8] sm:$0xff] }
  0x82   :  { %v2062_v29 = vmul.f32 %v1753_v59, %v2461_v5  ;;  %v2060_v22 = vmul.f32 %v1743_v9, %v2507_v32  ;;  %v3456_v5 = vsel %vm587_vm0, %v548_v4, 0.0  ;;  %v1003_v32 = vsel %vm587_vm0, %v291_v34, 0.0  ;;  %v101_v34 = vld [vmem:[%s5177_s0 + $0x2d0] sm:$0xff] }
  0x83   :  { %v1002_v40 = vadd.f32 %v1001_v8, %v1000_v31  ;;  %v1025_v1 = vadd.f32 %v1024_v38, %v1023_v39  ;;  %v1007_v59 = vsel %vm587_vm0, %v419_v53, 0.0  ;;  %v165_v9 = vld [vmem:[%s5177_s0 + $0x4d0] sm:$0xff]  ;;  %v1009_v52 = vsel %vm587_vm0, %v483_v51, 0.0  ;;  %v422_v38 = vld [vmem:[%s5177_s0 + $0xcd8] sm:$0xff]  ;;  %v40_v39 = vld [vmem:[%s5177_s0 + $0xe8] sm:$0xff] }
  0x84   :  { %2126 = vst.msk [vmem:[%s5178_s2 + $0x10] sm:$0xff] %vm587_vm0, %v2062_v29  ;;  %2124 = vst.msk [vmem:[%s5178_s2] sm:$0xff] %vm587_vm0, %v2060_v22  ;;  %v3512_v15 = vsel %vm587_vm0, %v547_v35, 0.0  ;;  %v1054_v8 = vsel %vm587_vm0, %v294_v17, 0.0  ;;  %v486_v22 = vld [vmem:[%s5177_s0 + $0xed8] sm:$0xff]  ;;  %v229_v31 = vld [vmem:[%s5177_s0 + $0x6d0] sm:$0xff]  ;;  %v3537_v53 = vadd.f32 %v3411_v11, %v976_v12 }
  0x85   :  { %v1758_v20 = vpop.permute.xlu1 %1757  ;;  %v1748_v18 = vpop.permute.xlu0 %1747  ;;  %v1004_v4 = vadd.f32 %v1003_v32, %v1002_v40  ;;  %v1027_v29 = vadd.f32 %v1026_v47, %v1025_v1  ;;  %v1031_v36 = vsel %vm587_vm0, %v101_v34, 0.0  ;;  %v1033_v32 = vsel %vm587_vm0, %v165_v9, 0.0  ;;  %v168_v35 = vld [vmem:[%s5177_s0 + $0x4e8] sm:$0xff]  ;;  %v485_v34 = vld [vmem:[%s5177_s0 + $0xed0] sm:$0xff] }
  0x86   :  { %v2063_v37 = vmul.f32 %v1758_v20, %v2539_v50  ;;  %v2061_v62 = vmul.f32 %v1748_v18, %v2582_v14  ;;  %v358_v50 = vld [vmem:[%s5177_s0 + $0xad8] sm:$0xff]  ;;  %v1051_v14 = vadd.f32 %v1050_v23, %v1049_v46  ;;  %v1058_v11 = vsel %vm587_vm0, %v422_v38, 0.0  ;;  %v232_v1 = vld [vmem:[%s5177_s0 + $0x6e8] sm:$0xff]  ;;  %v549_v12 = vld [vmem:[%s5177_s0 + $0x10d0] sm:$0xff] }
  0x87   :  { %v1006_v21 = vadd.f32 %v1005_v26, %v1004_v4  ;;  %v1056_v61 = vsel %vm587_vm0, %v358_v50, 0.0  ;;  %v1060_v20 = vsel %vm587_vm0, %v486_v22, 0.0  ;;  %v3556_v18 = vsel %vm587_vm0, %v550_v25, 0.0  ;;  %v39_v38 = vld [vmem:[%s5177_s0 + $0xe0] sm:$0xff] }
  0x88   :  { %2127 = vst.msk [vmem:[%s5178_s2 + $0x18] sm:$0xff] %vm587_vm0, %v2063_v37  ;;  %2125 = vst.msk [vmem:[%s5178_s2 + $0x8] sm:$0xff] %vm587_vm0, %v2061_v62  ;;  %v1053_v30 = vadd.f32 %v1052_v54, %v1051_v14  ;;  %v1035_v51 = vsel %vm587_vm0, %v229_v31, 0.0  ;;  %v3563_v46 = vadd.f32 %v3456_v5, %v1027_v29  ;;  %v357_v54 = vld [vmem:[%s5177_s0 + $0xad0] sm:$0xff]  ;;  %v1081_v4 = vsel %vm587_vm0, %v40_v39, 0.0  ;;  %v103_v29 = vld [vmem:[%s5177_s0 + $0x2e0] sm:$0xff] }
  0x89   :  { %v1768_v19 = vpop.permute.xlu1 %1767  ;;  %v1763_v7 = vpop.permute.xlu0 %1762  ;;  %v1008_v40 = vadd.f32 %v1007_v59, %v1006_v21  ;;  %v421_v37 = vld [vmem:[%s5177_s0 + $0xcd0] sm:$0xff]  ;;  %v1037_v59 = vsel %vm587_vm0, %v293_v44, 0.0  ;;  %v1043_v31 = vsel %vm587_vm0, %v485_v34, 0.0  ;;  %v424_v39 = vld [vmem:[%s5177_s0 + $0xce8] sm:$0xff]  ;;  %v1064_v44 = vsel %vm587_vm0, %v39_v38, 0.0  ;;  %v170_v34 = vld [vmem:[%s5177_s0 + $0x4f8] sm:$0xff] }
  0x8a   :  { %v2065_v56 = vmul.f32 %v1768_v19, %v2640_v49  ;;  %v2064_v47 = vmul.f32 %v1763_v7, %v2673_v6  ;;  %v1055_v42 = vadd.f32 %v1054_v8, %v1053_v30  ;;  %v1032_v49 = vadd.f32 %v1031_v36, %v1030_v33  ;;  %v104_v6 = vld [vmem:[%s5177_s0 + $0x2e8] sm:$0xff] }
  0x8b   :  { %v1082_v50 = vsel %vm587_vm0, %v104_v6, 0.0  ;;  %v1010_v14 = vadd.f32 %v1009_v52, %v1008_v40  ;;  %v1039_v8 = vsel %vm587_vm0, %v357_v54, 0.0  ;;  %v1041_v19 = vsel %vm587_vm0, %v421_v37, 0.0  ;;  %v360_v36 = vld [vmem:[%s5177_s0 + $0xae8] sm:$0xff]  ;;  %v42_v54 = vld [vmem:[%s5177_s0 + $0xf8] sm:$0xff] }
  0x8c   :  { %2129 = vst.msk [vmem:[%s5178_s2 + $0x28] sm:$0xff] %vm587_vm0, %v2065_v56  ;;  %2128 = vst.msk [vmem:[%s5178_s2 + $0x20] sm:$0xff] %vm587_vm0, %v2064_v47  ;;  %v1057_v23 = vadd.f32 %v1056_v61, %v1055_v42  ;;  %v1034_v62 = vadd.f32 %v1033_v32, %v1032_v49  ;;  %v1083_v21 = vadd.f32 %v1082_v50, %v1081_v4  ;;  %v1086_v7 = vsel %vm587_vm0, %v232_v1, 0.0  ;;  %v167_v47 = vld [vmem:[%s5177_s0 + $0x4e0] sm:$0xff] }
  0x8d   :  { %v1778_v26 = vpop.permute.xlu1 %1777  ;;  %v1773_v17 = vpop.permute.xlu0 %1772  ;;  %v3608_v33 = vsel %vm587_vm0, %v549_v12, 0.0  ;;  %v231_v42 = vld [vmem:[%s5177_s0 + $0x6e0] sm:$0xff]  ;;  %v3627_v49 = vadd.f32 %v3512_v15, %v1010_v14  ;;  %v1092_v4 = vsel %vm587_vm0, %v424_v39, 0.0  ;;  %v105_v39 = vld [vmem:[%s5177_s0 + $0x2f0] sm:$0xff] }
  0x8e   :  { %v2067_v0 = vmul.f32 %v1778_v26, %v2730_v43  ;;  %v2066_v5 = vmul.f32 %v1773_v17, %v2770_v10  ;;  %v1036_v9 = vadd.f32 %v1035_v51, %v1034_v62  ;;  %v296_v43 = vld [vmem:[%s5177_s0 + $0x8e8] sm:$0xff]  ;;  %v1084_v10 = vsel %vm587_vm0, %v168_v35, 0.0  ;;  %v295_v26 = vld [vmem:[%s5177_s0 + $0x8e0] sm:$0xff] }
  0x8f   :  { %v1059_v52 = vadd.f32 %v1058_v11, %v1057_v23  ;;  %v1085_v56 = vadd.f32 %v1084_v10, %v1083_v21  ;;  %v1088_v40 = vsel %vm587_vm0, %v296_v43, 0.0  ;;  %v1065_v11 = vsel %vm587_vm0, %v103_v29, 0.0  ;;  %v552_v51 = vld [vmem:[%s5177_s0 + $0x10e8] sm:$0xff]  ;;  %v359_v14 = vld [vmem:[%s5177_s0 + $0xae0] sm:$0xff] }
  0x90   :  { %2131 = vst.msk [vmem:[%s5178_s2 + $0x38] sm:$0xff] %vm587_vm0, %v2067_v0  ;;  %2130 = vst.msk [vmem:[%s5178_s2 + $0x30] sm:$0xff] %vm587_vm0, %v2066_v5  ;;  %v1038_v30 = vadd.f32 %v1037_v59, %v1036_v9  ;;  %v1090_v35 = vsel %vm587_vm0, %v360_v36, 0.0  ;;  %v1066_v17 = vadd.f32 %v1065_v11, %v1064_v44  ;;  %v1067_v23 = vsel %vm587_vm0, %v167_v47, 0.0  ;;  %v106_v5 = vld [vmem:[%s5177_s0 + $0x2f8] sm:$0xff]  ;;  %v423_v9 = vld [vmem:[%s5177_s0 + $0xce0] sm:$0xff] }
  0x91   :  { %v1788_v22 = vpop.permute.xlu1 %1787  ;;  %v1783_v25 = vpop.permute.xlu0 %1782  ;;  %v1061_v15 = vadd.f32 %v1060_v20, %v1059_v52  ;;  %v1069_v0 = vsel %vm587_vm0, %v231_v42, 0.0  ;;  %v3670_v10 = vsel %vm587_vm0, %v552_v51, 0.0  ;;  %v1071_v38 = vsel %vm587_vm0, %v295_v26, 0.0  ;;  %v298_v47 = vld [vmem:[%s5177_s0 + $0x8f8] sm:$0xff] }
  0x92   :  { %v2069_v61 = vmul.f32 %v1788_v22, %v2834_v48  ;;  %v2068_v32 = vmul.f32 %v1783_v25, %v2864_v3  ;;  %v1040_v6 = vadd.f32 %v1039_v8, %v1038_v30  ;;  %v488_v48 = vld [vmem:[%s5177_s0 + $0xee8] sm:$0xff]  ;;  %v1087_v3 = vadd.f32 %v1086_v7, %v1085_v56  ;;  %v487_v8 = vld [vmem:[%s5177_s0 + $0xee0] sm:$0xff] }
  0x93   :  { %v1094_v50 = vsel %vm587_vm0, %v488_v48, 0.0  ;;  %v1068_v43 = vadd.f32 %v1067_v23, %v1066_v17  ;;  %v3686_v52 = vadd.f32 %v3556_v18, %v1061_v15  ;;  %v1116_v29 = vsel %vm587_vm0, %v106_v5, 0.0  ;;  %v362_v15 = vld [vmem:[%s5177_s0 + $0xaf8] sm:$0xff] }
  0x94   :  { %2133 = vst.msk [vmem:[%s5178_s2 + $0x48] sm:$0xff] %vm587_vm0, %v2069_v61  ;;  %2132 = vst.msk [vmem:[%s5178_s2 + $0x40] sm:$0xff] %vm587_vm0, %v2068_v32  ;;  %v1042_v20 = vadd.f32 %v1041_v19, %v1040_v6  ;;  %v1089_v1 = vadd.f32 %v1088_v40, %v1087_v3  ;;  %v551_v19 = vld [vmem:[%s5177_s0 + $0x10e0] sm:$0xff]  ;;  %v1118_v22 = vsel %vm587_vm0, %v170_v34, 0.0  ;;  %v1073_v56 = vsel %vm587_vm0, %v359_v14, 0.0  ;;  %v41_v32 = vld [vmem:[%s5177_s0 + $0xf0] sm:$0xff] }
  0x95   :  { %v1798_v37 = vpop.permute.xlu1 %1797  ;;  %v1793_v62 = vpop.permute.xlu0 %1792  ;;  %v1070_v7 = vadd.f32 %v1069_v0, %v1068_v43  ;;  %v1075_v18 = vsel %vm587_vm0, %v423_v9, 0.0  ;;  %v169_v6 = vld [vmem:[%s5177_s0 + $0x4f0] sm:$0xff]  ;;  %v1077_v3 = vsel %vm587_vm0, %v487_v8, 0.0  ;;  %v3715_v11 = vsel %vm587_vm0, %v551_v19, 0.0  ;;  %v44_v9 = vld [vmem:[%s5177_s0 + $0x108] sm:$0xff] }
  0x96   :  { %v2071_v12 = vmul.f32 %v1798_v37, %v2923_v45  ;;  %v2070_v59 = vmul.f32 %v1793_v62, %v2983_v27  ;;  %v1091_v21 = vadd.f32 %v1090_v35, %v1089_v1  ;;  %v234_v45 = vld [vmem:[%s5177_s0 + $0x6f8] sm:$0xff]  ;;  %v1115_v27 = vsel %vm587_vm0, %v42_v54, 0.0  ;;  %v297_v0 = vld [vmem:[%s5177_s0 + $0x8f0] sm:$0xff]  ;;  %v108_v43 = vld [vmem:[%s5177_s0 + $0x308] sm:$0xff] }
  0x97   :  { %v1044_v36 = vadd.f32 %v1043_v31, %v1042_v20  ;;  %v1117_v61 = vadd.f32 %v1116_v29, %v1115_v27  ;;  %v1072_v42 = vadd.f32 %v1071_v38, %v1070_v7  ;;  %v1120_v44 = vsel %vm587_vm0, %v234_v45, 0.0  ;;  %v426_v35 = vld [vmem:[%s5177_s0 + $0xcf8] sm:$0xff]  ;;  %v172_v7 = vld [vmem:[%s5177_s0 + $0x508] sm:$0xff] }
  0x98   :  { %2135 = vst.msk [vmem:[%s5178_s2 + $0x58] sm:$0xff] %vm587_vm0, %v2071_v12  ;;  %2134 = vst.msk [vmem:[%s5178_s2 + $0x50] sm:$0xff] %vm587_vm0, %v2070_v59  ;;  %v1093_v48 = vadd.f32 %v1092_v4, %v1091_v21  ;;  %v1122_v26 = vsel %vm587_vm0, %v298_v47, 0.0  ;;  %v1098_v17 = vsel %vm587_vm0, %v41_v32, 0.0  ;;  %v1099_v23 = vsel %vm587_vm0, %v105_v39, 0.0  ;;  %v490_v20 = vld [vmem:[%s5177_s0 + $0xef8] sm:$0xff] }
  0x99   :  { %v1808_v25 = vpop.permute.xlu1 %1807  ;;  %v1803_v30 = vpop.permute.xlu0 %1802  ;;  %v1074_v51 = vadd.f32 %v1073_v56, %v1072_v42  ;;  %v3738_v62 = vadd.f32 %v3608_v33, %v1044_v36  ;;  %v554_v1 = vld [vmem:[%s5177_s0 + $0x10f8] sm:$0xff]  ;;  %v1100_v5 = vadd.f32 %v1099_v23, %v1098_v17  ;;  %v1101_v34 = vsel %vm587_vm0, %v169_v6, 0.0  ;;  %v236_v29 = vld [vmem:[%s5177_s0 + $0x708] sm:$0xff]  ;;  %v425_v36 = vld [vmem:[%s5177_s0 + $0xcf0] sm:$0xff] }
  0x9a   :  { %v2073_v40 = vmul.f32 %v1808_v25, %v3022_v57  ;;  %v2072_v31 = vmul.f32 %v1803_v30, %v3052_v63  ;;  %v1119_v57 = vadd.f32 %v1118_v22, %v1117_v61  ;;  %v233_v63 = vld [vmem:[%s5177_s0 + $0x6f0] sm:$0xff]  ;;  %v1124_v59 = vsel %vm587_vm0, %v362_v15, 0.0  ;;  %v300_v42 = vld [vmem:[%s5177_s0 + $0x908] sm:$0xff]  ;;  %v43_v15 = vld [vmem:[%s5177_s0 + $0x100] sm:$0xff] }
  0x9b   :  { %v1103_v14 = vsel %vm587_vm0, %v233_v63, 0.0  ;;  %v1095_v21 = vadd.f32 %v1094_v50, %v1093_v48  ;;  %v1126_v45 = vsel %vm587_vm0, %v426_v35, 0.0  ;;  %v1076_v27 = vadd.f32 %v1075_v18, %v1074_v51  ;;  %v489_v39 = vld [vmem:[%s5177_s0 + $0xef0] sm:$0xff]  ;;  %v364_v51 = vld [vmem:[%s5177_s0 + $0xb08] sm:$0xff]  ;;  %v171_v17 = vld [vmem:[%s5177_s0 + $0x500] sm:$0xff] }
  0x9c   :  { %2137 = vst.msk [vmem:[%s5178_s2 + $0x68] sm:$0xff] %vm587_vm0, %v2073_v40  ;;  %2136 = vst.msk [vmem:[%s5178_s2 + $0x60] sm:$0xff] %vm587_vm0, %v2072_v31  ;;  %v1121_v4 = vadd.f32 %v1120_v44, %v1119_v57  ;;  %v1128_v50 = vsel %vm587_vm0, %v490_v20, 0.0  ;;  %v3774_v8 = vsel %vm587_vm0, %v554_v1, 0.0  ;;  %v1105_v19 = vsel %vm587_vm0, %v297_v0, 0.0  ;;  %v553_v40 = vld [vmem:[%s5177_s0 + $0x10f0] sm:$0xff] }
  0x9d   :  { %v1818_v54 = vpop.permute.xlu1 %1817  ;;  %v1813_v37 = vpop.permute.xlu0 %1812  ;;  %v1149_v18 = vsel %vm587_vm0, %v44_v9, 0.0  ;;  %v1150_v47 = vsel %vm587_vm0, %v108_v43, 0.0  ;;  %v3801_v6 = vadd.f32 %v3670_v10, %v1095_v21  ;;  %v1154_v48 = vsel %vm587_vm0, %v236_v29, 0.0  ;;  %v428_v1 = vld [vmem:[%s5177_s0 + $0xd08] sm:$0xff] }
  0x9e   :  { %v2075_v12 = vmul.f32 %v1818_v54, %v3112_v58  ;;  %v2074_v33 = vmul.f32 %v1813_v37, %v3156_v24  ;;  %v1123_v38 = vadd.f32 %v1122_v26, %v1121_v4  ;;  %v361_v58 = vld [vmem:[%s5177_s0 + $0xaf0] sm:$0xff]  ;;  %v1102_v24 = vadd.f32 %v1101_v34, %v1100_v5  ;;  %v107_v26 = vld [vmem:[%s5177_s0 + $0x300] sm:$0xff]  ;;  %v492_v34 = vld [vmem:[%s5177_s0 + $0xf08] sm:$0xff] }
  0x9f   :  { %v1107_v31 = vsel %vm587_vm0, %v361_v58, 0.0  ;;  %v1151_v44 = vadd.f32 %v1150_v47, %v1149_v18  ;;  %v1078_v10 = vadd.f32 %v1077_v3, %v1076_v27  ;;  %v1109_v63 = vsel %vm587_vm0, %v425_v36, 0.0  ;;  %v299_v58 = vld [vmem:[%s5177_s0 + $0x900] sm:$0xff]  ;;  %v46_v27 = vld [vmem:[%s5177_s0 + $0x118] sm:$0xff] }
  0xa0   :  { %2139 = vst.msk [vmem:[%s5178_s2 + $0x78] sm:$0xff] %vm587_vm0, %v2075_v12  ;;  %2138 = vst.msk [vmem:[%s5178_s2 + $0x70] sm:$0xff] %vm587_vm0, %v2074_v33  ;;  %v1125_v30 = vadd.f32 %v1124_v59, %v1123_v38  ;;  %v1104_v56 = vadd.f32 %v1103_v14, %v1102_v24  ;;  %v1111_v3 = vsel %vm587_vm0, %v489_v39, 0.0  ;;  %v3828_v20 = vsel %vm587_vm0, %v553_v40, 0.0  ;;  %v556_v12 = vld [vmem:[%s5177_s0 + $0x1108] sm:$0xff]  ;;  %v235_v59 = vld [vmem:[%s5177_s0 + $0x700] sm:$0xff] }
  0xa1   :  { %v1828_v22 = vpop.permute.xlu1 %1827  ;;  %v1823_v25 = vpop.permute.xlu0 %1822  ;;  %v1156_v4 = vsel %vm587_vm0, %v300_v42, 0.0  ;;  %v1132_v14 = vsel %vm587_vm0, %v43_v15, 0.0  ;;  %v1135_v43 = vsel %vm587_vm0, %v171_v17, 0.0  ;;  %v3858_v21 = vadd.f32 %v3715_v11, %v1078_v10  ;;  %v363_v47 = vld [vmem:[%s5177_s0 + $0xb00] sm:$0xff]  ;;  %v45_v10 = vld [vmem:[%s5177_s0 + $0x110] sm:$0xff]  ;;  %v302_v17 = vld [vmem:[%s5177_s0 + $0x918] sm:$0xff] }
  0xa2   :  { %v2077_v61 = vmul.f32 %v1828_v22, %v3213_v55  ;;  %v2076_v32 = vmul.f32 %v1823_v25, %v3249_v28  ;;  %v1106_v55 = vadd.f32 %v1105_v19, %v1104_v56  ;;  %v1152_v28 = vsel %vm587_vm0, %v172_v7, 0.0  ;;  %v110_v19 = vld [vmem:[%s5177_s0 + $0x318] sm:$0xff] }
  0xa3   :  { %v1127_v57 = vadd.f32 %v1126_v45, %v1125_v30  ;;  %v1153_v35 = vadd.f32 %v1152_v28, %v1151_v44  ;;  %v1160_v11 = vsel %vm587_vm0, %v428_v1, 0.0  ;;  %v3874_v22 = vsel %vm587_vm0, %v556_v12, 0.0  ;;  %v174_v30 = vld [vmem:[%s5177_s0 + $0x518] sm:$0xff] }
  0xa4   :  { %2141 = vst.msk [vmem:[%s5178_s2 + $0x88] sm:$0xff] %vm587_vm0, %v2077_v61  ;;  %2140 = vst.msk [vmem:[%s5178_s2 + $0x80] sm:$0xff] %vm587_vm0, %v2076_v32  ;;  %v1108_v37 = vadd.f32 %v1107_v31, %v1106_v55  ;;  %v1137_v25 = vsel %vm587_vm0, %v235_v59, 0.0  ;;  %v427_v61 = vld [vmem:[%s5177_s0 + $0xd00] sm:$0xff]  ;;  %v1139_v31 = vsel %vm587_vm0, %v299_v58, 0.0  ;;  %v1184_v42 = vsel %vm587_vm0, %v110_v19, 0.0 }
  0xa5   :  { %v1838_v23 = vpop.permute.xlu1 %1837  ;;  %v1833_v54 = vpop.permute.xlu0 %1832  ;;  %v1155_v33 = vadd.f32 %v1154_v48, %v1153_v35  ;;  %v1129_v38 = vadd.f32 %v1128_v50, %v1127_v57  ;;  %v3871_v50 = vsel %vm587_vm0, %v492_v34, 0.0  ;;  %v491_v32 = vld [vmem:[%s5177_s0 + $0xf00] sm:$0xff]  ;;  %v1186_v15 = vsel %vm587_vm0, %v174_v30, 0.0  ;;  %v494_v59 = vld [vmem:[%s5177_s0 + $0xf18] sm:$0xff] }
  0xa6   :  { %v2079_v0 = vmul.f32 %v1838_v23, %v3302_v16  ;;  %v2078_v5 = vmul.f32 %v1833_v54, %v3366_v13  ;;  %v1110_v9 = vadd.f32 %v1109_v63, %v1108_v37  ;;  %v1158_v16 = vsel %vm587_vm0, %v364_v51, 0.0  ;;  %v555_v55 = vld [vmem:[%s5177_s0 + $0x1100] sm:$0xff]  ;;  %v109_v23 = vld [vmem:[%s5177_s0 + $0x310] sm:$0xff] }
  0xa7   :  { %v1133_v13 = vsel %vm587_vm0, %v107_v26, 0.0  ;;  %v1157_v45 = vadd.f32 %v1156_v4, %v1155_v33  ;;  %v3906_v44 = vadd.f32 %v3774_v8, %v1129_v38  ;;  %v1141_v35 = vsel %vm587_vm0, %v363_v47, 0.0  ;;  %v173_v54 = vld [vmem:[%s5177_s0 + $0x510] sm:$0xff]  ;;  %v366_v4 = vld [vmem:[%s5177_s0 + $0xb18] sm:$0xff] }
  0xa8   :  { %2143 = vst.msk [vmem:[%s5178_s2 + $0x98] sm:$0xff] %vm587_vm0, %v2079_v0  ;;  %2142 = vst.msk [vmem:[%s5178_s2 + $0x90] sm:$0xff] %vm587_vm0, %v2078_v5  ;;  %v1134_v24 = vadd.f32 %v1133_v13, %v1132_v14  ;;  %v1112_v40 = vadd.f32 %v1111_v3, %v1110_v9  ;;  %v1143_v8 = vsel %vm587_vm0, %v427_v61, 0.0  ;;  %v3918_v26 = vsel %vm587_vm0, %v491_v32, 0.0  ;;  %v430_v0 = vld [vmem:[%s5177_s0 + $0xd18] sm:$0xff] }
  0xa9   :  { %v1848_v7 = vpop.permute.xlu1 %1847  ;;  %v1843_v29 = vpop.permute.xlu0 %1842  ;;  %v1159_v18 = vadd.f32 %v1158_v16, %v1157_v45  ;;  %v3942_v12 = vsel %vm587_vm0, %v555_v55, 0.0  ;;  %v1166_v33 = vsel %vm587_vm0, %v45_v10, 0.0  ;;  %v558_v14 = vld [vmem:[%s5177_s0 + $0x1118] sm:$0xff]  ;;  %v1190_v9 = vsel %vm587_vm0, %v302_v17, 0.0 }
  0xaa   :  { %v2081_v36 = vmul.f32 %v1848_v7, %v3399_v41  ;;  %v2080_v56 = vmul.f32 %v1843_v29, %v3425_v2  ;;  %v1136_v39 = vadd.f32 %v1135_v43, %v1134_v24  ;;  %v238_v41 = vld [vmem:[%s5177_s0 + $0x718] sm:$0xff]  ;;  %v1183_v2 = vsel %vm587_vm0, %v46_v27, 0.0  ;;  %v301_v27 = vld [vmem:[%s5177_s0 + $0x910] sm:$0xff]  ;;  %v48_v7 = vld [vmem:[%s5177_s0 + $0x128] sm:$0xff] }
  0xab   :  { %v1185_v48 = vadd.f32 %v1184_v42, %v1183_v2  ;;  %v1161_v51 = vadd.f32 %v1160_v11, %v1159_v18  ;;  %v1188_v5 = vsel %vm587_vm0, %v238_v41, 0.0  ;;  %v3939_v34 = vadd.f32 %v3828_v20, %v1112_v40  ;;  %v112_v29 = vld [vmem:[%s5177_s0 + $0x328] sm:$0xff] }
  0xac   :  { %2145 = vst.msk [vmem:[%s5178_s2 + $0xa8] sm:$0xff] %vm587_vm0, %v2081_v36  ;;  %2144 = vst.msk [vmem:[%s5178_s2 + $0xa0] sm:$0xff] %vm587_vm0, %v2080_v56  ;;  %v1138_v28 = vadd.f32 %v1137_v25, %v1136_v39  ;;  %v1167_v16 = vsel %vm587_vm0, %v109_v23, 0.0  ;;  %v1169_v13 = vsel %vm587_vm0, %v173_v54, 0.0  ;;  %v1192_v58 = vsel %vm587_vm0, %v366_v4, 0.0  ;;  %v176_v56 = vld [vmem:[%s5177_s0 + $0x528] sm:$0xff] }
  0xad   :  { %v1858_v57 = vpop.permute.xlu1 %1857  ;;  %v1853_v63 = vpop.permute.xlu0 %1852  ;;  %v1194_v24 = vsel %vm587_vm0, %v430_v0, 0.0  ;;  %v1168_v19 = vadd.f32 %v1167_v16, %v1166_v33  ;;  %v1163_v30 = vadd.f32 %v3871_v50, %v1161_v51  ;;  %v1196_v47 = vsel %vm587_vm0, %v494_v59, 0.0  ;;  %v429_v39 = vld [vmem:[%s5177_s0 + $0xd10] sm:$0xff]  ;;  %v47_v23 = vld [vmem:[%s5177_s0 + $0x120] sm:$0xff]  ;;  %v432_v59 = vld [vmem:[%s5177_s0 + $0xd28] sm:$0xff] }
  0xae   :  { %v2083_v37 = vmul.f32 %v1858_v57, %v3493_v60  ;;  %v2082_v3 = vmul.f32 %v1853_v63, %v3537_v53  ;;  %v1140_v1 = vadd.f32 %v1139_v31, %v1138_v28  ;;  %v1187_v60 = vadd.f32 %v1186_v15, %v1185_v48  ;;  %v237_v53 = vld [vmem:[%s5177_s0 + $0x710] sm:$0xff]  ;;  %v304_v15 = vld [vmem:[%s5177_s0 + $0x928] sm:$0xff] }
  0xaf   :  { %v1171_v36 = vsel %vm587_vm0, %v237_v53, 0.0  ;;  %v3985_v61 = vsel %vm587_vm0, %v558_v14, 0.0  ;;  %v1170_v32 = vadd.f32 %v1169_v13, %v1168_v19  ;;  %v1173_v40 = vsel %vm587_vm0, %v301_v27, 0.0  ;;  %v493_v28 = vld [vmem:[%s5177_s0 + $0xf10] sm:$0xff] }
  0xb0   :  { %2147 = vst.msk [vmem:[%s5178_s2 + $0xb8] sm:$0xff] %vm587_vm0, %v2083_v37  ;;  %2146 = vst.msk [vmem:[%s5178_s2 + $0xb0] sm:$0xff] %vm587_vm0, %v2082_v3  ;;  %v1142_v20 = vadd.f32 %v1141_v35, %v1140_v1  ;;  %v1189_v45 = vadd.f32 %v1188_v5, %v1187_v60  ;;  %v1217_v31 = vsel %vm587_vm0, %v48_v7, 0.0  ;;  %v1218_v41 = vsel %vm587_vm0, %v112_v29, 0.0  ;;  %v175_v1 = vld [vmem:[%s5177_s0 + $0x520] sm:$0xff]  ;;  %v557_v0 = vld [vmem:[%s5177_s0 + $0x1110] sm:$0xff] }
  0xb1   :  { %v1868_v43 = vpop.permute.xlu1 %1867  ;;  %v1863_v38 = vpop.permute.xlu0 %1862  ;;  %v1172_v48 = vadd.f32 %v1171_v36, %v1170_v32  ;;  %v1219_v10 = vadd.f32 %v1218_v41, %v1217_v31  ;;  %v1220_v57 = vsel %vm587_vm0, %v176_v56, 0.0  ;;  %v4025_v54 = vadd.f32 %v3874_v22, %v1163_v30  ;;  %v114_v56 = vld [vmem:[%s5177_s0 + $0x338] sm:$0xff] }
  0xb2   :  { %v2085_v11 = vmul.f32 %v1868_v43, %v3563_v46  ;;  %v2084_v25 = vmul.f32 %v1863_v38, %v3627_v49  ;;  %v1191_v18 = vadd.f32 %v1190_v9, %v1189_v45  ;;  %v365_v46 = vld [vmem:[%s5177_s0 + $0xb10] sm:$0xff]  ;;  %v240_v49 = vld [vmem:[%s5177_s0 + $0x728] sm:$0xff]  ;;  %v1144_v50 = vadd.f32 %v1143_v8, %v1142_v20  ;;  %v303_v45 = vld [vmem:[%s5177_s0 + $0x920] sm:$0xff] }
  0xb3   :  { %v1175_v35 = vsel %vm587_vm0, %v365_v46, 0.0  ;;  %v368_v8 = vld [vmem:[%s5177_s0 + $0xb28] sm:$0xff]  ;;  %v1222_v17 = vsel %vm587_vm0, %v240_v49, 0.0  ;;  %v1174_v37 = vadd.f32 %v1173_v40, %v1172_v48  ;;  %v1221_v3 = vadd.f32 %v1220_v57, %v1219_v10 }
  0xb4   :  { %2149 = vst.msk [vmem:[%s5178_s2 + $0xc8] sm:$0xff] %vm587_vm0, %v2085_v11  ;;  %2148 = vst.msk [vmem:[%s5178_s2 + $0xc0] sm:$0xff] %vm587_vm0, %v2084_v25  ;;  %v1193_v55 = vadd.f32 %v1192_v58, %v1191_v18  ;;  %v1146_v22 = vadd.f32 %v3918_v26, %v1144_v50  ;;  %v1179_v5 = vsel %vm587_vm0, %v493_v28, 0.0  ;;  %v1224_v60 = vsel %vm587_vm0, %v304_v15, 0.0  ;;  %v239_v26 = vld [vmem:[%s5177_s0 + $0x720] sm:$0xff]  ;;  %v496_v38 = vld [vmem:[%s5177_s0 + $0xf28] sm:$0xff] }
  0xb5   :  { %v1878_v2 = vpop.permute.xlu1 %1877  ;;  %v1873_v42 = vpop.permute.xlu0 %1872  ;;  %v1176_v20 = vadd.f32 %v1175_v35, %v1174_v37  ;;  %v1223_v14 = vadd.f32 %v1222_v17, %v1221_v3  ;;  %v1226_v9 = vsel %vm587_vm0, %v368_v8, 0.0  ;;  %v1200_v16 = vsel %vm587_vm0, %v47_v23, 0.0  ;;  %v560_v25 = vld [vmem:[%s5177_s0 + $0x1128] sm:$0xff]  ;;  %v49_v8 = vld [vmem:[%s5177_s0 + $0x130] sm:$0xff]  ;;  %v559_v37 = vld [vmem:[%s5177_s0 + $0x1120] sm:$0xff] }
  0xb6   :  { %v2087_v63 = vmul.f32 %v1878_v2, %v3686_v52  ;;  %v2086_v51 = vmul.f32 %v1873_v42, %v3738_v62  ;;  %v1177_v52 = vsel %vm587_vm0, %v429_v39, 0.0  ;;  %v111_v62 = vld [vmem:[%s5177_s0 + $0x320] sm:$0xff]  ;;  %v1195_v4 = vadd.f32 %v1194_v24, %v1193_v55  ;;  %v178_v39 = vld [vmem:[%s5177_s0 + $0x538] sm:$0xff] }
  0xb7   :  { %v1201_v58 = vsel %vm587_vm0, %v111_v62, 0.0  ;;  %v1203_v24 = vsel %vm587_vm0, %v175_v1, 0.0  ;;  %v1178_v27 = vadd.f32 %v1177_v52, %v1176_v20  ;;  %v1181_v19 = vsel %vm587_vm0, %v557_v0, 0.0  ;;  %v431_v2 = vld [vmem:[%s5177_s0 + $0xd20] sm:$0xff]  ;;  %v242_v42 = vld [vmem:[%s5177_s0 + $0x738] sm:$0xff]  ;;  %v113_v1 = vld [vmem:[%s5177_s0 + $0x330] sm:$0xff] }
  0xb8   :  { %2151 = vst.msk [vmem:[%s5178_s2 + $0xd8] sm:$0xff] %vm587_vm0, %v2087_v63  ;;  %2150 = vst.msk [vmem:[%s5178_s2 + $0xd0] sm:$0xff] %vm587_vm0, %v2086_v51  ;;  %v1225_v7 = vadd.f32 %v1224_v60, %v1223_v14  ;;  %v1202_v29 = vadd.f32 %v1201_v58, %v1200_v16  ;;  %v1197_v11 = vadd.f32 %v1196_v47, %v1195_v4  ;;  %v1228_v30 = vsel %vm587_vm0, %v432_v59, 0.0  ;;  %v306_v63 = vld [vmem:[%s5177_s0 + $0x938] sm:$0xff]  ;;  %v241_v14 = vld [vmem:[%s5177_s0 + $0x730] sm:$0xff] }
  0xb9   :  { %v1888_v53 = vpop.permute.xlu1 %1887  ;;  %v1883_v33 = vpop.permute.xlu0 %1882  ;;  %v1205_v36 = vsel %vm587_vm0, %v239_v26, 0.0  ;;  %v1230_v49 = vsel %vm587_vm0, %v496_v38, 0.0  ;;  %v1207_v50 = vsel %vm587_vm0, %v303_v45, 0.0  ;;  %v1180_v41 = vadd.f32 %v1179_v5, %v1178_v27  ;;  %v370_v60 = vld [vmem:[%s5177_s0 + $0xb38] sm:$0xff] }
  0xba   :  { %v2089_v13 = vmul.f32 %v1888_v53, %v3801_v6  ;;  %v2088_v43 = vmul.f32 %v1883_v33, %v3858_v21  ;;  %v50_v6 = vld [vmem:[%s5177_s0 + $0x138] sm:$0xff]  ;;  %v1148_v21 = vadd.f32 %v3942_v12, %v1146_v22  ;;  %v1227_v32 = vadd.f32 %v1226_v9, %v1225_v7  ;;  %v367_v12 = vld [vmem:[%s5177_s0 + $0xb20] sm:$0xff]  ;;  %v177_v22 = vld [vmem:[%s5177_s0 + $0x530] sm:$0xff] }
  0xbb   :  { %v1204_v47 = vadd.f32 %v1203_v24, %v1202_v29  ;;  %v1251_v55 = vsel %vm587_vm0, %v50_v6, 0.0  ;;  %v1232_v48 = vsel %vm587_vm0, %v560_v25, 0.0  ;;  %v1252_v10 = vsel %vm587_vm0, %v114_v56, 0.0  ;;  %v434_v26 = vld [vmem:[%s5177_s0 + $0xd38] sm:$0xff]  ;;  %v52_v29 = vld [vmem:[%s5177_s0 + $0x148] sm:$0xff] }
  0xbc   :  { %2153 = vst.msk [vmem:[%s5178_s2 + $0xe8] sm:$0xff] %vm587_vm0, %v2089_v13  ;;  %2152 = vst.msk [vmem:[%s5178_s2 + $0xe0] sm:$0xff] %vm587_vm0, %v2088_v43  ;;  %v1229_v28 = vadd.f32 %v1228_v30, %v1227_v32  ;;  %v1209_v57 = vsel %vm587_vm0, %v367_v12, 0.0  ;;  %v1253_v51 = vadd.f32 %v1252_v10, %v1251_v55  ;;  %v1254_v35 = vsel %vm587_vm0, %v178_v39, 0.0  ;;  %v305_v13 = vld [vmem:[%s5177_s0 + $0x930] sm:$0xff]  ;;  %v116_v6 = vld [vmem:[%s5177_s0 + $0x348] sm:$0xff] }
  0xbd   :  { %v1898_v18 = vpop.permute.xlu1 %1897  ;;  %v1893_v46 = vpop.permute.xlu0 %1892  ;;  %v1206_v15 = vadd.f32 %v1205_v36, %v1204_v47  ;;  %v1211_v3 = vsel %vm587_vm0, %v431_v2, 0.0  ;;  %v1256_v62 = vsel %vm587_vm0, %v242_v42, 0.0  ;;  %v1182_v5 = vadd.f32 %v1181_v19, %v1180_v41  ;;  %v498_v30 = vld [vmem:[%s5177_s0 + $0xf38] sm:$0xff]  ;;  %v369_v32 = vld [vmem:[%s5177_s0 + $0xb30] sm:$0xff]  ;;  %v244_v47 = vld [vmem:[%s5177_s0 + $0x748] sm:$0xff] }
  0xbe   :  { %v2091_v40 = vmul.f32 %v1898_v18, %v3906_v44  ;;  %v2090_v31 = vmul.f32 %v1893_v46, %v3939_v34  ;;  %v1199_v44 = vadd.f32 %v3985_v61, %v1197_v11  ;;  %v495_v34 = vld [vmem:[%s5177_s0 + $0xf20] sm:$0xff]  ;;  %v1231_v61 = vadd.f32 %v1230_v49, %v1229_v28  ;;  %v308_v10 = vld [vmem:[%s5177_s0 + $0x948] sm:$0xff] }
  0xbf   :  { %v1208_v52 = vadd.f32 %v1207_v50, %v1206_v15  ;;  %v1255_v53 = vadd.f32 %v1254_v35, %v1253_v51  ;;  %v1213_v20 = vsel %vm587_vm0, %v495_v34, 0.0  ;;  %v1258_v59 = vsel %vm587_vm0, %v306_v63, 0.0  ;;  %v562_v50 = vld [vmem:[%s5177_s0 + $0x1138] sm:$0xff]  ;;  %v51_v34 = vld [vmem:[%s5177_s0 + $0x140] sm:$0xff] }
  0xc0   :  { %2155 = vst.msk [vmem:[%s5178_s2 + $0xf8] sm:$0xff] %vm587_vm0, %v2091_v40  ;;  %2154 = vst.msk [vmem:[%s5178_s2 + $0xf0] sm:$0xff] %vm587_vm0, %v2090_v31  ;;  %v1234_v9 = vsel %vm587_vm0, %v49_v8, 0.0  ;;  %v1235_v43 = vsel %vm587_vm0, %v113_v1, 0.0  ;;  %v1237_v38 = vsel %vm587_vm0, %v177_v22, 0.0  ;;  %v1233_v24 = vadd.f32 %v1232_v48, %v1231_v61  ;;  %v433_v48 = vld [vmem:[%s5177_s0 + $0xd30] sm:$0xff] }
  0xc1   :  { %v1908_v17 = vpop.permute.xlu1 %1907  ;;  %v1903_v23 = vpop.permute.xlu0 %1902  ;;  %v1210_v33 = vadd.f32 %v1209_v57, %v1208_v52  ;;  %v1257_v16 = vadd.f32 %v1256_v62, %v1255_v53  ;;  %v1260_v19 = vsel %vm587_vm0, %v370_v60, 0.0  ;;  %v1236_v7 = vadd.f32 %v1235_v43, %v1234_v9  ;;  %v115_v8 = vld [vmem:[%s5177_s0 + $0x340] sm:$0xff]  ;;  %v561_v22 = vld [vmem:[%s5177_s0 + $0x1130] sm:$0xff] }
  0xc2   :  { %v2093_v4 = vmul.f32 %v1908_v17, %v4025_v54  ;;  %v2092_v0 = vmul.f32 %v1903_v23, %v1148_v21  ;;  %v1215_v54 = vsel %vm587_vm0, %v559_v37, 0.0  ;;  %v180_v21 = vld [vmem:[%s5177_s0 + $0x548] sm:$0xff]  ;;  %v1239_v56 = vsel %vm587_vm0, %v241_v14, 0.0  ;;  %v179_v17 = vld [vmem:[%s5177_s0 + $0x540] sm:$0xff]  ;;  %v497_v37 = vld [vmem:[%s5177_s0 + $0xf30] sm:$0xff] }
  0xc3   :  { %v1212_v27 = vadd.f32 %v1211_v3, %v1210_v33  ;;  %v1259_v36 = vadd.f32 %v1258_v59, %v1257_v16  ;;  %v1262_v46 = vsel %vm587_vm0, %v434_v26, 0.0  ;;  %v1238_v49 = vadd.f32 %v1237_v38, %v1236_v7  ;;  %v372_v3 = vld [vmem:[%s5177_s0 + $0xb48] sm:$0xff]  ;;  %v307_v14 = vld [vmem:[%s5177_s0 + $0x940] sm:$0xff]  ;;  %v54_v38 = vld [vmem:[%s5177_s0 + $0x158] sm:$0xff] }
  0xc4   :  { %2157 = vst.msk [vmem:[%s5178_s2 + $0x108] sm:$0xff] %vm587_vm0, %v2093_v4  ;;  %2156 = vst.msk [vmem:[%s5178_s2 + $0x100] sm:$0xff] %vm587_vm0, %v2092_v0  ;;  %v1241_v12 = vsel %vm587_vm0, %v305_v13, 0.0  ;;  %v1285_v40 = vsel %vm587_vm0, %v52_v29, 0.0  ;;  %v1286_v31 = vsel %vm587_vm0, %v116_v6, 0.0  ;;  %v1288_v41 = vsel %vm587_vm0, %v180_v21, 0.0 }
  0xc5   :  { %v1918_v45 = vpop.permute.xlu1 %1917  ;;  %v1913_v58 = vpop.permute.xlu0 %1912  ;;  %v1214_v18 = vadd.f32 %v1213_v20, %v1212_v27  ;;  %v1261_v39 = vadd.f32 %v1260_v19, %v1259_v36  ;;  %v1264_v28 = vsel %vm587_vm0, %v498_v30, 0.0  ;;  %v1240_v15 = vadd.f32 %v1239_v56, %v1238_v49  ;;  %v436_v20 = vld [vmem:[%s5177_s0 + $0xd48] sm:$0xff]  ;;  %v182_v29 = vld [vmem:[%s5177_s0 + $0x558] sm:$0xff] }
  0xc6   :  { %v2095_v11 = vmul.f32 %v1918_v45, %v1199_v44  ;;  %v2094_v25 = vmul.f32 %v1913_v58, %v1182_v5  ;;  %v1287_v44 = vadd.f32 %v1286_v31, %v1285_v40  ;;  %v1243_v51 = vsel %vm587_vm0, %v369_v32, 0.0  ;;  %v243_v5 = vld [vmem:[%s5177_s0 + $0x740] sm:$0xff]  ;;  %v118_v45 = vld [vmem:[%s5177_s0 + $0x358] sm:$0xff]  ;;  %v500_v27 = vld [vmem:[%s5177_s0 + $0xf48] sm:$0xff] }
  0xc7   :  { %v1216_v55 = vadd.f32 %v1215_v54, %v1214_v18  ;;  %v1263_v63 = vadd.f32 %v1262_v46, %v1261_v39  ;;  %v1290_v35 = vsel %vm587_vm0, %v244_v47, 0.0  ;;  %v1266_v61 = vsel %vm587_vm0, %v562_v50, 0.0  ;;  %v246_v36 = vld [vmem:[%s5177_s0 + $0x758] sm:$0xff]  ;;  %v564_v18 = vld [vmem:[%s5177_s0 + $0x1148] sm:$0xff]  ;;  %v435_v32 = vld [vmem:[%s5177_s0 + $0xd40] sm:$0xff] }
  0xc8   :  { %2159 = vst.msk [vmem:[%s5178_s2 + $0x118] sm:$0xff] %vm587_vm0, %v2095_v11  ;;  %2158 = vst.msk [vmem:[%s5178_s2 + $0x110] sm:$0xff] %vm587_vm0, %v2094_v25  ;;  %v1242_v52 = vadd.f32 %v1241_v12, %v1240_v15  ;;  %v1289_v62 = vadd.f32 %v1288_v41, %v1287_v44  ;;  %v1245_v4 = vsel %vm587_vm0, %v433_v48, 0.0  ;;  %v1292_v0 = vsel %vm587_vm0, %v308_v10, 0.0  ;;  %v371_v11 = vld [vmem:[%s5177_s0 + $0xb40] sm:$0xff]  ;;  %v310_v40 = vld [vmem:[%s5177_s0 + $0x958] sm:$0xff] }
  0xc9   :  { %v1928_v2 = vpop.permute.xlu1 %1927  ;;  %v1923_v42 = vpop.permute.xlu0 %1922  ;;  %v1265_v1 = vadd.f32 %v1264_v28, %v1263_v63  ;;  %v1268_v60 = vsel %vm587_vm0, %v51_v34, 0.0  ;;  %v1269_v9 = vsel %vm587_vm0, %v115_v8, 0.0  ;;  %v1271_v54 = vsel %vm587_vm0, %v179_v17, 0.0  ;;  %v117_v15 = vld [vmem:[%s5177_s0 + $0x350] sm:$0xff]  ;;  %v499_v34 = vld [vmem:[%s5177_s0 + $0xf40] sm:$0xff] }
  0xca   :  { %v2097_v57 = vmul.f32 %v1928_v2, %v1233_v24  ;;  %v2096_v23 = vmul.f32 %v1923_v42, %v1216_v55  ;;  %v1244_v33 = vadd.f32 %v1243_v51, %v1242_v52  ;;  %v1291_v59 = vadd.f32 %v1290_v35, %v1289_v62  ;;  %v53_v2 = vld [vmem:[%s5177_s0 + $0x150] sm:$0xff]  ;;  %v374_v51 = vld [vmem:[%s5177_s0 + $0xb58] sm:$0xff] }
  0xcb   :  { %v1267_v26 = vadd.f32 %v1266_v61, %v1265_v1  ;;  %v1247_v16 = vsel %vm587_vm0, %v497_v37, 0.0  ;;  %v1294_v13 = vsel %vm587_vm0, %v372_v3, 0.0  ;;  %v1270_v43 = vadd.f32 %v1269_v9, %v1268_v60  ;;  %v181_v10 = vld [vmem:[%s5177_s0 + $0x550] sm:$0xff]  ;;  %v438_v1 = vld [vmem:[%s5177_s0 + $0xd58] sm:$0xff] }
  0xcc   :  { %2161 = vst.msk [vmem:[%s5178_s2 + $0x128] sm:$0xff] %vm587_vm0, %v2097_v57  ;;  %2160 = vst.msk [vmem:[%s5178_s2 + $0x120] sm:$0xff] %vm587_vm0, %v2096_v23  ;;  %v1246_v58 = vadd.f32 %v1245_v4, %v1244_v33  ;;  %v1249_v24 = vsel %vm587_vm0, %v561_v22, 0.0  ;;  %v1293_v19 = vadd.f32 %v1292_v0, %v1291_v59  ;;  %v1273_v7 = vsel %vm587_vm0, %v243_v5, 0.0  ;;  %v563_v23 = vld [vmem:[%s5177_s0 + $0x1140] sm:$0xff]  ;;  %v245_v37 = vld [vmem:[%s5177_s0 + $0x750] sm:$0xff] }
  0xcd   :  { %v1938_v53 = vpop.permute.xlu1 %1937  ;;  %v1296_v21 = vsel %vm587_vm0, %v436_v20, 0.0  ;;  %v1272_v25 = vadd.f32 %v1271_v54, %v1270_v43  ;;  %v1275_v30 = vsel %vm587_vm0, %v307_v14, 0.0  ;;  %v1319_v49 = vsel %vm587_vm0, %v54_v38, 0.0  ;;  %v1933_v47 = vpop.permute.xlu0 %1932  ;;  %v309_v4 = vld [vmem:[%s5177_s0 + $0x950] sm:$0xff]  ;;  %v56_v59 = vld [vmem:[%s5177_s0 + $0x168] sm:$0xff] }
  0xce   :  { %v2099_v6 = vmul.f32 %v1938_v53, %v1267_v26  ;;  %v1248_v56 = vadd.f32 %v1247_v16, %v1246_v58  ;;  %v1295_v46 = vadd.f32 %v1294_v13, %v1293_v19  ;;  %v1320_v12 = vsel %vm587_vm0, %v118_v45, 0.0  ;;  %v120_v14 = vld [vmem:[%s5177_s0 + $0x368] sm:$0xff]  ;;  %v502_v26 = vld [vmem:[%s5177_s0 + $0xf58] sm:$0xff]  ;;  %v373_v58 = vld [vmem:[%s5177_s0 + $0xb50] sm:$0xff] }
  0xcf   :  { %v1298_v50 = vsel %vm587_vm0, %v500_v27, 0.0  ;;  %v1274_v39 = vadd.f32 %v1273_v7, %v1272_v25  ;;  %v1321_v31 = vadd.f32 %v1320_v12, %v1319_v49  ;;  %v1322_v41 = vsel %vm587_vm0, %v182_v29, 0.0  ;;  %v184_v43 = vld [vmem:[%s5177_s0 + $0x568] sm:$0xff]  ;;  %v566_v29 = vld [vmem:[%s5177_s0 + $0x1158] sm:$0xff]  ;;  %v55_v49 = vld [vmem:[%s5177_s0 + $0x160] sm:$0xff] }
  0xd0   :  { %2163 = vst.msk [vmem:[%s5178_s2 + $0x138] sm:$0xff] %vm587_vm0, %v2099_v6  ;;  %v1250_v42 = vadd.f32 %v1249_v24, %v1248_v56  ;;  %v1297_v55 = vadd.f32 %v1296_v21, %v1295_v46  ;;  %v1277_v28 = vsel %vm587_vm0, %v371_v11, 0.0  ;;  %v1324_v48 = vsel %vm587_vm0, %v246_v36, 0.0  ;;  %v248_v19 = vld [vmem:[%s5177_s0 + $0x768] sm:$0xff]  ;;  %v437_v21 = vld [vmem:[%s5177_s0 + $0xd50] sm:$0xff] }
  0xd1   :  { %v1300_v44 = vsel %vm587_vm0, %v564_v18, 0.0  ;;  %v1276_v57 = vadd.f32 %v1275_v30, %v1274_v39  ;;  %v1279_v63 = vsel %vm587_vm0, %v435_v32, 0.0  ;;  %v1323_v35 = vadd.f32 %v1322_v41, %v1321_v31  ;;  %v1948_v3 = vpop.permute.xlu1 %1947  ;;  %v1943_v30 = vpop.permute.xlu0 %1942  ;;  %v312_v18 = vld [vmem:[%s5177_s0 + $0x968] sm:$0xff]  ;;  %v183_v31 = vld [vmem:[%s5177_s0 + $0x560] sm:$0xff] }
  0xd2   :  { %v2098_v8 = vmul.f32 %v1933_v47, %v1250_v42  ;;  %v1299_v17 = vadd.f32 %v1298_v50, %v1297_v55  ;;  %v1326_v61 = vsel %vm587_vm0, %v310_v40, 0.0  ;;  %v1302_v52 = vsel %vm587_vm0, %v53_v2, 0.0  ;;  %v119_v40 = vld [vmem:[%s5177_s0 + $0x360] sm:$0xff]  ;;  %v501_v2 = vld [vmem:[%s5177_s0 + $0xf50] sm:$0xff] }
  0xd3   :  { %v1278_v62 = vadd.f32 %v1277_v28, %v1276_v57  ;;  %v1325_v22 = vadd.f32 %v1324_v48, %v1323_v35  ;;  %v1303_v0 = vsel %vm587_vm0, %v117_v15, 0.0  ;;  %v1305_v5 = vsel %vm587_vm0, %v181_v10, 0.0  ;;  %v376_v28 = vld [vmem:[%s5177_s0 + $0xb68] sm:$0xff]  ;;  %v247_v57 = vld [vmem:[%s5177_s0 + $0x760] sm:$0xff] }
  0xd4   :  { %2162 = vst.msk [vmem:[%s5178_s2 + $0x130] sm:$0xff] %vm587_vm0, %v2098_v8  ;;  %v1301_v60 = vadd.f32 %v1300_v44, %v1299_v17  ;;  %v1281_v53 = vsel %vm587_vm0, %v499_v34, 0.0  ;;  %v1328_v33 = vsel %vm587_vm0, %v374_v51, 0.0  ;;  %v1304_v20 = vadd.f32 %v1303_v0, %v1302_v52  ;;  %v565_v44 = vld [vmem:[%s5177_s0 + $0x1150] sm:$0xff]  ;;  %v440_v8 = vld [vmem:[%s5177_s0 + $0xd68] sm:$0xff] }
  0xd5   :  { %v1280_v9 = vadd.f32 %v1279_v63, %v1278_v62  ;;  %v1283_v54 = vsel %vm587_vm0, %v563_v23, 0.0  ;;  %v1327_v16 = vadd.f32 %v1326_v61, %v1325_v22  ;;  %v1307_v13 = vsel %vm587_vm0, %v245_v37, 0.0  ;;  %v1958_v51 = vpop.permute.xlu1 %1957  ;;  %v311_v23 = vld [vmem:[%s5177_s0 + $0x960] sm:$0xff]  ;;  %v58_v22 = vld [vmem:[%s5177_s0 + $0x178] sm:$0xff] }
  0xd6   :  { %v2101_v38 = vmul.f32 %v1948_v3, %v1301_v60  ;;  %v1330_v45 = vsel %vm587_vm0, %v438_v1, 0.0  ;;  %v1306_v24 = vadd.f32 %v1305_v5, %v1304_v20  ;;  %v1309_v27 = vsel %vm587_vm0, %v309_v4, 0.0  ;;  %v122_v4 = vld [vmem:[%s5177_s0 + $0x378] sm:$0xff]  ;;  %v504_v60 = vld [vmem:[%s5177_s0 + $0xf68] sm:$0xff] }
  0xd7   :  { %v1282_v7 = vadd.f32 %v1281_v53, %v1280_v9  ;;  %v1329_v6 = vadd.f32 %v1328_v33, %v1327_v16  ;;  %v1353_v11 = vsel %vm587_vm0, %v56_v59, 0.0  ;;  %v1354_v25 = vsel %vm587_vm0, %v120_v14, 0.0  ;;  %v186_v20 = vld [vmem:[%s5177_s0 + $0x578] sm:$0xff]  ;;  %v375_v9 = vld [vmem:[%s5177_s0 + $0xb60] sm:$0xff] }
  0xd8   :  { %2165 = vst.msk [vmem:[%s5178_s2 + $0x148] sm:$0xff] %vm587_vm0, %v2101_v38  ;;  %v1332_v36 = vsel %vm587_vm0, %v502_v26, 0.0  ;;  %v1308_v56 = vadd.f32 %v1307_v13, %v1306_v24  ;;  %v1355_v46 = vadd.f32 %v1354_v25, %v1353_v11  ;;  %v1356_v32 = vsel %vm587_vm0, %v184_v43, 0.0  ;;  %v250_v16 = vld [vmem:[%s5177_s0 + $0x778] sm:$0xff]  ;;  %v568_v43 = vld [vmem:[%s5177_s0 + $0x1168] sm:$0xff]  ;;  %v57_v11 = vld [vmem:[%s5177_s0 + $0x170] sm:$0xff] }
  0xd9   :  { %v1284_v12 = vadd.f32 %v1283_v54, %v1282_v7  ;;  %v1331_v47 = vadd.f32 %v1330_v45, %v1329_v6  ;;  %v1311_v50 = vsel %vm587_vm0, %v373_v58, 0.0  ;;  %v1358_v39 = vsel %vm587_vm0, %v248_v19, 0.0  ;;  %v439_v45 = vld [vmem:[%s5177_s0 + $0xd60] sm:$0xff] }
  0xda   :  { %v1334_v41 = vsel %vm587_vm0, %v566_v29, 0.0  ;;  %v1310_v42 = vadd.f32 %v1309_v27, %v1308_v56  ;;  %v1313_v55 = vsel %vm587_vm0, %v437_v21, 0.0  ;;  %v1357_v48 = vadd.f32 %v1356_v32, %v1355_v46  ;;  %v1953_v27 = vpop.permute.xlu0 %1952  ;;  %v314_v29 = vld [vmem:[%s5177_s0 + $0x978] sm:$0xff]  ;;  %v185_v46 = vld [vmem:[%s5177_s0 + $0x570] sm:$0xff] }
  0xdb   :  { %v2100_v15 = vmul.f32 %v1943_v30, %v1284_v12  ;;  %v1333_v10 = vadd.f32 %v1332_v36, %v1331_v47  ;;  %v1360_v34 = vsel %vm587_vm0, %v312_v18, 0.0  ;;  %v1336_v63 = vsel %vm587_vm0, %v55_v49, 0.0  ;;  %v121_v18 = vld [vmem:[%s5177_s0 + $0x370] sm:$0xff]  ;;  %v503_v49 = vld [vmem:[%s5177_s0 + $0xf60] sm:$0xff] }
  0xdc   :  { %v1312_v35 = vadd.f32 %v1311_v50, %v1310_v42  ;;  %v1359_v17 = vadd.f32 %v1358_v39, %v1357_v48  ;;  %v1337_v61 = vsel %vm587_vm0, %v119_v40, 0.0  ;;  %v1339_v37 = vsel %vm587_vm0, %v183_v31, 0.0  ;;  %v378_v50 = vld [vmem:[%s5177_s0 + $0xb78] sm:$0xff]  ;;  %v249_v42 = vld [vmem:[%s5177_s0 + $0x770] sm:$0xff] }
  0xdd   :  { %2164 = vst.msk [vmem:[%s5178_s2 + $0x140] sm:$0xff] %vm587_vm0, %v2100_v15  ;;  %v1335_v52 = vadd.f32 %v1334_v41, %v1333_v10  ;;  %v1315_v3 = vsel %vm587_vm0, %v501_v2, 0.0  ;;  %v1362_v62 = vsel %vm587_vm0, %v376_v28, 0.0  ;;  %v1338_v1 = vadd.f32 %v1337_v61, %v1336_v63  ;;  %v567_v41 = vld [vmem:[%s5177_s0 + $0x1160] sm:$0xff]  ;;  %v1968_v28 = vpop.permute.xlu1 %1967  ;;  %v442_v15 = vld [vmem:[%s5177_s0 + $0xd78] sm:$0xff] }
  0xde   :  { %v1314_v0 = vadd.f32 %v1313_v55, %v1312_v35  ;;  %v1317_v5 = vsel %vm587_vm0, %v565_v44, 0.0  ;;  %v1361_v53 = vadd.f32 %v1360_v34, %v1359_v17  ;;  %v1341_v33 = vsel %vm587_vm0, %v247_v57, 0.0  ;;  %v313_v44 = vld [vmem:[%s5177_s0 + $0x970] sm:$0xff]  ;;  %v60_v17 = vld [vmem:[%s5177_s0 + $0x188] sm:$0xff] }
  0xdf   :  { %v2103_v59 = vmul.f32 %v1958_v51, %v1335_v52  ;;  %v1364_v14 = vsel %vm587_vm0, %v440_v8, 0.0  ;;  %v1340_v54 = vadd.f32 %v1339_v37, %v1338_v1  ;;  %v1343_v26 = vsel %vm587_vm0, %v311_v23, 0.0  ;;  %v124_v23 = vld [vmem:[%s5177_s0 + $0x388] sm:$0xff]  ;;  %v506_v52 = vld [vmem:[%s5177_s0 + $0xf78] sm:$0xff] }
  0xe0   :  { %v1316_v13 = vadd.f32 %v1315_v3, %v1314_v0  ;;  %v1363_v38 = vadd.f32 %v1362_v62, %v1361_v53  ;;  %v1387_v58 = vsel %vm587_vm0, %v58_v22, 0.0  ;;  %v1388_v24 = vsel %vm587_vm0, %v122_v4, 0.0  ;;  %v188_v1 = vld [vmem:[%s5177_s0 + $0x588] sm:$0xff]  ;;  %v377_v0 = vld [vmem:[%s5177_s0 + $0xb70] sm:$0xff] }
  0xe1   :  { %2167 = vst.msk [vmem:[%s5178_s2 + $0x158] sm:$0xff] %vm587_vm0, %v2103_v59  ;;  %v1366_v19 = vsel %vm587_vm0, %v504_v60, 0.0  ;;  %v1342_v7 = vadd.f32 %v1341_v33, %v1340_v54  ;;  %v1389_v6 = vadd.f32 %v1388_v24, %v1387_v58  ;;  %v1390_v21 = vsel %vm587_vm0, %v186_v20, 0.0  ;;  %v252_v53 = vld [vmem:[%s5177_s0 + $0x788] sm:$0xff]  ;;  %v570_v20 = vld [vmem:[%s5177_s0 + $0x1178] sm:$0xff]  ;;  %v59_v58 = vld [vmem:[%s5177_s0 + $0x180] sm:$0xff] }
  0xe2   :  { %v1318_v25 = vadd.f32 %v1317_v5, %v1316_v13  ;;  %v1365_v30 = vadd.f32 %v1364_v14, %v1363_v38  ;;  %v1345_v36 = vsel %vm587_vm0, %v375_v9, 0.0  ;;  %v1392_v56 = vsel %vm587_vm0, %v250_v16, 0.0  ;;  %v441_v14 = vld [vmem:[%s5177_s0 + $0xd70] sm:$0xff] }
  0xe3   :  { %v1368_v32 = vsel %vm587_vm0, %v568_v43, 0.0  ;;  %v1344_v12 = vadd.f32 %v1343_v26, %v1342_v7  ;;  %v1347_v47 = vsel %vm587_vm0, %v439_v45, 0.0  ;;  %v1391_v39 = vadd.f32 %v1390_v21, %v1389_v6  ;;  %v1963_v26 = vpop.permute.xlu0 %1962  ;;  %v316_v43 = vld [vmem:[%s5177_s0 + $0x988] sm:$0xff]  ;;  %v187_v6 = vld [vmem:[%s5177_s0 + $0x580] sm:$0xff] }
  0xe4   :  { %v2102_v40 = vmul.f32 %v1953_v27, %v1318_v25  ;;  %v1367_v31 = vadd.f32 %v1366_v19, %v1365_v30  ;;  %v1394_v2 = vsel %vm587_vm0, %v314_v29, 0.0  ;;  %v1370_v55 = vsel %vm587_vm0, %v57_v11, 0.0  ;;  %v123_v29 = vld [vmem:[%s5177_s0 + $0x380] sm:$0xff]  ;;  %v505_v11 = vld [vmem:[%s5177_s0 + $0xf70] sm:$0xff] }
  0xe5   :  { %v1346_v48 = vadd.f32 %v1345_v36, %v1344_v12  ;;  %v1393_v10 = vadd.f32 %v1392_v56, %v1391_v39  ;;  %v1371_v34 = vsel %vm587_vm0, %v121_v18, 0.0  ;;  %v1373_v57 = vsel %vm587_vm0, %v185_v46, 0.0  ;;  %v380_v36 = vld [vmem:[%s5177_s0 + $0xb88] sm:$0xff]  ;;  %v251_v12 = vld [vmem:[%s5177_s0 + $0x780] sm:$0xff] }
  0xe6   :  { %2166 = vst.msk [vmem:[%s5178_s2 + $0x150] sm:$0xff] %vm587_vm0, %v2102_v40  ;;  %v1369_v63 = vadd.f32 %v1368_v32, %v1367_v31  ;;  %v1349_v51 = vsel %vm587_vm0, %v503_v49, 0.0  ;;  %v1396_v35 = vsel %vm587_vm0, %v378_v50, 0.0  ;;  %v1372_v8 = vadd.f32 %v1371_v34, %v1370_v55  ;;  %v569_v32 = vld [vmem:[%s5177_s0 + $0x1170] sm:$0xff]  ;;  %v1978_v50 = vpop.permute.xlu1 %1977  ;;  %v444_v40 = vld [vmem:[%s5177_s0 + $0xd88] sm:$0xff] }
  0xe7   :  { %v1348_v61 = vadd.f32 %v1347_v47, %v1346_v48  ;;  %v1351_v37 = vsel %vm587_vm0, %v567_v41, 0.0  ;;  %v1395_v3 = vadd.f32 %v1394_v2, %v1393_v10  ;;  %v1375_v62 = vsel %vm587_vm0, %v249_v42, 0.0  ;;  %v315_v41 = vld [vmem:[%s5177_s0 + $0x980] sm:$0xff]  ;;  %v62_v10 = vld [vmem:[%s5177_s0 + $0x198] sm:$0xff] }
  0xe8   :  { %v2105_v22 = vmul.f32 %v1968_v28, %v1369_v63  ;;  %v1398_v4 = vsel %vm587_vm0, %v442_v15, 0.0  ;;  %v1374_v5 = vadd.f32 %v1373_v57, %v1372_v8  ;;  %v1377_v60 = vsel %vm587_vm0, %v313_v44, 0.0  ;;  %v126_v44 = vld [vmem:[%s5177_s0 + $0x398] sm:$0xff]  ;;  %v508_v63 = vld [vmem:[%s5177_s0 + $0xf88] sm:$0xff] }
  0xe9   :  { %v1350_v33 = vadd.f32 %v1349_v51, %v1348_v61  ;;  %v1397_v59 = vadd.f32 %v1396_v35, %v1395_v3  ;;  %v1421_v9 = vsel %vm587_vm0, %v60_v17, 0.0  ;;  %v1422_v54 = vsel %vm587_vm0, %v124_v23, 0.0  ;;  %v190_v8 = vld [vmem:[%s5177_s0 + $0x598] sm:$0xff]  ;;  %v379_v61 = vld [vmem:[%s5177_s0 + $0xb80] sm:$0xff] }
  0xea   :  { %2169 = vst.msk [vmem:[%s5178_s2 + $0x168] sm:$0xff] %vm587_vm0, %v2105_v22  ;;  %v1400_v16 = vsel %vm587_vm0, %v506_v52, 0.0  ;;  %v1376_v13 = vadd.f32 %v1375_v62, %v1374_v5  ;;  %v1423_v38 = vadd.f32 %v1422_v54, %v1421_v9  ;;  %v1424_v45 = vsel %vm587_vm0, %v188_v1, 0.0  ;;  %v254_v3 = vld [vmem:[%s5177_s0 + $0x798] sm:$0xff]  ;;  %v572_v1 = vld [vmem:[%s5177_s0 + $0x1188] sm:$0xff]  ;;  %v61_v9 = vld [vmem:[%s5177_s0 + $0x190] sm:$0xff] }
  0xeb   :  { %v1352_v24 = vadd.f32 %v1351_v37, %v1350_v33  ;;  %v1399_v27 = vadd.f32 %v1398_v4, %v1397_v59  ;;  %v1379_v19 = vsel %vm587_vm0, %v377_v0, 0.0  ;;  %v1426_v7 = vsel %vm587_vm0, %v252_v53, 0.0  ;;  %v443_v4 = vld [vmem:[%s5177_s0 + $0xd80] sm:$0xff] }
  0xec   :  { %v1402_v21 = vsel %vm587_vm0, %v570_v20, 0.0  ;;  %v1378_v25 = vadd.f32 %v1377_v60, %v1376_v13  ;;  %v1381_v30 = vsel %vm587_vm0, %v441_v14, 0.0  ;;  %v1425_v56 = vadd.f32 %v1424_v45, %v1423_v38  ;;  %v1973_v60 = vpop.permute.xlu0 %1972  ;;  %v318_v20 = vld [vmem:[%s5177_s0 + $0x998] sm:$0xff]  ;;  %v189_v38 = vld [vmem:[%s5177_s0 + $0x590] sm:$0xff] }
  0xed   :  { %v2104_v18 = vmul.f32 %v1963_v26, %v1352_v24  ;;  %v1401_v46 = vadd.f32 %v1400_v16, %v1399_v27  ;;  %v1428_v49 = vsel %vm587_vm0, %v316_v43, 0.0  ;;  %v1404_v47 = vsel %vm587_vm0, %v59_v58, 0.0  ;;  %v125_v43 = vld [vmem:[%s5177_s0 + $0x390] sm:$0xff]  ;;  %v507_v58 = vld [vmem:[%s5177_s0 + $0xf80] sm:$0xff] }
  0xee   :  { %v1380_v39 = vadd.f32 %v1379_v19, %v1378_v25  ;;  %v1427_v31 = vadd.f32 %v1426_v7, %v1425_v56  ;;  %v1405_v2 = vsel %vm587_vm0, %v123_v29, 0.0  ;;  %v1407_v42 = vsel %vm587_vm0, %v187_v6, 0.0  ;;  %v382_v19 = vld [vmem:[%s5177_s0 + $0xb98] sm:$0xff]  ;;  %v253_v25 = vld [vmem:[%s5177_s0 + $0x790] sm:$0xff] }
  0xef   :  { %2168 = vst.msk [vmem:[%s5178_s2 + $0x160] sm:$0xff] %vm587_vm0, %v2104_v18  ;;  %v1403_v55 = vadd.f32 %v1402_v21, %v1401_v46  ;;  %v1383_v28 = vsel %vm587_vm0, %v505_v11, 0.0  ;;  %v1430_v48 = vsel %vm587_vm0, %v380_v36, 0.0  ;;  %v1406_v15 = vadd.f32 %v1405_v2, %v1404_v47  ;;  %v571_v21 = vld [vmem:[%s5177_s0 + $0x1180] sm:$0xff]  ;;  %v1988_v36 = vpop.permute.xlu1 %1987  ;;  %v446_v18 = vld [vmem:[%s5177_s0 + $0xd98] sm:$0xff] }
  0xf0   :  { %v1382_v34 = vadd.f32 %v1381_v30, %v1380_v39  ;;  %v1385_v57 = vsel %vm587_vm0, %v569_v32, 0.0  ;;  %v1429_v51 = vadd.f32 %v1428_v49, %v1427_v31  ;;  %v1409_v35 = vsel %vm587_vm0, %v251_v12, 0.0  ;;  %v317_v32 = vld [vmem:[%s5177_s0 + $0x990] sm:$0xff]  ;;  %v64_v31 = vld [vmem:[%s5177_s0 + $0x1a8] sm:$0xff] }
  0xf1   :  { %v2107_v17 = vmul.f32 %v1978_v50, %v1403_v55  ;;  %v1432_v23 = vsel %vm587_vm0, %v444_v40, 0.0  ;;  %v1408_v37 = vadd.f32 %v1407_v42, %v1406_v15  ;;  %v1411_v52 = vsel %vm587_vm0, %v315_v41, 0.0  ;;  %v128_v41 = vld [vmem:[%s5177_s0 + $0x3a8] sm:$0xff]  ;;  %v510_v55 = vld [vmem:[%s5177_s0 + $0xf98] sm:$0xff] }
  0xf2   :  { %v1384_v62 = vadd.f32 %v1383_v28, %v1382_v34  ;;  %v1431_v22 = vadd.f32 %v1430_v48, %v1429_v51  ;;  %v1455_v0 = vsel %vm587_vm0, %v62_v10, 0.0  ;;  %v1456_v5 = vsel %vm587_vm0, %v126_v44, 0.0  ;;  %v192_v15 = vld [vmem:[%s5177_s0 + $0x5a8] sm:$0xff]  ;;  %v381_v34 = vld [vmem:[%s5177_s0 + $0xb90] sm:$0xff] }
  0xf3   :  { %2171 = vst.msk [vmem:[%s5178_s2 + $0x178] sm:$0xff] %vm587_vm0, %v2107_v17  ;;  %v1434_v53 = vsel %vm587_vm0, %v508_v63, 0.0  ;;  %v1410_v33 = vadd.f32 %v1409_v35, %v1408_v37  ;;  %v1457_v59 = vadd.f32 %v1456_v5, %v1455_v0  ;;  %v1458_v14 = vsel %vm587_vm0, %v190_v8, 0.0  ;;  %v256_v51 = vld [vmem:[%s5177_s0 + $0x7a8] sm:$0xff]  ;;  %v574_v8 = vld [vmem:[%s5177_s0 + $0x1198] sm:$0xff]  ;;  %v63_v0 = vld [vmem:[%s5177_s0 + $0x1a0] sm:$0xff] }
  0xf4   :  { %v1386_v54 = vadd.f32 %v1385_v57, %v1384_v62  ;;  %v1433_v26 = vadd.f32 %v1432_v23, %v1431_v22  ;;  %v1413_v16 = vsel %vm587_vm0, %v379_v61, 0.0  ;;  %v1460_v13 = vsel %vm587_vm0, %v254_v3, 0.0  ;;  %v445_v23 = vld [vmem:[%s5177_s0 + $0xd90] sm:$0xff] }
  0xf5   :  { %v1436_v45 = vsel %vm587_vm0, %v572_v1, 0.0  ;;  %v1412_v24 = vadd.f32 %v1411_v52, %v1410_v33  ;;  %v1415_v27 = vsel %vm587_vm0, %v443_v4, 0.0  ;;  %v1459_v7 = vadd.f32 %v1458_v14, %v1457_v59  ;;  %v1983_v52 = vpop.permute.xlu0 %1982  ;;  %v320_v1 = vld [vmem:[%s5177_s0 + $0x9a8] sm:$0xff]  ;;  %v191_v59 = vld [vmem:[%s5177_s0 + $0x5a0] sm:$0xff] }
  0xf6   :  { %v2106_v29 = vmul.f32 %v1973_v60, %v1386_v54  ;;  %v1435_v6 = vadd.f32 %v1434_v53, %v1433_v26  ;;  %v1462_v11 = vsel %vm587_vm0, %v318_v20, 0.0  ;;  %v1438_v30 = vsel %vm587_vm0, %v61_v9, 0.0  ;;  %v127_v20 = vld [vmem:[%s5177_s0 + $0x3a0] sm:$0xff]  ;;  %v509_v9 = vld [vmem:[%s5177_s0 + $0xf90] sm:$0xff] }
  0xf7   :  { %v1414_v56 = vadd.f32 %v1413_v16, %v1412_v24  ;;  %v1461_v46 = vadd.f32 %v1460_v13, %v1459_v7  ;;  %v1439_v49 = vsel %vm587_vm0, %v125_v43, 0.0  ;;  %v1441_v12 = vsel %vm587_vm0, %v189_v38, 0.0  ;;  %v384_v16 = vld [vmem:[%s5177_s0 + $0xba8] sm:$0xff]  ;;  %v255_v24 = vld [vmem:[%s5177_s0 + $0x7a0] sm:$0xff] }
  0xf8   :  { %2170 = vst.msk [vmem:[%s5178_s2 + $0x170] sm:$0xff] %vm587_vm0, %v2106_v29  ;;  %v1437_v47 = vadd.f32 %v1436_v45, %v1435_v6  ;;  %v1417_v50 = vsel %vm587_vm0, %v507_v58, 0.0  ;;  %v1464_v39 = vsel %vm587_vm0, %v382_v19, 0.0  ;;  %v1440_v40 = vadd.f32 %v1439_v49, %v1438_v30  ;;  %v573_v45 = vld [vmem:[%s5177_s0 + $0x1190] sm:$0xff]  ;;  %v1998_v19 = vpop.permute.xlu1 %1997  ;;  %v448_v29 = vld [vmem:[%s5177_s0 + $0xda8] sm:$0xff] }
  0xf9   :  { %v1416_v2 = vadd.f32 %v1415_v27, %v1414_v56  ;;  %v1419_v42 = vsel %vm587_vm0, %v571_v21, 0.0  ;;  %v1463_v28 = vadd.f32 %v1462_v11, %v1461_v46  ;;  %v1443_v48 = vsel %vm587_vm0, %v253_v25, 0.0  ;;  %v319_v21 = vld [vmem:[%s5177_s0 + $0x9a0] sm:$0xff]  ;;  %v66_v46 = vld [vmem:[%s5177_s0 + $0x1b8] sm:$0xff] }
  0xfa   :  { %v2109_v10 = vmul.f32 %v1988_v36, %v1437_v47  ;;  %v1466_v44 = vsel %vm587_vm0, %v446_v18, 0.0  ;;  %v1442_v57 = vadd.f32 %v1441_v12, %v1440_v40  ;;  %v1445_v63 = vsel %vm587_vm0, %v317_v32, 0.0  ;;  %v130_v32 = vld [vmem:[%s5177_s0 + $0x3b8] sm:$0xff]  ;;  %v512_v47 = vld [vmem:[%s5177_s0 + $0xfa8] sm:$0xff] }
  0xfb   :  { %v1418_v35 = vadd.f32 %v1417_v50, %v1416_v2  ;;  %v1465_v17 = vadd.f32 %v1464_v39, %v1463_v28  ;;  %v1489_v61 = vsel %vm587_vm0, %v64_v31, 0.0  ;;  %v1490_v37 = vsel %vm587_vm0, %v128_v41, 0.0  ;;  %v194_v40 = vld [vmem:[%s5177_s0 + $0x5b8] sm:$0xff]  ;;  %v383_v2 = vld [vmem:[%s5177_s0 + $0xba0] sm:$0xff] }
  0xfc   :  { %2173 = vst.msk [vmem:[%s5178_s2 + $0x188] sm:$0xff] %vm587_vm0, %v2109_v10  ;;  %v1468_v3 = vsel %vm587_vm0, %v510_v55, 0.0  ;;  %v1444_v62 = vadd.f32 %v1443_v48, %v1442_v57  ;;  %v1491_v22 = vadd.f32 %v1490_v37, %v1489_v61  ;;  %v1492_v4 = vsel %vm587_vm0, %v192_v15, 0.0  ;;  %v258_v28 = vld [vmem:[%s5177_s0 + $0x7b8] sm:$0xff]  ;;  %v576_v15 = vld [vmem:[%s5177_s0 + $0x11a8] sm:$0xff]  ;;  %v65_v61 = vld [vmem:[%s5177_s0 + $0x1b0] sm:$0xff] }
  0xfd   :  { %v1420_v5 = vadd.f32 %v1419_v42, %v1418_v35  ;;  %v1467_v60 = vadd.f32 %v1466_v44, %v1465_v17  ;;  %v1447_v53 = vsel %vm587_vm0, %v381_v34, 0.0  ;;  %v1494_v33 = vsel %vm587_vm0, %v256_v51, 0.0  ;;  %v447_v44 = vld [vmem:[%s5177_s0 + $0xda0] sm:$0xff] }
  0xfe   :  { %v1470_v14 = vsel %vm587_vm0, %v574_v8, 0.0  ;;  %v1446_v54 = vadd.f32 %v1445_v63, %v1444_v62  ;;  %v1449_v26 = vsel %vm587_vm0, %v445_v23, 0.0  ;;  %v1493_v13 = vadd.f32 %v1492_v4, %v1491_v22  ;;  %v1993_v63 = vpop.permute.xlu0 %1992  ;;  %v322_v8 = vld [vmem:[%s5177_s0 + $0x9b8] sm:$0xff]  ;;  %v193_v22 = vld [vmem:[%s5177_s0 + $0x5b0] sm:$0xff] }
  0xff   :  { %v2108_v43 = vmul.f32 %v1983_v52, %v1420_v5  ;;  %v1469_v38 = vadd.f32 %v1468_v3, %v1467_v60  ;;  %v1496_v58 = vsel %vm587_vm0, %v320_v1, 0.0  ;;  %v1472_v27 = vsel %vm587_vm0, %v63_v0, 0.0  ;;  %v129_v1 = vld [vmem:[%s5177_s0 + $0x3b0] sm:$0xff]  ;;  %v511_v0 = vld [vmem:[%s5177_s0 + $0xfa0] sm:$0xff] }
 0x100   :  { %v1448_v7 = vadd.f32 %v1447_v53, %v1446_v54  ;;  %v1495_v6 = vadd.f32 %v1494_v33, %v1493_v13  ;;  %v1473_v11 = vsel %vm587_vm0, %v127_v20, 0.0  ;;  %v1475_v25 = vsel %vm587_vm0, %v191_v59, 0.0  ;;  %v386_v53 = vld [vmem:[%s5177_s0 + $0xbb8] sm:$0xff]  ;;  %v257_v54 = vld [vmem:[%s5177_s0 + $0x7b0] sm:$0xff] }
 0x101   :  { %2172 = vst.msk [vmem:[%s5178_s2 + $0x180] sm:$0xff] %vm587_vm0, %v2108_v43  ;;  %v1471_v30 = vadd.f32 %v1470_v14, %v1469_v38  ;;  %v1451_v36 = vsel %vm587_vm0, %v509_v9, 0.0  ;;  %v1498_v56 = vsel %vm587_vm0, %v384_v16, 0.0  ;;  %v1474_v18 = vadd.f32 %v1473_v11, %v1472_v27  ;;  %v575_v14 = vld [vmem:[%s5177_s0 + $0x11a0] sm:$0xff]  ;;  %v2008_v16 = vpop.permute.xlu1 %2007  ;;  %v450_v43 = vld [vmem:[%s5177_s0 + $0xdb8] sm:$0xff] }
 0x102   :  { %v1450_v49 = vadd.f32 %v1449_v26, %v1448_v7  ;;  %v1453_v12 = vsel %vm587_vm0, %v573_v45, 0.0  ;;  %v1497_v50 = vadd.f32 %v1496_v58, %v1495_v6  ;;  %v1477_v39 = vsel %vm587_vm0, %v255_v24, 0.0  ;;  %v321_v45 = vld [vmem:[%s5177_s0 + $0x9b0] sm:$0xff]  ;;  %v68_v6 = vld [vmem:[%s5177_s0 + $0x1c8] sm:$0xff] }
 0x103   :  { %v2111_v31 = vmul.f32 %v1998_v19, %v1471_v30  ;;  %v1500_v41 = vsel %vm587_vm0, %v448_v29, 0.0  ;;  %v1476_v42 = vadd.f32 %v1475_v25, %v1474_v18  ;;  %v1479_v55 = vsel %vm587_vm0, %v319_v21, 0.0  ;;  %v132_v21 = vld [vmem:[%s5177_s0 + $0x3c8] sm:$0xff]  ;;  %v514_v30 = vld [vmem:[%s5177_s0 + $0xfb8] sm:$0xff] }
 0x104   :  { %v1452_v48 = vadd.f32 %v1451_v36, %v1450_v49  ;;  %v1499_v10 = vadd.f32 %v1498_v56, %v1497_v50  ;;  %v1523_v34 = vsel %vm587_vm0, %v66_v46, 0.0  ;;  %v1524_v57 = vsel %vm587_vm0, %v130_v32, 0.0  ;;  %v196_v18 = vld [vmem:[%s5177_s0 + $0x5c8] sm:$0xff]  ;;  %v385_v49 = vld [vmem:[%s5177_s0 + $0xbb0] sm:$0xff] }
 0x105   :  { %2175 = vst.msk [vmem:[%s5178_s2 + $0x198] sm:$0xff] %vm587_vm0, %v2111_v31  ;;  %v1502_v51 = vsel %vm587_vm0, %v512_v47, 0.0  ;;  %v1478_v35 = vadd.f32 %v1477_v39, %v1476_v42  ;;  %v1525_v17 = vadd.f32 %v1524_v57, %v1523_v34  ;;  %v1526_v23 = vsel %vm587_vm0, %v194_v40, 0.0  ;;  %v260_v50 = vld [vmem:[%s5177_s0 + $0x7c8] sm:$0xff]  ;;  %v578_v40 = vld [vmem:[%s5177_s0 + $0x11b8] sm:$0xff]  ;;  %v67_v34 = vld [vmem:[%s5177_s0 + $0x1c0] sm:$0xff] }
 0x106   :  { %v1454_v37 = vadd.f32 %v1453_v12, %v1452_v48  ;;  %v1501_v52 = vadd.f32 %v1500_v41, %v1499_v10  ;;  %v1481_v3 = vsel %vm587_vm0, %v383_v2, 0.0  ;;  %v1528_v62 = vsel %vm587_vm0, %v258_v28, 0.0  ;;  %v449_v41 = vld [vmem:[%s5177_s0 + $0xdb0] sm:$0xff] }
 0x107   :  { %v1504_v4 = vsel %vm587_vm0, %v576_v15, 0.0  ;;  %v1480_v5 = vadd.f32 %v1479_v55, %v1478_v35  ;;  %v1483_v60 = vsel %vm587_vm0, %v447_v44, 0.0  ;;  %v1527_v33 = vadd.f32 %v1526_v23, %v1525_v17  ;;  %v2003_v55 = vpop.permute.xlu0 %2002  ;;  %v324_v15 = vld [vmem:[%s5177_s0 + $0x9c8] sm:$0xff]  ;;  %v195_v17 = vld [vmem:[%s5177_s0 + $0x5c0] sm:$0xff] }
 0x108   :  { %v2110_v20 = vmul.f32 %v1993_v63, %v1454_v37  ;;  %v1503_v59 = vadd.f32 %v1502_v51, %v1501_v52  ;;  %v1530_v9 = vsel %vm587_vm0, %v322_v8, 0.0  ;;  %v1506_v26 = vsel %vm587_vm0, %v65_v61, 0.0  ;;  %v131_v8 = vld [vmem:[%s5177_s0 + $0x3c0] sm:$0xff]  ;;  %v513_v61 = vld [vmem:[%s5177_s0 + $0xfb0] sm:$0xff] }
 0x109   :  { %v1482_v13 = vadd.f32 %v1481_v3, %v1480_v5  ;;  %v1529_v38 = vadd.f32 %v1528_v62, %v1527_v33  ;;  %v1507_v58 = vsel %vm587_vm0, %v129_v1, 0.0  ;;  %v1509_v24 = vsel %vm587_vm0, %v193_v22, 0.0  ;;  %v388_v3 = vld [vmem:[%s5177_s0 + $0xbc8] sm:$0xff]  ;;  %v259_v5 = vld [vmem:[%s5177_s0 + $0x7c0] sm:$0xff] }
 0x10a   :  { %2174 = vst.msk [vmem:[%s5178_s2 + $0x190] sm:$0xff] %vm587_vm0, %v2110_v20  ;;  %v1505_v27 = vadd.f32 %v1504_v4, %v1503_v59  ;;  %v1485_v19 = vsel %vm587_vm0, %v511_v0, 0.0  ;;  %v1532_v7 = vsel %vm587_vm0, %v386_v53, 0.0  ;;  %v1508_v29 = vadd.f32 %v1507_v58, %v1506_v26  ;;  %v577_v4 = vld [vmem:[%s5177_s0 + $0x11b0] sm:$0xff]  ;;  %v2018_v53 = vpop.permute.xlu1 %2017  ;;  %v452_v20 = vld [vmem:[%s5177_s0 + $0xdc8] sm:$0xff] }
 0x10b   :  { %v1484_v11 = vadd.f32 %v1483_v60, %v1482_v13  ;;  %v1487_v25 = vsel %vm587_vm0, %v575_v14, 0.0  ;;  %v1531_v36 = vadd.f32 %v1530_v9, %v1529_v38  ;;  %v1511_v56 = vsel %vm587_vm0, %v257_v54, 0.0  ;;  %v323_v14 = vld [vmem:[%s5177_s0 + $0x9c0] sm:$0xff]  ;;  %v70_v38 = vld [vmem:[%s5177_s0 + $0x1d8] sm:$0xff] }
 0x10c   :  { %v2113_v46 = vmul.f32 %v2008_v16, %v1505_v27  ;;  %v1534_v32 = vsel %vm587_vm0, %v450_v43, 0.0  ;;  %v1510_v12 = vadd.f32 %v1509_v24, %v1508_v29  ;;  %v1513_v47 = vsel %vm587_vm0, %v321_v45, 0.0  ;;  %v134_v45 = vld [vmem:[%s5177_s0 + $0x3d8] sm:$0xff]  ;;  %v516_v27 = vld [vmem:[%s5177_s0 + $0xfc8] sm:$0xff] }
 0x10d   :  { %v1486_v39 = vadd.f32 %v1485_v19, %v1484_v11  ;;  %v1533_v31 = vadd.f32 %v1532_v7, %v1531_v36  ;;  %v1557_v2 = vsel %vm587_vm0, %v68_v6, 0.0  ;;  %v1558_v42 = vsel %vm587_vm0, %v132_v21, 0.0  ;;  %v198_v29 = vld [vmem:[%s5177_s0 + $0x5d8] sm:$0xff]  ;;  %v387_v11 = vld [vmem:[%s5177_s0 + $0xbc0] sm:$0xff] }
 0x10e   :  { %2177 = vst.msk [vmem:[%s5178_s2 + $0x1a8] sm:$0xff] %vm587_vm0, %v2113_v46  ;;  %v1536_v28 = vsel %vm587_vm0, %v514_v30, 0.0  ;;  %v1512_v48 = vadd.f32 %v1511_v56, %v1510_v12  ;;  %v1559_v10 = vadd.f32 %v1558_v42, %v1557_v2  ;;  %v1560_v44 = vsel %vm587_vm0, %v196_v18, 0.0  ;;  %v262_v36 = vld [vmem:[%s5177_s0 + $0x7d8] sm:$0xff]  ;;  %v580_v18 = vld [vmem:[%s5177_s0 + $0x11c8] sm:$0xff]  ;;  %v69_v2 = vld [vmem:[%s5177_s0 + $0x1d0] sm:$0xff] }
 0x10f   :  { %v1488_v57 = vadd.f32 %v1487_v25, %v1486_v39  ;;  %v1535_v63 = vadd.f32 %v1534_v32, %v1533_v31  ;;  %v1515_v51 = vsel %vm587_vm0, %v385_v49, 0.0  ;;  %v1562_v35 = vsel %vm587_vm0, %v260_v50, 0.0  ;;  %v451_v32 = vld [vmem:[%s5177_s0 + $0xdc0] sm:$0xff] }
 0x110   :  { %v1538_v23 = vsel %vm587_vm0, %v578_v40, 0.0  ;;  %v1514_v37 = vadd.f32 %v1513_v47, %v1512_v48  ;;  %v1517_v52 = vsel %vm587_vm0, %v449_v41, 0.0  ;;  %v1561_v62 = vadd.f32 %v1560_v44, %v1559_v10  ;;  %v2013_v47 = vpop.permute.xlu0 %2012  ;;  %v326_v40 = vld [vmem:[%s5177_s0 + $0x9d8] sm:$0xff]  ;;  %v197_v10 = vld [vmem:[%s5177_s0 + $0x5d0] sm:$0xff] }
 0x111   :  { %v2112_v1 = vmul.f32 %v2003_v55, %v1488_v57  ;;  %v1537_v22 = vadd.f32 %v1536_v28, %v1535_v63  ;;  %v1564_v0 = vsel %vm587_vm0, %v324_v15, 0.0  ;;  %v1540_v60 = vsel %vm587_vm0, %v67_v34, 0.0  ;;  %v133_v15 = vld [vmem:[%s5177_s0 + $0x3d0] sm:$0xff]  ;;  %v515_v34 = vld [vmem:[%s5177_s0 + $0xfc0] sm:$0xff] }
 0x112   :  { %v1516_v33 = vadd.f32 %v1515_v51, %v1514_v37  ;;  %v1563_v59 = vadd.f32 %v1562_v35, %v1561_v62  ;;  %v1541_v9 = vsel %vm587_vm0, %v131_v8, 0.0  ;;  %v1543_v54 = vsel %vm587_vm0, %v195_v17, 0.0  ;;  %v390_v51 = vld [vmem:[%s5177_s0 + $0xbd8] sm:$0xff]  ;;  %v261_v37 = vld [vmem:[%s5177_s0 + $0x7d0] sm:$0xff] }
 0x113   :  { %2176 = vst.msk [vmem:[%s5178_s2 + $0x1a0] sm:$0xff] %vm587_vm0, %v2112_v1  ;;  %v1539_v26 = vadd.f32 %v1538_v23, %v1537_v22  ;;  %v1519_v16 = vsel %vm587_vm0, %v513_v61, 0.0  ;;  %v1566_v13 = vsel %vm587_vm0, %v388_v3, 0.0  ;;  %v1542_v43 = vadd.f32 %v1541_v9, %v1540_v60  ;;  %v579_v23 = vld [vmem:[%s5177_s0 + $0x11c0] sm:$0xff]  ;;  %v2028_v3 = vpop.permute.xlu1 %2027  ;;  %v454_v1 = vld [vmem:[%s5177_s0 + $0xdd8] sm:$0xff] }
 0x114   :  { %v1518_v58 = vadd.f32 %v1517_v52, %v1516_v33  ;;  %v1521_v24 = vsel %vm587_vm0, %v577_v4, 0.0  ;;  %v1565_v19 = vadd.f32 %v1564_v0, %v1563_v59  ;;  %v1545_v7 = vsel %vm587_vm0, %v259_v5, 0.0  ;;  %v325_v4 = vld [vmem:[%s5177_s0 + $0x9d0] sm:$0xff]  ;;  %v72_v59 = vld [vmem:[%s5177_s0 + $0x1e8] sm:$0xff] }
 0x115   :  { %v2115_v6 = vmul.f32 %v2018_v53, %v1539_v26  ;;  %v1568_v21 = vsel %vm587_vm0, %v452_v20, 0.0  ;;  %v1544_v25 = vadd.f32 %v1543_v54, %v1542_v43  ;;  %v1547_v30 = vsel %vm587_vm0, %v323_v14, 0.0  ;;  %v136_v14 = vld [vmem:[%s5177_s0 + $0x3e8] sm:$0xff]  ;;  %v518_v26 = vld [vmem:[%s5177_s0 + $0xfd8] sm:$0xff] }
 0x116   :  { %v1520_v56 = vadd.f32 %v1519_v16, %v1518_v58  ;;  %v1567_v46 = vadd.f32 %v1566_v13, %v1565_v19  ;;  %v1591_v49 = vsel %vm587_vm0, %v70_v38, 0.0  ;;  %v1592_v12 = vsel %vm587_vm0, %v134_v45, 0.0  ;;  %v200_v43 = vld [vmem:[%s5177_s0 + $0x5e8] sm:$0xff]  ;;  %v389_v58 = vld [vmem:[%s5177_s0 + $0xbd0] sm:$0xff] }
 0x117   :  { %2179 = vst.msk [vmem:[%s5178_s2 + $0x1b8] sm:$0xff] %vm587_vm0, %v2115_v6  ;;  %v1570_v50 = vsel %vm587_vm0, %v516_v27, 0.0  ;;  %v1546_v39 = vadd.f32 %v1545_v7, %v1544_v25  ;;  %v1593_v31 = vadd.f32 %v1592_v12, %v1591_v49  ;;  %v1594_v41 = vsel %vm587_vm0, %v198_v29, 0.0  ;;  %v264_v19 = vld [vmem:[%s5177_s0 + $0x7e8] sm:$0xff]  ;;  %v582_v29 = vld [vmem:[%s5177_s0 + $0x11d8] sm:$0xff]  ;;  %v71_v49 = vld [vmem:[%s5177_s0 + $0x1e0] sm:$0xff] }
 0x118   :  { %v1522_v42 = vadd.f32 %v1521_v24, %v1520_v56  ;;  %v1569_v55 = vadd.f32 %v1568_v21, %v1567_v46  ;;  %v1549_v28 = vsel %vm587_vm0, %v387_v11, 0.0  ;;  %v1596_v48 = vsel %vm587_vm0, %v262_v36, 0.0  ;;  %v453_v21 = vld [vmem:[%s5177_s0 + $0xdd0] sm:$0xff] }
 0x119   :  { %v1572_v44 = vsel %vm587_vm0, %v580_v18, 0.0  ;;  %v1548_v57 = vadd.f32 %v1547_v30, %v1546_v39  ;;  %v1551_v63 = vsel %vm587_vm0, %v451_v32, 0.0  ;;  %v1595_v35 = vadd.f32 %v1594_v41, %v1593_v31  ;;  %v2023_v30 = vpop.permute.xlu0 %2022  ;;  %v328_v18 = vld [vmem:[%s5177_s0 + $0x9e8] sm:$0xff]  ;;  %v199_v31 = vld [vmem:[%s5177_s0 + $0x5e0] sm:$0xff] }
 0x11a   :  { %v2114_v8 = vmul.f32 %v2013_v47, %v1522_v42  ;;  %v1571_v17 = vadd.f32 %v1570_v50, %v1569_v55  ;;  %v1598_v61 = vsel %vm587_vm0, %v326_v40, 0.0  ;;  %v1574_v52 = vsel %vm587_vm0, %v69_v2, 0.0  ;;  %v135_v40 = vld [vmem:[%s5177_s0 + $0x3e0] sm:$0xff]  ;;  %v517_v2 = vld [vmem:[%s5177_s0 + $0xfd0] sm:$0xff] }
 0x11b   :  { %v1550_v62 = vadd.f32 %v1549_v28, %v1548_v57  ;;  %v1597_v22 = vadd.f32 %v1596_v48, %v1595_v35  ;;  %v1575_v0 = vsel %vm587_vm0, %v133_v15, 0.0  ;;  %v1577_v5 = vsel %vm587_vm0, %v197_v10, 0.0  ;;  %v392_v28 = vld [vmem:[%s5177_s0 + $0xbe8] sm:$0xff]  ;;  %v263_v57 = vld [vmem:[%s5177_s0 + $0x7e0] sm:$0xff] }
 0x11c   :  { %2178 = vst.msk [vmem:[%s5178_s2 + $0x1b0] sm:$0xff] %vm587_vm0, %v2114_v8  ;;  %v1573_v60 = vadd.f32 %v1572_v44, %v1571_v17  ;;  %v1553_v53 = vsel %vm587_vm0, %v515_v34, 0.0  ;;  %v1600_v33 = vsel %vm587_vm0, %v390_v51, 0.0  ;;  %v1576_v20 = vadd.f32 %v1575_v0, %v1574_v52  ;;  %v581_v44 = vld [vmem:[%s5177_s0 + $0x11d0] sm:$0xff]  ;;  %v2038_v51 = vpop.permute.xlu1 %2037  ;;  %v456_v8 = vld [vmem:[%s5177_s0 + $0xde8] sm:$0xff] }
 0x11d   :  { %v1552_v9 = vadd.f32 %v1551_v63, %v1550_v62  ;;  %v1555_v54 = vsel %vm587_vm0, %v579_v23, 0.0  ;;  %v1599_v16 = vadd.f32 %v1598_v61, %v1597_v22  ;;  %v1579_v13 = vsel %vm587_vm0, %v261_v37, 0.0  ;;  %v327_v23 = vld [vmem:[%s5177_s0 + $0x9e0] sm:$0xff]  ;;  %v74_v22 = vld [vmem:[%s5177_s0 + $0x1f8] sm:$0xff] }
 0x11e   :  { %v2117_v38 = vmul.f32 %v2028_v3, %v1573_v60  ;;  %v1602_v45 = vsel %vm587_vm0, %v454_v1, 0.0  ;;  %v1578_v24 = vadd.f32 %v1577_v5, %v1576_v20  ;;  %v1581_v27 = vsel %vm587_vm0, %v325_v4, 0.0  ;;  %v138_v4 = vld [vmem:[%s5177_s0 + $0x3f8] sm:$0xff]  ;;  %v520_v60 = vld [vmem:[%s5177_s0 + $0xfe8] sm:$0xff] }
 0x11f   :  { %v1554_v7 = vadd.f32 %v1553_v53, %v1552_v9  ;;  %v1601_v6 = vadd.f32 %v1600_v33, %v1599_v16  ;;  %v1625_v11 = vsel %vm587_vm0, %v72_v59, 0.0  ;;  %v1626_v25 = vsel %vm587_vm0, %v136_v14, 0.0  ;;  %v202_v20 = vld [vmem:[%s5177_s0 + $0x5f8] sm:$0xff]  ;;  %v391_v9 = vld [vmem:[%s5177_s0 + $0xbe0] sm:$0xff] }
 0x120   :  { %2181 = vst.msk [vmem:[%s5178_s2 + $0x1c8] sm:$0xff] %vm587_vm0, %v2117_v38  ;;  %v1604_v36 = vsel %vm587_vm0, %v518_v26, 0.0  ;;  %v1580_v56 = vadd.f32 %v1579_v13, %v1578_v24  ;;  %v1627_v46 = vadd.f32 %v1626_v25, %v1625_v11  ;;  %v1628_v32 = vsel %vm587_vm0, %v200_v43, 0.0  ;;  %v266_v16 = vld [vmem:[%s5177_s0 + $0x7f8] sm:$0xff]  ;;  %v584_v43 = vld [vmem:[%s5177_s0 + $0x11e8] sm:$0xff]  ;;  %v73_v11 = vld [vmem:[%s5177_s0 + $0x1f0] sm:$0xff] }
 0x121   :  { %v1556_v12 = vadd.f32 %v1555_v54, %v1554_v7  ;;  %v1603_v47 = vadd.f32 %v1602_v45, %v1601_v6  ;;  %v1583_v50 = vsel %vm587_vm0, %v389_v58, 0.0  ;;  %v1630_v39 = vsel %vm587_vm0, %v264_v19, 0.0  ;;  %v455_v45 = vld [vmem:[%s5177_s0 + $0xde0] sm:$0xff] }
 0x122   :  { %v1606_v41 = vsel %vm587_vm0, %v582_v29, 0.0  ;;  %v1582_v42 = vadd.f32 %v1581_v27, %v1580_v56  ;;  %v1585_v55 = vsel %vm587_vm0, %v453_v21, 0.0  ;;  %v1629_v48 = vadd.f32 %v1628_v32, %v1627_v46  ;;  %v2033_v27 = vpop.permute.xlu0 %2032  ;;  %v330_v29 = vld [vmem:[%s5177_s0 + $0x9f8] sm:$0xff]  ;;  %v201_v46 = vld [vmem:[%s5177_s0 + $0x5f0] sm:$0xff] }
 0x123   :  { %v2116_v15 = vmul.f32 %v2023_v30, %v1556_v12  ;;  %v1605_v10 = vadd.f32 %v1604_v36, %v1603_v47  ;;  %v1632_v34 = vsel %vm587_vm0, %v328_v18, 0.0  ;;  %v1608_v63 = vsel %vm587_vm0, %v71_v49, 0.0  ;;  %v137_v18 = vld [vmem:[%s5177_s0 + $0x3f0] sm:$0xff]  ;;  %v519_v49 = vld [vmem:[%s5177_s0 + $0xfe0] sm:$0xff] }
 0x124   :  { %v1584_v35 = vadd.f32 %v1583_v50, %v1582_v42  ;;  %v1631_v17 = vadd.f32 %v1630_v39, %v1629_v48  ;;  %v1609_v61 = vsel %vm587_vm0, %v135_v40, 0.0  ;;  %v1611_v37 = vsel %vm587_vm0, %v199_v31, 0.0  ;;  %v394_v50 = vld [vmem:[%s5177_s0 + $0xbf8] sm:$0xff] }
 0x125   :  { %2180 = vst.msk [vmem:[%s5178_s2 + $0x1c0] sm:$0xff] %vm587_vm0, %v2116_v15  ;;  %v1607_v52 = vadd.f32 %v1606_v41, %v1605_v10  ;;  %v1587_v3 = vsel %vm587_vm0, %v517_v2, 0.0  ;;  %v1634_v62 = vsel %vm587_vm0, %v392_v28, 0.0  ;;  %v1610_v1 = vadd.f32 %v1609_v61, %v1608_v63  ;;  %v265_v2 = vld [vmem:[%s5177_s0 + $0x7f0] sm:$0xff]  ;;  %v583_v28 = vld [vmem:[%s5177_s0 + $0x11e0] sm:$0xff]  ;;  %v458_v15 = vld [vmem:[%s5177_s0 + $0xdf8] sm:$0xff] }
 0x126   :  { %v1586_v0 = vadd.f32 %v1585_v55, %v1584_v35  ;;  %v1589_v5 = vsel %vm587_vm0, %v581_v44, 0.0  ;;  %v1633_v53 = vadd.f32 %v1632_v34, %v1631_v17  ;;  %v1613_v33 = vsel %vm587_vm0, %v263_v57, 0.0  ;;  %v2048_v55 = vpop.permute.xlu1 %2047  ;;  %v329_v35 = vld [vmem:[%s5177_s0 + $0x9f0] sm:$0xff] }
 0x127   :  { %v2119_v59 = vmul.f32 %v2038_v51, %v1607_v52  ;;  %v1636_v14 = vsel %vm587_vm0, %v456_v8, 0.0  ;;  %v1612_v54 = vadd.f32 %v1611_v37, %v1610_v1  ;;  %v1615_v26 = vsel %vm587_vm0, %v327_v23, 0.0  ;;  %v522_v23 = vld [vmem:[%s5177_s0 + $0xff8] sm:$0xff]  ;;  %v393_v1 = vld [vmem:[%s5177_s0 + $0xbf0] sm:$0xff] }
 0x128   :  { %v1588_v13 = vadd.f32 %v1587_v3, %v1586_v0  ;;  %v1635_v38 = vadd.f32 %v1634_v62, %v1633_v53  ;;  %v1659_v58 = vsel %vm587_vm0, %v74_v22, 0.0  ;;  %v1660_v24 = vsel %vm587_vm0, %v138_v4, 0.0  ;;  %v586_v0 = vld [vmem:[%s5177_s0 + $0x11f8] sm:$0xff]  ;;  %v2043_v53 = vpop.permute.xlu0 %2042 }
 0x129   :  { %2183 = vst.msk [vmem:[%s5178_s2 + $0x1d8] sm:$0xff] %vm587_vm0, %v2119_v59  ;;  %v1638_v19 = vsel %vm587_vm0, %v520_v60, 0.0  ;;  %v1614_v7 = vadd.f32 %v1613_v33, %v1612_v54  ;;  %v1661_v6 = vadd.f32 %v1660_v24, %v1659_v58  ;;  %v1662_v21 = vsel %vm587_vm0, %v202_v20, 0.0  ;;  %v457_v20 = vld [vmem:[%s5177_s0 + $0xdf0] sm:$0xff] }
 0x12a   :  { %v1590_v25 = vadd.f32 %v1589_v5, %v1588_v13  ;;  %v1637_v30 = vadd.f32 %v1636_v14, %v1635_v38  ;;  %v1617_v36 = vsel %vm587_vm0, %v391_v9, 0.0  ;;  %v1664_v56 = vsel %vm587_vm0, %v266_v16, 0.0  ;;  %v521_v16 = vld [vmem:[%s5177_s0 + $0xff0] sm:$0xff]  ;;  %v2058_v58 = vpop.permute.xlu1 %2057 }
 0x12b   :  { %v1640_v32 = vsel %vm587_vm0, %v584_v43, 0.0  ;;  %v1616_v12 = vadd.f32 %v1615_v26, %v1614_v7  ;;  %v1619_v47 = vsel %vm587_vm0, %v455_v45, 0.0  ;;  %v1663_v39 = vadd.f32 %v1662_v21, %v1661_v6  ;;  %v585_v24 = vld [vmem:[%s5177_s0 + $0x11f0] sm:$0xff] }
 0x12c   :  { %v2118_v40 = vmul.f32 %v2033_v27, %v1590_v25  ;;  %v1639_v31 = vadd.f32 %v1638_v19, %v1637_v30  ;;  %v1666_v41 = vsel %vm587_vm0, %v330_v29, 0.0  ;;  %v1642_v42 = vsel %vm587_vm0, %v73_v11, 0.0  ;;  %v2053_v25 = vpop.permute.xlu0 %2052 }
 0x12d   :  { %v1618_v48 = vadd.f32 %v1617_v36, %v1616_v12  ;;  %v1665_v10 = vadd.f32 %v1664_v56, %v1663_v39  ;;  %v1643_v44 = vsel %vm587_vm0, %v137_v18, 0.0  ;;  %v1645_v34 = vsel %vm587_vm0, %v201_v46, 0.0 }
 0x12e   :  { %2182 = vst.msk [vmem:[%s5178_s2 + $0x1d0] sm:$0xff] %vm587_vm0, %v2118_v40  ;;  %v1641_v57 = vadd.f32 %v1640_v32, %v1639_v31  ;;  %v1621_v63 = vsel %vm587_vm0, %v519_v49, 0.0  ;;  %v1668_v51 = vsel %vm587_vm0, %v394_v50, 0.0  ;;  %v1644_v8 = vadd.f32 %v1643_v44, %v1642_v42 }
 0x12f   :  { %v1620_v17 = vadd.f32 %v1619_v47, %v1618_v48  ;;  %v1667_v61 = vadd.f32 %v1666_v41, %v1665_v10  ;;  %v1647_v37 = vsel %vm587_vm0, %v265_v2, 0.0  ;;  %v1623_v3 = vsel %vm587_vm0, %v583_v28, 0.0 }
 0x130   :  { %v2121_v52 = vmul.f32 %v2048_v55, %v1641_v57  ;;  %v1670_v62 = vsel %vm587_vm0, %v458_v15, 0.0  ;;  %v1646_v22 = vadd.f32 %v1645_v34, %v1644_v8  ;;  %v1649_v60 = vsel %vm587_vm0, %v329_v35, 0.0 }
 0x131   :  { %v1622_v4 = vadd.f32 %v1621_v63, %v1620_v17  ;;  %v1669_v5 = vadd.f32 %v1668_v51, %v1667_v61  ;;  %v1672_v33 = vsel %vm587_vm0, %v522_v23, 0.0  ;;  %v1651_v54 = vsel %vm587_vm0, %v393_v1, 0.0 }
 0x132   :  { %2185 = vst.msk [vmem:[%s5178_s2 + $0x1e8] sm:$0xff] %vm587_vm0, %v2121_v52  ;;  %v1648_v59 = vadd.f32 %v1647_v37, %v1646_v22  ;;  %v1674_v26 = vsel %vm587_vm0, %v586_v0, 0.0  ;;  %v1653_v45 = vsel %vm587_vm0, %v457_v20, 0.0  ;;  %v1655_v7 = vsel %vm587_vm0, %v521_v16, 0.0 }
 0x133   :  { %v1624_v14 = vadd.f32 %v1623_v3, %v1622_v4  ;;  %v1671_v9 = vadd.f32 %v1670_v62, %v1669_v5  ;;  %v1657_v21 = vsel %vm587_vm0, %v585_v24, 0.0 }
 0x134   :  { %v1650_v13 = vadd.f32 %v1649_v60, %v1648_v59 }
 0x135   :  { %v2120_v43 = vmul.f32 %v2043_v53, %v1624_v14  ;;  %v1673_v38 = vadd.f32 %v1672_v33, %v1671_v9 }
 0x136   :  { %v1652_v27 = vadd.f32 %v1651_v54, %v1650_v13 }
 0x137   :  { %2184 = vst.msk [vmem:[%s5178_s2 + $0x1e0] sm:$0xff] %vm587_vm0, %v2120_v43  ;;  %v1675_v19 = vadd.f32 %v1674_v26, %v1673_v38 }
 0x138   :  { %v1654_v29 = vadd.f32 %v1653_v45, %v1652_v27 }
 0x139   :  { %v2123_v6 = vmul.f32 %v2058_v58, %v1675_v19 }
 0x13a   :  { %v1656_v11 = vadd.f32 %v1655_v7, %v1654_v29 }
 0x13b   :  { %2187 = vst.msk [vmem:[%s5178_s2 + $0x1f8] sm:$0xff] %vm587_vm0, %v2123_v6 }
 0x13c   :  { %v1658_v30 = vadd.f32 %v1657_v21, %v1656_v11 }
 0x13e   :  { %v2122_v36 = vmul.f32 %v2053_v25, %v1658_v30 }
 0x140   :  { %2186 = vst.msk [vmem:[%s5178_s2 + $0x1f0] sm:$0xff] %vm587_vm0, %v2122_v36 }

// kernel: d_net_multi_forward.16
= control target key start
LH: loop header
LB: loop body
LE: loop exit
PB: predicated region body
PF: predicated region fallthrough
CT: control target
= control target key end

     0   :  { %vm232_vm0 = vcmask 519168   ;;  %s666_s1 = inlined_call_operand.vmem [shape: f32[512,64], index: 1, kind: input, shape index: {}]   ;;  %s667_s0 = inlined_call_operand.vmem [shape: f32[8,512], index: 0, kind: input, shape index: {}]   ;;  %s668_s2 = inlined_call_operand.vmem [shape: f32[1,64], index: 2, kind: input, shape index: {}]   ;;  %s669_s3 = inlined_call_operand.vmem [shape: f32[2,4,64], index: 3, kind: output, shape index: {}]  }
   0x1   :  { %v34_v0 = vld [vmem:[%s666_s1 + $0x80] sm:$0xff]  ;;  %v35_v1 = vld [vmem:[%s666_s1 + $0x88] sm:$0xff]  ;;  %v36_v11 = vld [vmem:[%s666_s1 + $0x90] sm:$0xff] }
   0x2   :  { %v18_v2 = vld [vmem:[%s666_s1] sm:$0xff]  ;;  %v359_v3 = vpack.c.bf16 %v35_v1, %v34_v0  ;;  %v19_v4 = vld [vmem:[%s666_s1 + $0x8] sm:$0xff]  ;;  %v37_v13 = vld [vmem:[%s666_s1 + $0x98] sm:$0xff] }
   0x3   :  { %v66_v5 = vld [vmem:[%s666_s1 + $0x180] sm:$0xff]  ;;  %v67_v6 = vld [vmem:[%s666_s1 + $0x188] sm:$0xff]  ;;  %v361_v7 = vpack.c.bf16 %v19_v4, %v18_v2  ;;  %v20_v14 = vld [vmem:[%s666_s1 + $0x10] sm:$0xff]  ;;  %v363_v16 = vpack.c.bf16 %v37_v13, %v36_v11 }
   0x4   :  { %v391_v8 = vpack.c.bf16 %v67_v6, %v66_v5  ;;  %v50_v9 = vld [vmem:[%s666_s1 + $0x100] sm:$0xff]  ;;  %v51_v10 = vld [vmem:[%s666_s1 + $0x108] sm:$0xff]  ;;  %360 = vmatprep.subr.bf16.mxu0 %v359_v3  ;;  %v21_v15 = vld [vmem:[%s666_s1 + $0x18] sm:$0xff] }
   0x5   :  { %v393_v12 = vpack.c.bf16 %v51_v10, %v50_v9  ;;  %362 = vmatpush3.bf16.msra.mxu0 %v361_v7  ;;  %v365_v17 = vpack.c.bf16 %v21_v15, %v20_v14  ;;  %v68_v18 = vld [vmem:[%s666_s1 + $0x190] sm:$0xff]  ;;  %v69_v19 = vld [vmem:[%s666_s1 + $0x198] sm:$0xff]  ;;  %v38_v23 = vld [vmem:[%s666_s1 + $0xa0] sm:$0xff] }
   0x6   :  { %392 = vmatprep.subr.bf16.mxu1 %v391_v8  ;;  %v52_v20 = vld [vmem:[%s666_s1 + $0x110] sm:$0xff]  ;;  %v395_v21 = vpack.c.bf16 %v69_v19, %v68_v18  ;;  %v53_v22 = vld [vmem:[%s666_s1 + $0x118] sm:$0xff]  ;;  %v39_v24 = vld [vmem:[%s666_s1 + $0xa8] sm:$0xff]  ;;  %364 = vmatprep.subr.bf16.mxu0 %v363_v16 }
   0x7   :  { %394 = vmatpush3.bf16.msra.mxu1 %v393_v12  ;;  %v397_v25 = vpack.c.bf16 %v53_v22, %v52_v20  ;;  %v367_v26 = vpack.c.bf16 %v39_v24, %v38_v23  ;;  %v22_v27 = vld [vmem:[%s666_s1 + $0x20] sm:$0xff]  ;;  %v23_v28 = vld [vmem:[%s666_s1 + $0x28] sm:$0xff]  ;;  %v40_v35 = vld [vmem:[%s666_s1 + $0xb0] sm:$0xff] }
   0x8   :  { %v70_v29 = vld [vmem:[%s666_s1 + $0x1a0] sm:$0xff]  ;;  %396 = vmatprep.subr.bf16.mxu1 %v395_v21  ;;  %v71_v30 = vld [vmem:[%s666_s1 + $0x1a8] sm:$0xff]  ;;  %v369_v33 = vpack.c.bf16 %v23_v28, %v22_v27  ;;  %v41_v36 = vld [vmem:[%s666_s1 + $0xb8] sm:$0xff] }
   0x9   :  { %v54_v31 = vld [vmem:[%s666_s1 + $0x120] sm:$0xff]  ;;  %v55_v32 = vld [vmem:[%s666_s1 + $0x128] sm:$0xff]  ;;  %366 = vmatpush3.bf16.msra.mxu0 %v365_v17  ;;  %v399_v34 = vpack.c.bf16 %v71_v30, %v70_v29  ;;  %v24_v37 = vld [vmem:[%s666_s1 + $0x30] sm:$0xff]  ;;  %v371_v39 = vpack.c.bf16 %v41_v36, %v40_v35 }
   0xa   :  { %368 = vmatprep.subr.bf16.mxu0 %v367_v26  ;;  %v401_v38 = vpack.c.bf16 %v55_v32, %v54_v31  ;;  %v25_v40 = vld [vmem:[%s666_s1 + $0x38] sm:$0xff]  ;;  %v72_v41 = vld [vmem:[%s666_s1 + $0x1b0] sm:$0xff]  ;;  %v42_v46 = vld [vmem:[%s666_s1 + $0xc0] sm:$0xff] }
   0xb   :  { %398 = vmatpush3.bf16.msra.mxu1 %v397_v25  ;;  %v73_v42 = vld [vmem:[%s666_s1 + $0x1b8] sm:$0xff]  ;;  %v56_v44 = vld [vmem:[%s666_s1 + $0x130] sm:$0xff]  ;;  %v43_v47 = vld [vmem:[%s666_s1 + $0xc8] sm:$0xff]  ;;  %v373_v48 = vpack.c.bf16 %v25_v40, %v24_v37 }
   0xc   :  { %400 = vmatprep.subr.bf16.mxu1 %v399_v34  ;;  %v403_v43 = vpack.c.bf16 %v73_v42, %v72_v41  ;;  %v57_v45 = vld [vmem:[%s666_s1 + $0x138] sm:$0xff]  ;;  %v74_v49 = vld [vmem:[%s666_s1 + $0x1c0] sm:$0xff]  ;;  %v75_v50 = vld [vmem:[%s666_s1 + $0x1c8] sm:$0xff]  ;;  %v375_v52 = vpack.c.bf16 %v43_v47, %v42_v46 }
   0xd   :  { %370 = vmatpush3.bf16.msra.mxu0 %v369_v33  ;;  %v405_v51 = vpack.c.bf16 %v57_v45, %v56_v44  ;;  %v26_v53 = vld [vmem:[%s666_s1 + $0x40] sm:$0xff]  ;;  %v27_v54 = vld [vmem:[%s666_s1 + $0x48] sm:$0xff]  ;;  %v407_v56 = vpack.c.bf16 %v75_v50, %v74_v49  ;;  %v44_v58 = vld [vmem:[%s666_s1 + $0xd0] sm:$0xff] }
   0xe   :  { %372 = vmatprep.subr.bf16.mxu0 %v371_v39  ;;  %v58_v55 = vld [vmem:[%s666_s1 + $0x140] sm:$0xff]  ;;  %v59_v57 = vld [vmem:[%s666_s1 + $0x148] sm:$0xff]  ;;  %v45_v59 = vld [vmem:[%s666_s1 + $0xd8] sm:$0xff]  ;;  %v377_v62 = vpack.c.bf16 %v27_v54, %v26_v53 }
   0xf   :  { %402 = vmatpush3.bf16.msra.mxu1 %v401_v38  ;;  %v76_v60 = vld [vmem:[%s666_s1 + $0x1d0] sm:$0xff]  ;;  %v77_v61 = vld [vmem:[%s666_s1 + $0x1d8] sm:$0xff]  ;;  %v409_v63 = vpack.c.bf16 %v59_v57, %v58_v55  ;;  %v379_v0 = vpack.c.bf16 %v45_v59, %v44_v58  ;;  %v46_v6 = vld [vmem:[%s666_s1 + $0xe0] sm:$0xff] }
  0x10   :  { %404 = vmatprep.subr.bf16.mxu1 %v403_v43  ;;  %v28_v1 = vld [vmem:[%s666_s1 + $0x50] sm:$0xff]  ;;  %v29_v2 = vld [vmem:[%s666_s1 + $0x58] sm:$0xff]  ;;  %v411_v4 = vpack.c.bf16 %v77_v61, %v76_v60  ;;  %v47_v7 = vld [vmem:[%s666_s1 + $0xe8] sm:$0xff] }
  0x11   :  { %374 = vmatpush3.bf16.msra.mxu0 %v373_v48  ;;  %v60_v3 = vld [vmem:[%s666_s1 + $0x150] sm:$0xff]  ;;  %v61_v5 = vld [vmem:[%s666_s1 + $0x158] sm:$0xff]  ;;  %v78_v8 = vld [vmem:[%s666_s1 + $0x1e0] sm:$0xff]  ;;  %v381_v10 = vpack.c.bf16 %v29_v2, %v28_v1  ;;  %v383_v14 = vpack.c.bf16 %v47_v7, %v46_v6 }
  0x12   :  { %376 = vmatprep.subr.bf16.mxu0 %v375_v52  ;;  %v79_v9 = vld [vmem:[%s666_s1 + $0x1e8] sm:$0xff]  ;;  %v30_v11 = vld [vmem:[%s666_s1 + $0x60] sm:$0xff]  ;;  %v413_v13 = vpack.c.bf16 %v61_v5, %v60_v3  ;;  %v48_v19 = vld [vmem:[%s666_s1 + $0xf0] sm:$0xff] }
  0x13   :  { %406 = vmatpush3.bf16.msra.mxu1 %v405_v51  ;;  %v31_v12 = vld [vmem:[%s666_s1 + $0x68] sm:$0xff]  ;;  %v62_v15 = vld [vmem:[%s666_s1 + $0x160] sm:$0xff]  ;;  %v415_v18 = vpack.c.bf16 %v79_v9, %v78_v8  ;;  %v49_v20 = vld [vmem:[%s666_s1 + $0xf8] sm:$0xff] }
  0x14   :  { %408 = vmatprep.subr.bf16.mxu1 %v407_v56  ;;  %v63_v16 = vld [vmem:[%s666_s1 + $0x168] sm:$0xff]  ;;  %v17_v21 = vld [vmem:[%s667_s0 + $0x18] sm:$0xff]  ;;  %v80_v22 = vld [vmem:[%s666_s1 + $0x1f0] sm:$0xff]  ;;  %v385_v24 = vpack.c.bf16 %v31_v12, %v30_v11  ;;  %v387_v26 = vpack.c.bf16 %v49_v20, %v48_v19 }
  0x15   :  { %378 = vmatpush3.bf16.msra.mxu0 %v377_v62  ;;  %v15_v17 = vld [vmem:[%s667_s0 + $0x8] sm:$0xff]  ;;  %v81_v23 = vld [vmem:[%s666_s1 + $0x1f8] sm:$0xff]  ;;  %223 = vmatprep.mubr.f32.mxu1 %v17_v21  ;;  %v417_v25 = vpack.c.bf16 %v63_v16, %v62_v15  ;;  %v32_v27 = vld [vmem:[%s666_s1 + $0x70] sm:$0xff] }
  0x16   :  { %380 = vmatprep.subr.bf16.mxu0 %v379_v0  ;;  %153 = vmatprep.mubr.f32.mxu0 %v15_v17  ;;  %v33_v28 = vld [vmem:[%s666_s1 + $0x78] sm:$0xff]  ;;  %v419_v29 = vpack.c.bf16 %v81_v23, %v80_v22  ;;  %v64_v30 = vld [vmem:[%s666_s1 + $0x170] sm:$0xff]  ;;  %v14_v34 = vld [vmem:[%s667_s0] sm:$0xff] }
  0x17   :  { %410 = vmatpush3.bf16.msra.mxu1 %v409_v63  ;;  %v65_v31 = vld [vmem:[%s666_s1 + $0x178] sm:$0xff]  ;;  %v389_v32 = vpack.c.bf16 %v33_v28, %v32_v27  ;;  %v16_v35 = vld [vmem:[%s667_s0 + $0x10] sm:$0xff]  ;;  %v288_v37 = vld [vmem:[%s668_s2] ss:$0 sm:$0xff] }
  0x18   :  { %412 = vmatprep.subr.bf16.mxu1 %v411_v4  ;;  %v421_v33 = vpack.c.bf16 %v65_v31, %v64_v30 }
  0x19   :  { %382 = vmatpush3.bf16.msra.mxu0 %v381_v10 }
  0x1a   :  { %384 = vmatprep.subr.bf16.mxu0 %v383_v14 }
  0x1b   :  { %414 = vmatpush3.bf16.msra.mxu1 %v413_v13 }
  0x1c   :  { %416 = vmatprep.subr.bf16.mxu1 %v415_v18 }
  0x1d   :  { %386 = vmatpush3.bf16.msra.mxu0 %v385_v24 }
  0x1e   :  { %388 = vmatprep.subr.bf16.mxu0 %v387_v26 }
  0x1f   :  { %418 = vmatpush3.bf16.msra.mxu1 %v417_v25 }
  0x20   :  { %420 = vmatprep.subr.bf16.mxu1 %v419_v29 }
  0x21   :  { %390 = vmatpush3.bf16.msra.mxu0 %v389_v32 }
  0x23   :  { %422 = vmatpush3.bf16.msra.mxu1 %v421_v33 }
  0x24   :  { %154 = vmatmul.mubr.f32.vlgmr.msra.gmra.mrb[0].mxu0 %v14_v34 }
  0x26   :  { %224 = vmatmul.mubr.f32.vlgmr.msra.gmra.mrb[0].mxu1 %v16_v35 }
  0xf7   :  { %v321_v36 = vpop.f32.mrb[0].mxu0 }
  0xf8   :  { %v322_v38 = vpop.f32.mrb[1].mxu0 }
  0xf9   :  { %v356_v39 = vpop.f32.mrb[0].mxu1  ;;  %v323_v40 = vadd.f32 %v322_v38, %v321_v36 }
  0xfa   :  { %v357_v41 = vpop.f32.mrb[1].mxu1 }
  0xfb   :  { %v358_v42 = vadd.f32 %v357_v41, %v356_v39  ;;  %v156_v43 = vadd.f32 %v323_v40, %v288_v37 }
  0xfd   :  { %v226_v44 = vadd.f32 %v358_v42, %v156_v43 }
  0xff   :  { %v230_v45 = vcombine.high %v226_v44, %v226_v44  ;;  %v233_v46 = vsel %vm232_vm0, %v226_v44, 0.0 }
 0x100   :  { %v234_v47 = vrot.slane %v233_v46, 4 }
 0x101   :  { %v240_v48 = vsel %vm232_vm0, %v230_v45, 0.0 }
 0x102   :  { %v235_v49 = vadd.f32 %v234_v47, %v233_v46  ;;  %v241_v50 = vrot.slane %v240_v48, 4 }
 0x104   :  { %v236_v51 = vrot.slane %v235_v49, 2  ;;  %v242_v52 = vadd.f32 %v241_v50, %v240_v48 }
 0x106   :  { %v237_v53 = vadd.f32 %v236_v51, %v235_v49  ;;  %v243_v54 = vrot.slane %v242_v52, 2 }
 0x108   :  { %v238_v55 = vrot.slane %v237_v53, 1  ;;  %v244_v56 = vadd.f32 %v243_v54, %v242_v52 }
 0x10a   :  { %v239_v57 = vadd.f32 %v238_v55, %v237_v53  ;;  %v245_v58 = vrot.slane %v244_v56, 1 }
 0x10c   :  { %v246_v59 = vadd.f32 %v245_v58, %v244_v56  ;;  %v248_v60 = vmul.f32 0.25, %v239_v57 }
 0x10e   :  { %v249_v61 = vmul.f32 0.25, %v246_v59  ;;  %v250_v62 = vsub.f32 %v226_v44, %v248_v60 }
 0x110   :  { %v251_v63 = vsub.f32 %v230_v45, %v249_v61  ;;  %v252_v0 = vmul.f32 %v250_v62, %v250_v62 }
 0x112   :  { %v253_v1 = vmul.f32 %v251_v63, %v251_v63  ;;  %v254_v2 = vsel %vm232_vm0, %v252_v0, 0.0 }
 0x113   :  { %v255_v3 = vrot.slane %v254_v2, 4 }
 0x114   :  { %v261_v4 = vsel %vm232_vm0, %v253_v1, 0.0 }
 0x115   :  { %v256_v5 = vadd.f32 %v255_v3, %v254_v2  ;;  %v262_v6 = vrot.slane %v261_v4, 4 }
 0x117   :  { %v257_v7 = vrot.slane %v256_v5, 2  ;;  %v263_v8 = vadd.f32 %v262_v6, %v261_v4 }
 0x119   :  { %v258_v9 = vadd.f32 %v257_v7, %v256_v5  ;;  %v264_v10 = vrot.slane %v263_v8, 2 }
 0x11b   :  { %v259_v11 = vrot.slane %v258_v9, 1  ;;  %v265_v12 = vadd.f32 %v264_v10, %v263_v8 }
 0x11d   :  { %v260_v13 = vadd.f32 %v259_v11, %v258_v9  ;;  %v266_v14 = vrot.slane %v265_v12, 1 }
 0x11f   :  { %v267_v15 = vadd.f32 %v266_v14, %v265_v12  ;;  %v268_v16 = vmul.f32 0.25, %v260_v13 }
 0x121   :  { %v269_v17 = vmul.f32 0.25, %v267_v15  ;;  %v270_v18 = vadd.f32 1e-05, %v268_v16 }
 0x123   :  { %v271_v19 = vadd.f32 1e-05, %v269_v17  ;;  %423 = vrsqrt.f32 %v270_v18 }
 0x125   :  { %425 = vrsqrt.f32 %v271_v19 }
 0x12d   :  { %v424_v20 = vpop.eup %423 }
 0x12e   :  { %v274_v21 = vmul.f32 %v424_v20, %v250_v62 }
 0x12f   :  { %v426_v22 = vpop.eup %425 }
 0x130   :  { %v275_v23 = vmul.f32 %v426_v22, %v251_v63  ;;  %vm276_vm1 = vcmp.gt.f32.partialorder %v274_v21, 0.0  ;;  %v278_v24 = vmul.f32 0.2, %v274_v21 }
 0x132   :  { %vm277_vm2 = vcmp.gt.f32.partialorder %v275_v23, 0.0  ;;  %v279_v25 = vmul.f32 0.2, %v275_v23  ;;  %v280_v26 = vsel %vm276_vm1, %v274_v21, %v278_v24 }
 0x133   :  { %282 = vst.msk [vmem:[%s669_s3] sm:$0xf] %vm232_vm0, %v280_v26 }
 0x134   :  { %v281_v27 = vsel %vm277_vm2, %v275_v23, %v279_v25 }
 0x135   :  { %283 = vst.msk [vmem:[%s669_s3 + $0x4] sm:$0xf] %vm232_vm0, %v281_v27 }

// kernel: d_net_multi_forward.17
= control target key start
LH: loop header
LB: loop body
LE: loop exit
PB: predicated region body
PF: predicated region fallthrough
CT: control target
= control target key end

     0   :  { %v782_v47 = vmov 1983009808   ;;  %v159_v49 = vlaneseq  ;;  %vm502_vm0 = vcmask 0   ;;  %s1217_s1 = inlined_call_operand.vmem [shape: f32[1024,1], index: 1, kind: input, shape index: {}]   ;;  %s1218_s0 = inlined_call_operand.vmem [shape: f32[2,1024], index: 0, kind: input, shape index: {}]   ;;  %s1219_s2 = inlined_call_operand.<no memory space> [shape: f32[1,1], index: 2, kind: input, shape index: {}]   ;;  %s1220_s3 = inlined_call_operand.vmem [shape: f32[2,1,1], index: 3, kind: output, shape index: {}]  }
   0x1   :  { %v34_v0 = vld [vmem:[%s1217_s1 + $0x80] sm:$0xff]  ;;  %v35_v1 = vld [vmem:[%s1217_s1 + $0x88] sm:$0xff]  ;;  %v36_v11 = vld [vmem:[%s1217_s1 + $0x90] sm:$0xff]  ;;  %v157_v48 = vunpack.c.l.s4 %v782_v47 }
   0x2   :  { %v18_v2 = vld [vmem:[%s1217_s1] sm:$0xff]  ;;  %v650_v3 = vpack.c.bf16 %v35_v1, %v34_v0  ;;  %v19_v4 = vld [vmem:[%s1217_s1 + $0x8] sm:$0xff]  ;;  %v37_v13 = vld [vmem:[%s1217_s1 + $0x98] sm:$0xff]  ;;  %v930_v0 = vshrl.u32 %v159_v49, 7 }
   0x3   :  { %v66_v5 = vld [vmem:[%s1217_s1 + $0x180] sm:$0xff]  ;;  %v67_v6 = vld [vmem:[%s1217_s1 + $0x188] sm:$0xff]  ;;  %v652_v7 = vpack.c.bf16 %v19_v4, %v18_v2  ;;  %v20_v14 = vld [vmem:[%s1217_s1 + $0x10] sm:$0xff]  ;;  %v654_v16 = vpack.c.bf16 %v37_v13, %v36_v11  ;;  %v158_v63 = vunpack.c.0.s8 %v157_v48 }
   0x4   :  { %v682_v8 = vpack.c.bf16 %v67_v6, %v66_v5  ;;  %v50_v9 = vld [vmem:[%s1217_s1 + $0x100] sm:$0xff]  ;;  %v51_v10 = vld [vmem:[%s1217_s1 + $0x108] sm:$0xff]  ;;  %651 = vmatprep.subr.bf16.mxu0 %v650_v3  ;;  %v21_v15 = vld [vmem:[%s1217_s1 + $0x18] sm:$0xff] }
   0x5   :  { %v684_v12 = vpack.c.bf16 %v51_v10, %v50_v9  ;;  %653 = vmatpush3.bf16.msra.mxu0 %v652_v7  ;;  %v656_v17 = vpack.c.bf16 %v21_v15, %v20_v14  ;;  %v68_v18 = vld [vmem:[%s1217_s1 + $0x190] sm:$0xff]  ;;  %v69_v19 = vld [vmem:[%s1217_s1 + $0x198] sm:$0xff]  ;;  %v38_v23 = vld [vmem:[%s1217_s1 + $0xa0] sm:$0xff]  ;;  %v161_v13 = vsub.s32 %v158_v63, %v930_v0 }
   0x6   :  { %683 = vmatprep.subr.bf16.mxu1 %v682_v8  ;;  %v52_v20 = vld [vmem:[%s1217_s1 + $0x110] sm:$0xff]  ;;  %v686_v21 = vpack.c.bf16 %v69_v19, %v68_v18  ;;  %v53_v22 = vld [vmem:[%s1217_s1 + $0x118] sm:$0xff]  ;;  %v39_v24 = vld [vmem:[%s1217_s1 + $0xa8] sm:$0xff]  ;;  %655 = vmatprep.subr.bf16.mxu0 %v654_v16 }
   0x7   :  { %685 = vmatpush3.bf16.msra.mxu1 %v684_v12  ;;  %v688_v25 = vpack.c.bf16 %v53_v22, %v52_v20  ;;  %v658_v26 = vpack.c.bf16 %v39_v24, %v38_v23  ;;  %v22_v27 = vld [vmem:[%s1217_s1 + $0x20] sm:$0xff]  ;;  %v23_v28 = vld [vmem:[%s1217_s1 + $0x28] sm:$0xff]  ;;  %v40_v35 = vld [vmem:[%s1217_s1 + $0xb0] sm:$0xff] }
   0x8   :  { %v70_v29 = vld [vmem:[%s1217_s1 + $0x1a0] sm:$0xff]  ;;  %687 = vmatprep.subr.bf16.mxu1 %v686_v21  ;;  %v71_v30 = vld [vmem:[%s1217_s1 + $0x1a8] sm:$0xff]  ;;  %v660_v33 = vpack.c.bf16 %v23_v28, %v22_v27  ;;  %v41_v36 = vld [vmem:[%s1217_s1 + $0xb8] sm:$0xff] }
   0x9   :  { %v54_v31 = vld [vmem:[%s1217_s1 + $0x120] sm:$0xff]  ;;  %v55_v32 = vld [vmem:[%s1217_s1 + $0x128] sm:$0xff]  ;;  %657 = vmatpush3.bf16.msra.mxu0 %v656_v17  ;;  %v690_v34 = vpack.c.bf16 %v71_v30, %v70_v29  ;;  %v24_v37 = vld [vmem:[%s1217_s1 + $0x30] sm:$0xff]  ;;  %v662_v39 = vpack.c.bf16 %v41_v36, %v40_v35 }
   0xa   :  { %659 = vmatprep.subr.bf16.mxu0 %v658_v26  ;;  %v692_v38 = vpack.c.bf16 %v55_v32, %v54_v31  ;;  %v25_v40 = vld [vmem:[%s1217_s1 + $0x38] sm:$0xff]  ;;  %v72_v41 = vld [vmem:[%s1217_s1 + $0x1b0] sm:$0xff]  ;;  %v42_v46 = vld [vmem:[%s1217_s1 + $0xc0] sm:$0xff] }
   0xb   :  { %689 = vmatpush3.bf16.msra.mxu1 %v688_v25  ;;  %v73_v42 = vld [vmem:[%s1217_s1 + $0x1b8] sm:$0xff]  ;;  %v56_v44 = vld [vmem:[%s1217_s1 + $0x130] sm:$0xff]  ;;  %v43_v50 = vld [vmem:[%s1217_s1 + $0xc8] sm:$0xff]  ;;  %v664_v51 = vpack.c.bf16 %v25_v40, %v24_v37 }
   0xc   :  { %691 = vmatprep.subr.bf16.mxu1 %v690_v34  ;;  %v694_v43 = vpack.c.bf16 %v73_v42, %v72_v41  ;;  %v57_v45 = vld [vmem:[%s1217_s1 + $0x138] sm:$0xff]  ;;  %v74_v52 = vld [vmem:[%s1217_s1 + $0x1c0] sm:$0xff]  ;;  %v75_v53 = vld [vmem:[%s1217_s1 + $0x1c8] sm:$0xff]  ;;  %v666_v55 = vpack.c.bf16 %v43_v50, %v42_v46 }
   0xd   :  { %661 = vmatpush3.bf16.msra.mxu0 %v660_v33  ;;  %v696_v54 = vpack.c.bf16 %v57_v45, %v56_v44  ;;  %v26_v56 = vld [vmem:[%s1217_s1 + $0x40] sm:$0xff]  ;;  %v27_v57 = vld [vmem:[%s1217_s1 + $0x48] sm:$0xff]  ;;  %v698_v59 = vpack.c.bf16 %v75_v53, %v74_v52  ;;  %v44_v61 = vld [vmem:[%s1217_s1 + $0xd0] sm:$0xff] }
   0xe   :  { %663 = vmatprep.subr.bf16.mxu0 %v662_v39  ;;  %v58_v58 = vld [vmem:[%s1217_s1 + $0x140] sm:$0xff]  ;;  %v59_v60 = vld [vmem:[%s1217_s1 + $0x148] sm:$0xff]  ;;  %v45_v62 = vld [vmem:[%s1217_s1 + $0xd8] sm:$0xff]  ;;  %v668_v3 = vpack.c.bf16 %v27_v57, %v26_v56 }
   0xf   :  { %693 = vmatpush3.bf16.msra.mxu1 %v692_v38  ;;  %v76_v1 = vld [vmem:[%s1217_s1 + $0x1d0] sm:$0xff]  ;;  %v77_v2 = vld [vmem:[%s1217_s1 + $0x1d8] sm:$0xff]  ;;  %v700_v4 = vpack.c.bf16 %v59_v60, %v58_v58  ;;  %v670_v5 = vpack.c.bf16 %v45_v62, %v44_v61  ;;  %v46_v11 = vld [vmem:[%s1217_s1 + $0xe0] sm:$0xff] }
  0x10   :  { %695 = vmatprep.subr.bf16.mxu1 %v694_v43  ;;  %v28_v6 = vld [vmem:[%s1217_s1 + $0x50] sm:$0xff]  ;;  %v29_v7 = vld [vmem:[%s1217_s1 + $0x58] sm:$0xff]  ;;  %v702_v9 = vpack.c.bf16 %v77_v2, %v76_v1  ;;  %v47_v12 = vld [vmem:[%s1217_s1 + $0xe8] sm:$0xff] }
  0x11   :  { %665 = vmatpush3.bf16.msra.mxu0 %v664_v51  ;;  %v60_v8 = vld [vmem:[%s1217_s1 + $0x150] sm:$0xff]  ;;  %v61_v10 = vld [vmem:[%s1217_s1 + $0x158] sm:$0xff]  ;;  %v78_v14 = vld [vmem:[%s1217_s1 + $0x1e0] sm:$0xff]  ;;  %v672_v16 = vpack.c.bf16 %v29_v7, %v28_v6  ;;  %v674_v19 = vpack.c.bf16 %v47_v12, %v46_v11 }
  0x12   :  { %667 = vmatprep.subr.bf16.mxu0 %v666_v55  ;;  %v79_v15 = vld [vmem:[%s1217_s1 + $0x1e8] sm:$0xff]  ;;  %v30_v17 = vld [vmem:[%s1217_s1 + $0x60] sm:$0xff]  ;;  %v704_v18 = vpack.c.bf16 %v61_v10, %v60_v8  ;;  %v48_v25 = vld [vmem:[%s1217_s1 + $0xf0] sm:$0xff] }
  0x13   :  { %697 = vmatpush3.bf16.msra.mxu1 %v696_v54  ;;  %v31_v20 = vld [vmem:[%s1217_s1 + $0x68] sm:$0xff]  ;;  %v62_v21 = vld [vmem:[%s1217_s1 + $0x160] sm:$0xff]  ;;  %v706_v23 = vpack.c.bf16 %v79_v15, %v78_v14  ;;  %v49_v26 = vld [vmem:[%s1217_s1 + $0xf8] sm:$0xff] }
  0x14   :  { %699 = vmatprep.subr.bf16.mxu1 %v698_v59  ;;  %v16_v22 = vld [vmem:[%s1218_s0] sm:$0xff]  ;;  %v63_v24 = vld [vmem:[%s1217_s1 + $0x168] sm:$0xff]  ;;  %v80_v29 = vld [vmem:[%s1217_s1 + $0x1f0] sm:$0xff]  ;;  %v676_v31 = vpack.c.bf16 %v31_v20, %v30_v17  ;;  %v678_v36 = vpack.c.bf16 %v49_v26, %v48_v25 }
  0x15   :  { %669 = vmatpush3.bf16.msra.mxu0 %v668_v3  ;;  %v162_v27 = vrot.slane %v16_v22, %v161_v13  ;;  %v155_v28 = vcombine.high %v16_v22, %v16_v22  ;;  %v81_v30 = vld [vmem:[%s1217_s1 + $0x1f8] sm:$0xff]  ;;  %v17_v32 = vld [vmem:[%s1218_s0 + $0x8] sm:$0xff]  ;;  %v708_v35 = vpack.c.bf16 %v63_v24, %v62_v21  ;;  %v32_v37 = vld [vmem:[%s1217_s1 + $0x70] sm:$0xff] }
  0x16   :  { %671 = vmatprep.subr.bf16.mxu0 %v670_v5  ;;  %v33_v38 = vld [vmem:[%s1217_s1 + $0x78] sm:$0xff]  ;;  %v64_v39 = vld [vmem:[%s1217_s1 + $0x170] sm:$0xff]  ;;  %v710_v40 = vpack.c.bf16 %v81_v30, %v80_v29  ;;  %v98_v42 = vld [vmem:[%s1217_s1 + $0x280] sm:$0xff]  ;;  %v172_v45 = vcombine.high %v17_v32, %v17_v32  ;;  %v1035_v58 = vrot.slane %v17_v32, %v161_v13 }
  0x17   :  { %701 = vmatpush3.bf16.msra.mxu1 %v700_v4  ;;  %v170_v33 = vcombine.high %v162_v27, %v162_v27  ;;  %v169_v34 = vrot.slane %v155_v28, %v161_v13  ;;  %v65_v41 = vld [vmem:[%s1217_s1 + $0x178] sm:$0xff]  ;;  %v99_v43 = vld [vmem:[%s1217_s1 + $0x288] sm:$0xff]  ;;  %v130_v46 = vld [vmem:[%s1217_s1 + $0x380] sm:$0xff]  ;;  %v680_v48 = vpack.c.bf16 %v33_v38, %v32_v37 }
  0x18   :  { %703 = vmatprep.subr.bf16.mxu1 %v702_v9  ;;  %v131_v47 = vld [vmem:[%s1217_s1 + $0x388] sm:$0xff]  ;;  %v712_v49 = vpack.c.bf16 %v65_v41, %v64_v39  ;;  %v714_v50 = vpack.c.bf16 %v99_v43, %v98_v42  ;;  %v82_v51 = vld [vmem:[%s1217_s1 + $0x200] sm:$0xff]  ;;  %v100_v56 = vld [vmem:[%s1217_s1 + $0x290] sm:$0xff]  ;;  %v1043_v61 = vrot.slane %v172_v45, %v161_v13  ;;  %v187_v9 = vcombine.high %v1035_v58, %v1035_v58 }
  0x19   :  { %673 = vmatpush3.bf16.msra.mxu0 %v672_v16  ;;  %261 = vmatprep.mubr.f32.mxu0 %v170_v33  ;;  %v171_v44 = vcombine.high %v169_v34, %v169_v34  ;;  %v83_v52 = vld [vmem:[%s1217_s1 + $0x208] sm:$0xff]  ;;  %v114_v53 = vld [vmem:[%s1217_s1 + $0x300] sm:$0xff]  ;;  %v746_v54 = vpack.c.bf16 %v131_v47, %v130_v46  ;;  %v101_v57 = vld [vmem:[%s1217_s1 + $0x298] sm:$0xff] }
  0x1a   :  { %675 = vmatprep.subr.bf16.mxu0 %v674_v19  ;;  %v115_v55 = vld [vmem:[%s1217_s1 + $0x308] sm:$0xff]  ;;  %v132_v59 = vld [vmem:[%s1217_s1 + $0x390] sm:$0xff]  ;;  %v133_v60 = vld [vmem:[%s1217_s1 + $0x398] sm:$0xff]  ;;  %v716_v62 = vpack.c.bf16 %v83_v52, %v82_v51  ;;  %v718_v1 = vpack.c.bf16 %v101_v57, %v100_v56  ;;  %v188_v12 = vcombine.high %v1043_v61, %v1043_v61 }
  0x1b   :  { %705 = vmatpush3.bf16.msra.mxu1 %v704_v18  ;;  %331 = vmatprep.mubr.f32.mxu1 %v171_v44  ;;  %v748_v63 = vpack.c.bf16 %v115_v55, %v114_v53  ;;  %v84_v2 = vld [vmem:[%s1217_s1 + $0x210] sm:$0xff]  ;;  %v85_v3 = vld [vmem:[%s1217_s1 + $0x218] sm:$0xff]  ;;  %v750_v5 = vpack.c.bf16 %v133_v60, %v132_v59  ;;  %v102_v7 = vld [vmem:[%s1217_s1 + $0x2a0] sm:$0xff] }
  0x1c   :  { %707 = vmatprep.subr.bf16.mxu1 %v706_v23  ;;  %v116_v4 = vld [vmem:[%s1217_s1 + $0x310] sm:$0xff]  ;;  %v117_v6 = vld [vmem:[%s1217_s1 + $0x318] sm:$0xff]  ;;  %v103_v8 = vld [vmem:[%s1217_s1 + $0x2a8] sm:$0xff]  ;;  %v720_v13 = vpack.c.bf16 %v85_v3, %v84_v2 }
  0x1d   :  { %677 = vmatpush3.bf16.msra.mxu0 %v676_v31  ;;  %v134_v10 = vld [vmem:[%s1217_s1 + $0x3a0] sm:$0xff]  ;;  %v135_v11 = vld [vmem:[%s1217_s1 + $0x3a8] sm:$0xff]  ;;  %v752_v14 = vpack.c.bf16 %v117_v6, %v116_v4  ;;  %v722_v15 = vpack.c.bf16 %v103_v8, %v102_v7  ;;  %v104_v21 = vld [vmem:[%s1217_s1 + $0x2b0] sm:$0xff] }
  0x1e   :  { %679 = vmatprep.subr.bf16.mxu0 %v678_v36  ;;  %v86_v16 = vld [vmem:[%s1217_s1 + $0x220] sm:$0xff]  ;;  %v87_v17 = vld [vmem:[%s1217_s1 + $0x228] sm:$0xff]  ;;  %v754_v19 = vpack.c.bf16 %v135_v11, %v134_v10  ;;  %v105_v22 = vld [vmem:[%s1217_s1 + $0x2b8] sm:$0xff] }
  0x1f   :  { %709 = vmatpush3.bf16.msra.mxu1 %v708_v35  ;;  %v118_v18 = vld [vmem:[%s1217_s1 + $0x320] sm:$0xff]  ;;  %v119_v20 = vld [vmem:[%s1217_s1 + $0x328] sm:$0xff]  ;;  %v136_v23 = vld [vmem:[%s1217_s1 + $0x3b0] sm:$0xff]  ;;  %v724_v25 = vpack.c.bf16 %v87_v17, %v86_v16 }
  0x20   :  { %711 = vmatprep.subr.bf16.mxu1 %v710_v40  ;;  %v137_v24 = vld [vmem:[%s1217_s1 + $0x3b8] sm:$0xff]  ;;  %v756_v26 = vpack.c.bf16 %v119_v20, %v118_v18  ;;  %v88_v28 = vld [vmem:[%s1217_s1 + $0x230] sm:$0xff]  ;;  %v106_v33 = vld [vmem:[%s1217_s1 + $0x2c0] sm:$0xff] }
  0x21   :  { %681 = vmatpush3.bf16.msra.mxu0 %v680_v48  ;;  %v89_v29 = vld [vmem:[%s1217_s1 + $0x238] sm:$0xff]  ;;  %v120_v30 = vld [vmem:[%s1217_s1 + $0x330] sm:$0xff]  ;;  %v758_v31 = vpack.c.bf16 %v137_v24, %v136_v23  ;;  %v138_v35 = vld [vmem:[%s1217_s1 + $0x3c0] sm:$0xff] }
  0x22   :  { %715 = vmatprep.subr.bf16.mxu0 %v714_v50  ;;  %v121_v32 = vld [vmem:[%s1217_s1 + $0x338] sm:$0xff]  ;;  %v139_v36 = vld [vmem:[%s1217_s1 + $0x3c8] sm:$0xff]  ;;  %v728_v37 = vpack.c.bf16 %v89_v29, %v88_v28  ;;  %v90_v40 = vld [vmem:[%s1217_s1 + $0x240] sm:$0xff] }
  0x23   :  { %713 = vmatpush3.bf16.msra.mxu1 %v712_v49  ;;  %v760_v38 = vpack.c.bf16 %v121_v32, %v120_v30  ;;  %v91_v41 = vld [vmem:[%s1217_s1 + $0x248] sm:$0xff]  ;;  %v122_v42 = vld [vmem:[%s1217_s1 + $0x340] sm:$0xff]  ;;  %v762_v43 = vpack.c.bf16 %v139_v36, %v138_v35  ;;  %v108_v45 = vld [vmem:[%s1217_s1 + $0x2d0] sm:$0xff]  ;;  %v783_v32 = vmov 1966171168  }
  0x24   :  { %747 = vmatprep.subr.bf16.mxu1 %v746_v54  ;;  %262 = vmatmul.mubr.f32.vlgmr.msra.gmra.mrb[0].mxu0 %v162_v27  ;;  %v726_v27 = vpack.c.bf16 %v105_v22, %v104_v21  ;;  %v123_v44 = vld [vmem:[%s1217_s1 + $0x348] sm:$0xff]  ;;  %v109_v46 = vld [vmem:[%s1217_s1 + $0x2d8] sm:$0xff]  ;;  %v140_v47 = vld [vmem:[%s1217_s1 + $0x3d0] sm:$0xff]  ;;  %v732_v49 = vpack.c.bf16 %v91_v41, %v90_v40  ;;  %v8_v22 = vstv %s1219_s2 }
  0x25   :  { %717 = vmatpush3.bf16.msra.mxu0 %v716_v62  ;;  %401 = vmatprep.mubr.f32.mxu0 %v187_v9  ;;  %v141_v48 = vld [vmem:[%s1217_s1 + $0x3d8] sm:$0xff]  ;;  %v764_v50 = vpack.c.bf16 %v123_v44, %v122_v42  ;;  %v734_v51 = vpack.c.bf16 %v109_v46, %v108_v45  ;;  %v92_v52 = vld [vmem:[%s1217_s1 + $0x250] sm:$0xff]  ;;  %v110_v57 = vld [vmem:[%s1217_s1 + $0x2e0] sm:$0xff]  ;;  %9 = vst [vmem:[#allocation2] sm:$0x1] %v8_v22 }
  0x26   :  { %332 = vmatmul.mubr.f32.vlgmr.msra.gmra.mrb[0].mxu1 %v169_v34  ;;  %719 = vmatprep.subr.bf16.mxu0 %v718_v1  ;;  %v107_v34 = vld [vmem:[%s1217_s1 + $0x2c8] sm:$0xff]  ;;  %v93_v53 = vld [vmem:[%s1217_s1 + $0x258] sm:$0xff]  ;;  %v124_v54 = vld [vmem:[%s1217_s1 + $0x350] sm:$0xff]  ;;  %v766_v55 = vpack.c.bf16 %v141_v48, %v140_v47 }
  0x27   :  { %749 = vmatpush3.bf16.msra.mxu1 %v748_v63  ;;  %471 = vmatprep.mubr.f32.mxu1 %v188_v12  ;;  %v730_v39 = vpack.c.bf16 %v107_v34, %v106_v33  ;;  %v125_v56 = vld [vmem:[%s1217_s1 + $0x358] sm:$0xff]  ;;  %v111_v59 = vld [vmem:[%s1217_s1 + $0x2e8] sm:$0xff]  ;;  %v142_v60 = vld [vmem:[%s1217_s1 + $0x3e0] sm:$0xff]  ;;  %v736_v63 = vpack.c.bf16 %v93_v53, %v92_v52  ;;  %v479_v33 = vunpack.c.l.s4 %v783_v32 }
  0x28   :  { %751 = vmatprep.subr.bf16.mxu1 %v750_v5  ;;  %v143_v62 = vld [vmem:[%s1217_s1 + $0x3e8] sm:$0xff]  ;;  %v768_v1 = vpack.c.bf16 %v125_v56, %v124_v54  ;;  %v738_v2 = vpack.c.bf16 %v111_v59, %v110_v57  ;;  %v94_v3 = vld [vmem:[%s1217_s1 + $0x260] sm:$0xff]  ;;  %v112_v8 = vld [vmem:[%s1217_s1 + $0x2f0] sm:$0xff] }
  0x29   :  { %721 = vmatpush3.bf16.msra.mxu0 %v720_v13  ;;  %v95_v4 = vld [vmem:[%s1217_s1 + $0x268] sm:$0xff]  ;;  %v126_v5 = vld [vmem:[%s1217_s1 + $0x360] sm:$0xff]  ;;  %v770_v6 = vpack.c.bf16 %v143_v62, %v142_v60  ;;  %v113_v9 = vld [vmem:[%s1217_s1 + $0x2f8] sm:$0xff] }
  0x2a   :  { %723 = vmatprep.subr.bf16.mxu0 %v722_v15  ;;  %v127_v7 = vld [vmem:[%s1217_s1 + $0x368] sm:$0xff]  ;;  %v144_v10 = vld [vmem:[%s1217_s1 + $0x3f0] sm:$0xff]  ;;  %v145_v11 = vld [vmem:[%s1217_s1 + $0x3f8] sm:$0xff]  ;;  %v740_v12 = vpack.c.bf16 %v95_v4, %v94_v3 }
  0x2b   :  { %753 = vmatpush3.bf16.msra.mxu1 %v752_v14  ;;  %v772_v13 = vpack.c.bf16 %v127_v7, %v126_v5  ;;  %v742_v14 = vpack.c.bf16 %v113_v9, %v112_v8  ;;  %v96_v15 = vld [vmem:[%s1217_s1 + $0x270] sm:$0xff]  ;;  %v97_v16 = vld [vmem:[%s1217_s1 + $0x278] sm:$0xff]  ;;  %v774_v17 = vpack.c.bf16 %v145_v11, %v144_v10 }
  0x2c   :  { %755 = vmatprep.subr.bf16.mxu1 %v754_v19  ;;  %v128_v18 = vld [vmem:[%s1217_s1 + $0x370] sm:$0xff]  ;;  %v129_v19 = vld [vmem:[%s1217_s1 + $0x378] sm:$0xff]  ;;  %v744_v20 = vpack.c.bf16 %v97_v16, %v96_v15  ;;  %v509_v24 = vld [vmem:[#allocation2] ss:$0 sm:$0xff] }
  0x2d   :  { %725 = vmatpush3.bf16.msra.mxu0 %v724_v25  ;;  %v776_v21 = vpack.c.bf16 %v129_v19, %v128_v18 }
  0x2e   :  { %727 = vmatprep.subr.bf16.mxu0 %v726_v27 }
  0x2f   :  { %757 = vmatpush3.bf16.msra.mxu1 %v756_v26 }
  0x30   :  { %759 = vmatprep.subr.bf16.mxu1 %v758_v31 }
  0x31   :  { %729 = vmatpush3.bf16.msra.mxu0 %v728_v37 }
  0x32   :  { %731 = vmatprep.subr.bf16.mxu0 %v730_v39 }
  0x33   :  { %761 = vmatpush3.bf16.msra.mxu1 %v760_v38 }
  0x34   :  { %763 = vmatprep.subr.bf16.mxu1 %v762_v43 }
  0x35   :  { %733 = vmatpush3.bf16.msra.mxu0 %v732_v49 }
  0x36   :  { %735 = vmatprep.subr.bf16.mxu0 %v734_v51 }
  0x37   :  { %765 = vmatpush3.bf16.msra.mxu1 %v764_v50 }
  0x38   :  { %767 = vmatprep.subr.bf16.mxu1 %v766_v55 }
  0x39   :  { %737 = vmatpush3.bf16.msra.mxu0 %v736_v63 }
  0x3a   :  { %739 = vmatprep.subr.bf16.mxu0 %v738_v2 }
  0x3b   :  { %769 = vmatpush3.bf16.msra.mxu1 %v768_v1 }
  0x3c   :  { %771 = vmatprep.subr.bf16.mxu1 %v770_v6 }
  0x3d   :  { %741 = vmatpush3.bf16.msra.mxu0 %v740_v12 }
  0x3e   :  { %743 = vmatprep.subr.bf16.mxu0 %v742_v14 }
  0x3f   :  { %773 = vmatpush3.bf16.msra.mxu1 %v772_v13 }
  0x40   :  { %775 = vmatprep.subr.bf16.mxu1 %v774_v17 }
  0x41   :  { %745 = vmatpush3.bf16.msra.mxu0 %v744_v20 }
  0x43   :  { %777 = vmatpush3.bf16.msra.mxu1 %v776_v21 }
  0x44   :  { %402 = vmatmul.mubr.f32.vlgmr.msra.gmra.mrb[2].mxu0 %v1035_v58  ;;  %v480_v58 = vunpack.c.0.s8 %v479_v33 }
  0x46   :  { %472 = vmatmul.mubr.f32.vlgmr.msra.gmra.mrb[2].mxu1 %v1043_v61  ;;  %v483_v40 = vsub.s32 %v480_v58, %v930_v0 }
  0xf7   :  { %v542_v23 = vpop.f32.mrb[0].mxu0 }
  0xf8   :  { %v543_v25 = vpop.f32.mrb[1].mxu0 }
  0xf9   :  { %v577_v26 = vpop.f32.mrb[0].mxu1  ;;  %v544_v27 = vadd.f32 %v543_v25, %v542_v23 }
  0xfa   :  { %v578_v28 = vpop.f32.mrb[1].mxu1 }
  0xfb   :  { %v579_v29 = vadd.f32 %v578_v28, %v577_v26  ;;  %v264_v30 = vadd.f32 %v544_v27, %v509_v24 }
  0xfd   :  { %v334_v31 = vadd.f32 %v579_v29, %v264_v30 }
 0x117   :  { %v612_v34 = vpop.f32.mrb[2].mxu0 }
 0x118   :  { %v613_v35 = vpop.f32.mrb[3].mxu0 }
 0x119   :  { %v647_v61 = vpop.f32.mrb[2].mxu1  ;;  %v614_v36 = vadd.f32 %v613_v35, %v612_v34 }
 0x11a   :  { %v648_v37 = vpop.f32.mrb[3].mxu1 }
 0x11b   :  { %v649_v38 = vadd.f32 %v648_v37, %v647_v61  ;;  %v404_v39 = vadd.f32 %v614_v36, %v334_v31 }
 0x11d   :  { %v474_v41 = vadd.f32 %v649_v38, %v404_v39 }
 0x11f   :  { %v484_v42 = vrot.slane %v474_v41, %v483_v40 }
 0x121   :  { %v485_v43 = vcombine.high %v484_v42, %v484_v42  ;;  %v492_v44 = vrot.slane %v484_v42, %v483_v40 }
 0x123   :  { %v499_v45 = vrot.slane %v485_v43, %v483_v40  ;;  %503 = vst.msk [vmem:[%s1220_s3] sm:$0x1] %vm502_vm0, %v492_v44 }
 0x125   :  { %504 = vst.msk [vmem:[%s1220_s3 + $0x1] sm:$0x1] %vm502_vm0, %v499_v45 }

// kernel: d_net_multi_forward.9
= control target key start
LH: loop header
LB: loop body
LE: loop exit
PB: predicated region body
PF: predicated region fallthrough
CT: control target
= control target key end

     0   :  { %vm91_vm0 = vcmask 392192   ;;  %vm861_vm1 = vcmask 261120   ;;  %s1810_s1 = inlined_call_operand.vmem [shape: f32[48,32], index: 1, kind: input, shape index: {}]   ;;  %s1811_s0 = inlined_call_operand.vmem [shape: f32[512,48], index: 0, kind: input, shape index: {}]   ;;  %s1812_s2 = inlined_call_operand.vmem [shape: f32[1,32], index: 2, kind: input, shape index: {}]   ;;  %s1813_s3 = inlined_call_operand.vmem [shape: f32[2,256,32], index: 3, kind: output, shape index: {}]  }
   0x1   :  { %v78_v0 = vld [vmem:[%s1810_s1] sm:$0xff]  ;;  %v79_v1 = vld [vmem:[%s1810_s1 + $0x8] sm:$0xff]  ;;  %v80_v2 = vld [vmem:[%s1810_s1 + $0x10] sm:$0xff] }
   0x2   :  { %v1173_v3 = vpack.c.bf16 %v79_v1, %v78_v0  ;;  %v81_v4 = vld [vmem:[%s1810_s1 + $0x18] sm:$0xff]  ;;  %v82_v6 = vld [vmem:[%s1810_s1 + $0x20] sm:$0xff]  ;;  %v83_v7 = vld [vmem:[%s1810_s1 + $0x28] sm:$0xff] }
   0x3   :  { %v1177_v5 = vpack.c.bf16 %v81_v4, %v80_v2  ;;  %v14_v8 = vld [vmem:[%s1811_s0] sm:$0xff]  ;;  %v1181_v10 = vpack.c.bf16 %v83_v7, %v82_v6  ;;  %v15_v11 = vld [vmem:[%s1811_s0 + $0x8] sm:$0xff]  ;;  %v16_v13 = vld [vmem:[%s1811_s0 + $0x10] sm:$0xff] }
   0x4   :  { %1174 = vmatprep.subr.bf16.mxu0 %v1173_v3  ;;  %1185 = vmatprep.subr.bf16.mxu1 %v1173_v3  ;;  %v46_v9 = vld [vmem:[%s1811_s0 + $0x100] sm:$0xff]  ;;  %v47_v12 = vld [vmem:[%s1811_s0 + $0x108] sm:$0xff]  ;;  %v48_v14 = vld [vmem:[%s1811_s0 + $0x110] sm:$0xff] }
   0x5   :  { %1176 = vmatpush3.bf16.msra.mxu0 %v1173_v3  ;;  %1188 = vmatpush3.bf16.msra.mxu1 %v1173_v3  ;;  %v17_v15 = vld [vmem:[%s1811_s0 + $0x18] sm:$0xff]  ;;  %v18_v17 = vld [vmem:[%s1811_s0 + $0x20] sm:$0xff]  ;;  %v19_v19 = vld [vmem:[%s1811_s0 + $0x28] sm:$0xff] }
   0x6   :  { %1178 = vmatprep.subr.bf16.mxu0 %v1177_v5  ;;  %1186 = vmatprep.subr.bf16.mxu1 %v1177_v5  ;;  %v49_v16 = vld [vmem:[%s1811_s0 + $0x118] sm:$0xff]  ;;  %v50_v18 = vld [vmem:[%s1811_s0 + $0x120] sm:$0xff]  ;;  %v51_v20 = vld [vmem:[%s1811_s0 + $0x128] sm:$0xff] }
   0x7   :  { %1077 = vmatprep.mubr.msk.f32.mxu0 %vm91_vm0, %v14_v8  ;;  %1125 = vmatprep.mubr.msk.f32.mxu1 %vm91_vm0, %v46_v9  ;;  %v20_v21 = vld [vmem:[%s1811_s0 + $0x30] sm:$0xff]  ;;  %v21_v23 = vld [vmem:[%s1811_s0 + $0x38] sm:$0xff]  ;;  %v22_v25 = vld [vmem:[%s1811_s0 + $0x40] sm:$0xff] }
   0x8   :  { %v52_v22 = vld [vmem:[%s1811_s0 + $0x130] sm:$0xff]  ;;  %v53_v24 = vld [vmem:[%s1811_s0 + $0x138] sm:$0xff]  ;;  %v54_v26 = vld [vmem:[%s1811_s0 + $0x140] sm:$0xff] }
   0x9   :  { %1180 = vmatpush3.bf16.msra.mxu0 %v1177_v5  ;;  %1189 = vmatpush3.bf16.msra.mxu1 %v1177_v5  ;;  %v23_v27 = vld [vmem:[%s1811_s0 + $0x48] sm:$0xff]  ;;  %v24_v29 = vld [vmem:[%s1811_s0 + $0x50] sm:$0xff]  ;;  %v25_v31 = vld [vmem:[%s1811_s0 + $0x58] sm:$0xff] }
   0xa   :  { %1182 = vmatprep.subr.bf16.mxu0 %v1181_v10  ;;  %1187 = vmatprep.subr.bf16.mxu1 %v1181_v10  ;;  %v55_v28 = vld [vmem:[%s1811_s0 + $0x148] sm:$0xff]  ;;  %v56_v30 = vld [vmem:[%s1811_s0 + $0x150] sm:$0xff]  ;;  %v57_v32 = vld [vmem:[%s1811_s0 + $0x158] sm:$0xff] }
   0xb   :  { %v26_v33 = vld [vmem:[%s1811_s0 + $0x60] sm:$0xff]  ;;  %v27_v35 = vld [vmem:[%s1811_s0 + $0x68] sm:$0xff]  ;;  %v28_v37 = vld [vmem:[%s1811_s0 + $0x70] sm:$0xff] }
   0xc   :  { %v58_v34 = vld [vmem:[%s1811_s0 + $0x160] sm:$0xff]  ;;  %v59_v36 = vld [vmem:[%s1811_s0 + $0x168] sm:$0xff]  ;;  %v60_v38 = vld [vmem:[%s1811_s0 + $0x170] sm:$0xff] }
   0xd   :  { %1184 = vmatpush3.bf16.msra.mxu0 %v1181_v10  ;;  %1190 = vmatpush3.bf16.msra.mxu1 %v1181_v10  ;;  %v29_v39 = vld [vmem:[%s1811_s0 + $0x78] sm:$0xff]  ;;  %v30_v41 = vld [vmem:[%s1811_s0 + $0x80] sm:$0xff]  ;;  %v31_v43 = vld [vmem:[%s1811_s0 + $0x88] sm:$0xff] }
   0xe   :  { %v61_v40 = vld [vmem:[%s1811_s0 + $0x178] sm:$0xff]  ;;  %v62_v42 = vld [vmem:[%s1811_s0 + $0x180] sm:$0xff]  ;;  %v63_v44 = vld [vmem:[%s1811_s0 + $0x188] sm:$0xff] }
   0xf   :  { %v32_v45 = vld [vmem:[%s1811_s0 + $0x90] sm:$0xff]  ;;  %v33_v47 = vld [vmem:[%s1811_s0 + $0x98] sm:$0xff]  ;;  %v34_v49 = vld [vmem:[%s1811_s0 + $0xa0] sm:$0xff] }
  0x10   :  { %1078 = vmatmul.mubr.msk.f32.vlgmr.msra.gmra.mrb[0].mxu0 %vm91_vm0, %v15_v11  ;;  %1126 = vmatmul.mubr.msk.f32.vlgmr.msra.gmra.mrb[0].mxu1 %vm91_vm0, %v47_v12  ;;  %v64_v46 = vld [vmem:[%s1811_s0 + $0x190] sm:$0xff]  ;;  %v65_v48 = vld [vmem:[%s1811_s0 + $0x198] sm:$0xff]  ;;  %v66_v50 = vld [vmem:[%s1811_s0 + $0x1a0] sm:$0xff] }
  0x11   :  { %1080 = vmatprep.mubr.msk.f32.mxu0 %vm91_vm0, %v16_v13  ;;  %1128 = vmatprep.mubr.msk.f32.mxu1 %vm91_vm0, %v48_v14  ;;  %v35_v51 = vld [vmem:[%s1811_s0 + $0xa8] sm:$0xff]  ;;  %v36_v53 = vld [vmem:[%s1811_s0 + $0xb0] sm:$0xff]  ;;  %v37_v55 = vld [vmem:[%s1811_s0 + $0xb8] sm:$0xff] }
  0x12   :  { %v67_v52 = vld [vmem:[%s1811_s0 + $0x1a8] sm:$0xff]  ;;  %v68_v54 = vld [vmem:[%s1811_s0 + $0x1b0] sm:$0xff]  ;;  %v69_v56 = vld [vmem:[%s1811_s0 + $0x1b8] sm:$0xff] }
  0x13   :  { %v38_v57 = vld [vmem:[%s1811_s0 + $0xc0] sm:$0xff]  ;;  %v39_v59 = vld [vmem:[%s1811_s0 + $0xc8] sm:$0xff]  ;;  %v40_v61 = vld [vmem:[%s1811_s0 + $0xd0] sm:$0xff] }
  0x14   :  { %1081 = vmatmul.mubr.msk.f32.gmra.mrb[2].mxu0 %vm91_vm0, %v17_v15  ;;  %1129 = vmatmul.mubr.msk.f32.gmra.mrb[2].mxu1 %vm91_vm0, %v49_v16  ;;  %v70_v58 = vld [vmem:[%s1811_s0 + $0x1c0] sm:$0xff]  ;;  %v71_v60 = vld [vmem:[%s1811_s0 + $0x1c8] sm:$0xff]  ;;  %v72_v62 = vld [vmem:[%s1811_s0 + $0x1d0] sm:$0xff] }
  0x15   :  { %1083 = vmatprep.mubr.msk.f32.mxu0 %vm91_vm0, %v18_v17  ;;  %1131 = vmatprep.mubr.msk.f32.mxu1 %vm91_vm0, %v50_v18  ;;  %v41_v63 = vld [vmem:[%s1811_s0 + $0xd8] sm:$0xff]  ;;  %v42_v1 = vld [vmem:[%s1811_s0 + $0xe0] sm:$0xff]  ;;  %v43_v3 = vld [vmem:[%s1811_s0 + $0xe8] sm:$0xff] }
  0x16   :  { %v73_v0 = vld [vmem:[%s1811_s0 + $0x1d8] sm:$0xff]  ;;  %v74_v2 = vld [vmem:[%s1811_s0 + $0x1e0] sm:$0xff]  ;;  %v75_v4 = vld [vmem:[%s1811_s0 + $0x1e8] sm:$0xff] }
  0x17   :  { %v44_v5 = vld [vmem:[%s1811_s0 + $0xf0] sm:$0xff]  ;;  %v45_v7 = vld [vmem:[%s1811_s0 + $0xf8] sm:$0xff]  ;;  %v1488_v9 = vld [vmem:[%s1812_s2] ss:$0 sm:$0xff] }
  0x18   :  { %1084 = vmatmul.mubr.msk.f32.gmra.mrb[4].mxu0 %vm91_vm0, %v19_v19  ;;  %1132 = vmatmul.mubr.msk.f32.gmra.mrb[4].mxu1 %vm91_vm0, %v51_v20  ;;  %v76_v6 = vld [vmem:[%s1811_s0 + $0x1f0] sm:$0xff]  ;;  %v77_v8 = vld [vmem:[%s1811_s0 + $0x1f8] sm:$0xff] }
  0x19   :  { %1086 = vmatprep.mubr.msk.f32.mxu0 %vm91_vm0, %v20_v21  ;;  %1134 = vmatprep.mubr.msk.f32.mxu1 %vm91_vm0, %v52_v22 }
  0x1c   :  { %1087 = vmatmul.mubr.msk.f32.gmra.mrb[6].mxu0 %vm91_vm0, %v21_v23  ;;  %1135 = vmatmul.mubr.msk.f32.gmra.mrb[6].mxu1 %vm91_vm0, %v53_v24 }
  0x1d   :  { %1089 = vmatprep.mubr.msk.f32.mxu0 %vm91_vm0, %v22_v25  ;;  %1137 = vmatprep.mubr.msk.f32.mxu1 %vm91_vm0, %v54_v26 }
  0x20   :  { %1090 = vmatmul.mubr.msk.f32.gmra.mrb[8].mxu0 %vm91_vm0, %v23_v27  ;;  %1138 = vmatmul.mubr.msk.f32.gmra.mrb[8].mxu1 %vm91_vm0, %v55_v28 }
  0x21   :  { %1092 = vmatprep.mubr.msk.f32.mxu0 %vm91_vm0, %v24_v29  ;;  %1140 = vmatprep.mubr.msk.f32.mxu1 %vm91_vm0, %v56_v30 }
  0x24   :  { %1093 = vmatmul.mubr.msk.f32.gmra.mrb[10].mxu0 %vm91_vm0, %v25_v31  ;;  %1141 = vmatmul.mubr.msk.f32.gmra.mrb[10].mxu1 %vm91_vm0, %v57_v32 }
  0x25   :  { %1095 = vmatprep.mubr.msk.f32.mxu0 %vm91_vm0, %v26_v33  ;;  %1143 = vmatprep.mubr.msk.f32.mxu1 %vm91_vm0, %v58_v34 }
  0x28   :  { %1096 = vmatmul.mubr.msk.f32.gmra.mrb[12].mxu0 %vm91_vm0, %v27_v35  ;;  %1144 = vmatmul.mubr.msk.f32.gmra.mrb[12].mxu1 %vm91_vm0, %v59_v36 }
  0x29   :  { %1098 = vmatprep.mubr.msk.f32.mxu0 %vm91_vm0, %v28_v37  ;;  %1146 = vmatprep.mubr.msk.f32.mxu1 %vm91_vm0, %v60_v38 }
  0x2c   :  { %1099 = vmatmul.mubr.msk.f32.gmra.mrb[14].mxu0 %vm91_vm0, %v29_v39  ;;  %1147 = vmatmul.mubr.msk.f32.gmra.mrb[14].mxu1 %vm91_vm0, %v61_v40 }
  0x2d   :  { %1101 = vmatprep.mubr.msk.f32.mxu0 %vm91_vm0, %v30_v41  ;;  %1149 = vmatprep.mubr.msk.f32.mxu1 %vm91_vm0, %v62_v42 }
  0x30   :  { %1102 = vmatmul.mubr.msk.f32.gmra.mrb[16].mxu0 %vm91_vm0, %v31_v43  ;;  %1150 = vmatmul.mubr.msk.f32.gmra.mrb[16].mxu1 %vm91_vm0, %v63_v44 }
  0x31   :  { %1104 = vmatprep.mubr.msk.f32.mxu0 %vm91_vm0, %v32_v45  ;;  %1152 = vmatprep.mubr.msk.f32.mxu1 %vm91_vm0, %v64_v46 }
  0x34   :  { %1105 = vmatmul.mubr.msk.f32.gmra.mrb[18].mxu0 %vm91_vm0, %v33_v47  ;;  %1153 = vmatmul.mubr.msk.f32.gmra.mrb[18].mxu1 %vm91_vm0, %v65_v48 }
  0x35   :  { %1107 = vmatprep.mubr.msk.f32.mxu0 %vm91_vm0, %v34_v49  ;;  %1155 = vmatprep.mubr.msk.f32.mxu1 %vm91_vm0, %v66_v50 }
  0x38   :  { %1108 = vmatmul.mubr.msk.f32.gmra.mrb[20].mxu0 %vm91_vm0, %v35_v51  ;;  %1156 = vmatmul.mubr.msk.f32.gmra.mrb[20].mxu1 %vm91_vm0, %v67_v52 }
  0x39   :  { %1110 = vmatprep.mubr.msk.f32.mxu0 %vm91_vm0, %v36_v53  ;;  %1158 = vmatprep.mubr.msk.f32.mxu1 %vm91_vm0, %v68_v54 }
  0x3c   :  { %1111 = vmatmul.mubr.msk.f32.gmra.mrb[22].mxu0 %vm91_vm0, %v37_v55  ;;  %1159 = vmatmul.mubr.msk.f32.gmra.mrb[22].mxu1 %vm91_vm0, %v69_v56 }
  0x3d   :  { %1113 = vmatprep.mubr.msk.f32.mxu0 %vm91_vm0, %v38_v57  ;;  %1161 = vmatprep.mubr.msk.f32.mxu1 %vm91_vm0, %v70_v58 }
  0x40   :  { %1114 = vmatmul.mubr.msk.f32.gmra.mrb[24].mxu0 %vm91_vm0, %v39_v59  ;;  %1162 = vmatmul.mubr.msk.f32.gmra.mrb[24].mxu1 %vm91_vm0, %v71_v60 }
  0x41   :  { %1116 = vmatprep.mubr.msk.f32.mxu0 %vm91_vm0, %v40_v61  ;;  %1164 = vmatprep.mubr.msk.f32.mxu1 %vm91_vm0, %v72_v62 }
  0x44   :  { %1117 = vmatmul.mubr.msk.f32.gmra.mrb[26].mxu0 %vm91_vm0, %v41_v63  ;;  %1165 = vmatmul.mubr.msk.f32.gmra.mrb[26].mxu1 %vm91_vm0, %v73_v0 }
  0x45   :  { %1119 = vmatprep.mubr.msk.f32.mxu0 %vm91_vm0, %v42_v1  ;;  %1167 = vmatprep.mubr.msk.f32.mxu1 %vm91_vm0, %v74_v2 }
  0x48   :  { %1120 = vmatmul.mubr.msk.f32.gmra.mrb[28].mxu0 %vm91_vm0, %v43_v3  ;;  %1168 = vmatmul.mubr.msk.f32.gmra.mrb[28].mxu1 %vm91_vm0, %v75_v4 }
  0x49   :  { %1122 = vmatprep.mubr.msk.f32.mxu0 %vm91_vm0, %v44_v5  ;;  %1170 = vmatprep.mubr.msk.f32.mxu1 %vm91_vm0, %v76_v6 }
  0x4c   :  { %1123 = vmatmul.mubr.msk.f32.gmra.mrb[30].mxu0 %vm91_vm0, %v45_v7  ;;  %1171 = vmatmul.mubr.msk.f32.gmra.mrb[30].mxu1 %vm91_vm0, %v77_v8 }
  0xe3   :  { %v1079_v10 = vpop.f32.mrb[0].mxu0  ;;  %v1127_v11 = vpop.f32.mrb[0].mxu1 }
  0xe4   :  { %v356_v12 = vadd.f32 %v1079_v10, %v1488_v9  ;;  %v516_v13 = vadd.f32 %v1127_v11, %v1488_v9  ;;  %v350_v14 = vpop.f32.mrb[1].mxu0  ;;  %v510_v15 = vpop.f32.mrb[1].mxu1 }
  0xe5   :  { %v351_v16 = vadd.f32 %v1488_v9, %v350_v14  ;;  %v511_v17 = vadd.f32 %v1488_v9, %v510_v15 }
  0xe6   :  { %vm670_vm2 = vcmp.gt.f32.partialorder %v356_v12, 0.0  ;;  %v734_v18 = vmul.f32 0.2, %v356_v12  ;;  %vm702_vm3 = vcmp.gt.f32.partialorder %v516_v13, 0.0  ;;  %v766_v19 = vmul.f32 0.2, %v516_v13 }
  0xe7   :  { %vm669_vm4 = vcmp.gt.f32.partialorder %v351_v16, 0.0  ;;  %v733_v20 = vmul.f32 0.2, %v351_v16  ;;  %vm701_vm5 = vcmp.gt.f32.partialorder %v511_v17, 0.0  ;;  %v765_v21 = vmul.f32 0.2, %v511_v17 }
  0xe8   :  { %v798_v22 = vsel %vm670_vm2, %v356_v12, %v734_v18  ;;  %v830_v23 = vsel %vm702_vm3, %v516_v13, %v766_v19  ;;  %v1082_v24 = vpop.f32.mrb[2].mxu0  ;;  %v1130_v25 = vpop.f32.mrb[2].mxu1 }
  0xe9   :  { %863 = vst.msk [vmem:[%s1813_s3 + $0x8] sm:$0xff] %vm861_vm1, %v798_v22  ;;  %895 = vst.msk [vmem:[%s1813_s3 + $0x108] sm:$0xff] %vm861_vm1, %v830_v23  ;;  %v797_v26 = vsel %vm669_vm4, %v351_v16, %v733_v20  ;;  %v829_v27 = vsel %vm701_vm5, %v511_v17, %v765_v21  ;;  %v366_v28 = vadd.f32 %v1082_v24, %v1488_v9  ;;  %v360_v30 = vpop.f32.mrb[3].mxu0  ;;  %v520_v31 = vpop.f32.mrb[3].mxu1 }
  0xea   :  { %v526_v29 = vadd.f32 %v1130_v25, %v1488_v9  ;;  %862 = vst.msk [vmem:[%s1813_s3] sm:$0xff] %vm861_vm1, %v797_v26  ;;  %894 = vst.msk [vmem:[%s1813_s3 + $0x100] sm:$0xff] %vm861_vm1, %v829_v27  ;;  %v361_v32 = vadd.f32 %v1488_v9, %v360_v30  ;;  %v521_v33 = vadd.f32 %v1488_v9, %v520_v31 }
  0xeb   :  { %vm672_vm6 = vcmp.gt.f32.partialorder %v366_v28, 0.0  ;;  %v736_v34 = vmul.f32 0.2, %v366_v28  ;;  %v1085_v40 = vpop.f32.mrb[4].mxu0  ;;  %v1133_v41 = vpop.f32.mrb[4].mxu1 }
  0xec   :  { %vm704_vm7 = vcmp.gt.f32.partialorder %v526_v29, 0.0  ;;  %v768_v35 = vmul.f32 0.2, %v526_v29  ;;  %vm671_vm8 = vcmp.gt.f32.partialorder %v361_v32, 0.0  ;;  %v735_v36 = vmul.f32 0.2, %v361_v32 }
  0xed   :  { %vm703_vm9 = vcmp.gt.f32.partialorder %v521_v33, 0.0  ;;  %v767_v37 = vmul.f32 0.2, %v521_v33  ;;  %v800_v38 = vsel %vm672_vm6, %v366_v28, %v736_v34  ;;  %v376_v44 = vadd.f32 %v1085_v40, %v1488_v9  ;;  %v370_v46 = vpop.f32.mrb[5].mxu0  ;;  %v530_v47 = vpop.f32.mrb[5].mxu1 }
  0xee   :  { %v832_v39 = vsel %vm704_vm7, %v526_v29, %v768_v35  ;;  %865 = vst.msk [vmem:[%s1813_s3 + $0x18] sm:$0xff] %vm861_vm1, %v800_v38  ;;  %v799_v42 = vsel %vm671_vm8, %v361_v32, %v735_v36  ;;  %v536_v45 = vadd.f32 %v1133_v41, %v1488_v9  ;;  %v371_v48 = vadd.f32 %v1488_v9, %v370_v46 }
  0xef   :  { %897 = vst.msk [vmem:[%s1813_s3 + $0x118] sm:$0xff] %vm861_vm1, %v832_v39  ;;  %v831_v43 = vsel %vm703_vm9, %v521_v33, %v767_v37  ;;  %864 = vst.msk [vmem:[%s1813_s3 + $0x10] sm:$0xff] %vm861_vm1, %v799_v42  ;;  %v531_v49 = vadd.f32 %v1488_v9, %v530_v47  ;;  %v1088_v50 = vpop.f32.mrb[6].mxu0  ;;  %v1136_v51 = vpop.f32.mrb[6].mxu1  ;;  %vm674_vm10 = vcmp.gt.f32.partialorder %v376_v44, 0.0 }
  0xf0   :  { %896 = vst.msk [vmem:[%s1813_s3 + $0x110] sm:$0xff] %vm861_vm1, %v831_v43  ;;  %v738_v52 = vmul.f32 0.2, %v376_v44  ;;  %vm706_vm11 = vcmp.gt.f32.partialorder %v536_v45, 0.0  ;;  %v770_v53 = vmul.f32 0.2, %v536_v45  ;;  %v386_v58 = vadd.f32 %v1088_v50, %v1488_v9 }
  0xf1   :  { %vm673_vm12 = vcmp.gt.f32.partialorder %v371_v48, 0.0  ;;  %v737_v54 = vmul.f32 0.2, %v371_v48  ;;  %vm705_vm13 = vcmp.gt.f32.partialorder %v531_v49, 0.0  ;;  %v769_v55 = vmul.f32 0.2, %v531_v49 }
  0xf2   :  { %v802_v56 = vsel %vm674_vm10, %v376_v44, %v738_v52  ;;  %v834_v57 = vsel %vm706_vm11, %v536_v45, %v770_v53  ;;  %v546_v59 = vadd.f32 %v1136_v51, %v1488_v9  ;;  %v380_v60 = vpop.f32.mrb[7].mxu0  ;;  %v540_v61 = vpop.f32.mrb[7].mxu1  ;;  %vm676_vm14 = vcmp.gt.f32.partialorder %v386_v58, 0.0 }
  0xf3   :  { %867 = vst.msk [vmem:[%s1813_s3 + $0x28] sm:$0xff] %vm861_vm1, %v802_v56  ;;  %899 = vst.msk [vmem:[%s1813_s3 + $0x128] sm:$0xff] %vm861_vm1, %v834_v57  ;;  %v801_v62 = vsel %vm673_vm12, %v371_v48, %v737_v54  ;;  %v833_v63 = vsel %vm705_vm13, %v531_v49, %v769_v55  ;;  %v381_v0 = vadd.f32 %v1488_v9, %v380_v60  ;;  %v1091_v2 = vpop.f32.mrb[8].mxu0  ;;  %v1139_v3 = vpop.f32.mrb[8].mxu1  ;;  %v740_v4 = vmul.f32 0.2, %v386_v58 }
  0xf4   :  { %v541_v1 = vadd.f32 %v1488_v9, %v540_v61  ;;  %866 = vst.msk [vmem:[%s1813_s3 + $0x20] sm:$0xff] %vm861_vm1, %v801_v62  ;;  %898 = vst.msk [vmem:[%s1813_s3 + $0x120] sm:$0xff] %vm861_vm1, %v833_v63  ;;  %vm708_vm15 = vcmp.gt.f32.partialorder %v546_v59, 0.0  ;;  %v772_v5 = vmul.f32 0.2, %v546_v59  ;;  %v396_v11 = vadd.f32 %v1091_v2, %v1488_v9  ;;  %v390_v13 = vpop.f32.mrb[9].mxu0 }
  0xf5   :  { %vm675_vm0 = vcmp.gt.f32.partialorder %v381_v0, 0.0  ;;  %v739_v6 = vmul.f32 0.2, %v381_v0  ;;  %v804_v8 = vsel %vm676_vm14, %v386_v58, %v740_v4  ;;  %v556_v12 = vadd.f32 %v1139_v3, %v1488_v9  ;;  %v550_v14 = vpop.f32.mrb[9].mxu1 }
  0xf6   :  { %vm707_vm2 = vcmp.gt.f32.partialorder %v541_v1, 0.0  ;;  %v771_v7 = vmul.f32 0.2, %v541_v1  ;;  %v836_v10 = vsel %vm708_vm15, %v546_v59, %v772_v5  ;;  %869 = vst.msk [vmem:[%s1813_s3 + $0x38] sm:$0xff] %vm861_vm1, %v804_v8  ;;  %v391_v17 = vadd.f32 %v1488_v9, %v390_v13 }
  0xf7   :  { %901 = vst.msk [vmem:[%s1813_s3 + $0x138] sm:$0xff] %vm861_vm1, %v836_v10  ;;  %v803_v15 = vsel %vm675_vm0, %v381_v0, %v739_v6  ;;  %v551_v18 = vadd.f32 %v1488_v9, %v550_v14  ;;  %v1094_v19 = vpop.f32.mrb[10].mxu0  ;;  %v1142_v20 = vpop.f32.mrb[10].mxu1  ;;  %vm678_vm3 = vcmp.gt.f32.partialorder %v396_v11, 0.0  ;;  %v742_v21 = vmul.f32 0.2, %v396_v11 }
  0xf8   :  { %v835_v16 = vsel %vm707_vm2, %v541_v1, %v771_v7  ;;  %868 = vst.msk [vmem:[%s1813_s3 + $0x30] sm:$0xff] %vm861_vm1, %v803_v15  ;;  %vm710_vm4 = vcmp.gt.f32.partialorder %v556_v12, 0.0  ;;  %v774_v22 = vmul.f32 0.2, %v556_v12  ;;  %vm677_vm5 = vcmp.gt.f32.partialorder %v391_v17, 0.0  ;;  %v400_v29 = vpop.f32.mrb[11].mxu0 }
  0xf9   :  { %900 = vst.msk [vmem:[%s1813_s3 + $0x130] sm:$0xff] %vm861_vm1, %v835_v16  ;;  %v741_v23 = vmul.f32 0.2, %v391_v17  ;;  %vm709_vm6 = vcmp.gt.f32.partialorder %v551_v18, 0.0  ;;  %v773_v24 = vmul.f32 0.2, %v551_v18  ;;  %v806_v25 = vsel %vm678_vm3, %v396_v11, %v742_v21 }
  0xfa   :  { %v838_v26 = vsel %vm710_vm4, %v556_v12, %v774_v22  ;;  %v406_v27 = vadd.f32 %v1094_v19, %v1488_v9  ;;  %v566_v28 = vadd.f32 %v1142_v20, %v1488_v9  ;;  %v560_v30 = vpop.f32.mrb[11].mxu1  ;;  %871 = vst.msk [vmem:[%s1813_s3 + $0x48] sm:$0xff] %vm861_vm1, %v806_v25  ;;  %v401_v33 = vadd.f32 %v1488_v9, %v400_v29 }
  0xfb   :  { %903 = vst.msk [vmem:[%s1813_s3 + $0x148] sm:$0xff] %vm861_vm1, %v838_v26  ;;  %v805_v31 = vsel %vm677_vm5, %v391_v17, %v741_v23  ;;  %v837_v32 = vsel %vm709_vm6, %v551_v18, %v773_v24  ;;  %v561_v34 = vadd.f32 %v1488_v9, %v560_v30  ;;  %v1097_v35 = vpop.f32.mrb[12].mxu0  ;;  %v1145_v36 = vpop.f32.mrb[12].mxu1 }
  0xfc   :  { %870 = vst.msk [vmem:[%s1813_s3 + $0x40] sm:$0xff] %vm861_vm1, %v805_v31  ;;  %902 = vst.msk [vmem:[%s1813_s3 + $0x140] sm:$0xff] %vm861_vm1, %v837_v32  ;;  %vm680_vm7 = vcmp.gt.f32.partialorder %v406_v27, 0.0  ;;  %v744_v37 = vmul.f32 0.2, %v406_v27  ;;  %vm712_vm8 = vcmp.gt.f32.partialorder %v566_v28, 0.0  ;;  %v416_v43 = vadd.f32 %v1097_v35, %v1488_v9 }
  0xfd   :  { %v776_v38 = vmul.f32 0.2, %v566_v28  ;;  %vm679_vm9 = vcmp.gt.f32.partialorder %v401_v33, 0.0  ;;  %v743_v39 = vmul.f32 0.2, %v401_v33  ;;  %vm711_vm10 = vcmp.gt.f32.partialorder %v561_v34, 0.0 }
  0xfe   :  { %v775_v40 = vmul.f32 0.2, %v561_v34  ;;  %v808_v41 = vsel %vm680_vm7, %v406_v27, %v744_v37  ;;  %v576_v44 = vadd.f32 %v1145_v36, %v1488_v9  ;;  %v410_v45 = vpop.f32.mrb[13].mxu0  ;;  %v570_v46 = vpop.f32.mrb[13].mxu1  ;;  %vm682_vm11 = vcmp.gt.f32.partialorder %v416_v43, 0.0 }
  0xff   :  { %v840_v42 = vsel %vm712_vm8, %v566_v28, %v776_v38  ;;  %873 = vst.msk [vmem:[%s1813_s3 + $0x58] sm:$0xff] %vm861_vm1, %v808_v41  ;;  %v807_v47 = vsel %vm679_vm9, %v401_v33, %v743_v39  ;;  %v411_v49 = vadd.f32 %v1488_v9, %v410_v45  ;;  %v571_v50 = vadd.f32 %v1488_v9, %v570_v46  ;;  %v1100_v51 = vpop.f32.mrb[14].mxu0  ;;  %v1148_v52 = vpop.f32.mrb[14].mxu1 }
 0x100   :  { %905 = vst.msk [vmem:[%s1813_s3 + $0x158] sm:$0xff] %vm861_vm1, %v840_v42  ;;  %v839_v48 = vsel %vm711_vm10, %v561_v34, %v775_v40  ;;  %872 = vst.msk [vmem:[%s1813_s3 + $0x50] sm:$0xff] %vm861_vm1, %v807_v47  ;;  %v746_v53 = vmul.f32 0.2, %v416_v43  ;;  %vm714_vm12 = vcmp.gt.f32.partialorder %v576_v44, 0.0  ;;  %v426_v59 = vadd.f32 %v1100_v51, %v1488_v9  ;;  %v420_v61 = vpop.f32.mrb[15].mxu0 }
 0x101   :  { %904 = vst.msk [vmem:[%s1813_s3 + $0x150] sm:$0xff] %vm861_vm1, %v839_v48  ;;  %v778_v54 = vmul.f32 0.2, %v576_v44  ;;  %vm681_vm13 = vcmp.gt.f32.partialorder %v411_v49, 0.0  ;;  %v745_v55 = vmul.f32 0.2, %v411_v49  ;;  %v586_v60 = vadd.f32 %v1148_v52, %v1488_v9 }
 0x102   :  { %vm713_vm14 = vcmp.gt.f32.partialorder %v571_v50, 0.0  ;;  %v777_v56 = vmul.f32 0.2, %v571_v50  ;;  %v810_v57 = vsel %vm682_vm11, %v416_v43, %v746_v53  ;;  %v580_v62 = vpop.f32.mrb[15].mxu1  ;;  %v421_v1 = vadd.f32 %v1488_v9, %v420_v61 }
 0x103   :  { %v842_v58 = vsel %vm714_vm12, %v576_v44, %v778_v54  ;;  %875 = vst.msk [vmem:[%s1813_s3 + $0x68] sm:$0xff] %vm861_vm1, %v810_v57  ;;  %v809_v63 = vsel %vm681_vm13, %v411_v49, %v745_v55  ;;  %v581_v2 = vadd.f32 %v1488_v9, %v580_v62  ;;  %v1103_v3 = vpop.f32.mrb[16].mxu0  ;;  %v1151_v4 = vpop.f32.mrb[16].mxu1  ;;  %vm684_vm15 = vcmp.gt.f32.partialorder %v426_v59, 0.0 }
 0x104   :  { %907 = vst.msk [vmem:[%s1813_s3 + $0x168] sm:$0xff] %vm861_vm1, %v842_v58  ;;  %v841_v0 = vsel %vm713_vm14, %v571_v50, %v777_v56  ;;  %874 = vst.msk [vmem:[%s1813_s3 + $0x60] sm:$0xff] %vm861_vm1, %v809_v63  ;;  %v748_v5 = vmul.f32 0.2, %v426_v59  ;;  %vm716_vm0 = vcmp.gt.f32.partialorder %v586_v60, 0.0  ;;  %vm683_vm2 = vcmp.gt.f32.partialorder %v421_v1, 0.0 }
 0x105   :  { %906 = vst.msk [vmem:[%s1813_s3 + $0x160] sm:$0xff] %vm861_vm1, %v841_v0  ;;  %v780_v6 = vmul.f32 0.2, %v586_v60  ;;  %v747_v7 = vmul.f32 0.2, %v421_v1  ;;  %vm715_vm3 = vcmp.gt.f32.partialorder %v581_v2, 0.0  ;;  %v436_v12 = vadd.f32 %v1103_v3, %v1488_v9 }
 0x106   :  { %v779_v8 = vmul.f32 0.2, %v581_v2  ;;  %v812_v10 = vsel %vm684_vm15, %v426_v59, %v748_v5  ;;  %v596_v13 = vadd.f32 %v1151_v4, %v1488_v9  ;;  %v430_v14 = vpop.f32.mrb[17].mxu0  ;;  %v590_v15 = vpop.f32.mrb[17].mxu1 }
 0x107   :  { %v844_v11 = vsel %vm716_vm0, %v586_v60, %v780_v6  ;;  %877 = vst.msk [vmem:[%s1813_s3 + $0x78] sm:$0xff] %vm861_vm1, %v812_v10  ;;  %v811_v16 = vsel %vm683_vm2, %v421_v1, %v747_v7  ;;  %v431_v18 = vadd.f32 %v1488_v9, %v430_v14  ;;  %v591_v19 = vadd.f32 %v1488_v9, %v590_v15  ;;  %v1106_v20 = vpop.f32.mrb[18].mxu0  ;;  %v1154_v21 = vpop.f32.mrb[18].mxu1 }
 0x108   :  { %909 = vst.msk [vmem:[%s1813_s3 + $0x178] sm:$0xff] %vm861_vm1, %v844_v11  ;;  %v843_v17 = vsel %vm715_vm3, %v581_v2, %v779_v8  ;;  %876 = vst.msk [vmem:[%s1813_s3 + $0x70] sm:$0xff] %vm861_vm1, %v811_v16  ;;  %vm686_vm4 = vcmp.gt.f32.partialorder %v436_v12, 0.0  ;;  %v750_v22 = vmul.f32 0.2, %v436_v12  ;;  %vm718_vm5 = vcmp.gt.f32.partialorder %v596_v13, 0.0 }
 0x109   :  { %908 = vst.msk [vmem:[%s1813_s3 + $0x170] sm:$0xff] %vm861_vm1, %v843_v17  ;;  %v782_v23 = vmul.f32 0.2, %v596_v13  ;;  %vm685_vm6 = vcmp.gt.f32.partialorder %v431_v18, 0.0  ;;  %v749_v24 = vmul.f32 0.2, %v431_v18  ;;  %v446_v28 = vadd.f32 %v1106_v20, %v1488_v9 }
 0x10a   :  { %vm717_vm7 = vcmp.gt.f32.partialorder %v591_v19, 0.0  ;;  %v781_v25 = vmul.f32 0.2, %v591_v19  ;;  %v814_v26 = vsel %vm686_vm4, %v436_v12, %v750_v22  ;;  %v606_v29 = vadd.f32 %v1154_v21, %v1488_v9  ;;  %v440_v30 = vpop.f32.mrb[19].mxu0  ;;  %v600_v31 = vpop.f32.mrb[19].mxu1 }
 0x10b   :  { %v846_v27 = vsel %vm718_vm5, %v596_v13, %v782_v23  ;;  %879 = vst.msk [vmem:[%s1813_s3 + $0x88] sm:$0xff] %vm861_vm1, %v814_v26  ;;  %v813_v32 = vsel %vm685_vm6, %v431_v18, %v749_v24  ;;  %v441_v34 = vadd.f32 %v1488_v9, %v440_v30  ;;  %v601_v35 = vadd.f32 %v1488_v9, %v600_v31  ;;  %v1109_v36 = vpop.f32.mrb[20].mxu0  ;;  %v1157_v37 = vpop.f32.mrb[20].mxu1 }
 0x10c   :  { %911 = vst.msk [vmem:[%s1813_s3 + $0x188] sm:$0xff] %vm861_vm1, %v846_v27  ;;  %v845_v33 = vsel %vm717_vm7, %v591_v19, %v781_v25  ;;  %878 = vst.msk [vmem:[%s1813_s3 + $0x80] sm:$0xff] %vm861_vm1, %v813_v32  ;;  %vm688_vm8 = vcmp.gt.f32.partialorder %v446_v28, 0.0  ;;  %v752_v38 = vmul.f32 0.2, %v446_v28  ;;  %vm720_vm9 = vcmp.gt.f32.partialorder %v606_v29, 0.0 }
 0x10d   :  { %910 = vst.msk [vmem:[%s1813_s3 + $0x180] sm:$0xff] %vm861_vm1, %v845_v33  ;;  %v784_v39 = vmul.f32 0.2, %v606_v29  ;;  %vm687_vm10 = vcmp.gt.f32.partialorder %v441_v34, 0.0  ;;  %v751_v40 = vmul.f32 0.2, %v441_v34  ;;  %v456_v44 = vadd.f32 %v1109_v36, %v1488_v9 }
 0x10e   :  { %vm719_vm11 = vcmp.gt.f32.partialorder %v601_v35, 0.0  ;;  %v783_v41 = vmul.f32 0.2, %v601_v35  ;;  %v816_v42 = vsel %vm688_vm8, %v446_v28, %v752_v38  ;;  %v616_v45 = vadd.f32 %v1157_v37, %v1488_v9  ;;  %v450_v46 = vpop.f32.mrb[21].mxu0  ;;  %v610_v47 = vpop.f32.mrb[21].mxu1 }
 0x10f   :  { %v848_v43 = vsel %vm720_vm9, %v606_v29, %v784_v39  ;;  %881 = vst.msk [vmem:[%s1813_s3 + $0x98] sm:$0xff] %vm861_vm1, %v816_v42  ;;  %v815_v48 = vsel %vm687_vm10, %v441_v34, %v751_v40  ;;  %v451_v50 = vadd.f32 %v1488_v9, %v450_v46  ;;  %v611_v51 = vadd.f32 %v1488_v9, %v610_v47  ;;  %v1112_v52 = vpop.f32.mrb[22].mxu0  ;;  %v1160_v53 = vpop.f32.mrb[22].mxu1 }
 0x110   :  { %913 = vst.msk [vmem:[%s1813_s3 + $0x198] sm:$0xff] %vm861_vm1, %v848_v43  ;;  %v847_v49 = vsel %vm719_vm11, %v601_v35, %v783_v41  ;;  %880 = vst.msk [vmem:[%s1813_s3 + $0x90] sm:$0xff] %vm861_vm1, %v815_v48  ;;  %vm690_vm12 = vcmp.gt.f32.partialorder %v456_v44, 0.0  ;;  %v754_v54 = vmul.f32 0.2, %v456_v44  ;;  %vm722_vm13 = vcmp.gt.f32.partialorder %v616_v45, 0.0 }
 0x111   :  { %912 = vst.msk [vmem:[%s1813_s3 + $0x190] sm:$0xff] %vm861_vm1, %v847_v49  ;;  %v786_v55 = vmul.f32 0.2, %v616_v45  ;;  %vm689_vm14 = vcmp.gt.f32.partialorder %v451_v50, 0.0  ;;  %v753_v56 = vmul.f32 0.2, %v451_v50  ;;  %v466_v60 = vadd.f32 %v1112_v52, %v1488_v9 }
 0x112   :  { %vm721_vm15 = vcmp.gt.f32.partialorder %v611_v51, 0.0  ;;  %v785_v57 = vmul.f32 0.2, %v611_v51  ;;  %v818_v58 = vsel %vm690_vm12, %v456_v44, %v754_v54  ;;  %v626_v61 = vadd.f32 %v1160_v53, %v1488_v9  ;;  %v460_v62 = vpop.f32.mrb[23].mxu0  ;;  %v620_v63 = vpop.f32.mrb[23].mxu1 }
 0x113   :  { %v850_v59 = vsel %vm722_vm13, %v616_v45, %v786_v55  ;;  %883 = vst.msk [vmem:[%s1813_s3 + $0xa8] sm:$0xff] %vm861_vm1, %v818_v58  ;;  %v817_v0 = vsel %vm689_vm14, %v451_v50, %v753_v56  ;;  %v461_v2 = vadd.f32 %v1488_v9, %v460_v62  ;;  %v621_v3 = vadd.f32 %v1488_v9, %v620_v63  ;;  %v1115_v4 = vpop.f32.mrb[24].mxu0  ;;  %v1163_v5 = vpop.f32.mrb[24].mxu1 }
 0x114   :  { %915 = vst.msk [vmem:[%s1813_s3 + $0x1a8] sm:$0xff] %vm861_vm1, %v850_v59  ;;  %v849_v1 = vsel %vm721_vm15, %v611_v51, %v785_v57  ;;  %882 = vst.msk [vmem:[%s1813_s3 + $0xa0] sm:$0xff] %vm861_vm1, %v817_v0  ;;  %vm692_vm0 = vcmp.gt.f32.partialorder %v466_v60, 0.0  ;;  %v756_v6 = vmul.f32 0.2, %v466_v60  ;;  %vm724_vm2 = vcmp.gt.f32.partialorder %v626_v61, 0.0 }
 0x115   :  { %914 = vst.msk [vmem:[%s1813_s3 + $0x1a0] sm:$0xff] %vm861_vm1, %v849_v1  ;;  %v788_v7 = vmul.f32 0.2, %v626_v61  ;;  %vm691_vm3 = vcmp.gt.f32.partialorder %v461_v2, 0.0  ;;  %v755_v8 = vmul.f32 0.2, %v461_v2  ;;  %v476_v13 = vadd.f32 %v1115_v4, %v1488_v9 }
 0x116   :  { %vm723_vm4 = vcmp.gt.f32.partialorder %v621_v3, 0.0  ;;  %v787_v10 = vmul.f32 0.2, %v621_v3  ;;  %v820_v11 = vsel %vm692_vm0, %v466_v60, %v756_v6  ;;  %v636_v14 = vadd.f32 %v1163_v5, %v1488_v9  ;;  %v470_v15 = vpop.f32.mrb[25].mxu0  ;;  %v630_v16 = vpop.f32.mrb[25].mxu1 }
 0x117   :  { %v852_v12 = vsel %vm724_vm2, %v626_v61, %v788_v7  ;;  %885 = vst.msk [vmem:[%s1813_s3 + $0xb8] sm:$0xff] %vm861_vm1, %v820_v11  ;;  %v819_v17 = vsel %vm691_vm3, %v461_v2, %v755_v8  ;;  %v471_v19 = vadd.f32 %v1488_v9, %v470_v15  ;;  %v631_v20 = vadd.f32 %v1488_v9, %v630_v16  ;;  %v1118_v21 = vpop.f32.mrb[26].mxu0  ;;  %v1166_v22 = vpop.f32.mrb[26].mxu1 }
 0x118   :  { %917 = vst.msk [vmem:[%s1813_s3 + $0x1b8] sm:$0xff] %vm861_vm1, %v852_v12  ;;  %v851_v18 = vsel %vm723_vm4, %v621_v3, %v787_v10  ;;  %884 = vst.msk [vmem:[%s1813_s3 + $0xb0] sm:$0xff] %vm861_vm1, %v819_v17  ;;  %vm694_vm5 = vcmp.gt.f32.partialorder %v476_v13, 0.0  ;;  %v758_v23 = vmul.f32 0.2, %v476_v13  ;;  %vm726_vm6 = vcmp.gt.f32.partialorder %v636_v14, 0.0 }
 0x119   :  { %916 = vst.msk [vmem:[%s1813_s3 + $0x1b0] sm:$0xff] %vm861_vm1, %v851_v18  ;;  %v790_v24 = vmul.f32 0.2, %v636_v14  ;;  %vm693_vm7 = vcmp.gt.f32.partialorder %v471_v19, 0.0  ;;  %v757_v25 = vmul.f32 0.2, %v471_v19  ;;  %v486_v29 = vadd.f32 %v1118_v21, %v1488_v9 }
 0x11a   :  { %vm725_vm8 = vcmp.gt.f32.partialorder %v631_v20, 0.0  ;;  %v789_v26 = vmul.f32 0.2, %v631_v20  ;;  %v822_v27 = vsel %vm694_vm5, %v476_v13, %v758_v23  ;;  %v646_v30 = vadd.f32 %v1166_v22, %v1488_v9  ;;  %v480_v31 = vpop.f32.mrb[27].mxu0  ;;  %v640_v32 = vpop.f32.mrb[27].mxu1 }
 0x11b   :  { %v854_v28 = vsel %vm726_vm6, %v636_v14, %v790_v24  ;;  %887 = vst.msk [vmem:[%s1813_s3 + $0xc8] sm:$0xff] %vm861_vm1, %v822_v27  ;;  %v821_v33 = vsel %vm693_vm7, %v471_v19, %v757_v25  ;;  %v481_v35 = vadd.f32 %v1488_v9, %v480_v31  ;;  %v641_v36 = vadd.f32 %v1488_v9, %v640_v32  ;;  %v1121_v37 = vpop.f32.mrb[28].mxu0  ;;  %v1169_v38 = vpop.f32.mrb[28].mxu1 }
 0x11c   :  { %919 = vst.msk [vmem:[%s1813_s3 + $0x1c8] sm:$0xff] %vm861_vm1, %v854_v28  ;;  %v853_v34 = vsel %vm725_vm8, %v631_v20, %v789_v26  ;;  %886 = vst.msk [vmem:[%s1813_s3 + $0xc0] sm:$0xff] %vm861_vm1, %v821_v33  ;;  %vm696_vm9 = vcmp.gt.f32.partialorder %v486_v29, 0.0  ;;  %v760_v39 = vmul.f32 0.2, %v486_v29  ;;  %vm728_vm10 = vcmp.gt.f32.partialorder %v646_v30, 0.0 }
 0x11d   :  { %918 = vst.msk [vmem:[%s1813_s3 + $0x1c0] sm:$0xff] %vm861_vm1, %v853_v34  ;;  %v792_v40 = vmul.f32 0.2, %v646_v30  ;;  %vm695_vm11 = vcmp.gt.f32.partialorder %v481_v35, 0.0  ;;  %v759_v41 = vmul.f32 0.2, %v481_v35  ;;  %v496_v45 = vadd.f32 %v1121_v37, %v1488_v9 }
 0x11e   :  { %vm727_vm12 = vcmp.gt.f32.partialorder %v641_v36, 0.0  ;;  %v791_v42 = vmul.f32 0.2, %v641_v36  ;;  %v824_v43 = vsel %vm696_vm9, %v486_v29, %v760_v39  ;;  %v656_v46 = vadd.f32 %v1169_v38, %v1488_v9  ;;  %v490_v47 = vpop.f32.mrb[29].mxu0  ;;  %v650_v48 = vpop.f32.mrb[29].mxu1 }
 0x11f   :  { %v856_v44 = vsel %vm728_vm10, %v646_v30, %v792_v40  ;;  %889 = vst.msk [vmem:[%s1813_s3 + $0xd8] sm:$0xff] %vm861_vm1, %v824_v43  ;;  %v823_v49 = vsel %vm695_vm11, %v481_v35, %v759_v41  ;;  %v491_v51 = vadd.f32 %v1488_v9, %v490_v47  ;;  %v651_v52 = vadd.f32 %v1488_v9, %v650_v48  ;;  %v1124_v53 = vpop.f32.mrb[30].mxu0  ;;  %v1172_v54 = vpop.f32.mrb[30].mxu1 }
 0x120   :  { %921 = vst.msk [vmem:[%s1813_s3 + $0x1d8] sm:$0xff] %vm861_vm1, %v856_v44  ;;  %v855_v50 = vsel %vm727_vm12, %v641_v36, %v791_v42  ;;  %888 = vst.msk [vmem:[%s1813_s3 + $0xd0] sm:$0xff] %vm861_vm1, %v823_v49  ;;  %vm698_vm13 = vcmp.gt.f32.partialorder %v496_v45, 0.0  ;;  %v762_v55 = vmul.f32 0.2, %v496_v45  ;;  %vm730_vm14 = vcmp.gt.f32.partialorder %v656_v46, 0.0 }
 0x121   :  { %920 = vst.msk [vmem:[%s1813_s3 + $0x1d0] sm:$0xff] %vm861_vm1, %v855_v50  ;;  %v794_v56 = vmul.f32 0.2, %v656_v46  ;;  %vm697_vm15 = vcmp.gt.f32.partialorder %v491_v51, 0.0  ;;  %v761_v57 = vmul.f32 0.2, %v491_v51  ;;  %v506_v61 = vadd.f32 %v1124_v53, %v1488_v9 }
 0x122   :  { %vm729_vm0 = vcmp.gt.f32.partialorder %v651_v52, 0.0  ;;  %v793_v58 = vmul.f32 0.2, %v651_v52  ;;  %v826_v59 = vsel %vm698_vm13, %v496_v45, %v762_v55  ;;  %v666_v62 = vadd.f32 %v1172_v54, %v1488_v9  ;;  %v500_v63 = vpop.f32.mrb[31].mxu0  ;;  %v660_v0 = vpop.f32.mrb[31].mxu1 }
 0x123   :  { %v858_v60 = vsel %vm730_vm14, %v656_v46, %v794_v56  ;;  %891 = vst.msk [vmem:[%s1813_s3 + $0xe8] sm:$0xff] %vm861_vm1, %v826_v59  ;;  %v825_v1 = vsel %vm697_vm15, %v491_v51, %v761_v57  ;;  %v501_v3 = vadd.f32 %v1488_v9, %v500_v63  ;;  %v661_v4 = vadd.f32 %v1488_v9, %v660_v0 }
 0x124   :  { %923 = vst.msk [vmem:[%s1813_s3 + $0x1e8] sm:$0xff] %vm861_vm1, %v858_v60  ;;  %v857_v2 = vsel %vm729_vm0, %v651_v52, %v793_v58  ;;  %890 = vst.msk [vmem:[%s1813_s3 + $0xe0] sm:$0xff] %vm861_vm1, %v825_v1  ;;  %vm700_vm2 = vcmp.gt.f32.partialorder %v506_v61, 0.0  ;;  %v764_v5 = vmul.f32 0.2, %v506_v61  ;;  %vm732_vm3 = vcmp.gt.f32.partialorder %v666_v62, 0.0 }
 0x125   :  { %922 = vst.msk [vmem:[%s1813_s3 + $0x1e0] sm:$0xff] %vm861_vm1, %v857_v2  ;;  %v796_v6 = vmul.f32 0.2, %v666_v62  ;;  %vm699_vm4 = vcmp.gt.f32.partialorder %v501_v3, 0.0  ;;  %v763_v7 = vmul.f32 0.2, %v501_v3 }
 0x126   :  { %vm731_vm5 = vcmp.gt.f32.partialorder %v661_v4, 0.0  ;;  %v795_v8 = vmul.f32 0.2, %v661_v4  ;;  %v828_v10 = vsel %vm700_vm2, %v506_v61, %v764_v5 }
 0x127   :  { %v860_v9 = vsel %vm732_vm3, %v666_v62, %v796_v6  ;;  %893 = vst.msk [vmem:[%s1813_s3 + $0xf8] sm:$0xff] %vm861_vm1, %v828_v10  ;;  %v827_v11 = vsel %vm699_vm4, %v501_v3, %v763_v7 }
 0x128   :  { %925 = vst.msk [vmem:[%s1813_s3 + $0x1f8] sm:$0xff] %vm861_vm1, %v860_v9  ;;  %v859_v12 = vsel %vm731_vm5, %v661_v4, %v795_v8  ;;  %892 = vst.msk [vmem:[%s1813_s3 + $0xf0] sm:$0xff] %vm861_vm1, %v827_v11 }
 0x129   :  { %924 = vst.msk [vmem:[%s1813_s3 + $0x1f0] sm:$0xff] %vm861_vm1, %v859_v12 }

// kernel: d_net_multi_forward.10
= control target key start
LH: loop header
LB: loop body
LE: loop exit
PB: predicated region body
PF: predicated region fallthrough
CT: control target
= control target key end

     0   :  { %vm439_vm0 = vcmask 523264   ;;  %s1539_s1 = inlined_call_operand.vmem [shape: f32[512,64], index: 1, kind: input, shape index: {}]   ;;  %s1540_s0 = inlined_call_operand.vmem [shape: f32[128,512], index: 0, kind: input, shape index: {}]   ;;  %s1541_s2 = inlined_call_operand.vmem [shape: f32[1,64], index: 2, kind: input, shape index: {}]   ;;  %s1542_s3 = inlined_call_operand.vmem [shape: f32[2,64,64], index: 3, kind: output, shape index: {}]  }
   0x1   :  { %v94_v0 = vld [vmem:[%s1539_s1 + $0x80] sm:$0xff]  ;;  %v95_v1 = vld [vmem:[%s1539_s1 + $0x88] sm:$0xff]  ;;  %v96_v11 = vld [vmem:[%s1539_s1 + $0x90] sm:$0xff] }
   0x2   :  { %v78_v2 = vld [vmem:[%s1539_s1] sm:$0xff]  ;;  %v810_v3 = vpack.c.bf16 %v95_v1, %v94_v0  ;;  %v79_v4 = vld [vmem:[%s1539_s1 + $0x8] sm:$0xff]  ;;  %v97_v13 = vld [vmem:[%s1539_s1 + $0x98] sm:$0xff] }
   0x3   :  { %v126_v5 = vld [vmem:[%s1539_s1 + $0x180] sm:$0xff]  ;;  %v127_v6 = vld [vmem:[%s1539_s1 + $0x188] sm:$0xff]  ;;  %v812_v7 = vpack.c.bf16 %v79_v4, %v78_v2  ;;  %v80_v14 = vld [vmem:[%s1539_s1 + $0x10] sm:$0xff]  ;;  %v814_v16 = vpack.c.bf16 %v97_v13, %v96_v11 }
   0x4   :  { %v842_v8 = vpack.c.bf16 %v127_v6, %v126_v5  ;;  %v110_v9 = vld [vmem:[%s1539_s1 + $0x100] sm:$0xff]  ;;  %v111_v10 = vld [vmem:[%s1539_s1 + $0x108] sm:$0xff]  ;;  %811 = vmatprep.subr.bf16.mxu0 %v810_v3  ;;  %v81_v15 = vld [vmem:[%s1539_s1 + $0x18] sm:$0xff] }
   0x5   :  { %v844_v12 = vpack.c.bf16 %v111_v10, %v110_v9  ;;  %813 = vmatpush3.bf16.msra.mxu0 %v812_v7  ;;  %v816_v17 = vpack.c.bf16 %v81_v15, %v80_v14  ;;  %v128_v18 = vld [vmem:[%s1539_s1 + $0x190] sm:$0xff]  ;;  %v129_v19 = vld [vmem:[%s1539_s1 + $0x198] sm:$0xff]  ;;  %v98_v23 = vld [vmem:[%s1539_s1 + $0xa0] sm:$0xff] }
   0x6   :  { %843 = vmatprep.subr.bf16.mxu1 %v842_v8  ;;  %v112_v20 = vld [vmem:[%s1539_s1 + $0x110] sm:$0xff]  ;;  %v846_v21 = vpack.c.bf16 %v129_v19, %v128_v18  ;;  %v113_v22 = vld [vmem:[%s1539_s1 + $0x118] sm:$0xff]  ;;  %v99_v24 = vld [vmem:[%s1539_s1 + $0xa8] sm:$0xff]  ;;  %815 = vmatprep.subr.bf16.mxu0 %v814_v16 }
   0x7   :  { %845 = vmatpush3.bf16.msra.mxu1 %v844_v12  ;;  %v848_v25 = vpack.c.bf16 %v113_v22, %v112_v20  ;;  %v818_v26 = vpack.c.bf16 %v99_v24, %v98_v23  ;;  %v82_v27 = vld [vmem:[%s1539_s1 + $0x20] sm:$0xff]  ;;  %v83_v28 = vld [vmem:[%s1539_s1 + $0x28] sm:$0xff]  ;;  %v100_v35 = vld [vmem:[%s1539_s1 + $0xb0] sm:$0xff] }
   0x8   :  { %v130_v29 = vld [vmem:[%s1539_s1 + $0x1a0] sm:$0xff]  ;;  %847 = vmatprep.subr.bf16.mxu1 %v846_v21  ;;  %v131_v30 = vld [vmem:[%s1539_s1 + $0x1a8] sm:$0xff]  ;;  %v820_v33 = vpack.c.bf16 %v83_v28, %v82_v27  ;;  %v101_v36 = vld [vmem:[%s1539_s1 + $0xb8] sm:$0xff] }
   0x9   :  { %v114_v31 = vld [vmem:[%s1539_s1 + $0x120] sm:$0xff]  ;;  %v115_v32 = vld [vmem:[%s1539_s1 + $0x128] sm:$0xff]  ;;  %817 = vmatpush3.bf16.msra.mxu0 %v816_v17  ;;  %v850_v34 = vpack.c.bf16 %v131_v30, %v130_v29  ;;  %v84_v37 = vld [vmem:[%s1539_s1 + $0x30] sm:$0xff]  ;;  %v822_v39 = vpack.c.bf16 %v101_v36, %v100_v35 }
   0xa   :  { %819 = vmatprep.subr.bf16.mxu0 %v818_v26  ;;  %v852_v38 = vpack.c.bf16 %v115_v32, %v114_v31  ;;  %v85_v40 = vld [vmem:[%s1539_s1 + $0x38] sm:$0xff]  ;;  %v132_v41 = vld [vmem:[%s1539_s1 + $0x1b0] sm:$0xff]  ;;  %v102_v46 = vld [vmem:[%s1539_s1 + $0xc0] sm:$0xff] }
   0xb   :  { %849 = vmatpush3.bf16.msra.mxu1 %v848_v25  ;;  %v133_v42 = vld [vmem:[%s1539_s1 + $0x1b8] sm:$0xff]  ;;  %v116_v44 = vld [vmem:[%s1539_s1 + $0x130] sm:$0xff]  ;;  %v103_v47 = vld [vmem:[%s1539_s1 + $0xc8] sm:$0xff]  ;;  %v824_v48 = vpack.c.bf16 %v85_v40, %v84_v37 }
   0xc   :  { %851 = vmatprep.subr.bf16.mxu1 %v850_v34  ;;  %v854_v43 = vpack.c.bf16 %v133_v42, %v132_v41  ;;  %v117_v45 = vld [vmem:[%s1539_s1 + $0x138] sm:$0xff]  ;;  %v134_v49 = vld [vmem:[%s1539_s1 + $0x1c0] sm:$0xff]  ;;  %v135_v50 = vld [vmem:[%s1539_s1 + $0x1c8] sm:$0xff]  ;;  %v826_v52 = vpack.c.bf16 %v103_v47, %v102_v46 }
   0xd   :  { %821 = vmatpush3.bf16.msra.mxu0 %v820_v33  ;;  %v856_v51 = vpack.c.bf16 %v117_v45, %v116_v44  ;;  %v86_v53 = vld [vmem:[%s1539_s1 + $0x40] sm:$0xff]  ;;  %v87_v54 = vld [vmem:[%s1539_s1 + $0x48] sm:$0xff]  ;;  %v858_v56 = vpack.c.bf16 %v135_v50, %v134_v49  ;;  %v104_v58 = vld [vmem:[%s1539_s1 + $0xd0] sm:$0xff] }
   0xe   :  { %823 = vmatprep.subr.bf16.mxu0 %v822_v39  ;;  %v118_v55 = vld [vmem:[%s1539_s1 + $0x140] sm:$0xff]  ;;  %v119_v57 = vld [vmem:[%s1539_s1 + $0x148] sm:$0xff]  ;;  %v105_v59 = vld [vmem:[%s1539_s1 + $0xd8] sm:$0xff]  ;;  %v828_v62 = vpack.c.bf16 %v87_v54, %v86_v53 }
   0xf   :  { %853 = vmatpush3.bf16.msra.mxu1 %v852_v38  ;;  %v136_v60 = vld [vmem:[%s1539_s1 + $0x1d0] sm:$0xff]  ;;  %v137_v61 = vld [vmem:[%s1539_s1 + $0x1d8] sm:$0xff]  ;;  %v860_v63 = vpack.c.bf16 %v119_v57, %v118_v55  ;;  %v830_v0 = vpack.c.bf16 %v105_v59, %v104_v58  ;;  %v106_v6 = vld [vmem:[%s1539_s1 + $0xe0] sm:$0xff] }
  0x10   :  { %855 = vmatprep.subr.bf16.mxu1 %v854_v43  ;;  %v88_v1 = vld [vmem:[%s1539_s1 + $0x50] sm:$0xff]  ;;  %v89_v2 = vld [vmem:[%s1539_s1 + $0x58] sm:$0xff]  ;;  %v862_v4 = vpack.c.bf16 %v137_v61, %v136_v60  ;;  %v107_v7 = vld [vmem:[%s1539_s1 + $0xe8] sm:$0xff] }
  0x11   :  { %825 = vmatpush3.bf16.msra.mxu0 %v824_v48  ;;  %v120_v3 = vld [vmem:[%s1539_s1 + $0x150] sm:$0xff]  ;;  %v121_v5 = vld [vmem:[%s1539_s1 + $0x158] sm:$0xff]  ;;  %v138_v8 = vld [vmem:[%s1539_s1 + $0x1e0] sm:$0xff]  ;;  %v832_v10 = vpack.c.bf16 %v89_v2, %v88_v1  ;;  %v834_v14 = vpack.c.bf16 %v107_v7, %v106_v6 }
  0x12   :  { %827 = vmatprep.subr.bf16.mxu0 %v826_v52  ;;  %v139_v9 = vld [vmem:[%s1539_s1 + $0x1e8] sm:$0xff]  ;;  %v90_v11 = vld [vmem:[%s1539_s1 + $0x60] sm:$0xff]  ;;  %v864_v13 = vpack.c.bf16 %v121_v5, %v120_v3  ;;  %v108_v19 = vld [vmem:[%s1539_s1 + $0xf0] sm:$0xff] }
  0x13   :  { %857 = vmatpush3.bf16.msra.mxu1 %v856_v51  ;;  %v91_v12 = vld [vmem:[%s1539_s1 + $0x68] sm:$0xff]  ;;  %v122_v15 = vld [vmem:[%s1539_s1 + $0x160] sm:$0xff]  ;;  %v866_v18 = vpack.c.bf16 %v139_v9, %v138_v8  ;;  %v109_v20 = vld [vmem:[%s1539_s1 + $0xf8] sm:$0xff] }
  0x14   :  { %859 = vmatprep.subr.bf16.mxu1 %v858_v56  ;;  %v123_v16 = vld [vmem:[%s1539_s1 + $0x168] sm:$0xff]  ;;  %v17_v21 = vld [vmem:[%s1540_s0 + $0x18] sm:$0xff]  ;;  %v140_v22 = vld [vmem:[%s1539_s1 + $0x1f0] sm:$0xff]  ;;  %v836_v24 = vpack.c.bf16 %v91_v12, %v90_v11  ;;  %v838_v26 = vpack.c.bf16 %v109_v20, %v108_v19 }
  0x15   :  { %829 = vmatpush3.bf16.msra.mxu0 %v828_v62  ;;  %v15_v17 = vld [vmem:[%s1540_s0 + $0x8] sm:$0xff]  ;;  %v141_v23 = vld [vmem:[%s1539_s1 + $0x1f8] sm:$0xff]  ;;  %358 = vmatprep.mubr.f32.mxu1 %v17_v21  ;;  %v868_v25 = vpack.c.bf16 %v123_v16, %v122_v15  ;;  %v92_v27 = vld [vmem:[%s1539_s1 + $0x70] sm:$0xff] }
  0x16   :  { %831 = vmatprep.subr.bf16.mxu0 %v830_v0  ;;  %213 = vmatprep.mubr.f32.mxu0 %v15_v17  ;;  %v93_v28 = vld [vmem:[%s1539_s1 + $0x78] sm:$0xff]  ;;  %v870_v29 = vpack.c.bf16 %v141_v23, %v140_v22  ;;  %v124_v30 = vld [vmem:[%s1539_s1 + $0x170] sm:$0xff]  ;;  %v14_v34 = vld [vmem:[%s1540_s0] sm:$0xff] }
  0x17   :  { %861 = vmatpush3.bf16.msra.mxu1 %v860_v63  ;;  %v125_v31 = vld [vmem:[%s1539_s1 + $0x178] sm:$0xff]  ;;  %v840_v32 = vpack.c.bf16 %v93_v28, %v92_v27  ;;  %v16_v35 = vld [vmem:[%s1540_s0 + $0x10] sm:$0xff]  ;;  %v19_v36 = vld [vmem:[%s1540_s0 + $0x28] sm:$0xff] }
  0x18   :  { %863 = vmatprep.subr.bf16.mxu1 %v862_v4  ;;  %v872_v33 = vpack.c.bf16 %v125_v31, %v124_v30  ;;  %v21_v37 = vld [vmem:[%s1540_s0 + $0x38] sm:$0xff]  ;;  %v18_v38 = vld [vmem:[%s1540_s0 + $0x20] sm:$0xff]  ;;  %v20_v39 = vld [vmem:[%s1540_s0 + $0x30] sm:$0xff] }
  0x19   :  { %833 = vmatpush3.bf16.msra.mxu0 %v832_v10  ;;  %v23_v40 = vld [vmem:[%s1540_s0 + $0x48] sm:$0xff]  ;;  %v25_v41 = vld [vmem:[%s1540_s0 + $0x58] sm:$0xff]  ;;  %v22_v42 = vld [vmem:[%s1540_s0 + $0x40] sm:$0xff] }
  0x1a   :  { %835 = vmatprep.subr.bf16.mxu0 %v834_v14  ;;  %v24_v43 = vld [vmem:[%s1540_s0 + $0x50] sm:$0xff]  ;;  %v27_v44 = vld [vmem:[%s1540_s0 + $0x68] sm:$0xff]  ;;  %v29_v45 = vld [vmem:[%s1540_s0 + $0x78] sm:$0xff] }
  0x1b   :  { %865 = vmatpush3.bf16.msra.mxu1 %v864_v13  ;;  %v26_v46 = vld [vmem:[%s1540_s0 + $0x60] sm:$0xff]  ;;  %v28_v47 = vld [vmem:[%s1540_s0 + $0x70] sm:$0xff]  ;;  %v31_v48 = vld [vmem:[%s1540_s0 + $0x88] sm:$0xff] }
  0x1c   :  { %867 = vmatprep.subr.bf16.mxu1 %v866_v18  ;;  %v33_v49 = vld [vmem:[%s1540_s0 + $0x98] sm:$0xff]  ;;  %v30_v50 = vld [vmem:[%s1540_s0 + $0x80] sm:$0xff]  ;;  %v32_v51 = vld [vmem:[%s1540_s0 + $0x90] sm:$0xff] }
  0x1d   :  { %837 = vmatpush3.bf16.msra.mxu0 %v836_v24  ;;  %v35_v52 = vld [vmem:[%s1540_s0 + $0xa8] sm:$0xff]  ;;  %v37_v53 = vld [vmem:[%s1540_s0 + $0xb8] sm:$0xff]  ;;  %v34_v54 = vld [vmem:[%s1540_s0 + $0xa0] sm:$0xff] }
  0x1e   :  { %839 = vmatprep.subr.bf16.mxu0 %v838_v26  ;;  %v36_v55 = vld [vmem:[%s1540_s0 + $0xb0] sm:$0xff]  ;;  %v39_v56 = vld [vmem:[%s1540_s0 + $0xc8] sm:$0xff]  ;;  %v41_v57 = vld [vmem:[%s1540_s0 + $0xd8] sm:$0xff] }
  0x1f   :  { %869 = vmatpush3.bf16.msra.mxu1 %v868_v25  ;;  %v38_v58 = vld [vmem:[%s1540_s0 + $0xc0] sm:$0xff]  ;;  %v40_v59 = vld [vmem:[%s1540_s0 + $0xd0] sm:$0xff]  ;;  %v43_v60 = vld [vmem:[%s1540_s0 + $0xe8] sm:$0xff] }
  0x20   :  { %871 = vmatprep.subr.bf16.mxu1 %v870_v29  ;;  %v45_v61 = vld [vmem:[%s1540_s0 + $0xf8] sm:$0xff]  ;;  %v42_v62 = vld [vmem:[%s1540_s0 + $0xe0] sm:$0xff]  ;;  %v44_v63 = vld [vmem:[%s1540_s0 + $0xf0] sm:$0xff] }
  0x21   :  { %841 = vmatpush3.bf16.msra.mxu0 %v840_v32  ;;  %v47_v0 = vld [vmem:[%s1540_s0 + $0x108] sm:$0xff]  ;;  %v49_v1 = vld [vmem:[%s1540_s0 + $0x118] sm:$0xff]  ;;  %v46_v2 = vld [vmem:[%s1540_s0 + $0x100] sm:$0xff] }
  0x22   :  { %v48_v3 = vld [vmem:[%s1540_s0 + $0x110] sm:$0xff]  ;;  %v51_v4 = vld [vmem:[%s1540_s0 + $0x128] sm:$0xff]  ;;  %v53_v5 = vld [vmem:[%s1540_s0 + $0x138] sm:$0xff] }
  0x23   :  { %873 = vmatpush3.bf16.msra.mxu1 %v872_v33  ;;  %v50_v6 = vld [vmem:[%s1540_s0 + $0x120] sm:$0xff]  ;;  %v52_v7 = vld [vmem:[%s1540_s0 + $0x130] sm:$0xff]  ;;  %v55_v8 = vld [vmem:[%s1540_s0 + $0x148] sm:$0xff] }
  0x24   :  { %214 = vmatmul.mubr.f32.vlgmr.msra.gmra.mrb[0].mxu0 %v14_v34  ;;  %v57_v9 = vld [vmem:[%s1540_s0 + $0x158] sm:$0xff]  ;;  %v54_v10 = vld [vmem:[%s1540_s0 + $0x140] sm:$0xff]  ;;  %v56_v11 = vld [vmem:[%s1540_s0 + $0x150] sm:$0xff] }
  0x25   :  { %218 = vmatprep.mubr.f32.mxu0 %v19_v36  ;;  %v59_v12 = vld [vmem:[%s1540_s0 + $0x168] sm:$0xff]  ;;  %v61_v13 = vld [vmem:[%s1540_s0 + $0x178] sm:$0xff]  ;;  %v58_v14 = vld [vmem:[%s1540_s0 + $0x160] sm:$0xff] }
  0x26   :  { %359 = vmatmul.mubr.f32.vlgmr.msra.gmra.mrb[0].mxu1 %v16_v35  ;;  %v60_v15 = vld [vmem:[%s1540_s0 + $0x170] sm:$0xff]  ;;  %v63_v16 = vld [vmem:[%s1540_s0 + $0x188] sm:$0xff]  ;;  %v65_v17 = vld [vmem:[%s1540_s0 + $0x198] sm:$0xff] }
  0x27   :  { %363 = vmatprep.mubr.f32.mxu1 %v21_v37  ;;  %v62_v18 = vld [vmem:[%s1540_s0 + $0x180] sm:$0xff]  ;;  %v64_v19 = vld [vmem:[%s1540_s0 + $0x190] sm:$0xff]  ;;  %v67_v20 = vld [vmem:[%s1540_s0 + $0x1a8] sm:$0xff] }
  0x28   :  { %219 = vmatmul.mubr.f32.gmra.mrb[2].mxu0 %v18_v38  ;;  %v69_v21 = vld [vmem:[%s1540_s0 + $0x1b8] sm:$0xff]  ;;  %v66_v22 = vld [vmem:[%s1540_s0 + $0x1a0] sm:$0xff]  ;;  %v68_v23 = vld [vmem:[%s1540_s0 + $0x1b0] sm:$0xff] }
  0x29   :  { %223 = vmatprep.mubr.f32.mxu0 %v23_v40  ;;  %v71_v24 = vld [vmem:[%s1540_s0 + $0x1c8] sm:$0xff]  ;;  %v73_v25 = vld [vmem:[%s1540_s0 + $0x1d8] sm:$0xff]  ;;  %v70_v26 = vld [vmem:[%s1540_s0 + $0x1c0] sm:$0xff] }
  0x2a   :  { %364 = vmatmul.mubr.f32.gmra.mrb[2].mxu1 %v20_v39  ;;  %v72_v27 = vld [vmem:[%s1540_s0 + $0x1d0] sm:$0xff]  ;;  %v75_v28 = vld [vmem:[%s1540_s0 + $0x1e8] sm:$0xff]  ;;  %v77_v29 = vld [vmem:[%s1540_s0 + $0x1f8] sm:$0xff] }
  0x2b   :  { %368 = vmatprep.mubr.f32.mxu1 %v25_v41  ;;  %v74_v30 = vld [vmem:[%s1540_s0 + $0x1e0] sm:$0xff]  ;;  %v76_v31 = vld [vmem:[%s1540_s0 + $0x1f0] sm:$0xff] }
  0x2c   :  { %224 = vmatmul.mubr.f32.gmra.mrb[4].mxu0 %v22_v42  ;;  %v1285_v33 = vld [vmem:[%s1541_s2] ss:$0 sm:$0xff] }
  0x2d   :  { %228 = vmatprep.mubr.f32.mxu0 %v27_v44 }
  0x2e   :  { %369 = vmatmul.mubr.f32.gmra.mrb[4].mxu1 %v24_v43 }
  0x2f   :  { %373 = vmatprep.mubr.f32.mxu1 %v29_v45 }
  0x30   :  { %229 = vmatmul.mubr.f32.gmra.mrb[6].mxu0 %v26_v46 }
  0x31   :  { %233 = vmatprep.mubr.f32.mxu0 %v31_v48 }
  0x32   :  { %374 = vmatmul.mubr.f32.gmra.mrb[6].mxu1 %v28_v47 }
  0x33   :  { %378 = vmatprep.mubr.f32.mxu1 %v33_v49 }
  0x34   :  { %234 = vmatmul.mubr.f32.gmra.mrb[8].mxu0 %v30_v50 }
  0x35   :  { %238 = vmatprep.mubr.f32.mxu0 %v35_v52 }
  0x36   :  { %379 = vmatmul.mubr.f32.gmra.mrb[8].mxu1 %v32_v51 }
  0x37   :  { %383 = vmatprep.mubr.f32.mxu1 %v37_v53 }
  0x38   :  { %239 = vmatmul.mubr.f32.gmra.mrb[10].mxu0 %v34_v54 }
  0x39   :  { %243 = vmatprep.mubr.f32.mxu0 %v39_v56 }
  0x3a   :  { %384 = vmatmul.mubr.f32.gmra.mrb[10].mxu1 %v36_v55 }
  0x3b   :  { %388 = vmatprep.mubr.f32.mxu1 %v41_v57 }
  0x3c   :  { %244 = vmatmul.mubr.f32.gmra.mrb[12].mxu0 %v38_v58 }
  0x3d   :  { %248 = vmatprep.mubr.f32.mxu0 %v43_v60 }
  0x3e   :  { %389 = vmatmul.mubr.f32.gmra.mrb[12].mxu1 %v40_v59 }
  0x3f   :  { %393 = vmatprep.mubr.f32.mxu1 %v45_v61 }
  0x40   :  { %249 = vmatmul.mubr.f32.gmra.mrb[14].mxu0 %v42_v62 }
  0x41   :  { %253 = vmatprep.mubr.f32.mxu0 %v47_v0 }
  0x42   :  { %394 = vmatmul.mubr.f32.gmra.mrb[14].mxu1 %v44_v63 }
  0x43   :  { %398 = vmatprep.mubr.f32.mxu1 %v49_v1 }
  0x44   :  { %254 = vmatmul.mubr.f32.gmra.mrb[16].mxu0 %v46_v2 }
  0x45   :  { %258 = vmatprep.mubr.f32.mxu0 %v51_v4 }
  0x46   :  { %399 = vmatmul.mubr.f32.gmra.mrb[16].mxu1 %v48_v3 }
  0x47   :  { %403 = vmatprep.mubr.f32.mxu1 %v53_v5 }
  0x48   :  { %259 = vmatmul.mubr.f32.gmra.mrb[18].mxu0 %v50_v6 }
  0x49   :  { %263 = vmatprep.mubr.f32.mxu0 %v55_v8 }
  0x4a   :  { %404 = vmatmul.mubr.f32.gmra.mrb[18].mxu1 %v52_v7 }
  0x4b   :  { %408 = vmatprep.mubr.f32.mxu1 %v57_v9 }
  0x4c   :  { %264 = vmatmul.mubr.f32.gmra.mrb[20].mxu0 %v54_v10 }
  0x4d   :  { %268 = vmatprep.mubr.f32.mxu0 %v59_v12 }
  0x4e   :  { %409 = vmatmul.mubr.f32.gmra.mrb[20].mxu1 %v56_v11 }
  0x4f   :  { %413 = vmatprep.mubr.f32.mxu1 %v61_v13 }
  0x50   :  { %269 = vmatmul.mubr.f32.gmra.mrb[22].mxu0 %v58_v14 }
  0x51   :  { %273 = vmatprep.mubr.f32.mxu0 %v63_v16 }
  0x52   :  { %414 = vmatmul.mubr.f32.gmra.mrb[22].mxu1 %v60_v15 }
  0x53   :  { %418 = vmatprep.mubr.f32.mxu1 %v65_v17 }
  0x54   :  { %274 = vmatmul.mubr.f32.gmra.mrb[24].mxu0 %v62_v18 }
  0x55   :  { %278 = vmatprep.mubr.f32.mxu0 %v67_v20 }
  0x56   :  { %419 = vmatmul.mubr.f32.gmra.mrb[24].mxu1 %v64_v19 }
  0x57   :  { %423 = vmatprep.mubr.f32.mxu1 %v69_v21 }
  0x58   :  { %279 = vmatmul.mubr.f32.gmra.mrb[26].mxu0 %v66_v22 }
  0x59   :  { %283 = vmatprep.mubr.f32.mxu0 %v71_v24 }
  0x5a   :  { %424 = vmatmul.mubr.f32.gmra.mrb[26].mxu1 %v68_v23 }
  0x5b   :  { %428 = vmatprep.mubr.f32.mxu1 %v73_v25 }
  0x5c   :  { %284 = vmatmul.mubr.f32.gmra.mrb[28].mxu0 %v70_v26 }
  0x5d   :  { %288 = vmatprep.mubr.f32.mxu0 %v75_v28 }
  0x5e   :  { %429 = vmatmul.mubr.f32.gmra.mrb[28].mxu1 %v72_v27 }
  0x5f   :  { %433 = vmatprep.mubr.f32.mxu1 %v77_v29 }
  0x60   :  { %289 = vmatmul.mubr.f32.gmra.mrb[30].mxu0 %v74_v30 }
  0x62   :  { %434 = vmatmul.mubr.f32.gmra.mrb[30].mxu1 %v76_v31 }
  0xf7   :  { %v682_v32 = vpop.f32.mrb[0].mxu0 }
  0xf8   :  { %v683_v34 = vpop.f32.mrb[1].mxu0 }
  0xf9   :  { %v762_v35 = vpop.f32.mrb[0].mxu1  ;;  %v684_v36 = vadd.f32 %v683_v34, %v682_v32 }
  0xfa   :  { %v763_v37 = vpop.f32.mrb[1].mxu1 }
  0xfb   :  { %v764_v38 = vadd.f32 %v763_v37, %v762_v35  ;;  %v216_v39 = vadd.f32 %v684_v36, %v1285_v33  ;;  %v685_v40 = vpop.f32.mrb[2].mxu0 }
  0xfc   :  { %v686_v41 = vpop.f32.mrb[3].mxu0 }
  0xfd   :  { %v765_v42 = vpop.f32.mrb[2].mxu1  ;;  %v1288_v43 = vadd.f32 %v764_v38, %v216_v39  ;;  %v687_v44 = vadd.f32 %v686_v41, %v685_v40 }
  0xfe   :  { %v766_v45 = vpop.f32.mrb[3].mxu1 }
  0xff   :  { %v767_v46 = vadd.f32 %v766_v45, %v765_v42  ;;  %v221_v47 = vadd.f32 %v687_v44, %v1285_v33  ;;  %v688_v48 = vpop.f32.mrb[4].mxu0  ;;  %v440_v55 = vsel %vm439_vm0, %v1288_v43, 0.0 }
 0x100   :  { %v689_v49 = vpop.f32.mrb[5].mxu0 }
 0x101   :  { %v768_v50 = vpop.f32.mrb[4].mxu1  ;;  %v1291_v51 = vadd.f32 %v767_v46, %v221_v47  ;;  %v690_v52 = vadd.f32 %v689_v49, %v688_v48 }
 0x102   :  { %v769_v53 = vpop.f32.mrb[5].mxu1 }
 0x103   :  { %v770_v54 = vadd.f32 %v769_v53, %v768_v50  ;;  %v441_v56 = vsel %vm439_vm0, %v1291_v51, 0.0  ;;  %v226_v57 = vadd.f32 %v690_v52, %v1285_v33  ;;  %v691_v58 = vpop.f32.mrb[6].mxu0 }
 0x104   :  { %v442_v59 = vadd.f32 %v441_v56, %v440_v55  ;;  %v692_v60 = vpop.f32.mrb[7].mxu0 }
 0x105   :  { %v771_v61 = vpop.f32.mrb[6].mxu1  ;;  %v1298_v62 = vadd.f32 %v770_v54, %v226_v57  ;;  %v693_v63 = vadd.f32 %v692_v60, %v691_v58 }
 0x106   :  { %v772_v0 = vpop.f32.mrb[7].mxu1 }
 0x107   :  { %v773_v1 = vadd.f32 %v772_v0, %v771_v61  ;;  %v443_v2 = vsel %vm439_vm0, %v1298_v62, 0.0  ;;  %v231_v3 = vadd.f32 %v693_v63, %v1285_v33  ;;  %v694_v4 = vpop.f32.mrb[8].mxu0 }
 0x108   :  { %v444_v5 = vadd.f32 %v443_v2, %v442_v59  ;;  %v695_v6 = vpop.f32.mrb[9].mxu0 }
 0x109   :  { %v774_v7 = vpop.f32.mrb[8].mxu1  ;;  %v1303_v8 = vadd.f32 %v773_v1, %v231_v3  ;;  %v696_v9 = vadd.f32 %v695_v6, %v694_v4 }
 0x10a   :  { %v775_v10 = vpop.f32.mrb[9].mxu1 }
 0x10b   :  { %v776_v11 = vadd.f32 %v775_v10, %v774_v7  ;;  %v445_v12 = vsel %vm439_vm0, %v1303_v8, 0.0  ;;  %v236_v13 = vadd.f32 %v696_v9, %v1285_v33  ;;  %v697_v14 = vpop.f32.mrb[10].mxu0 }
 0x10c   :  { %v446_v15 = vadd.f32 %v445_v12, %v444_v5  ;;  %v698_v16 = vpop.f32.mrb[11].mxu0 }
 0x10d   :  { %v777_v17 = vpop.f32.mrb[10].mxu1  ;;  %v1308_v18 = vadd.f32 %v776_v11, %v236_v13  ;;  %v699_v19 = vadd.f32 %v698_v16, %v697_v14 }
 0x10e   :  { %v778_v20 = vpop.f32.mrb[11].mxu1 }
 0x10f   :  { %v779_v21 = vadd.f32 %v778_v20, %v777_v17  ;;  %v447_v22 = vsel %vm439_vm0, %v1308_v18, 0.0  ;;  %v241_v23 = vadd.f32 %v699_v19, %v1285_v33  ;;  %v700_v24 = vpop.f32.mrb[12].mxu0 }
 0x110   :  { %v448_v25 = vadd.f32 %v447_v22, %v446_v15  ;;  %v701_v26 = vpop.f32.mrb[13].mxu0 }
 0x111   :  { %v780_v27 = vpop.f32.mrb[12].mxu1  ;;  %v1313_v28 = vadd.f32 %v779_v21, %v241_v23  ;;  %v702_v29 = vadd.f32 %v701_v26, %v700_v24 }
 0x112   :  { %v781_v30 = vpop.f32.mrb[13].mxu1 }
 0x113   :  { %v782_v31 = vadd.f32 %v781_v30, %v780_v27  ;;  %v449_v32 = vsel %vm439_vm0, %v1313_v28, 0.0  ;;  %v246_v34 = vadd.f32 %v702_v29, %v1285_v33  ;;  %v703_v35 = vpop.f32.mrb[14].mxu0 }
 0x114   :  { %v450_v36 = vadd.f32 %v449_v32, %v448_v25  ;;  %v704_v37 = vpop.f32.mrb[15].mxu0 }
 0x115   :  { %v783_v38 = vpop.f32.mrb[14].mxu1  ;;  %v1318_v39 = vadd.f32 %v782_v31, %v246_v34  ;;  %v705_v40 = vadd.f32 %v704_v37, %v703_v35 }
 0x116   :  { %v784_v41 = vpop.f32.mrb[15].mxu1 }
 0x117   :  { %v785_v42 = vadd.f32 %v784_v41, %v783_v38  ;;  %v451_v44 = vsel %vm439_vm0, %v1318_v39, 0.0  ;;  %v251_v45 = vadd.f32 %v705_v40, %v1285_v33  ;;  %v706_v46 = vpop.f32.mrb[16].mxu0 }
 0x118   :  { %v452_v47 = vadd.f32 %v451_v44, %v450_v36  ;;  %v707_v48 = vpop.f32.mrb[17].mxu0 }
 0x119   :  { %v786_v49 = vpop.f32.mrb[16].mxu1  ;;  %v396_v50 = vadd.f32 %v785_v42, %v251_v45  ;;  %v708_v52 = vadd.f32 %v707_v48, %v706_v46 }
 0x11a   :  { %v787_v53 = vpop.f32.mrb[17].mxu1 }
 0x11b   :  { %v788_v54 = vadd.f32 %v787_v53, %v786_v49  ;;  %v453_v55 = vsel %vm439_vm0, %v396_v50, 0.0  ;;  %v256_v56 = vadd.f32 %v708_v52, %v1285_v33  ;;  %v709_v57 = vpop.f32.mrb[18].mxu0 }
 0x11c   :  { %v454_v58 = vadd.f32 %v453_v55, %v452_v47  ;;  %v710_v59 = vpop.f32.mrb[19].mxu0 }
 0x11d   :  { %v789_v60 = vpop.f32.mrb[18].mxu1  ;;  %v1325_v61 = vadd.f32 %v788_v54, %v256_v56  ;;  %v711_v63 = vadd.f32 %v710_v59, %v709_v57 }
 0x11e   :  { %v790_v0 = vpop.f32.mrb[19].mxu1  ;;  %v455_v1 = vrot.slane %v454_v58, 4 }
 0x11f   :  { %v791_v2 = vadd.f32 %v790_v0, %v789_v60  ;;  %v261_v3 = vadd.f32 %v711_v63, %v1285_v33  ;;  %v712_v4 = vpop.f32.mrb[20].mxu0  ;;  %v461_v14 = vsel %vm439_vm0, %v1325_v61, 0.0 }
 0x120   :  { %v456_v5 = vadd.f32 %v455_v1, %v454_v58  ;;  %v713_v6 = vpop.f32.mrb[21].mxu0 }
 0x121   :  { %v792_v7 = vpop.f32.mrb[20].mxu1  ;;  %v1328_v9 = vadd.f32 %v791_v2, %v261_v3  ;;  %v714_v10 = vadd.f32 %v713_v6, %v712_v4 }
 0x122   :  { %v793_v11 = vpop.f32.mrb[21].mxu1  ;;  %v457_v12 = vrot.slane %v456_v5, 2 }
 0x123   :  { %v794_v13 = vadd.f32 %v793_v11, %v792_v7  ;;  %v462_v15 = vsel %vm439_vm0, %v1328_v9, 0.0  ;;  %v266_v16 = vadd.f32 %v714_v10, %v1285_v33  ;;  %v715_v17 = vpop.f32.mrb[22].mxu0 }
 0x124   :  { %v458_v19 = vadd.f32 %v457_v12, %v456_v5  ;;  %v463_v20 = vadd.f32 %v462_v15, %v461_v14  ;;  %v716_v21 = vpop.f32.mrb[23].mxu0 }
 0x125   :  { %v795_v22 = vpop.f32.mrb[22].mxu1  ;;  %v1335_v23 = vadd.f32 %v794_v13, %v266_v16  ;;  %v717_v24 = vadd.f32 %v716_v21, %v715_v17 }
 0x126   :  { %v796_v25 = vpop.f32.mrb[23].mxu1  ;;  %v459_v26 = vrot.slane %v458_v19, 1 }
 0x127   :  { %v797_v27 = vadd.f32 %v796_v25, %v795_v22  ;;  %v464_v29 = vsel %vm439_vm0, %v1335_v23, 0.0  ;;  %v271_v30 = vadd.f32 %v717_v24, %v1285_v33  ;;  %v718_v31 = vpop.f32.mrb[24].mxu0 }
 0x128   :  { %v460_v32 = vadd.f32 %v459_v26, %v458_v19  ;;  %v465_v34 = vadd.f32 %v464_v29, %v463_v20  ;;  %v719_v35 = vpop.f32.mrb[25].mxu0 }
 0x129   :  { %v798_v36 = vpop.f32.mrb[24].mxu1  ;;  %v1340_v37 = vadd.f32 %v797_v27, %v271_v30  ;;  %v720_v38 = vadd.f32 %v719_v35, %v718_v31 }
 0x12a   :  { %v799_v40 = vpop.f32.mrb[25].mxu1  ;;  %v483_v41 = vmul.f32 0.015625, %v460_v32 }
 0x12b   :  { %v800_v42 = vadd.f32 %v799_v40, %v798_v36  ;;  %v721_v44 = vpop.f32.mrb[26].mxu0 }
 0x12c   :  { %v1343_v45 = vsub.f32 %v1288_v43, %v483_v41  ;;  %v1346_v46 = vsub.f32 %v1291_v51, %v483_v41  ;;  %v1349_v47 = vsub.f32 %v1298_v62, %v483_v41  ;;  %v1352_v48 = vsub.f32 %v1303_v8, %v483_v41  ;;  %v722_v49 = vpop.f32.mrb[27].mxu0 }
 0x12d   :  { %v801_v52 = vpop.f32.mrb[26].mxu1  ;;  %v1355_v53 = vsub.f32 %v1308_v18, %v483_v41  ;;  %v1358_v54 = vsub.f32 %v1313_v28, %v483_v41  ;;  %v1361_v43 = vsub.f32 %v1318_v39, %v483_v41  ;;  %v1363_v55 = vsub.f32 %v396_v50, %v483_v41 }
 0x12e   :  { %v802_v51 = vpop.f32.mrb[27].mxu1  ;;  %v501_v62 = vmul.f32 %v1343_v45, %v1343_v45  ;;  %v502_v8 = vmul.f32 %v1346_v46, %v1346_v46  ;;  %v503_v56 = vmul.f32 %v1349_v47, %v1349_v47  ;;  %v276_v18 = vadd.f32 %v720_v38, %v1285_v33 }
 0x12f   :  { %v466_v28 = vsel %vm439_vm0, %v1340_v37, 0.0  ;;  %v724_v57 = vpop.f32.mrb[28].mxu0  ;;  %v504_v39 = vmul.f32 %v1352_v48, %v1352_v48  ;;  %v505_v63 = vmul.f32 %v1355_v53, %v1355_v53  ;;  %v723_v5 = vadd.f32 %v722_v49, %v721_v44 }
 0x130   :  { %v517_v50 = vsel %vm439_vm0, %v501_v62, 0.0  ;;  %v518_v58 = vsel %vm439_vm0, %v502_v8, 0.0  ;;  %v725_v59 = vpop.f32.mrb[29].mxu0  ;;  %v520_v2 = vsel %vm439_vm0, %v503_v56, 0.0  ;;  %v467_v3 = vadd.f32 %v466_v28, %v465_v34 }
 0x131   :  { %v804_v60 = vpop.f32.mrb[28].mxu1  ;;  %v519_v0 = vadd.f32 %v518_v58, %v517_v50  ;;  %v421_v4 = vadd.f32 %v800_v42, %v276_v18  ;;  %v803_v7 = vadd.f32 %v802_v51, %v801_v52  ;;  %v726_v10 = vadd.f32 %v725_v59, %v724_v57 }
 0x132   :  { %v805_v1 = vpop.f32.mrb[29].mxu1  ;;  %v506_v13 = vmul.f32 %v1358_v54, %v1358_v54  ;;  %v522_v14 = vsel %vm439_vm0, %v504_v39, 0.0  ;;  %v281_v16 = vadd.f32 %v723_v5, %v1285_v33  ;;  %v507_v26 = vmul.f32 %v1361_v43, %v1361_v43 }
 0x133   :  { %v521_v6 = vadd.f32 %v520_v2, %v519_v0  ;;  %v806_v11 = vadd.f32 %v805_v1, %v804_v60  ;;  %v727_v12 = vpop.f32.mrb[30].mxu0  ;;  %v468_v15 = vsel %vm439_vm0, %v421_v4, 0.0  ;;  %v286_v22 = vadd.f32 %v726_v10, %v1285_v33 }
 0x134   :  { %v728_v17 = vpop.f32.mrb[31].mxu0  ;;  %v469_v21 = vadd.f32 %v468_v15, %v467_v3  ;;  %v524_v27 = vsel %vm439_vm0, %v505_v63, 0.0  ;;  %v426_v29 = vadd.f32 %v803_v7, %v281_v16  ;;  %v508_v35 = vmul.f32 %v1363_v55, %v1363_v55 }
 0x135   :  { %v807_v19 = vpop.f32.mrb[30].mxu1  ;;  %v523_v20 = vadd.f32 %v522_v14, %v521_v6  ;;  %v729_v24 = vadd.f32 %v728_v17, %v727_v12  ;;  %v431_v32 = vadd.f32 %v806_v11, %v286_v22  ;;  %v526_v36 = vsel %vm439_vm0, %v506_v13, 0.0 }
 0x136   :  { %v808_v25 = vpop.f32.mrb[31].mxu1  ;;  %v470_v38 = vsel %vm439_vm0, %v426_v29, 0.0  ;;  %v528_v49 = vsel %vm439_vm0, %v507_v26, 0.0 }
 0x137   :  { %v809_v30 = vadd.f32 %v808_v25, %v807_v19  ;;  %v525_v31 = vadd.f32 %v524_v27, %v523_v20  ;;  %v291_v34 = vadd.f32 %v729_v24, %v1285_v33  ;;  %v471_v41 = vadd.f32 %v470_v38, %v469_v21 }
 0x138   :  { %v472_v42 = vsel %vm439_vm0, %v431_v32, 0.0  ;;  %v530_v33 = vsel %vm439_vm0, %v508_v35, 0.0 }
 0x139   :  { %v527_v40 = vadd.f32 %v526_v36, %v525_v31  ;;  %v436_v44 = vadd.f32 %v809_v30, %v291_v34  ;;  %v473_v51 = vadd.f32 %v472_v42, %v471_v41 }
 0x13b   :  { %v529_v52 = vadd.f32 %v528_v49, %v527_v40  ;;  %v474_v62 = vsel %vm439_vm0, %v436_v44, 0.0 }
 0x13c   :  { %v475_v56 = vadd.f32 %v474_v62, %v473_v51 }
 0x13d   :  { %v531_v8 = vadd.f32 %v530_v33, %v529_v52 }
 0x13e   :  { %v476_v28 = vrot.slane %v475_v56, 4 }
 0x13f   :  { %v532_v18 = vrot.slane %v531_v8, 4 }
 0x140   :  { %v477_v39 = vadd.f32 %v476_v28, %v475_v56 }
 0x141   :  { %v533_v57 = vadd.f32 %v532_v18, %v531_v8 }
 0x142   :  { %v478_v58 = vrot.slane %v477_v39, 2 }
 0x143   :  { %v534_v50 = vrot.slane %v533_v57, 2 }
 0x144   :  { %v479_v60 = vadd.f32 %v478_v58, %v477_v39 }
 0x145   :  { %v535_v59 = vadd.f32 %v534_v50, %v533_v57 }
 0x146   :  { %v480_v0 = vrot.slane %v479_v60, 1 }
 0x147   :  { %v536_v63 = vrot.slane %v535_v59, 1 }
 0x148   :  { %v481_v2 = vadd.f32 %v480_v0, %v479_v60 }
 0x149   :  { %v537_v1 = vadd.f32 %v536_v63, %v535_v59 }
 0x14a   :  { %v484_v5 = vmul.f32 0.015625, %v481_v2 }
 0x14b   :  { %v559_v3 = vmul.f32 0.015625, %v537_v1 }
 0x14c   :  { %v1400_v7 = vsub.f32 %v1325_v61, %v484_v5  ;;  %v1403_v10 = vsub.f32 %v1328_v9, %v484_v5  ;;  %v1406_v11 = vsub.f32 %v1335_v23, %v484_v5  ;;  %v1409_v12 = vsub.f32 %v1340_v37, %v484_v5 }
 0x14d   :  { %v561_v6 = vadd.f32 1e-05, %v559_v3  ;;  %v1411_v13 = vsub.f32 %v421_v4, %v484_v5  ;;  %v1413_v14 = vsub.f32 %v426_v29, %v484_v5  ;;  %v1415_v15 = vsub.f32 %v431_v32, %v484_v5 }
 0x14e   :  { %v1417_v16 = vsub.f32 %v436_v44, %v484_v5  ;;  %v509_v61 = vmul.f32 %v1400_v7, %v1400_v7  ;;  %v510_v9 = vmul.f32 %v1403_v10, %v1403_v10  ;;  %v511_v23 = vmul.f32 %v1406_v11, %v1406_v11 }
 0x14f   :  { %874 = vrsqrt.f32 %v561_v6  ;;  %v512_v37 = vmul.f32 %v1409_v12, %v1409_v12  ;;  %v513_v20 = vmul.f32 %v1411_v13, %v1411_v13  ;;  %v514_v24 = vmul.f32 %v1413_v14, %v1413_v14 }
 0x150   :  { %v538_v4 = vsel %vm439_vm0, %v509_v61, 0.0  ;;  %v539_v17 = vsel %vm439_vm0, %v510_v9, 0.0  ;;  %v541_v21 = vsel %vm439_vm0, %v511_v23, 0.0  ;;  %v515_v25 = vmul.f32 %v1415_v15, %v1415_v15 }
 0x151   :  { %v540_v19 = vadd.f32 %v539_v17, %v538_v4  ;;  %v543_v26 = vsel %vm439_vm0, %v512_v37, 0.0  ;;  %v545_v29 = vsel %vm439_vm0, %v513_v20, 0.0  ;;  %v547_v32 = vsel %vm439_vm0, %v514_v24, 0.0 }
 0x152   :  { %v549_v34 = vsel %vm439_vm0, %v515_v25, 0.0 }
 0x153   :  { %v542_v22 = vadd.f32 %v541_v21, %v540_v19 }
 0x155   :  { %v544_v27 = vadd.f32 %v543_v26, %v542_v22 }
 0x157   :  { %v546_v30 = vadd.f32 %v545_v29, %v544_v27 }
 0x159   :  { %v875_v31 = vpop.eup %874 }
 0x15a   :  { %v565_v35 = vmul.f32 %v875_v31, %v1343_v45  ;;  %v566_v36 = vmul.f32 %v875_v31, %v1346_v46  ;;  %v567_v38 = vmul.f32 %v875_v31, %v1349_v47  ;;  %v568_v40 = vmul.f32 %v875_v31, %v1352_v48 }
 0x15b   :  { %v569_v41 = vmul.f32 %v875_v31, %v1355_v53  ;;  %v570_v42 = vmul.f32 %v875_v31, %v1358_v54  ;;  %v571_v44 = vmul.f32 %v875_v31, %v1361_v43  ;;  %v572_v49 = vmul.f32 %v875_v31, %v1363_v55 }
 0x15c   :  { %vm581_vm1 = vcmp.gt.f32.partialorder %v565_v35, 0.0  ;;  %vm582_vm2 = vcmp.gt.f32.partialorder %v566_v36, 0.0  ;;  %vm583_vm3 = vcmp.gt.f32.partialorder %v567_v38, 0.0  ;;  %vm584_vm4 = vcmp.gt.f32.partialorder %v568_v40, 0.0 }
 0x15d   :  { %vm585_vm5 = vcmp.gt.f32.partialorder %v569_v41, 0.0  ;;  %vm586_vm6 = vcmp.gt.f32.partialorder %v570_v42, 0.0  ;;  %vm587_vm7 = vcmp.gt.f32.partialorder %v571_v44, 0.0  ;;  %vm588_vm8 = vcmp.gt.f32.partialorder %v572_v49, 0.0 }
 0x15e   :  { %v597_v45 = vmul.f32 0.2, %v565_v35  ;;  %v598_v46 = vmul.f32 0.2, %v566_v36  ;;  %v599_v47 = vmul.f32 0.2, %v567_v38  ;;  %v548_v48 = vadd.f32 %v547_v32, %v546_v30 }
 0x15f   :  { %v600_v52 = vmul.f32 0.2, %v568_v40  ;;  %v601_v53 = vmul.f32 0.2, %v569_v41  ;;  %v602_v51 = vmul.f32 0.2, %v570_v42  ;;  %v516_v54 = vmul.f32 %v1417_v16, %v1417_v16 }
 0x160   :  { %v603_v43 = vmul.f32 0.2, %v571_v44  ;;  %v604_v55 = vmul.f32 0.2, %v572_v49  ;;  %v613_v62 = vsel %vm581_vm1, %v565_v35, %v597_v45  ;;  %v614_v33 = vsel %vm582_vm2, %v566_v36, %v598_v46 }
 0x161   :  { %v615_v8 = vsel %vm583_vm3, %v567_v38, %v599_v47  ;;  %v616_v56 = vsel %vm584_vm4, %v568_v40, %v600_v52  ;;  %v617_v18 = vsel %vm585_vm5, %v569_v41, %v601_v53  ;;  %v618_v28 = vsel %vm586_vm6, %v570_v42, %v602_v51  ;;  %629 = vst.msk [vmem:[%s1542_s3] sm:$0xff] %vm439_vm0, %v613_v62 }
 0x162   :  { %630 = vst.msk [vmem:[%s1542_s3 + $0x8] sm:$0xff] %vm439_vm0, %v614_v33  ;;  %v619_v57 = vsel %vm587_vm7, %v571_v44, %v603_v43  ;;  %v620_v39 = vsel %vm588_vm8, %v572_v49, %v604_v55  ;;  %631 = vst.msk [vmem:[%s1542_s3 + $0x10] sm:$0xff] %vm439_vm0, %v615_v8  ;;  %v550_v50 = vadd.f32 %v549_v34, %v548_v48  ;;  %v551_v58 = vsel %vm439_vm0, %v516_v54, 0.0 }
 0x163   :  { %632 = vst.msk [vmem:[%s1542_s3 + $0x18] sm:$0xff] %vm439_vm0, %v616_v56  ;;  %633 = vst.msk [vmem:[%s1542_s3 + $0x20] sm:$0xff] %vm439_vm0, %v617_v18 }
 0x164   :  { %634 = vst.msk [vmem:[%s1542_s3 + $0x28] sm:$0xff] %vm439_vm0, %v618_v28  ;;  %635 = vst.msk [vmem:[%s1542_s3 + $0x30] sm:$0xff] %vm439_vm0, %v619_v57  ;;  %v552_v59 = vadd.f32 %v551_v58, %v550_v50 }
 0x165   :  { %636 = vst.msk [vmem:[%s1542_s3 + $0x38] sm:$0xff] %vm439_vm0, %v620_v39 }
 0x166   :  { %v553_v60 = vrot.slane %v552_v59, 4 }
 0x168   :  { %v554_v63 = vadd.f32 %v553_v60, %v552_v59 }
 0x16a   :  { %v555_v0 = vrot.slane %v554_v63, 2 }
 0x16c   :  { %v556_v1 = vadd.f32 %v555_v0, %v554_v63 }
 0x16e   :  { %v557_v2 = vrot.slane %v556_v1, 1 }
 0x170   :  { %v558_v3 = vadd.f32 %v557_v2, %v556_v1 }
 0x172   :  { %v560_v5 = vmul.f32 0.015625, %v558_v3 }
 0x174   :  { %v562_v6 = vadd.f32 1e-05, %v560_v5 }
 0x176   :  { %876 = vrsqrt.f32 %v562_v6 }
 0x180   :  { %v877_v61 = vpop.eup %876 }
 0x181   :  { %v573_v9 = vmul.f32 %v877_v61, %v1400_v7  ;;  %v574_v23 = vmul.f32 %v877_v61, %v1403_v10  ;;  %v575_v37 = vmul.f32 %v877_v61, %v1406_v11  ;;  %v576_v4 = vmul.f32 %v877_v61, %v1409_v12 }
 0x182   :  { %v577_v17 = vmul.f32 %v877_v61, %v1411_v13  ;;  %v578_v19 = vmul.f32 %v877_v61, %v1413_v14  ;;  %v579_v20 = vmul.f32 %v877_v61, %v1415_v15  ;;  %v580_v21 = vmul.f32 %v877_v61, %v1417_v16 }
 0x183   :  { %vm589_vm9 = vcmp.gt.f32.partialorder %v573_v9, 0.0  ;;  %vm590_vm10 = vcmp.gt.f32.partialorder %v574_v23, 0.0  ;;  %vm591_vm11 = vcmp.gt.f32.partialorder %v575_v37, 0.0  ;;  %vm592_vm12 = vcmp.gt.f32.partialorder %v576_v4, 0.0 }
 0x184   :  { %vm593_vm13 = vcmp.gt.f32.partialorder %v577_v17, 0.0  ;;  %vm594_vm14 = vcmp.gt.f32.partialorder %v578_v19, 0.0  ;;  %vm595_vm15 = vcmp.gt.f32.partialorder %v579_v20, 0.0  ;;  %vm596_vm1 = vcmp.gt.f32.partialorder %v580_v21, 0.0 }
 0x185   :  { %v605_v7 = vmul.f32 0.2, %v573_v9  ;;  %v606_v10 = vmul.f32 0.2, %v574_v23  ;;  %v607_v11 = vmul.f32 0.2, %v575_v37 }
 0x186   :  { %v608_v12 = vmul.f32 0.2, %v576_v4  ;;  %v609_v22 = vmul.f32 0.2, %v577_v17  ;;  %v610_v13 = vmul.f32 0.2, %v578_v19 }
 0x187   :  { %v611_v24 = vmul.f32 0.2, %v579_v20  ;;  %v612_v14 = vmul.f32 0.2, %v580_v21  ;;  %v621_v15 = vsel %vm589_vm9, %v573_v9, %v605_v7  ;;  %v622_v16 = vsel %vm590_vm10, %v574_v23, %v606_v10 }
 0x188   :  { %v623_v25 = vsel %vm591_vm11, %v575_v37, %v607_v11  ;;  %v624_v26 = vsel %vm592_vm12, %v576_v4, %v608_v12  ;;  %v625_v27 = vsel %vm593_vm13, %v577_v17, %v609_v22  ;;  %v626_v29 = vsel %vm594_vm14, %v578_v19, %v610_v13  ;;  %637 = vst.msk [vmem:[%s1542_s3 + $0x40] sm:$0xff] %vm439_vm0, %v621_v15 }
 0x189   :  { %638 = vst.msk [vmem:[%s1542_s3 + $0x48] sm:$0xff] %vm439_vm0, %v622_v16  ;;  %v627_v30 = vsel %vm595_vm15, %v579_v20, %v611_v24  ;;  %v628_v31 = vsel %vm596_vm1, %v580_v21, %v612_v14  ;;  %639 = vst.msk [vmem:[%s1542_s3 + $0x50] sm:$0xff] %vm439_vm0, %v623_v25 }
 0x18a   :  { %640 = vst.msk [vmem:[%s1542_s3 + $0x58] sm:$0xff] %vm439_vm0, %v624_v26  ;;  %641 = vst.msk [vmem:[%s1542_s3 + $0x60] sm:$0xff] %vm439_vm0, %v625_v27 }
 0x18b   :  { %642 = vst.msk [vmem:[%s1542_s3 + $0x68] sm:$0xff] %vm439_vm0, %v626_v29  ;;  %643 = vst.msk [vmem:[%s1542_s3 + $0x70] sm:$0xff] %vm439_vm0, %v627_v30 }
 0x18c   :  { %644 = vst.msk [vmem:[%s1542_s3 + $0x78] sm:$0xff] %vm439_vm0, %v628_v31 }

// kernel: d_net_multi_forward.11
= control target key start
LH: loop header
LB: loop body
LE: loop exit
PB: predicated region body
PF: predicated region fallthrough
CT: control target
= control target key end

     0   :  { %s1414_s1 = inlined_call_operand.vmem [shape: f32[1024,128], index: 1, kind: input, shape index: {}]   ;;  %s1415_s0 = inlined_call_operand.vmem [shape: f32[32,1024], index: 0, kind: input, shape index: {}]   ;;  %s1416_s2 = inlined_call_operand.vmem [shape: f32[1,128], index: 2, kind: input, shape index: {}]   ;;  %s1417_s3 = inlined_call_operand.vmem [shape: f32[2,16,128], index: 3, kind: output, shape index: {}]  }
   0x1   :  { %v62_v0 = vld [vmem:[%s1414_s1 + $0x80] sm:$0xff]  ;;  %v63_v1 = vld [vmem:[%s1414_s1 + $0x88] sm:$0xff]  ;;  %v64_v11 = vld [vmem:[%s1414_s1 + $0x90] sm:$0xff] }
   0x2   :  { %v46_v2 = vld [vmem:[%s1414_s1] sm:$0xff]  ;;  %v767_v3 = vpack.c.bf16 %v63_v1, %v62_v0  ;;  %v47_v4 = vld [vmem:[%s1414_s1 + $0x8] sm:$0xff]  ;;  %v65_v13 = vld [vmem:[%s1414_s1 + $0x98] sm:$0xff] }
   0x3   :  { %v94_v5 = vld [vmem:[%s1414_s1 + $0x180] sm:$0xff]  ;;  %v95_v6 = vld [vmem:[%s1414_s1 + $0x188] sm:$0xff]  ;;  %v769_v7 = vpack.c.bf16 %v47_v4, %v46_v2  ;;  %v48_v14 = vld [vmem:[%s1414_s1 + $0x10] sm:$0xff]  ;;  %v771_v16 = vpack.c.bf16 %v65_v13, %v64_v11 }
   0x4   :  { %v799_v8 = vpack.c.bf16 %v95_v6, %v94_v5  ;;  %v78_v9 = vld [vmem:[%s1414_s1 + $0x100] sm:$0xff]  ;;  %v79_v10 = vld [vmem:[%s1414_s1 + $0x108] sm:$0xff]  ;;  %768 = vmatprep.subr.bf16.mxu0 %v767_v3  ;;  %v49_v15 = vld [vmem:[%s1414_s1 + $0x18] sm:$0xff] }
   0x5   :  { %v801_v12 = vpack.c.bf16 %v79_v10, %v78_v9  ;;  %770 = vmatpush3.bf16.msra.mxu0 %v769_v7  ;;  %v773_v17 = vpack.c.bf16 %v49_v15, %v48_v14  ;;  %v96_v18 = vld [vmem:[%s1414_s1 + $0x190] sm:$0xff]  ;;  %v97_v19 = vld [vmem:[%s1414_s1 + $0x198] sm:$0xff]  ;;  %v66_v23 = vld [vmem:[%s1414_s1 + $0xa0] sm:$0xff] }
   0x6   :  { %800 = vmatprep.subr.bf16.mxu1 %v799_v8  ;;  %v80_v20 = vld [vmem:[%s1414_s1 + $0x110] sm:$0xff]  ;;  %v803_v21 = vpack.c.bf16 %v97_v19, %v96_v18  ;;  %v81_v22 = vld [vmem:[%s1414_s1 + $0x118] sm:$0xff]  ;;  %v67_v24 = vld [vmem:[%s1414_s1 + $0xa8] sm:$0xff]  ;;  %772 = vmatprep.subr.bf16.mxu0 %v771_v16 }
   0x7   :  { %802 = vmatpush3.bf16.msra.mxu1 %v801_v12  ;;  %v805_v25 = vpack.c.bf16 %v81_v22, %v80_v20  ;;  %v775_v26 = vpack.c.bf16 %v67_v24, %v66_v23  ;;  %v50_v27 = vld [vmem:[%s1414_s1 + $0x20] sm:$0xff]  ;;  %v51_v28 = vld [vmem:[%s1414_s1 + $0x28] sm:$0xff]  ;;  %v68_v35 = vld [vmem:[%s1414_s1 + $0xb0] sm:$0xff] }
   0x8   :  { %v98_v29 = vld [vmem:[%s1414_s1 + $0x1a0] sm:$0xff]  ;;  %804 = vmatprep.subr.bf16.mxu1 %v803_v21  ;;  %v99_v30 = vld [vmem:[%s1414_s1 + $0x1a8] sm:$0xff]  ;;  %v777_v33 = vpack.c.bf16 %v51_v28, %v50_v27  ;;  %v69_v36 = vld [vmem:[%s1414_s1 + $0xb8] sm:$0xff] }
   0x9   :  { %v82_v31 = vld [vmem:[%s1414_s1 + $0x120] sm:$0xff]  ;;  %v83_v32 = vld [vmem:[%s1414_s1 + $0x128] sm:$0xff]  ;;  %774 = vmatpush3.bf16.msra.mxu0 %v773_v17  ;;  %v807_v34 = vpack.c.bf16 %v99_v30, %v98_v29  ;;  %v52_v37 = vld [vmem:[%s1414_s1 + $0x30] sm:$0xff]  ;;  %v779_v39 = vpack.c.bf16 %v69_v36, %v68_v35 }
   0xa   :  { %776 = vmatprep.subr.bf16.mxu0 %v775_v26  ;;  %v809_v38 = vpack.c.bf16 %v83_v32, %v82_v31  ;;  %v53_v40 = vld [vmem:[%s1414_s1 + $0x38] sm:$0xff]  ;;  %v100_v41 = vld [vmem:[%s1414_s1 + $0x1b0] sm:$0xff]  ;;  %v70_v46 = vld [vmem:[%s1414_s1 + $0xc0] sm:$0xff] }
   0xb   :  { %806 = vmatpush3.bf16.msra.mxu1 %v805_v25  ;;  %v101_v42 = vld [vmem:[%s1414_s1 + $0x1b8] sm:$0xff]  ;;  %v84_v44 = vld [vmem:[%s1414_s1 + $0x130] sm:$0xff]  ;;  %v71_v47 = vld [vmem:[%s1414_s1 + $0xc8] sm:$0xff]  ;;  %v781_v48 = vpack.c.bf16 %v53_v40, %v52_v37 }
   0xc   :  { %808 = vmatprep.subr.bf16.mxu1 %v807_v34  ;;  %v811_v43 = vpack.c.bf16 %v101_v42, %v100_v41  ;;  %v85_v45 = vld [vmem:[%s1414_s1 + $0x138] sm:$0xff]  ;;  %v102_v49 = vld [vmem:[%s1414_s1 + $0x1c0] sm:$0xff]  ;;  %v103_v50 = vld [vmem:[%s1414_s1 + $0x1c8] sm:$0xff]  ;;  %v783_v52 = vpack.c.bf16 %v71_v47, %v70_v46 }
   0xd   :  { %778 = vmatpush3.bf16.msra.mxu0 %v777_v33  ;;  %v813_v51 = vpack.c.bf16 %v85_v45, %v84_v44  ;;  %v54_v53 = vld [vmem:[%s1414_s1 + $0x40] sm:$0xff]  ;;  %v55_v54 = vld [vmem:[%s1414_s1 + $0x48] sm:$0xff]  ;;  %v815_v56 = vpack.c.bf16 %v103_v50, %v102_v49  ;;  %v72_v58 = vld [vmem:[%s1414_s1 + $0xd0] sm:$0xff] }
   0xe   :  { %780 = vmatprep.subr.bf16.mxu0 %v779_v39  ;;  %v86_v55 = vld [vmem:[%s1414_s1 + $0x140] sm:$0xff]  ;;  %v87_v57 = vld [vmem:[%s1414_s1 + $0x148] sm:$0xff]  ;;  %v73_v59 = vld [vmem:[%s1414_s1 + $0xd8] sm:$0xff]  ;;  %v785_v62 = vpack.c.bf16 %v55_v54, %v54_v53 }
   0xf   :  { %810 = vmatpush3.bf16.msra.mxu1 %v809_v38  ;;  %v104_v60 = vld [vmem:[%s1414_s1 + $0x1d0] sm:$0xff]  ;;  %v105_v61 = vld [vmem:[%s1414_s1 + $0x1d8] sm:$0xff]  ;;  %v817_v63 = vpack.c.bf16 %v87_v57, %v86_v55  ;;  %v787_v0 = vpack.c.bf16 %v73_v59, %v72_v58  ;;  %v74_v6 = vld [vmem:[%s1414_s1 + $0xe0] sm:$0xff] }
  0x10   :  { %812 = vmatprep.subr.bf16.mxu1 %v811_v43  ;;  %v56_v1 = vld [vmem:[%s1414_s1 + $0x50] sm:$0xff]  ;;  %v57_v2 = vld [vmem:[%s1414_s1 + $0x58] sm:$0xff]  ;;  %v819_v4 = vpack.c.bf16 %v105_v61, %v104_v60  ;;  %v75_v7 = vld [vmem:[%s1414_s1 + $0xe8] sm:$0xff] }
  0x11   :  { %782 = vmatpush3.bf16.msra.mxu0 %v781_v48  ;;  %v88_v3 = vld [vmem:[%s1414_s1 + $0x150] sm:$0xff]  ;;  %v89_v5 = vld [vmem:[%s1414_s1 + $0x158] sm:$0xff]  ;;  %v106_v8 = vld [vmem:[%s1414_s1 + $0x1e0] sm:$0xff]  ;;  %v789_v10 = vpack.c.bf16 %v57_v2, %v56_v1  ;;  %v791_v14 = vpack.c.bf16 %v75_v7, %v74_v6 }
  0x12   :  { %784 = vmatprep.subr.bf16.mxu0 %v783_v52  ;;  %v107_v9 = vld [vmem:[%s1414_s1 + $0x1e8] sm:$0xff]  ;;  %v58_v11 = vld [vmem:[%s1414_s1 + $0x60] sm:$0xff]  ;;  %v821_v13 = vpack.c.bf16 %v89_v5, %v88_v3  ;;  %v76_v19 = vld [vmem:[%s1414_s1 + $0xf0] sm:$0xff] }
  0x13   :  { %814 = vmatpush3.bf16.msra.mxu1 %v813_v51  ;;  %v59_v12 = vld [vmem:[%s1414_s1 + $0x68] sm:$0xff]  ;;  %v90_v15 = vld [vmem:[%s1414_s1 + $0x160] sm:$0xff]  ;;  %v823_v18 = vpack.c.bf16 %v107_v9, %v106_v8  ;;  %v77_v20 = vld [vmem:[%s1414_s1 + $0xf8] sm:$0xff] }
  0x14   :  { %816 = vmatprep.subr.bf16.mxu1 %v815_v56  ;;  %v91_v16 = vld [vmem:[%s1414_s1 + $0x168] sm:$0xff]  ;;  %v17_v21 = vld [vmem:[%s1415_s0 + $0x18] sm:$0xff]  ;;  %v108_v22 = vld [vmem:[%s1414_s1 + $0x1f0] sm:$0xff]  ;;  %v793_v24 = vpack.c.bf16 %v59_v12, %v58_v11  ;;  %v795_v26 = vpack.c.bf16 %v77_v20, %v76_v19 }
  0x15   :  { %786 = vmatpush3.bf16.msra.mxu0 %v785_v62  ;;  %v15_v17 = vld [vmem:[%s1415_s0 + $0x8] sm:$0xff]  ;;  %v109_v23 = vld [vmem:[%s1414_s1 + $0x1f8] sm:$0xff]  ;;  %330 = vmatprep.mubr.f32.mxu1 %v17_v21  ;;  %v825_v25 = vpack.c.bf16 %v91_v16, %v90_v15  ;;  %v60_v27 = vld [vmem:[%s1414_s1 + $0x70] sm:$0xff] }
  0x16   :  { %788 = vmatprep.subr.bf16.mxu0 %v787_v0  ;;  %245 = vmatprep.mubr.f32.mxu0 %v15_v17  ;;  %v61_v28 = vld [vmem:[%s1414_s1 + $0x78] sm:$0xff]  ;;  %v92_v29 = vld [vmem:[%s1414_s1 + $0x170] sm:$0xff]  ;;  %v827_v30 = vpack.c.bf16 %v109_v23, %v108_v22  ;;  %v126_v32 = vld [vmem:[%s1414_s1 + $0x280] sm:$0xff] }
  0x17   :  { %818 = vmatpush3.bf16.msra.mxu1 %v817_v63  ;;  %v93_v31 = vld [vmem:[%s1414_s1 + $0x178] sm:$0xff]  ;;  %v127_v33 = vld [vmem:[%s1414_s1 + $0x288] sm:$0xff]  ;;  %v158_v34 = vld [vmem:[%s1414_s1 + $0x380] sm:$0xff]  ;;  %v797_v36 = vpack.c.bf16 %v61_v28, %v60_v27 }
  0x18   :  { %820 = vmatprep.subr.bf16.mxu1 %v819_v4  ;;  %v159_v35 = vld [vmem:[%s1414_s1 + $0x388] sm:$0xff]  ;;  %v829_v37 = vpack.c.bf16 %v93_v31, %v92_v29  ;;  %v831_v38 = vpack.c.bf16 %v127_v33, %v126_v32  ;;  %v110_v39 = vld [vmem:[%s1414_s1 + $0x200] sm:$0xff]  ;;  %v128_v44 = vld [vmem:[%s1414_s1 + $0x290] sm:$0xff] }
  0x19   :  { %790 = vmatpush3.bf16.msra.mxu0 %v789_v10  ;;  %v111_v40 = vld [vmem:[%s1414_s1 + $0x208] sm:$0xff]  ;;  %v142_v41 = vld [vmem:[%s1414_s1 + $0x300] sm:$0xff]  ;;  %v863_v42 = vpack.c.bf16 %v159_v35, %v158_v34  ;;  %v129_v45 = vld [vmem:[%s1414_s1 + $0x298] sm:$0xff] }
  0x1a   :  { %792 = vmatprep.subr.bf16.mxu0 %v791_v14  ;;  %v143_v43 = vld [vmem:[%s1414_s1 + $0x308] sm:$0xff]  ;;  %v160_v46 = vld [vmem:[%s1414_s1 + $0x390] sm:$0xff]  ;;  %v161_v47 = vld [vmem:[%s1414_s1 + $0x398] sm:$0xff]  ;;  %v833_v49 = vpack.c.bf16 %v111_v40, %v110_v39  ;;  %v835_v52 = vpack.c.bf16 %v129_v45, %v128_v44 }
  0x1b   :  { %822 = vmatpush3.bf16.msra.mxu1 %v821_v13  ;;  %v14_v48 = vld [vmem:[%s1415_s0] sm:$0xff]  ;;  %v16_v50 = vld [vmem:[%s1415_s0 + $0x10] sm:$0xff]  ;;  %v865_v51 = vpack.c.bf16 %v143_v43, %v142_v41  ;;  %v113_v54 = vld [vmem:[%s1414_s1 + $0x218] sm:$0xff]  ;;  %v867_v56 = vpack.c.bf16 %v161_v47, %v160_v46 }
  0x1c   :  { %824 = vmatprep.subr.bf16.mxu1 %v823_v18  ;;  %v112_v53 = vld [vmem:[%s1414_s1 + $0x210] sm:$0xff]  ;;  %v145_v57 = vld [vmem:[%s1414_s1 + $0x318] sm:$0xff]  ;;  %v130_v58 = vld [vmem:[%s1414_s1 + $0x2a0] sm:$0xff] }
  0x1d   :  { %794 = vmatpush3.bf16.msra.mxu0 %v793_v24  ;;  %v144_v55 = vld [vmem:[%s1414_s1 + $0x310] sm:$0xff]  ;;  %v131_v59 = vld [vmem:[%s1414_s1 + $0x2a8] sm:$0xff]  ;;  %v162_v60 = vld [vmem:[%s1414_s1 + $0x3a0] sm:$0xff]  ;;  %v837_v63 = vpack.c.bf16 %v113_v54, %v112_v53 }
  0x1e   :  { %796 = vmatprep.subr.bf16.mxu0 %v795_v26  ;;  %v163_v61 = vld [vmem:[%s1414_s1 + $0x3a8] sm:$0xff]  ;;  %v114_v0 = vld [vmem:[%s1414_s1 + $0x220] sm:$0xff]  ;;  %v25_v2 = vld [vmem:[%s1415_s0 + $0x58] sm:$0xff]  ;;  %v869_v3 = vpack.c.bf16 %v145_v57, %v144_v55  ;;  %v839_v4 = vpack.c.bf16 %v131_v59, %v130_v58 }
  0x1f   :  { %826 = vmatpush3.bf16.msra.mxu1 %v825_v25  ;;  %v23_v62 = vld [vmem:[%s1415_s0 + $0x48] sm:$0xff]  ;;  %v22_v1 = vld [vmem:[%s1415_s0 + $0x40] sm:$0xff]  ;;  %v24_v7 = vld [vmem:[%s1415_s0 + $0x50] sm:$0xff]  ;;  %v871_v8 = vpack.c.bf16 %v163_v61, %v162_v60 }
  0x20   :  { %828 = vmatprep.subr.bf16.mxu1 %v827_v30  ;;  %v115_v5 = vld [vmem:[%s1414_s1 + $0x228] sm:$0xff]  ;;  %v146_v6 = vld [vmem:[%s1414_s1 + $0x320] sm:$0xff]  ;;  %v132_v10 = vld [vmem:[%s1414_s1 + $0x2b0] sm:$0xff] }
  0x21   :  { %798 = vmatpush3.bf16.msra.mxu0 %v797_v36  ;;  %v147_v9 = vld [vmem:[%s1414_s1 + $0x328] sm:$0xff]  ;;  %v133_v11 = vld [vmem:[%s1414_s1 + $0x2b8] sm:$0xff]  ;;  %v164_v12 = vld [vmem:[%s1414_s1 + $0x3b0] sm:$0xff]  ;;  %v841_v15 = vpack.c.bf16 %v115_v5, %v114_v0 }
  0x22   :  { %832 = vmatprep.subr.bf16.mxu0 %v831_v38  ;;  %v165_v13 = vld [vmem:[%s1414_s1 + $0x3b8] sm:$0xff]  ;;  %v31_v14 = vld [vmem:[%s1415_s0 + $0x88] sm:$0xff]  ;;  %v116_v16 = vld [vmem:[%s1414_s1 + $0x230] sm:$0xff]  ;;  %v873_v19 = vpack.c.bf16 %v147_v9, %v146_v6  ;;  %v843_v20 = vpack.c.bf16 %v133_v11, %v132_v10 }
  0x23   :  { %830 = vmatpush3.bf16.msra.mxu1 %v829_v37  ;;  %v30_v17 = vld [vmem:[%s1415_s0 + $0x80] sm:$0xff]  ;;  %v33_v18 = vld [vmem:[%s1415_s0 + $0x98] sm:$0xff]  ;;  %v148_v22 = vld [vmem:[%s1414_s1 + $0x330] sm:$0xff]  ;;  %v875_v24 = vpack.c.bf16 %v165_v13, %v164_v12 }
  0x24   :  { %864 = vmatprep.subr.bf16.mxu1 %v863_v42  ;;  %246 = vmatmul.mubr.f32.vlgmr.msra.gmra.mrb[0].mxu0 %v14_v48  ;;  %v117_v21 = vld [vmem:[%s1414_s1 + $0x238] sm:$0xff]  ;;  %v32_v23 = vld [vmem:[%s1415_s0 + $0x90] sm:$0xff]  ;;  %v134_v26 = vld [vmem:[%s1414_s1 + $0x2c0] sm:$0xff] }
  0x25   :  { %834 = vmatpush3.bf16.msra.mxu0 %v833_v49  ;;  %250 = vmatprep.mubr.f32.mxu0 %v23_v62  ;;  %v149_v25 = vld [vmem:[%s1414_s1 + $0x338] sm:$0xff]  ;;  %v135_v27 = vld [vmem:[%s1414_s1 + $0x2c8] sm:$0xff]  ;;  %v166_v28 = vld [vmem:[%s1414_s1 + $0x3c0] sm:$0xff]  ;;  %v845_v31 = vpack.c.bf16 %v117_v21, %v116_v16 }
  0x26   :  { %331 = vmatmul.mubr.f32.vlgmr.msra.gmra.mrb[0].mxu1 %v16_v50  ;;  %836 = vmatprep.subr.bf16.mxu0 %v835_v52  ;;  %v167_v29 = vld [vmem:[%s1414_s1 + $0x3c8] sm:$0xff]  ;;  %v118_v32 = vld [vmem:[%s1414_s1 + $0x240] sm:$0xff]  ;;  %v41_v34 = vld [vmem:[%s1415_s0 + $0xd8] sm:$0xff]  ;;  %v877_v35 = vpack.c.bf16 %v149_v25, %v148_v22  ;;  %v847_v36 = vpack.c.bf16 %v135_v27, %v134_v26 }
  0x27   :  { %866 = vmatpush3.bf16.msra.mxu1 %v865_v51  ;;  %335 = vmatprep.mubr.f32.mxu1 %v25_v2  ;;  %v39_v30 = vld [vmem:[%s1415_s0 + $0xc8] sm:$0xff]  ;;  %v38_v33 = vld [vmem:[%s1415_s0 + $0xc0] sm:$0xff]  ;;  %v40_v39 = vld [vmem:[%s1415_s0 + $0xd0] sm:$0xff]  ;;  %v879_v40 = vpack.c.bf16 %v167_v29, %v166_v28 }
  0x28   :  { %868 = vmatprep.subr.bf16.mxu1 %v867_v56  ;;  %251 = vmatmul.mubr.f32.gmra.mrb[2].mxu0 %v22_v1  ;;  %v119_v37 = vld [vmem:[%s1414_s1 + $0x248] sm:$0xff]  ;;  %v150_v38 = vld [vmem:[%s1414_s1 + $0x340] sm:$0xff]  ;;  %v136_v42 = vld [vmem:[%s1414_s1 + $0x2d0] sm:$0xff] }
  0x29   :  { %838 = vmatpush3.bf16.msra.mxu0 %v837_v63  ;;  %255 = vmatprep.mubr.f32.mxu0 %v31_v14  ;;  %v151_v41 = vld [vmem:[%s1414_s1 + $0x348] sm:$0xff]  ;;  %v137_v43 = vld [vmem:[%s1414_s1 + $0x2d8] sm:$0xff]  ;;  %v168_v44 = vld [vmem:[%s1414_s1 + $0x3d0] sm:$0xff]  ;;  %v849_v46 = vpack.c.bf16 %v119_v37, %v118_v32 }
  0x2a   :  { %336 = vmatmul.mubr.f32.gmra.mrb[2].mxu1 %v24_v7  ;;  %840 = vmatprep.subr.bf16.mxu0 %v839_v4  ;;  %v169_v45 = vld [vmem:[%s1414_s1 + $0x3d8] sm:$0xff]  ;;  %v19_v47 = vld [vmem:[%s1415_s0 + $0x28] sm:$0xff]  ;;  %v881_v49 = vpack.c.bf16 %v151_v41, %v150_v38  ;;  %v851_v50 = vpack.c.bf16 %v137_v43, %v136_v42  ;;  %v120_v51 = vld [vmem:[%s1414_s1 + $0x250] sm:$0xff] }
  0x2b   :  { %870 = vmatpush3.bf16.msra.mxu1 %v869_v3  ;;  %340 = vmatprep.mubr.f32.mxu1 %v33_v18  ;;  %v21_v48 = vld [vmem:[%s1415_s0 + $0x38] sm:$0xff]  ;;  %v152_v53 = vld [vmem:[%s1414_s1 + $0x350] sm:$0xff]  ;;  %v883_v54 = vpack.c.bf16 %v169_v45, %v168_v44  ;;  %v138_v56 = vld [vmem:[%s1414_s1 + $0x2e0] sm:$0xff] }
  0x2c   :  { %872 = vmatprep.subr.bf16.mxu1 %v871_v8  ;;  %256 = vmatmul.mubr.f32.gmra.mrb[4].mxu0 %v30_v17  ;;  %v121_v52 = vld [vmem:[%s1414_s1 + $0x258] sm:$0xff]  ;;  %v139_v57 = vld [vmem:[%s1414_s1 + $0x2e8] sm:$0xff]  ;;  %v170_v58 = vld [vmem:[%s1414_s1 + $0x3e0] sm:$0xff] }
  0x2d   :  { %842 = vmatpush3.bf16.msra.mxu0 %v841_v15  ;;  %260 = vmatprep.mubr.f32.mxu0 %v39_v30  ;;  %v153_v55 = vld [vmem:[%s1414_s1 + $0x358] sm:$0xff]  ;;  %v171_v59 = vld [vmem:[%s1414_s1 + $0x3e8] sm:$0xff]  ;;  %v853_v60 = vpack.c.bf16 %v121_v52, %v120_v51  ;;  %v855_v62 = vpack.c.bf16 %v139_v57, %v138_v56  ;;  %v122_v63 = vld [vmem:[%s1414_s1 + $0x260] sm:$0xff] }
  0x2e   :  { %341 = vmatmul.mubr.f32.gmra.mrb[4].mxu1 %v32_v23  ;;  %844 = vmatprep.subr.bf16.mxu0 %v843_v20  ;;  %v885_v61 = vpack.c.bf16 %v153_v55, %v152_v53  ;;  %v123_v0 = vld [vmem:[%s1414_s1 + $0x268] sm:$0xff]  ;;  %v154_v1 = vld [vmem:[%s1414_s1 + $0x360] sm:$0xff]  ;;  %v887_v2 = vpack.c.bf16 %v171_v59, %v170_v58  ;;  %v140_v4 = vld [vmem:[%s1414_s1 + $0x2f0] sm:$0xff] }
  0x2f   :  { %874 = vmatpush3.bf16.msra.mxu1 %v873_v19  ;;  %345 = vmatprep.mubr.f32.mxu1 %v41_v34  ;;  %v155_v3 = vld [vmem:[%s1414_s1 + $0x368] sm:$0xff]  ;;  %v141_v5 = vld [vmem:[%s1414_s1 + $0x2f8] sm:$0xff]  ;;  %v172_v6 = vld [vmem:[%s1414_s1 + $0x3f0] sm:$0xff]  ;;  %v857_v8 = vpack.c.bf16 %v123_v0, %v122_v63 }
  0x30   :  { %876 = vmatprep.subr.bf16.mxu1 %v875_v24  ;;  %261 = vmatmul.mubr.f32.gmra.mrb[6].mxu0 %v38_v33  ;;  %v173_v7 = vld [vmem:[%s1414_s1 + $0x3f8] sm:$0xff]  ;;  %v889_v9 = vpack.c.bf16 %v155_v3, %v154_v1  ;;  %v859_v10 = vpack.c.bf16 %v141_v5, %v140_v4  ;;  %v124_v11 = vld [vmem:[%s1414_s1 + $0x270] sm:$0xff]  ;;  %v18_v18 = vld [vmem:[%s1415_s0 + $0x20] sm:$0xff] }
  0x31   :  { %846 = vmatpush3.bf16.msra.mxu0 %v845_v31  ;;  %415 = vmatprep.mubr.f32.mxu0 %v19_v47  ;;  %v125_v12 = vld [vmem:[%s1414_s1 + $0x278] sm:$0xff]  ;;  %v891_v13 = vpack.c.bf16 %v173_v7, %v172_v6  ;;  %v156_v14 = vld [vmem:[%s1414_s1 + $0x370] sm:$0xff]  ;;  %v27_v20 = vld [vmem:[%s1415_s0 + $0x68] sm:$0xff] }
  0x32   :  { %346 = vmatmul.mubr.f32.gmra.mrb[6].mxu1 %v40_v39  ;;  %848 = vmatprep.subr.bf16.mxu0 %v847_v36  ;;  %v157_v15 = vld [vmem:[%s1414_s1 + $0x378] sm:$0xff]  ;;  %v861_v16 = vpack.c.bf16 %v125_v12, %v124_v11  ;;  %v20_v19 = vld [vmem:[%s1415_s0 + $0x30] sm:$0xff]  ;;  %v26_v22 = vld [vmem:[%s1415_s0 + $0x60] sm:$0xff] }
  0x33   :  { %878 = vmatpush3.bf16.msra.mxu1 %v877_v35  ;;  %500 = vmatprep.mubr.f32.mxu1 %v21_v48  ;;  %v893_v17 = vpack.c.bf16 %v157_v15, %v156_v14  ;;  %v29_v21 = vld [vmem:[%s1415_s0 + $0x78] sm:$0xff]  ;;  %v28_v23 = vld [vmem:[%s1415_s0 + $0x70] sm:$0xff]  ;;  %v35_v24 = vld [vmem:[%s1415_s0 + $0xa8] sm:$0xff] }
  0x34   :  { %880 = vmatprep.subr.bf16.mxu1 %v879_v40  ;;  %v37_v25 = vld [vmem:[%s1415_s0 + $0xb8] sm:$0xff]  ;;  %v34_v26 = vld [vmem:[%s1415_s0 + $0xa0] sm:$0xff]  ;;  %v36_v27 = vld [vmem:[%s1415_s0 + $0xb0] sm:$0xff] }
  0x35   :  { %850 = vmatpush3.bf16.msra.mxu0 %v849_v46  ;;  %v43_v28 = vld [vmem:[%s1415_s0 + $0xe8] sm:$0xff]  ;;  %v45_v29 = vld [vmem:[%s1415_s0 + $0xf8] sm:$0xff]  ;;  %v42_v30 = vld [vmem:[%s1415_s0 + $0xe0] sm:$0xff] }
  0x36   :  { %852 = vmatprep.subr.bf16.mxu0 %v851_v50  ;;  %v44_v31 = vld [vmem:[%s1415_s0 + $0xf0] sm:$0xff]  ;;  %v590_v33 = vld [vmem:[%s1416_s2] ss:$0 sm:$0xff] }
  0x37   :  { %882 = vmatpush3.bf16.msra.mxu1 %v881_v49 }
  0x38   :  { %884 = vmatprep.subr.bf16.mxu1 %v883_v54 }
  0x39   :  { %854 = vmatpush3.bf16.msra.mxu0 %v853_v60 }
  0x3a   :  { %856 = vmatprep.subr.bf16.mxu0 %v855_v62 }
  0x3b   :  { %886 = vmatpush3.bf16.msra.mxu1 %v885_v61 }
  0x3c   :  { %888 = vmatprep.subr.bf16.mxu1 %v887_v2 }
  0x3d   :  { %858 = vmatpush3.bf16.msra.mxu0 %v857_v8 }
  0x3e   :  { %860 = vmatprep.subr.bf16.mxu0 %v859_v10 }
  0x3f   :  { %890 = vmatpush3.bf16.msra.mxu1 %v889_v9 }
  0x40   :  { %892 = vmatprep.subr.bf16.mxu1 %v891_v13 }
  0x41   :  { %862 = vmatpush3.bf16.msra.mxu0 %v861_v16 }
  0x43   :  { %894 = vmatpush3.bf16.msra.mxu1 %v893_v17 }
  0x44   :  { %416 = vmatmul.mubr.f32.vlgmr.msra.gmra.mrb[8].mxu0 %v18_v18 }
  0x45   :  { %420 = vmatprep.mubr.f32.mxu0 %v27_v20 }
  0x46   :  { %501 = vmatmul.mubr.f32.vlgmr.msra.gmra.mrb[8].mxu1 %v20_v19 }
  0x47   :  { %505 = vmatprep.mubr.f32.mxu1 %v29_v21 }
  0x48   :  { %421 = vmatmul.mubr.f32.gmra.mrb[10].mxu0 %v26_v22 }
  0x49   :  { %425 = vmatprep.mubr.f32.mxu0 %v35_v24 }
  0x4a   :  { %506 = vmatmul.mubr.f32.gmra.mrb[10].mxu1 %v28_v23 }
  0x4b   :  { %510 = vmatprep.mubr.f32.mxu1 %v37_v25 }
  0x4c   :  { %426 = vmatmul.mubr.f32.gmra.mrb[12].mxu0 %v34_v26 }
  0x4d   :  { %430 = vmatprep.mubr.f32.mxu0 %v43_v28 }
  0x4e   :  { %511 = vmatmul.mubr.f32.gmra.mrb[12].mxu1 %v36_v27 }
  0x4f   :  { %515 = vmatprep.mubr.f32.mxu1 %v45_v29 }
  0x50   :  { %431 = vmatmul.mubr.f32.gmra.mrb[14].mxu0 %v42_v30 }
  0x52   :  { %516 = vmatmul.mubr.f32.gmra.mrb[14].mxu1 %v44_v31 }
  0xf7   :  { %v623_v32 = vpop.f32.mrb[0].mxu0 }
  0xf8   :  { %v624_v34 = vpop.f32.mrb[1].mxu0 }
  0xf9   :  { %v667_v35 = vpop.f32.mrb[0].mxu1  ;;  %v625_v36 = vadd.f32 %v624_v34, %v623_v32 }
  0xfa   :  { %v668_v37 = vpop.f32.mrb[1].mxu1 }
  0xfb   :  { %v669_v38 = vadd.f32 %v668_v37, %v667_v35  ;;  %v248_v39 = vadd.f32 %v625_v36, %v590_v33  ;;  %v626_v40 = vpop.f32.mrb[2].mxu0 }
  0xfc   :  { %v627_v41 = vpop.f32.mrb[3].mxu0 }
  0xfd   :  { %v670_v42 = vpop.f32.mrb[2].mxu1  ;;  %v333_v43 = vadd.f32 %v669_v38, %v248_v39  ;;  %v628_v44 = vadd.f32 %v627_v41, %v626_v40 }
  0xfe   :  { %v671_v45 = vpop.f32.mrb[3].mxu1 }
  0xff   :  { %v672_v46 = vadd.f32 %v671_v45, %v670_v42  ;;  %v253_v47 = vadd.f32 %v628_v44, %v590_v33  ;;  %v629_v48 = vpop.f32.mrb[4].mxu0 }
 0x100   :  { %v630_v49 = vpop.f32.mrb[5].mxu0 }
 0x101   :  { %v673_v50 = vpop.f32.mrb[4].mxu1  ;;  %v338_v51 = vadd.f32 %v672_v46, %v253_v47  ;;  %v631_v52 = vadd.f32 %v630_v49, %v629_v48 }
 0x102   :  { %v674_v53 = vpop.f32.mrb[5].mxu1 }
 0x103   :  { %v675_v54 = vadd.f32 %v674_v53, %v673_v50  ;;  %v258_v55 = vadd.f32 %v631_v52, %v590_v33  ;;  %v632_v56 = vpop.f32.mrb[6].mxu0 }
 0x104   :  { %v633_v57 = vpop.f32.mrb[7].mxu0 }
 0x105   :  { %v676_v58 = vpop.f32.mrb[6].mxu1  ;;  %v343_v59 = vadd.f32 %v675_v54, %v258_v55  ;;  %v634_v60 = vadd.f32 %v633_v57, %v632_v56 }
 0x106   :  { %v677_v61 = vpop.f32.mrb[7].mxu1 }
 0x107   :  { %v678_v62 = vadd.f32 %v677_v61, %v676_v58  ;;  %v263_v63 = vadd.f32 %v634_v60, %v590_v33 }
 0x109   :  { %v348_v0 = vadd.f32 %v678_v62, %v263_v63 }
 0x117   :  { %v711_v1 = vpop.f32.mrb[8].mxu0 }
 0x118   :  { %v712_v2 = vpop.f32.mrb[9].mxu0 }
 0x119   :  { %v755_v3 = vpop.f32.mrb[8].mxu1  ;;  %v713_v4 = vadd.f32 %v712_v2, %v711_v1 }
 0x11a   :  { %v756_v5 = vpop.f32.mrb[9].mxu1 }
 0x11b   :  { %v757_v6 = vadd.f32 %v756_v5, %v755_v3  ;;  %v418_v7 = vadd.f32 %v713_v4, %v333_v43  ;;  %v714_v8 = vpop.f32.mrb[10].mxu0 }
 0x11c   :  { %v715_v9 = vpop.f32.mrb[11].mxu0 }
 0x11d   :  { %v758_v10 = vpop.f32.mrb[10].mxu1  ;;  %v503_v11 = vadd.f32 %v757_v6, %v418_v7  ;;  %v716_v12 = vadd.f32 %v715_v9, %v714_v8 }
 0x11e   :  { %v759_v13 = vpop.f32.mrb[11].mxu1 }
 0x11f   :  { %v760_v14 = vadd.f32 %v759_v13, %v758_v10  ;;  %v423_v15 = vadd.f32 %v716_v12, %v338_v51  ;;  %v717_v16 = vpop.f32.mrb[12].mxu0 }
 0x120   :  { %v718_v17 = vpop.f32.mrb[13].mxu0 }
 0x121   :  { %v761_v18 = vpop.f32.mrb[12].mxu1  ;;  %v508_v19 = vadd.f32 %v760_v14, %v423_v15  ;;  %v719_v20 = vadd.f32 %v718_v17, %v717_v16 }
 0x122   :  { %v762_v21 = vpop.f32.mrb[13].mxu1 }
 0x123   :  { %v763_v22 = vadd.f32 %v762_v21, %v761_v18  ;;  %v521_v23 = vadd.f32 %v508_v19, %v503_v11  ;;  %v428_v24 = vadd.f32 %v719_v20, %v343_v59  ;;  %v720_v25 = vpop.f32.mrb[14].mxu0 }
 0x124   :  { %v721_v26 = vpop.f32.mrb[15].mxu0 }
 0x125   :  { %v764_v27 = vpop.f32.mrb[14].mxu1  ;;  %v522_v28 = vrot.slane %v521_v23, 4  ;;  %v513_v29 = vadd.f32 %v763_v22, %v428_v24  ;;  %v722_v30 = vadd.f32 %v721_v26, %v720_v25 }
 0x126   :  { %v765_v31 = vpop.f32.mrb[15].mxu1 }
 0x127   :  { %v766_v32 = vadd.f32 %v765_v31, %v764_v27  ;;  %v523_v33 = vadd.f32 %v522_v28, %v521_v23  ;;  %v433_v34 = vadd.f32 %v722_v30, %v348_v0 }
 0x129   :  { %v524_v35 = vrot.slane %v523_v33, 2  ;;  %v518_v36 = vadd.f32 %v766_v32, %v433_v34 }
 0x12b   :  { %v525_v37 = vadd.f32 %v524_v35, %v523_v33  ;;  %v528_v38 = vadd.f32 %v518_v36, %v513_v29 }
 0x12d   :  { %v526_v39 = vrot.slane %v525_v37, 1  ;;  %v529_v40 = vrot.slane %v528_v38, 4 }
 0x12f   :  { %v527_v41 = vadd.f32 %v526_v39, %v525_v37  ;;  %v530_v42 = vadd.f32 %v529_v40, %v528_v38 }
 0x131   :  { %v536_v43 = vmul.f32 0.0625, %v527_v41  ;;  %v531_v44 = vrot.slane %v530_v42, 2 }
 0x133   :  { %v538_v45 = vsub.f32 %v503_v11, %v536_v43  ;;  %v539_v46 = vsub.f32 %v508_v19, %v536_v43  ;;  %v532_v47 = vadd.f32 %v531_v44, %v530_v42 }
 0x135   :  { %v542_v48 = vmul.f32 %v538_v45, %v538_v45  ;;  %v543_v49 = vmul.f32 %v539_v46, %v539_v46  ;;  %v533_v50 = vrot.slane %v532_v47, 1 }
 0x137   :  { %v546_v51 = vadd.f32 %v543_v49, %v542_v48  ;;  %v534_v52 = vadd.f32 %v533_v50, %v532_v47 }
 0x139   :  { %v547_v53 = vrot.slane %v546_v51, 4  ;;  %v537_v54 = vmul.f32 0.0625, %v534_v52 }
 0x13b   :  { %v548_v55 = vadd.f32 %v547_v53, %v546_v51  ;;  %v540_v56 = vsub.f32 %v513_v29, %v537_v54  ;;  %v541_v57 = vsub.f32 %v518_v36, %v537_v54 }
 0x13d   :  { %v549_v58 = vrot.slane %v548_v55, 2  ;;  %v544_v59 = vmul.f32 %v540_v56, %v540_v56  ;;  %v545_v60 = vmul.f32 %v541_v57, %v541_v57 }
 0x13f   :  { %v550_v61 = vadd.f32 %v549_v58, %v548_v55  ;;  %v553_v62 = vadd.f32 %v545_v60, %v544_v59 }
 0x141   :  { %v551_v63 = vrot.slane %v550_v61, 1  ;;  %v554_v0 = vrot.slane %v553_v62, 4 }
 0x143   :  { %v552_v1 = vadd.f32 %v551_v63, %v550_v61  ;;  %v555_v2 = vadd.f32 %v554_v0, %v553_v62 }
 0x145   :  { %v560_v3 = vmul.f32 0.0625, %v552_v1  ;;  %v556_v4 = vrot.slane %v555_v2, 2 }
 0x147   :  { %v562_v5 = vadd.f32 1e-05, %v560_v3  ;;  %v557_v6 = vadd.f32 %v556_v4, %v555_v2 }
 0x149   :  { %895 = vrsqrt.f32 %v562_v5  ;;  %v558_v7 = vrot.slane %v557_v6, 1 }
 0x14b   :  { %v559_v8 = vadd.f32 %v558_v7, %v557_v6 }
 0x14d   :  { %v561_v9 = vmul.f32 0.0625, %v559_v8 }
 0x14f   :  { %v563_v10 = vadd.f32 1e-05, %v561_v9 }
 0x151   :  { %897 = vrsqrt.f32 %v563_v10 }
 0x153   :  { %v896_v11 = vpop.eup %895 }
 0x154   :  { %v566_v12 = vmul.f32 %v896_v11, %v538_v45  ;;  %v567_v13 = vmul.f32 %v896_v11, %v539_v46 }
 0x156   :  { %vm570_vm0 = vcmp.gt.f32.partialorder %v566_v12, 0.0  ;;  %vm571_vm1 = vcmp.gt.f32.partialorder %v567_v13, 0.0  ;;  %v574_v14 = vmul.f32 0.2, %v566_v12  ;;  %v575_v15 = vmul.f32 0.2, %v567_v13 }
 0x158   :  { %v578_v16 = vsel %vm570_vm0, %v566_v12, %v574_v14  ;;  %v579_v17 = vsel %vm571_vm1, %v567_v13, %v575_v15 }
 0x159   :  { %582 = vst [vmem:[%s1417_s3] sm:$0xff] %v578_v16  ;;  %583 = vst [vmem:[%s1417_s3 + $0x8] sm:$0xff] %v579_v17 }
 0x15b   :  { %v898_v18 = vpop.eup %897 }
 0x15c   :  { %v568_v19 = vmul.f32 %v898_v18, %v540_v56  ;;  %v569_v20 = vmul.f32 %v898_v18, %v541_v57 }
 0x15e   :  { %vm572_vm2 = vcmp.gt.f32.partialorder %v568_v19, 0.0  ;;  %vm573_vm3 = vcmp.gt.f32.partialorder %v569_v20, 0.0  ;;  %v576_v21 = vmul.f32 0.2, %v568_v19  ;;  %v577_v22 = vmul.f32 0.2, %v569_v20 }
 0x160   :  { %v580_v23 = vsel %vm572_vm2, %v568_v19, %v576_v21  ;;  %v581_v24 = vsel %vm573_vm3, %v569_v20, %v577_v22 }
 0x161   :  { %584 = vst [vmem:[%s1417_s3 + $0x10] sm:$0xff] %v580_v23  ;;  %585 = vst [vmem:[%s1417_s3 + $0x18] sm:$0xff] %v581_v24 }

// kernel: d_net_multi_forward.12
= control target key start
LH: loop header
LB: loop body
LE: loop exit
PB: predicated region body
PF: predicated region fallthrough
CT: control target
= control target key end

     0   :  { %vm1222_vm0 = vcmask 0   ;;  %vm1220_vm1 = vcmask 7168   ;;  %s2803_s1 = inlined_call_operand.vmem [shape: f32[2048,1], index: 1, kind: input, shape index: {}]   ;;  %s2804_s0 = inlined_call_operand.vmem [shape: f32[18,2048], index: 0, kind: input, shape index: {}]   ;;  %s2805_s2 = inlined_call_operand.<no memory space> [shape: f32[1,1], index: 2, kind: input, shape index: {}]   ;;  %s2806_s3 = inlined_call_operand.vmem [shape: f32[2,9,1], index: 3, kind: output, shape index: {}]  }
   0x1   :  { %v80_v0 = vld [vmem:[%s2803_s1 + $0x80] sm:$0xff]  ;;  %v81_v1 = vld [vmem:[%s2803_s1 + $0x88] sm:$0xff]  ;;  %v82_v11 = vld [vmem:[%s2803_s1 + $0x90] sm:$0xff] }
   0x2   :  { %v64_v2 = vld [vmem:[%s2803_s1] sm:$0xff]  ;;  %v1561_v3 = vpack.c.bf16 %v81_v1, %v80_v0  ;;  %v65_v4 = vld [vmem:[%s2803_s1 + $0x8] sm:$0xff]  ;;  %v83_v13 = vld [vmem:[%s2803_s1 + $0x98] sm:$0xff] }
   0x3   :  { %v112_v5 = vld [vmem:[%s2803_s1 + $0x180] sm:$0xff]  ;;  %v113_v6 = vld [vmem:[%s2803_s1 + $0x188] sm:$0xff]  ;;  %v1563_v7 = vpack.c.bf16 %v65_v4, %v64_v2  ;;  %v66_v14 = vld [vmem:[%s2803_s1 + $0x10] sm:$0xff]  ;;  %v1565_v16 = vpack.c.bf16 %v83_v13, %v82_v11 }
   0x4   :  { %v1593_v8 = vpack.c.bf16 %v113_v6, %v112_v5  ;;  %v96_v9 = vld [vmem:[%s2803_s1 + $0x100] sm:$0xff]  ;;  %v97_v10 = vld [vmem:[%s2803_s1 + $0x108] sm:$0xff]  ;;  %1562 = vmatprep.subr.bf16.mxu0 %v1561_v3  ;;  %v67_v15 = vld [vmem:[%s2803_s1 + $0x18] sm:$0xff] }
   0x5   :  { %v1595_v12 = vpack.c.bf16 %v97_v10, %v96_v9  ;;  %1564 = vmatpush3.bf16.msra.mxu0 %v1563_v7  ;;  %v1567_v17 = vpack.c.bf16 %v67_v15, %v66_v14  ;;  %v114_v18 = vld [vmem:[%s2803_s1 + $0x190] sm:$0xff]  ;;  %v115_v19 = vld [vmem:[%s2803_s1 + $0x198] sm:$0xff]  ;;  %v84_v23 = vld [vmem:[%s2803_s1 + $0xa0] sm:$0xff] }
   0x6   :  { %1594 = vmatprep.subr.bf16.mxu1 %v1593_v8  ;;  %v98_v20 = vld [vmem:[%s2803_s1 + $0x110] sm:$0xff]  ;;  %v1597_v21 = vpack.c.bf16 %v115_v19, %v114_v18  ;;  %v99_v22 = vld [vmem:[%s2803_s1 + $0x118] sm:$0xff]  ;;  %v85_v24 = vld [vmem:[%s2803_s1 + $0xa8] sm:$0xff]  ;;  %1566 = vmatprep.subr.bf16.mxu0 %v1565_v16 }
   0x7   :  { %1596 = vmatpush3.bf16.msra.mxu1 %v1595_v12  ;;  %v1599_v25 = vpack.c.bf16 %v99_v22, %v98_v20  ;;  %v1569_v26 = vpack.c.bf16 %v85_v24, %v84_v23  ;;  %v68_v27 = vld [vmem:[%s2803_s1 + $0x20] sm:$0xff]  ;;  %v69_v28 = vld [vmem:[%s2803_s1 + $0x28] sm:$0xff]  ;;  %v86_v35 = vld [vmem:[%s2803_s1 + $0xb0] sm:$0xff] }
   0x8   :  { %v116_v29 = vld [vmem:[%s2803_s1 + $0x1a0] sm:$0xff]  ;;  %1598 = vmatprep.subr.bf16.mxu1 %v1597_v21  ;;  %v117_v30 = vld [vmem:[%s2803_s1 + $0x1a8] sm:$0xff]  ;;  %v1571_v33 = vpack.c.bf16 %v69_v28, %v68_v27  ;;  %v87_v36 = vld [vmem:[%s2803_s1 + $0xb8] sm:$0xff] }
   0x9   :  { %v100_v31 = vld [vmem:[%s2803_s1 + $0x120] sm:$0xff]  ;;  %v101_v32 = vld [vmem:[%s2803_s1 + $0x128] sm:$0xff]  ;;  %1568 = vmatpush3.bf16.msra.mxu0 %v1567_v17  ;;  %v1601_v34 = vpack.c.bf16 %v117_v30, %v116_v29  ;;  %v70_v37 = vld [vmem:[%s2803_s1 + $0x30] sm:$0xff]  ;;  %v1573_v39 = vpack.c.bf16 %v87_v36, %v86_v35 }
   0xa   :  { %1570 = vmatprep.subr.bf16.mxu0 %v1569_v26  ;;  %v1603_v38 = vpack.c.bf16 %v101_v32, %v100_v31  ;;  %v71_v40 = vld [vmem:[%s2803_s1 + $0x38] sm:$0xff]  ;;  %v118_v41 = vld [vmem:[%s2803_s1 + $0x1b0] sm:$0xff]  ;;  %v88_v46 = vld [vmem:[%s2803_s1 + $0xc0] sm:$0xff] }
   0xb   :  { %1600 = vmatpush3.bf16.msra.mxu1 %v1599_v25  ;;  %v119_v42 = vld [vmem:[%s2803_s1 + $0x1b8] sm:$0xff]  ;;  %v102_v44 = vld [vmem:[%s2803_s1 + $0x130] sm:$0xff]  ;;  %v89_v47 = vld [vmem:[%s2803_s1 + $0xc8] sm:$0xff]  ;;  %v1575_v48 = vpack.c.bf16 %v71_v40, %v70_v37 }
   0xc   :  { %1602 = vmatprep.subr.bf16.mxu1 %v1601_v34  ;;  %v1605_v43 = vpack.c.bf16 %v119_v42, %v118_v41  ;;  %v103_v45 = vld [vmem:[%s2803_s1 + $0x138] sm:$0xff]  ;;  %v120_v49 = vld [vmem:[%s2803_s1 + $0x1c0] sm:$0xff]  ;;  %v121_v50 = vld [vmem:[%s2803_s1 + $0x1c8] sm:$0xff]  ;;  %v1577_v52 = vpack.c.bf16 %v89_v47, %v88_v46 }
   0xd   :  { %1572 = vmatpush3.bf16.msra.mxu0 %v1571_v33  ;;  %v1607_v51 = vpack.c.bf16 %v103_v45, %v102_v44  ;;  %v72_v53 = vld [vmem:[%s2803_s1 + $0x40] sm:$0xff]  ;;  %v73_v54 = vld [vmem:[%s2803_s1 + $0x48] sm:$0xff]  ;;  %v1609_v56 = vpack.c.bf16 %v121_v50, %v120_v49  ;;  %v90_v58 = vld [vmem:[%s2803_s1 + $0xd0] sm:$0xff] }
   0xe   :  { %1574 = vmatprep.subr.bf16.mxu0 %v1573_v39  ;;  %v104_v55 = vld [vmem:[%s2803_s1 + $0x140] sm:$0xff]  ;;  %v105_v57 = vld [vmem:[%s2803_s1 + $0x148] sm:$0xff]  ;;  %v91_v59 = vld [vmem:[%s2803_s1 + $0xd8] sm:$0xff]  ;;  %v1579_v62 = vpack.c.bf16 %v73_v54, %v72_v53 }
   0xf   :  { %1604 = vmatpush3.bf16.msra.mxu1 %v1603_v38  ;;  %v122_v60 = vld [vmem:[%s2803_s1 + $0x1d0] sm:$0xff]  ;;  %v123_v61 = vld [vmem:[%s2803_s1 + $0x1d8] sm:$0xff]  ;;  %v1611_v63 = vpack.c.bf16 %v105_v57, %v104_v55  ;;  %v1581_v0 = vpack.c.bf16 %v91_v59, %v90_v58  ;;  %v92_v6 = vld [vmem:[%s2803_s1 + $0xe0] sm:$0xff] }
  0x10   :  { %1606 = vmatprep.subr.bf16.mxu1 %v1605_v43  ;;  %v74_v1 = vld [vmem:[%s2803_s1 + $0x50] sm:$0xff]  ;;  %v75_v2 = vld [vmem:[%s2803_s1 + $0x58] sm:$0xff]  ;;  %v1613_v4 = vpack.c.bf16 %v123_v61, %v122_v60  ;;  %v93_v7 = vld [vmem:[%s2803_s1 + $0xe8] sm:$0xff] }
  0x11   :  { %1576 = vmatpush3.bf16.msra.mxu0 %v1575_v48  ;;  %v106_v3 = vld [vmem:[%s2803_s1 + $0x150] sm:$0xff]  ;;  %v107_v5 = vld [vmem:[%s2803_s1 + $0x158] sm:$0xff]  ;;  %v124_v8 = vld [vmem:[%s2803_s1 + $0x1e0] sm:$0xff]  ;;  %v1583_v10 = vpack.c.bf16 %v75_v2, %v74_v1  ;;  %v1585_v14 = vpack.c.bf16 %v93_v7, %v92_v6 }
  0x12   :  { %1578 = vmatprep.subr.bf16.mxu0 %v1577_v52  ;;  %v125_v9 = vld [vmem:[%s2803_s1 + $0x1e8] sm:$0xff]  ;;  %v76_v11 = vld [vmem:[%s2803_s1 + $0x60] sm:$0xff]  ;;  %v1615_v13 = vpack.c.bf16 %v107_v5, %v106_v3  ;;  %v94_v19 = vld [vmem:[%s2803_s1 + $0xf0] sm:$0xff] }
  0x13   :  { %1608 = vmatpush3.bf16.msra.mxu1 %v1607_v51  ;;  %v77_v12 = vld [vmem:[%s2803_s1 + $0x68] sm:$0xff]  ;;  %v108_v15 = vld [vmem:[%s2803_s1 + $0x160] sm:$0xff]  ;;  %v1617_v18 = vpack.c.bf16 %v125_v9, %v124_v8  ;;  %v95_v20 = vld [vmem:[%s2803_s1 + $0xf8] sm:$0xff] }
  0x14   :  { %1610 = vmatprep.subr.bf16.mxu1 %v1609_v56  ;;  %v109_v16 = vld [vmem:[%s2803_s1 + $0x168] sm:$0xff]  ;;  %v19_v21 = vld [vmem:[%s2804_s0 + $0x18] sm:$0xff]  ;;  %v126_v22 = vld [vmem:[%s2803_s1 + $0x1f0] sm:$0xff]  ;;  %v1587_v24 = vpack.c.bf16 %v77_v12, %v76_v11  ;;  %v1589_v26 = vpack.c.bf16 %v95_v20, %v94_v19 }
  0x15   :  { %1580 = vmatpush3.bf16.msra.mxu0 %v1579_v62  ;;  %v17_v17 = vld [vmem:[%s2804_s0 + $0x8] sm:$0xff]  ;;  %v127_v23 = vld [vmem:[%s2803_s1 + $0x1f8] sm:$0xff]  ;;  %471 = vmatprep.mubr.f32.mxu1 %v19_v21  ;;  %v1619_v25 = vpack.c.bf16 %v109_v16, %v108_v15  ;;  %v78_v27 = vld [vmem:[%s2803_s1 + $0x70] sm:$0xff] }
  0x16   :  { %1582 = vmatprep.subr.bf16.mxu0 %v1581_v0  ;;  %391 = vmatprep.mubr.f32.mxu0 %v17_v17  ;;  %v79_v28 = vld [vmem:[%s2803_s1 + $0x78] sm:$0xff]  ;;  %v110_v29 = vld [vmem:[%s2803_s1 + $0x170] sm:$0xff]  ;;  %v1621_v30 = vpack.c.bf16 %v127_v23, %v126_v22  ;;  %v144_v32 = vld [vmem:[%s2803_s1 + $0x280] sm:$0xff] }
  0x17   :  { %1612 = vmatpush3.bf16.msra.mxu1 %v1611_v63  ;;  %v111_v31 = vld [vmem:[%s2803_s1 + $0x178] sm:$0xff]  ;;  %v145_v33 = vld [vmem:[%s2803_s1 + $0x288] sm:$0xff]  ;;  %v176_v34 = vld [vmem:[%s2803_s1 + $0x380] sm:$0xff]  ;;  %v1591_v36 = vpack.c.bf16 %v79_v28, %v78_v27 }
  0x18   :  { %1614 = vmatprep.subr.bf16.mxu1 %v1613_v4  ;;  %v177_v35 = vld [vmem:[%s2803_s1 + $0x388] sm:$0xff]  ;;  %v1623_v37 = vpack.c.bf16 %v111_v31, %v110_v29  ;;  %v1625_v38 = vpack.c.bf16 %v145_v33, %v144_v32  ;;  %v128_v39 = vld [vmem:[%s2803_s1 + $0x200] sm:$0xff]  ;;  %v146_v44 = vld [vmem:[%s2803_s1 + $0x290] sm:$0xff] }
  0x19   :  { %1584 = vmatpush3.bf16.msra.mxu0 %v1583_v10  ;;  %v129_v40 = vld [vmem:[%s2803_s1 + $0x208] sm:$0xff]  ;;  %v160_v41 = vld [vmem:[%s2803_s1 + $0x300] sm:$0xff]  ;;  %v1657_v42 = vpack.c.bf16 %v177_v35, %v176_v34  ;;  %v147_v45 = vld [vmem:[%s2803_s1 + $0x298] sm:$0xff] }
  0x1a   :  { %1586 = vmatprep.subr.bf16.mxu0 %v1585_v14  ;;  %v161_v43 = vld [vmem:[%s2803_s1 + $0x308] sm:$0xff]  ;;  %v178_v46 = vld [vmem:[%s2803_s1 + $0x390] sm:$0xff]  ;;  %v179_v47 = vld [vmem:[%s2803_s1 + $0x398] sm:$0xff]  ;;  %v1627_v49 = vpack.c.bf16 %v129_v40, %v128_v39  ;;  %v1629_v52 = vpack.c.bf16 %v147_v45, %v146_v44 }
  0x1b   :  { %1616 = vmatpush3.bf16.msra.mxu1 %v1615_v13  ;;  %v16_v48 = vld [vmem:[%s2804_s0] sm:$0xff]  ;;  %v18_v50 = vld [vmem:[%s2804_s0 + $0x10] sm:$0xff]  ;;  %v1659_v51 = vpack.c.bf16 %v161_v43, %v160_v41  ;;  %v131_v54 = vld [vmem:[%s2803_s1 + $0x218] sm:$0xff]  ;;  %v1661_v56 = vpack.c.bf16 %v179_v47, %v178_v46 }
  0x1c   :  { %1618 = vmatprep.subr.bf16.mxu1 %v1617_v18  ;;  %v130_v53 = vld [vmem:[%s2803_s1 + $0x210] sm:$0xff]  ;;  %v163_v57 = vld [vmem:[%s2803_s1 + $0x318] sm:$0xff]  ;;  %v148_v58 = vld [vmem:[%s2803_s1 + $0x2a0] sm:$0xff] }
  0x1d   :  { %1588 = vmatpush3.bf16.msra.mxu0 %v1587_v24  ;;  %v162_v55 = vld [vmem:[%s2803_s1 + $0x310] sm:$0xff]  ;;  %v149_v59 = vld [vmem:[%s2803_s1 + $0x2a8] sm:$0xff]  ;;  %v180_v60 = vld [vmem:[%s2803_s1 + $0x3a0] sm:$0xff]  ;;  %v1631_v62 = vpack.c.bf16 %v131_v54, %v130_v53 }
  0x1e   :  { %1590 = vmatprep.subr.bf16.mxu0 %v1589_v26  ;;  %v181_v61 = vld [vmem:[%s2803_s1 + $0x3a8] sm:$0xff]  ;;  %v132_v63 = vld [vmem:[%s2803_s1 + $0x220] sm:$0xff]  ;;  %v1663_v0 = vpack.c.bf16 %v163_v57, %v162_v55  ;;  %v1633_v1 = vpack.c.bf16 %v149_v59, %v148_v58  ;;  %v150_v6 = vld [vmem:[%s2803_s1 + $0x2b0] sm:$0xff] }
  0x1f   :  { %1620 = vmatpush3.bf16.msra.mxu1 %v1619_v25  ;;  %v133_v2 = vld [vmem:[%s2803_s1 + $0x228] sm:$0xff]  ;;  %v164_v3 = vld [vmem:[%s2803_s1 + $0x320] sm:$0xff]  ;;  %v1665_v5 = vpack.c.bf16 %v181_v61, %v180_v60  ;;  %v151_v7 = vld [vmem:[%s2803_s1 + $0x2b8] sm:$0xff] }
  0x20   :  { %1622 = vmatprep.subr.bf16.mxu1 %v1621_v30  ;;  %v165_v4 = vld [vmem:[%s2803_s1 + $0x328] sm:$0xff]  ;;  %v182_v9 = vld [vmem:[%s2803_s1 + $0x3b0] sm:$0xff]  ;;  %v183_v10 = vld [vmem:[%s2803_s1 + $0x3b8] sm:$0xff]  ;;  %v1635_v12 = vpack.c.bf16 %v133_v2, %v132_v63  ;;  %v1637_v17 = vpack.c.bf16 %v151_v7, %v150_v6 }
  0x21   :  { %1592 = vmatpush3.bf16.msra.mxu0 %v1591_v36  ;;  %v33_v8 = vld [vmem:[%s2804_s0 + $0x88] sm:$0xff]  ;;  %v32_v11 = vld [vmem:[%s2804_s0 + $0x80] sm:$0xff]  ;;  %v134_v13 = vld [vmem:[%s2803_s1 + $0x230] sm:$0xff]  ;;  %v1667_v16 = vpack.c.bf16 %v165_v4, %v164_v3  ;;  %v1669_v21 = vpack.c.bf16 %v183_v10, %v182_v9 }
  0x22   :  { %1626 = vmatprep.subr.bf16.mxu0 %v1625_v38  ;;  %v135_v14 = vld [vmem:[%s2803_s1 + $0x238] sm:$0xff]  ;;  %v166_v18 = vld [vmem:[%s2803_s1 + $0x330] sm:$0xff]  ;;  %v152_v22 = vld [vmem:[%s2803_s1 + $0x2c0] sm:$0xff] }
  0x23   :  { %1624 = vmatpush3.bf16.msra.mxu1 %v1623_v37  ;;  %v35_v15 = vld [vmem:[%s2804_s0 + $0x98] sm:$0xff]  ;;  %v34_v20 = vld [vmem:[%s2804_s0 + $0x90] sm:$0xff]  ;;  %v153_v23 = vld [vmem:[%s2803_s1 + $0x2c8] sm:$0xff]  ;;  %v1639_v28 = vpack.c.bf16 %v135_v14, %v134_v13 }
  0x24   :  { %1658 = vmatprep.subr.bf16.mxu1 %v1657_v42  ;;  %392 = vmatmul.mubr.f32.vlgmr.msra.gmra.mrb[0].mxu0 %v16_v48  ;;  %v167_v19 = vld [vmem:[%s2803_s1 + $0x338] sm:$0xff]  ;;  %v49_v24 = vld [vmem:[%s2804_s0 + $0x108] sm:$0x3]  ;;  %v184_v25 = vld [vmem:[%s2803_s1 + $0x3c0] sm:$0xff]  ;;  %v1641_v33 = vpack.c.bf16 %v153_v23, %v152_v22 }
  0x25   :  { %1628 = vmatpush3.bf16.msra.mxu0 %v1627_v49  ;;  %396 = vmatprep.mubr.f32.mxu0 %v33_v8  ;;  %v185_v26 = vld [vmem:[%s2803_s1 + $0x3c8] sm:$0xff]  ;;  %v48_v27 = vld [vmem:[%s2804_s0 + $0x100] sm:$0x3]  ;;  %v51_v31 = vld [vmem:[%s2804_s0 + $0x118] sm:$0x3]  ;;  %v1671_v32 = vpack.c.bf16 %v167_v19, %v166_v18 }
  0x26   :  { %472 = vmatmul.mubr.f32.vlgmr.msra.gmra.mrb[0].mxu1 %v18_v50  ;;  %1630 = vmatprep.subr.bf16.mxu0 %v1629_v52  ;;  %v136_v29 = vld [vmem:[%s2803_s1 + $0x240] sm:$0xff]  ;;  %v137_v30 = vld [vmem:[%s2803_s1 + $0x248] sm:$0xff]  ;;  %v50_v36 = vld [vmem:[%s2804_s0 + $0x110] sm:$0x3]  ;;  %v1673_v37 = vpack.c.bf16 %v185_v26, %v184_v25 }
  0x27   :  { %1660 = vmatpush3.bf16.msra.mxu1 %v1659_v51  ;;  %476 = vmatprep.mubr.f32.mxu1 %v35_v15  ;;  %v168_v34 = vld [vmem:[%s2803_s1 + $0x340] sm:$0xff]  ;;  %v169_v35 = vld [vmem:[%s2803_s1 + $0x348] sm:$0xff]  ;;  %v154_v38 = vld [vmem:[%s2803_s1 + $0x2d0] sm:$0xff]  ;;  %v1643_v43 = vpack.c.bf16 %v137_v30, %v136_v29 }
  0x28   :  { %1662 = vmatprep.subr.bf16.mxu1 %v1661_v56  ;;  %397 = vmatmul.mubr.f32.gmra.mrb[2].mxu0 %v32_v11  ;;  %v155_v39 = vld [vmem:[%s2803_s1 + $0x2d8] sm:$0xff]  ;;  %v21_v40 = vld [vmem:[%s2804_s0 + $0x28] sm:$0xff]  ;;  %v186_v41 = vld [vmem:[%s2803_s1 + $0x3d0] sm:$0xff]  ;;  %v1675_v45 = vpack.c.bf16 %v169_v35, %v168_v34 }
  0x29   :  { %1632 = vmatpush3.bf16.msra.mxu0 %v1631_v62  ;;  %401 = vmatprep.mubr.f32.mxu0 %v49_v24  ;;  %v187_v42 = vld [vmem:[%s2803_s1 + $0x3d8] sm:$0xff]  ;;  %v1645_v46 = vpack.c.bf16 %v155_v39, %v154_v38  ;;  %v138_v47 = vld [vmem:[%s2803_s1 + $0x250] sm:$0xff]  ;;  %v156_v52 = vld [vmem:[%s2803_s1 + $0x2e0] sm:$0xff] }
  0x2a   :  { %1634 = vmatprep.subr.bf16.mxu0 %v1633_v1  ;;  %477 = vmatmul.mubr.f32.gmra.mrb[2].mxu1 %v34_v20  ;;  %v23_v44 = vld [vmem:[%s2804_s0 + $0x38] sm:$0xff]  ;;  %v170_v49 = vld [vmem:[%s2803_s1 + $0x350] sm:$0xff]  ;;  %v1677_v50 = vpack.c.bf16 %v187_v42, %v186_v41  ;;  %v157_v53 = vld [vmem:[%s2803_s1 + $0x2e8] sm:$0xff] }
  0x2b   :  { %1664 = vmatpush3.bf16.msra.mxu1 %v1663_v0  ;;  %481 = vmatprep.mubr.f32.mxu1 %v51_v31  ;;  %v139_v48 = vld [vmem:[%s2803_s1 + $0x258] sm:$0xff]  ;;  %v188_v54 = vld [vmem:[%s2803_s1 + $0x3e0] sm:$0xff]  ;;  %v189_v55 = vld [vmem:[%s2803_s1 + $0x3e8] sm:$0xff]  ;;  %v1649_v58 = vpack.c.bf16 %v157_v53, %v156_v52 }
  0x2c   :  { %1666 = vmatprep.subr.bf16.mxu1 %v1665_v5  ;;  %402 = vmatmul.mubr.f32.gmra.mrb[4].mxu0 %v48_v27  ;;  %v171_v51 = vld [vmem:[%s2803_s1 + $0x358] sm:$0xff]  ;;  %v1647_v56 = vpack.c.bf16 %v139_v48, %v138_v47  ;;  %v140_v59 = vld [vmem:[%s2803_s1 + $0x260] sm:$0xff]  ;;  %v141_v60 = vld [vmem:[%s2803_s1 + $0x268] sm:$0xff]  ;;  %v1681_v62 = vpack.c.bf16 %v189_v55, %v188_v54 }
  0x2d   :  { %1636 = vmatpush3.bf16.msra.mxu0 %v1635_v12  ;;  %551 = vmatprep.mubr.f32.mxu0 %v21_v40  ;;  %v1679_v57 = vpack.c.bf16 %v171_v51, %v170_v49  ;;  %v172_v61 = vld [vmem:[%s2803_s1 + $0x360] sm:$0xff]  ;;  %v173_v63 = vld [vmem:[%s2803_s1 + $0x368] sm:$0xff]  ;;  %v158_v0 = vld [vmem:[%s2803_s1 + $0x2f0] sm:$0xff]  ;;  %v1651_v4 = vpack.c.bf16 %v141_v60, %v140_v59 }
  0x2e   :  { %1638 = vmatprep.subr.bf16.mxu0 %v1637_v17  ;;  %482 = vmatmul.mubr.f32.gmra.mrb[4].mxu1 %v50_v36  ;;  %v159_v1 = vld [vmem:[%s2803_s1 + $0x2f8] sm:$0xff]  ;;  %v190_v2 = vld [vmem:[%s2803_s1 + $0x3f0] sm:$0xff]  ;;  %v1683_v5 = vpack.c.bf16 %v173_v63, %v172_v61  ;;  %v208_v12 = vld [vmem:[%s2803_s1 + $0x480] sm:$0xff] }
  0x2f   :  { %1668 = vmatpush3.bf16.msra.mxu1 %v1667_v16  ;;  %631 = vmatprep.mubr.f32.mxu1 %v23_v44  ;;  %v191_v3 = vld [vmem:[%s2803_s1 + $0x3f8] sm:$0xff]  ;;  %v1653_v6 = vpack.c.bf16 %v159_v1, %v158_v0  ;;  %v142_v7 = vld [vmem:[%s2803_s1 + $0x270] sm:$0xff]  ;;  %v209_v13 = vld [vmem:[%s2803_s1 + $0x488] sm:$0xff] }
  0x30   :  { %1670 = vmatprep.subr.bf16.mxu1 %v1669_v21  ;;  %v143_v8 = vld [vmem:[%s2803_s1 + $0x278] sm:$0xff]  ;;  %v174_v9 = vld [vmem:[%s2803_s1 + $0x370] sm:$0xff]  ;;  %v1685_v10 = vpack.c.bf16 %v191_v3, %v190_v2  ;;  %v240_v14 = vld [vmem:[%s2803_s1 + $0x580] sm:$0xff]  ;;  %v1689_v18 = vpack.c.bf16 %v209_v13, %v208_v12 }
  0x31   :  { %1640 = vmatpush3.bf16.msra.mxu0 %v1639_v28  ;;  %v175_v11 = vld [vmem:[%s2803_s1 + $0x378] sm:$0xff]  ;;  %v241_v15 = vld [vmem:[%s2803_s1 + $0x588] sm:$0xff]  ;;  %v1655_v16 = vpack.c.bf16 %v143_v8, %v142_v7  ;;  %v192_v19 = vld [vmem:[%s2803_s1 + $0x400] sm:$0xff] }
  0x32   :  { %1642 = vmatprep.subr.bf16.mxu0 %v1641_v33  ;;  %v1687_v17 = vpack.c.bf16 %v175_v11, %v174_v9  ;;  %v193_v20 = vld [vmem:[%s2803_s1 + $0x408] sm:$0xff]  ;;  %v1721_v21 = vpack.c.bf16 %v241_v15, %v240_v14  ;;  %v224_v22 = vld [vmem:[%s2803_s1 + $0x500] sm:$0xff]  ;;  %v210_v25 = vld [vmem:[%s2803_s1 + $0x490] sm:$0xff] }
  0x33   :  { %1672 = vmatpush3.bf16.msra.mxu1 %v1671_v32  ;;  %v225_v23 = vld [vmem:[%s2803_s1 + $0x508] sm:$0xff]  ;;  %v20_v24 = vld [vmem:[%s2804_s0 + $0x20] sm:$0xff]  ;;  %v211_v26 = vld [vmem:[%s2803_s1 + $0x498] sm:$0xff]  ;;  %v1691_v27 = vpack.c.bf16 %v193_v20, %v192_v19 }
  0x34   :  { %1674 = vmatprep.subr.bf16.mxu1 %v1673_v37  ;;  %v22_v28 = vld [vmem:[%s2804_s0 + $0x30] sm:$0xff]  ;;  %v243_v30 = vld [vmem:[%s2803_s1 + $0x598] sm:$0xff]  ;;  %v1723_v31 = vpack.c.bf16 %v225_v23, %v224_v22  ;;  %v37_v32 = vld [vmem:[%s2804_s0 + $0xa8] sm:$0xff]  ;;  %v1693_v36 = vpack.c.bf16 %v211_v26, %v210_v25 }
  0x35   :  { %1644 = vmatpush3.bf16.msra.mxu0 %v1643_v43  ;;  %v242_v29 = vld [vmem:[%s2803_s1 + $0x590] sm:$0xff]  ;;  %v195_v34 = vld [vmem:[%s2803_s1 + $0x418] sm:$0xff]  ;;  %v36_v35 = vld [vmem:[%s2804_s0 + $0xa0] sm:$0xff] }
  0x36   :  { %1646 = vmatprep.subr.bf16.mxu0 %v1645_v46  ;;  %v194_v33 = vld [vmem:[%s2803_s1 + $0x410] sm:$0xff]  ;;  %v39_v37 = vld [vmem:[%s2804_s0 + $0xb8] sm:$0xff]  ;;  %v1725_v40 = vpack.c.bf16 %v243_v30, %v242_v29  ;;  %v212_v42 = vld [vmem:[%s2803_s1 + $0x4a0] sm:$0xff] }
  0x37   :  { %1676 = vmatpush3.bf16.msra.mxu1 %v1675_v45  ;;  %v226_v38 = vld [vmem:[%s2803_s1 + $0x510] sm:$0xff]  ;;  %v227_v39 = vld [vmem:[%s2803_s1 + $0x518] sm:$0xff]  ;;  %v213_v43 = vld [vmem:[%s2803_s1 + $0x4a8] sm:$0xff]  ;;  %v1695_v44 = vpack.c.bf16 %v195_v34, %v194_v33 }
  0x38   :  { %1678 = vmatprep.subr.bf16.mxu1 %v1677_v50  ;;  %v38_v41 = vld [vmem:[%s2804_s0 + $0xb0] sm:$0xff]  ;;  %v53_v45 = vld [vmem:[%s2804_s0 + $0x128] sm:$0x3]  ;;  %v244_v46 = vld [vmem:[%s2803_s1 + $0x5a0] sm:$0xff]  ;;  %v1727_v48 = vpack.c.bf16 %v227_v39, %v226_v38  ;;  %v1697_v52 = vpack.c.bf16 %v213_v43, %v212_v42 }
  0x39   :  { %1648 = vmatpush3.bf16.msra.mxu0 %v1647_v56  ;;  %v245_v47 = vld [vmem:[%s2803_s1 + $0x5a8] sm:$0xff]  ;;  %v196_v49 = vld [vmem:[%s2803_s1 + $0x420] sm:$0xff]  ;;  %v214_v54 = vld [vmem:[%s2803_s1 + $0x4b0] sm:$0xff] }
  0x3a   :  { %1650 = vmatprep.subr.bf16.mxu0 %v1649_v58  ;;  %v197_v50 = vld [vmem:[%s2803_s1 + $0x428] sm:$0xff]  ;;  %v228_v51 = vld [vmem:[%s2803_s1 + $0x520] sm:$0xff]  ;;  %v215_v55 = vld [vmem:[%s2803_s1 + $0x4b8] sm:$0xff] }
  0x3b   :  { %1680 = vmatpush3.bf16.msra.mxu1 %v1679_v57  ;;  %v229_v53 = vld [vmem:[%s2803_s1 + $0x528] sm:$0xff]  ;;  %v55_v56 = vld [vmem:[%s2804_s0 + $0x138] sm:$0x3]  ;;  %v1729_v57 = vpack.c.bf16 %v245_v47, %v244_v46  ;;  %v246_v58 = vld [vmem:[%s2803_s1 + $0x5b0] sm:$0xff]  ;;  %v1699_v61 = vpack.c.bf16 %v197_v50, %v196_v49  ;;  %v1701_v0 = vpack.c.bf16 %v215_v55, %v214_v54 }
  0x3c   :  { %1682 = vmatprep.subr.bf16.mxu1 %v1681_v62  ;;  %v247_v59 = vld [vmem:[%s2803_s1 + $0x5b8] sm:$0xff]  ;;  %v52_v60 = vld [vmem:[%s2804_s0 + $0x120] sm:$0x3]  ;;  %v54_v62 = vld [vmem:[%s2804_s0 + $0x130] sm:$0x3]  ;;  %v1731_v63 = vpack.c.bf16 %v229_v53, %v228_v51 }
  0x3d   :  { %1652 = vmatpush3.bf16.msra.mxu0 %v1651_v4  ;;  %v198_v1 = vld [vmem:[%s2803_s1 + $0x430] sm:$0xff]  ;;  %v199_v2 = vld [vmem:[%s2803_s1 + $0x438] sm:$0xff]  ;;  %v1733_v4 = vpack.c.bf16 %v247_v59, %v246_v58  ;;  %v217_v7 = vld [vmem:[%s2803_s1 + $0x4c8] sm:$0xff] }
  0x3e   :  { %1654 = vmatprep.subr.bf16.mxu0 %v1653_v6  ;;  %v230_v3 = vld [vmem:[%s2803_s1 + $0x530] sm:$0xff]  ;;  %v216_v6 = vld [vmem:[%s2803_s1 + $0x4c0] sm:$0xff]  ;;  %v249_v9 = vld [vmem:[%s2803_s1 + $0x5c8] sm:$0xff]  ;;  %v1703_v11 = vpack.c.bf16 %v199_v2, %v198_v1 }
  0x3f   :  { %1684 = vmatpush3.bf16.msra.mxu1 %v1683_v5  ;;  %v231_v5 = vld [vmem:[%s2803_s1 + $0x538] sm:$0xff]  ;;  %v248_v8 = vld [vmem:[%s2803_s1 + $0x5c0] sm:$0xff]  ;;  %v1705_v14 = vpack.c.bf16 %v217_v7, %v216_v6  ;;  %v233_v19 = vld [vmem:[%s2803_s1 + $0x548] sm:$0xff] }
  0x40   :  { %1686 = vmatprep.subr.bf16.mxu1 %v1685_v10  ;;  %v25_v10 = vld [vmem:[%s2804_s0 + $0x48] sm:$0xff]  ;;  %v27_v12 = vld [vmem:[%s2804_s0 + $0x58] sm:$0xff]  ;;  %v1735_v13 = vpack.c.bf16 %v231_v5, %v230_v3  ;;  %v200_v15 = vld [vmem:[%s2803_s1 + $0x440] sm:$0xff] }
  0x41   :  { %1656 = vmatpush3.bf16.msra.mxu0 %v1655_v16  ;;  %v201_v16 = vld [vmem:[%s2803_s1 + $0x448] sm:$0xff]  ;;  %v218_v20 = vld [vmem:[%s2803_s1 + $0x4d0] sm:$0xff]  ;;  %v251_v23 = vld [vmem:[%s2803_s1 + $0x5d8] sm:$0xff] }
  0x42   :  { %1690 = vmatprep.subr.bf16.mxu0 %v1689_v18  ;;  %v1737_v18 = vpack.c.bf16 %v249_v9, %v248_v8  ;;  %v250_v22 = vld [vmem:[%s2803_s1 + $0x5d0] sm:$0xff]  ;;  %v221_v33 = vld [vmem:[%s2803_s1 + $0x4e8] sm:$0xff]  ;;  %v252_v34 = vld [vmem:[%s2803_s1 + $0x5e0] sm:$0xff] }
  0x43   :  { %1688 = vmatpush3.bf16.msra.mxu1 %v1687_v17  ;;  %v232_v17 = vld [vmem:[%s2803_s1 + $0x540] sm:$0xff]  ;;  %v234_v29 = vld [vmem:[%s2803_s1 + $0x550] sm:$0xff]  ;;  %v1741_v30 = vpack.c.bf16 %v251_v23, %v250_v22  ;;  %v237_v43 = vld [vmem:[%s2803_s1 + $0x568] sm:$0xff] }
  0x44   :  { %1722 = vmatprep.subr.bf16.mxu1 %v1721_v21  ;;  %552 = vmatmul.mubr.f32.vlgmr.msra.gmra.mrb[6].mxu0 %v20_v24  ;;  %v219_v21 = vld [vmem:[%s2803_s1 + $0x4d8] sm:$0xff]  ;;  %v1707_v24 = vpack.c.bf16 %v201_v16, %v200_v15  ;;  %v1739_v25 = vpack.c.bf16 %v233_v19, %v232_v17  ;;  %v204_v39 = vld [vmem:[%s2803_s1 + $0x460] sm:$0xff]  ;;  %v254_v46 = vld [vmem:[%s2803_s1 + $0x5f0] sm:$0xff] }
  0x45   :  { %1692 = vmatpush3.bf16.msra.mxu0 %v1691_v27  ;;  %556 = vmatprep.mubr.f32.mxu0 %v37_v32  ;;  %v1709_v26 = vpack.c.bf16 %v219_v21, %v218_v20  ;;  %v202_v27 = vld [vmem:[%s2803_s1 + $0x450] sm:$0xff]  ;;  %v220_v32 = vld [vmem:[%s2803_s1 + $0x4e0] sm:$0xff]  ;;  %v255_v47 = vld [vmem:[%s2803_s1 + $0x5f8] sm:$0xff] }
  0x46   :  { %632 = vmatmul.mubr.f32.vlgmr.msra.gmra.mrb[6].mxu1 %v22_v28  ;;  %1694 = vmatprep.subr.bf16.mxu0 %v1693_v36  ;;  %v203_v28 = vld [vmem:[%s2803_s1 + $0x458] sm:$0xff]  ;;  %v1713_v38 = vpack.c.bf16 %v221_v33, %v220_v32  ;;  %v206_v51 = vld [vmem:[%s2803_s1 + $0x470] sm:$0xff]  ;;  %v1749_v54 = vpack.c.bf16 %v255_v47, %v254_v46  ;;  %v304_v58 = vld [vmem:[%s2803_s1 + $0x780] sm:$0xff] }
  0x47   :  { %1724 = vmatpush3.bf16.msra.mxu1 %v1723_v31  ;;  %636 = vmatprep.mubr.f32.mxu1 %v39_v37  ;;  %v235_v31 = vld [vmem:[%s2803_s1 + $0x558] sm:$0xff]  ;;  %v1711_v36 = vpack.c.bf16 %v203_v28, %v202_v27  ;;  %v238_v53 = vld [vmem:[%s2803_s1 + $0x570] sm:$0xff]  ;;  %v305_v59 = vld [vmem:[%s2803_s1 + $0x788] sm:$0xff] }
  0x48   :  { %557 = vmatmul.mubr.f32.gmra.mrb[8].mxu0 %v36_v35  ;;  %1726 = vmatprep.subr.bf16.mxu1 %v1725_v40  ;;  %v253_v35 = vld [vmem:[%s2803_s1 + $0x5e8] sm:$0xff]  ;;  %v1743_v37 = vpack.c.bf16 %v235_v31, %v234_v29  ;;  %v239_v55 = vld [vmem:[%s2803_s1 + $0x578] sm:$0xff]  ;;  %v1785_v1 = vpack.c.bf16 %v305_v59, %v304_v58  ;;  %v288_v2 = vld [vmem:[%s2803_s1 + $0x700] sm:$0xff] }
  0x49   :  { %1696 = vmatpush3.bf16.msra.mxu0 %v1695_v44  ;;  %561 = vmatprep.mubr.f32.mxu0 %v53_v45  ;;  %v205_v40 = vld [vmem:[%s2803_s1 + $0x468] sm:$0xff]  ;;  %v1745_v42 = vpack.c.bf16 %v253_v35, %v252_v34  ;;  %v222_v44 = vld [vmem:[%s2803_s1 + $0x4f0] sm:$0xff]  ;;  %v223_v45 = vld [vmem:[%s2803_s1 + $0x4f8] sm:$0xff] }
  0x4a   :  { %637 = vmatmul.mubr.f32.gmra.mrb[8].mxu1 %v38_v41  ;;  %1698 = vmatprep.subr.bf16.mxu0 %v1697_v52  ;;  %v236_v41 = vld [vmem:[%s2803_s1 + $0x560] sm:$0xff]  ;;  %v1717_v50 = vpack.c.bf16 %v223_v45, %v222_v44  ;;  %v207_v52 = vld [vmem:[%s2803_s1 + $0x478] sm:$0xff]  ;;  %v289_v3 = vld [vmem:[%s2803_s1 + $0x708] sm:$0xff] }
  0x4b   :  { %1728 = vmatpush3.bf16.msra.mxu1 %v1727_v48  ;;  %641 = vmatprep.mubr.f32.mxu1 %v55_v56  ;;  %v1715_v48 = vpack.c.bf16 %v205_v40, %v204_v39  ;;  %v1747_v49 = vpack.c.bf16 %v237_v43, %v236_v41  ;;  %v272_v56 = vld [vmem:[%s2803_s1 + $0x680] sm:$0xff]  ;;  %v274_v5 = vld [vmem:[%s2803_s1 + $0x690] sm:$0xff]  ;;  %v275_v6 = vld [vmem:[%s2803_s1 + $0x698] sm:$0xff] }
  0x4c   :  { %562 = vmatmul.mubr.f32.gmra.mrb[10].mxu0 %v52_v60  ;;  %1730 = vmatprep.subr.bf16.mxu1 %v1729_v57  ;;  %v273_v57 = vld [vmem:[%s2803_s1 + $0x688] sm:$0xff]  ;;  %v1719_v60 = vpack.c.bf16 %v207_v52, %v206_v51  ;;  %v26_v8 = vld [vmem:[%s2804_s0 + $0x50] sm:$0xff]  ;;  %v40_v15 = vld [vmem:[%s2804_s0 + $0xc0] sm:$0xff]  ;;  %v1757_v16 = vpack.c.bf16 %v275_v6, %v274_v5 }
  0x4d   :  { %1700 = vmatpush3.bf16.msra.mxu0 %v1699_v61  ;;  %711 = vmatprep.mubr.f32.mxu0 %v25_v10  ;;  %v1751_v61 = vpack.c.bf16 %v239_v55, %v238_v53  ;;  %v306_v9 = vld [vmem:[%s2803_s1 + $0x790] sm:$0xff]  ;;  %v307_v10 = vld [vmem:[%s2803_s1 + $0x798] sm:$0xff]  ;;  %v276_v22 = vld [vmem:[%s2803_s1 + $0x6a0] sm:$0xff] }
  0x4e   :  { %642 = vmatmul.mubr.f32.gmra.mrb[10].mxu1 %v54_v62  ;;  %1702 = vmatprep.subr.bf16.mxu0 %v1701_v0  ;;  %v1753_v62 = vpack.c.bf16 %v273_v57, %v272_v56  ;;  %v257_v0 = vld [vmem:[%s2803_s1 + $0x608] sm:$0xff]  ;;  %v43_v17 = vld [vmem:[%s2804_s0 + $0xd8] sm:$0xff]  ;;  %v1789_v20 = vpack.c.bf16 %v307_v10, %v306_v9  ;;  %v42_v21 = vld [vmem:[%s2804_s0 + $0xd0] sm:$0xff]  ;;  %v8_v10 = vstv %s2805_s2 }
  0x4f   :  { %1732 = vmatpush3.bf16.msra.mxu1 %v1731_v63  ;;  %791 = vmatprep.mubr.f32.mxu1 %v27_v12  ;;  %v256_v63 = vld [vmem:[%s2803_s1 + $0x600] sm:$0xff]  ;;  %v41_v12 = vld [vmem:[%s2804_s0 + $0xc8] sm:$0xff]  ;;  %v291_v19 = vld [vmem:[%s2803_s1 + $0x718] sm:$0xff]  ;;  %9 = vst [vmem:[#allocation2] sm:$0x1] %v8_v10 }
  0x50   :  { %1734 = vmatprep.subr.bf16.mxu1 %v1733_v4  ;;  %v24_v4 = vld [vmem:[%s2804_s0 + $0x40] sm:$0xff]  ;;  %v1755_v7 = vpack.c.bf16 %v257_v0, %v256_v63  ;;  %v277_v23 = vld [vmem:[%s2803_s1 + $0x6a8] sm:$0xff]  ;;  %v278_v34 = vld [vmem:[%s2803_s1 + $0x6b0] sm:$0xff] }
  0x51   :  { %1704 = vmatpush3.bf16.msra.mxu0 %v1703_v11  ;;  %v1787_v11 = vpack.c.bf16 %v289_v3, %v288_v2  ;;  %v309_v27 = vld [vmem:[%s2803_s1 + $0x7a8] sm:$0xff]  ;;  %v260_v29 = vld [vmem:[%s2803_s1 + $0x620] sm:$0xff]  ;;  %v1761_v32 = vpack.c.bf16 %v277_v23, %v276_v22  ;;  %v279_v35 = vld [vmem:[%s2803_s1 + $0x6b8] sm:$0xff] }
  0x52   :  { %1706 = vmatprep.subr.bf16.mxu0 %v1705_v14  ;;  %v259_v14 = vld [vmem:[%s2803_s1 + $0x618] sm:$0xff]  ;;  %v292_v31 = vld [vmem:[%s2803_s1 + $0x720] sm:$0xff]  ;;  %v293_v33 = vld [vmem:[%s2803_s1 + $0x728] sm:$0xff]  ;;  %v1765_v44 = vpack.c.bf16 %v279_v35, %v278_v34 }
  0x53   :  { %1736 = vmatpush3.bf16.msra.mxu1 %v1735_v13  ;;  %v258_v13 = vld [vmem:[%s2803_s1 + $0x610] sm:$0xff]  ;;  %v311_v39 = vld [vmem:[%s2803_s1 + $0x7b8] sm:$0xff]  ;;  %v56_v40 = vld [vmem:[%s2804_s0 + $0x140] sm:$0x3]  ;;  %v1795_v43 = vpack.c.bf16 %v293_v33, %v292_v31 }
  0x54   :  { %1738 = vmatprep.subr.bf16.mxu1 %v1737_v18  ;;  %v290_v18 = vld [vmem:[%s2803_s1 + $0x710] sm:$0xff]  ;;  %v263_v46 = vld [vmem:[%s2803_s1 + $0x638] sm:$0xff]  ;;  %v281_v51 = vld [vmem:[%s2803_s1 + $0x6c8] sm:$0xff] }
  0x55   :  { %1708 = vmatpush3.bf16.msra.mxu0 %v1707_v24  ;;  %v1759_v24 = vpack.c.bf16 %v259_v14, %v258_v13  ;;  %v1791_v28 = vpack.c.bf16 %v291_v19, %v290_v18  ;;  %v262_v45 = vld [vmem:[%s2803_s1 + $0x630] sm:$0xff]  ;;  %v312_v52 = vld [vmem:[%s2803_s1 + $0x7c0] sm:$0xff]  ;;  %v313_v53 = vld [vmem:[%s2803_s1 + $0x7c8] sm:$0xff] }
  0x56   :  { %1710 = vmatprep.subr.bf16.mxu0 %v1709_v26  ;;  %v308_v26 = vld [vmem:[%s2803_s1 + $0x7a0] sm:$0xff]  ;;  %v294_v47 = vld [vmem:[%s2803_s1 + $0x730] sm:$0xff]  ;;  %v1767_v55 = vpack.c.bf16 %v263_v46, %v262_v45  ;;  %v31_v56 = vld [vmem:[%s2804_s0 + $0x78] sm:$0xff] }
  0x57   :  { %1740 = vmatpush3.bf16.msra.mxu1 %v1739_v25  ;;  %v57_v25 = vld [vmem:[%s2804_s0 + $0x148] sm:$0x3]  ;;  %v264_v59 = vld [vmem:[%s2803_s1 + $0x640] sm:$0xff]  ;;  %v282_v0 = vld [vmem:[%s2803_s1 + $0x6d0] sm:$0xff] }
  0x58   :  { %1742 = vmatprep.subr.bf16.mxu1 %v1741_v30  ;;  %v261_v30 = vld [vmem:[%s2803_s1 + $0x628] sm:$0xff]  ;;  %v314_v2 = vld [vmem:[%s2803_s1 + $0x7d0] sm:$0xff]  ;;  %v315_v3 = vld [vmem:[%s2803_s1 + $0x7d8] sm:$0xff] }
  0x59   :  { %1712 = vmatpush3.bf16.msra.mxu0 %v1711_v36  ;;  %v59_v36 = vld [vmem:[%s2804_s0 + $0x158] sm:$0x3]  ;;  %v1763_v41 = vpack.c.bf16 %v261_v30, %v260_v29  ;;  %v297_v63 = vld [vmem:[%s2803_s1 + $0x748] sm:$0xff]  ;;  %v298_v9 = vld [vmem:[%s2803_s1 + $0x750] sm:$0xff] }
  0x5a   :  { %1714 = vmatprep.subr.bf16.mxu0 %v1713_v38  ;;  %v310_v38 = vld [vmem:[%s2803_s1 + $0x7b0] sm:$0xff]  ;;  %v284_v13 = vld [vmem:[%s2803_s1 + $0x6e0] sm:$0xff]  ;;  %v285_v14 = vld [vmem:[%s2803_s1 + $0x6e8] sm:$0xff] }
  0x5b   :  { %1744 = vmatpush3.bf16.msra.mxu1 %v1743_v37  ;;  %v1793_v37 = vpack.c.bf16 %v309_v27, %v308_v26  ;;  %v1777_v19 = vpack.c.bf16 %v285_v14, %v284_v13  ;;  %v300_v22 = vld [vmem:[%s2803_s1 + $0x760] sm:$0xff]  ;;  %v287_v26 = vld [vmem:[%s2803_s1 + $0x6f8] sm:$0xff]  ;;  %v318_v27 = vld [vmem:[%s2803_s1 + $0x7f0] sm:$0xff] }
  0x5c   :  { %1746 = vmatprep.subr.bf16.mxu1 %v1745_v42  ;;  %v58_v42 = vld [vmem:[%s2804_s0 + $0x150] sm:$0x3]  ;;  %v271_v33 = vld [vmem:[%s2803_s1 + $0x678] sm:$0xff]  ;;  %v61_v45 = vld [vmem:[%s2804_s0 + $0x168] sm:$0x3] }
  0x5d   :  { %1716 = vmatpush3.bf16.msra.mxu0 %v1715_v48  ;;  %v1797_v48 = vpack.c.bf16 %v311_v39, %v310_v38  ;;  %v302_v35 = vld [vmem:[%s2803_s1 + $0x770] sm:$0xff]  ;;  %v28_v39 = vld [vmem:[%s2804_s0 + $0x60] sm:$0xff]  ;;  %v63_v46 = vld [vmem:[%s2804_s0 + $0x178] sm:$0x3] }
  0x5e   :  { %1718 = vmatprep.subr.bf16.mxu0 %v1717_v50  ;;  %v280_v50 = vld [vmem:[%s2803_s1 + $0x6c0] sm:$0xff] }
  0x5f   :  { %1748 = vmatpush3.bf16.msra.mxu1 %v1747_v49  ;;  %v295_v49 = vld [vmem:[%s2803_s1 + $0x738] sm:$0xff]  ;;  %v1769_v58 = vpack.c.bf16 %v281_v51, %v280_v50  ;;  %v1230_v50 = vld [vmem:[#allocation2] ss:$0 sm:$0xff] }
  0x60   :  { %1750 = vmatprep.subr.bf16.mxu1 %v1749_v54  ;;  %v29_v54 = vld [vmem:[%s2804_s0 + $0x68] sm:$0xff]  ;;  %v1799_v57 = vpack.c.bf16 %v295_v49, %v294_v47  ;;  %v60_v47 = vld [vmem:[%s2804_s0 + $0x160] sm:$0x3] }
  0x61   :  { %1720 = vmatpush3.bf16.msra.mxu0 %v1719_v60  ;;  %v265_v60 = vld [vmem:[%s2803_s1 + $0x648] sm:$0xff] }
  0x62   :  { %1754 = vmatprep.subr.bf16.mxu0 %v1753_v62  ;;  %v1801_v62 = vpack.c.bf16 %v313_v53, %v312_v52 }
  0x63   :  { %1752 = vmatpush3.bf16.msra.mxu1 %v1751_v61  ;;  %v296_v61 = vld [vmem:[%s2803_s1 + $0x740] sm:$0xff] }
  0x64   :  { %1786 = vmatprep.subr.bf16.mxu1 %v1785_v1  ;;  %712 = vmatmul.mubr.f32.vlgmr.msra.gmra.mrb[12].mxu0 %v24_v4  ;;  %v283_v1 = vld [vmem:[%s2803_s1 + $0x6d8] sm:$0xff]  ;;  %v1771_v4 = vpack.c.bf16 %v265_v60, %v264_v59  ;;  %v1803_v5 = vpack.c.bf16 %v297_v63, %v296_v61 }
  0x65   :  { %1756 = vmatpush3.bf16.msra.mxu0 %v1755_v7  ;;  %716 = vmatprep.mubr.f32.mxu0 %v41_v12  ;;  %v1773_v6 = vpack.c.bf16 %v283_v1, %v282_v0  ;;  %v266_v7 = vld [vmem:[%s2803_s1 + $0x650] sm:$0xff]  ;;  %v299_v12 = vld [vmem:[%s2803_s1 + $0x758] sm:$0xff] }
  0x66   :  { %792 = vmatmul.mubr.f32.vlgmr.msra.gmra.mrb[12].mxu1 %v26_v8  ;;  %1758 = vmatprep.subr.bf16.mxu0 %v1757_v16  ;;  %v267_v8 = vld [vmem:[%s2803_s1 + $0x658] sm:$0xff]  ;;  %v317_v16 = vld [vmem:[%s2803_s1 + $0x7e8] sm:$0xff]  ;;  %v1807_v18 = vpack.c.bf16 %v299_v12, %v298_v9 }
  0x67   :  { %1788 = vmatpush3.bf16.msra.mxu1 %v1787_v11  ;;  %796 = vmatprep.mubr.f32.mxu1 %v43_v17  ;;  %v1805_v11 = vpack.c.bf16 %v315_v3, %v314_v2  ;;  %v1775_v17 = vpack.c.bf16 %v267_v8, %v266_v7 }
  0x68   :  { %717 = vmatmul.mubr.f32.gmra.mrb[14].mxu0 %v40_v15  ;;  %1790 = vmatprep.subr.bf16.mxu1 %v1789_v20  ;;  %v316_v15 = vld [vmem:[%s2803_s1 + $0x7e0] sm:$0xff] }
  0x69   :  { %1760 = vmatpush3.bf16.msra.mxu0 %v1759_v24  ;;  %721 = vmatprep.mubr.f32.mxu0 %v57_v25  ;;  %v268_v20 = vld [vmem:[%s2803_s1 + $0x660] sm:$0xff]  ;;  %v1809_v23 = vpack.c.bf16 %v317_v16, %v316_v15  ;;  %v301_v24 = vld [vmem:[%s2803_s1 + $0x768] sm:$0xff]  ;;  %v286_v25 = vld [vmem:[%s2803_s1 + $0x6f0] sm:$0xff] }
  0x6a   :  { %797 = vmatmul.mubr.f32.gmra.mrb[14].mxu1 %v42_v21  ;;  %1762 = vmatprep.subr.bf16.mxu0 %v1761_v32  ;;  %v269_v21 = vld [vmem:[%s2803_s1 + $0x668] sm:$0xff]  ;;  %v1811_v30 = vpack.c.bf16 %v301_v24, %v300_v22  ;;  %v1781_v31 = vpack.c.bf16 %v287_v26, %v286_v25  ;;  %v270_v32 = vld [vmem:[%s2803_s1 + $0x670] sm:$0xff] }
  0x6b   :  { %1792 = vmatpush3.bf16.msra.mxu1 %v1791_v28  ;;  %801 = vmatprep.mubr.f32.mxu1 %v59_v36  ;;  %v319_v28 = vld [vmem:[%s2803_s1 + $0x7f8] sm:$0xff]  ;;  %v1779_v29 = vpack.c.bf16 %v269_v21, %v268_v20 }
  0x6c   :  { %722 = vmatmul.mubr.f32.gmra.mrb[16].mxu0 %v56_v40  ;;  %1794 = vmatprep.subr.bf16.mxu1 %v1793_v37  ;;  %v1813_v34 = vpack.c.bf16 %v319_v28, %v318_v27  ;;  %v303_v36 = vld [vmem:[%s2803_s1 + $0x778] sm:$0xff]  ;;  %v1783_v37 = vpack.c.bf16 %v271_v33, %v270_v32  ;;  %v30_v40 = vld [vmem:[%s2804_s0 + $0x70] sm:$0xff] }
  0x6d   :  { %1764 = vmatpush3.bf16.msra.mxu0 %v1763_v41  ;;  %871 = vmatprep.mubr.f32.mxu0 %v29_v54  ;;  %v1815_v38 = vpack.c.bf16 %v303_v36, %v302_v35  ;;  %v45_v41 = vld [vmem:[%s2804_s0 + $0xe8] sm:$0xff] }
  0x6e   :  { %802 = vmatmul.mubr.f32.gmra.mrb[16].mxu1 %v58_v42  ;;  %1766 = vmatprep.subr.bf16.mxu0 %v1765_v44  ;;  %v47_v42 = vld [vmem:[%s2804_s0 + $0xf8] sm:$0xff]  ;;  %v46_v44 = vld [vmem:[%s2804_s0 + $0xf0] sm:$0xff] }
  0x6f   :  { %1796 = vmatpush3.bf16.msra.mxu1 %v1795_v43  ;;  %951 = vmatprep.mubr.f32.mxu1 %v31_v56  ;;  %v44_v43 = vld [vmem:[%s2804_s0 + $0xe0] sm:$0xff] }
  0x70   :  { %1798 = vmatprep.subr.bf16.mxu1 %v1797_v48  ;;  %v62_v48 = vld [vmem:[%s2804_s0 + $0x170] sm:$0x3] }
  0x71   :  { %1768 = vmatpush3.bf16.msra.mxu0 %v1767_v55 }
  0x72   :  { %1770 = vmatprep.subr.bf16.mxu0 %v1769_v58 }
  0x73   :  { %1800 = vmatpush3.bf16.msra.mxu1 %v1799_v57 }
  0x74   :  { %1802 = vmatprep.subr.bf16.mxu1 %v1801_v62 }
  0x75   :  { %1772 = vmatpush3.bf16.msra.mxu0 %v1771_v4 }
  0x76   :  { %1774 = vmatprep.subr.bf16.mxu0 %v1773_v6 }
  0x77   :  { %1804 = vmatpush3.bf16.msra.mxu1 %v1803_v5 }
  0x78   :  { %1806 = vmatprep.subr.bf16.mxu1 %v1805_v11 }
  0x79   :  { %1776 = vmatpush3.bf16.msra.mxu0 %v1775_v17 }
  0x7a   :  { %1778 = vmatprep.subr.bf16.mxu0 %v1777_v19 }
  0x7b   :  { %1808 = vmatpush3.bf16.msra.mxu1 %v1807_v18 }
  0x7c   :  { %1810 = vmatprep.subr.bf16.mxu1 %v1809_v23 }
  0x7d   :  { %1780 = vmatpush3.bf16.msra.mxu0 %v1779_v29 }
  0x7e   :  { %1782 = vmatprep.subr.bf16.mxu0 %v1781_v31 }
  0x7f   :  { %1812 = vmatpush3.bf16.msra.mxu1 %v1811_v30 }
  0x80   :  { %1814 = vmatprep.subr.bf16.mxu1 %v1813_v34 }
  0x81   :  { %1784 = vmatpush3.bf16.msra.mxu0 %v1783_v37 }
  0x83   :  { %1816 = vmatpush3.bf16.msra.mxu1 %v1815_v38 }
  0x84   :  { %872 = vmatmul.mubr.f32.vlgmr.msra.gmra.mrb[18].mxu0 %v28_v39 }
  0x85   :  { %876 = vmatprep.mubr.f32.mxu0 %v45_v41 }
  0x86   :  { %952 = vmatmul.mubr.f32.vlgmr.msra.gmra.mrb[18].mxu1 %v30_v40 }
  0x87   :  { %956 = vmatprep.mubr.f32.mxu1 %v47_v42 }
  0x88   :  { %877 = vmatmul.mubr.f32.gmra.mrb[20].mxu0 %v44_v43 }
  0x89   :  { %881 = vmatprep.mubr.f32.mxu0 %v61_v45 }
  0x8a   :  { %957 = vmatmul.mubr.f32.gmra.mrb[20].mxu1 %v46_v44 }
  0x8b   :  { %961 = vmatprep.mubr.f32.mxu1 %v63_v46 }
  0x8c   :  { %882 = vmatmul.mubr.f32.gmra.mrb[22].mxu0 %v60_v47 }
  0x8e   :  { %962 = vmatmul.mubr.f32.gmra.mrb[22].mxu1 %v62_v48 }
  0xf7   :  { %v1265_v49 = vpop.f32.mrb[0].mxu0 }
  0xf8   :  { %v1266_v51 = vpop.f32.mrb[1].mxu0 }
  0xf9   :  { %v1306_v52 = vpop.f32.mrb[0].mxu1  ;;  %v1267_v53 = vadd.f32 %v1266_v51, %v1265_v49 }
  0xfa   :  { %v1307_v54 = vpop.f32.mrb[1].mxu1 }
  0xfb   :  { %v1308_v55 = vadd.f32 %v1307_v54, %v1306_v52  ;;  %v394_v56 = vadd.f32 %v1267_v53, %v1230_v50  ;;  %v1268_v58 = vpop.f32.mrb[2].mxu0 }
  0xfc   :  { %v1269_v59 = vpop.f32.mrb[3].mxu0 }
  0xfd   :  { %v474_v57 = vadd.f32 %v1308_v55, %v394_v56  ;;  %v1270_v60 = vadd.f32 %v1269_v59, %v1268_v58  ;;  %v1309_v61 = vpop.f32.mrb[2].mxu1  ;;  %v1818_v58 = vmov 1966171168  }
  0xfe   :  { %v1310_v62 = vpop.f32.mrb[3].mxu1  ;;  %v972_v59 = vunpack.c.l.s4 %v1818_v58 }
  0xff   :  { %v399_v63 = vadd.f32 %v1270_v60, %v1230_v50  ;;  %v1311_v0 = vadd.f32 %v1310_v62, %v1309_v61  ;;  %v1271_v1 = vpop.f32.mrb[4].mxu0  ;;  %v974_v60 = vlaneseq }
 0x100   :  { %v1272_v2 = vpop.f32.mrb[5].mxu0  ;;  %v973_v62 = vunpack.c.0.s8 %v972_v59 }
 0x101   :  { %v479_v3 = vadd.f32 %v1311_v0, %v399_v63  ;;  %v1273_v4 = vadd.f32 %v1272_v2, %v1271_v1  ;;  %v1312_v5 = vpop.f32.mrb[4].mxu1  ;;  %v975_v63 = vshrl.u32 %v974_v60, 7 }
 0x102   :  { %v1313_v6 = vpop.f32.mrb[5].mxu1 }
 0x103   :  { %v404_v7 = vadd.f32 %v1273_v4, %v1230_v50  ;;  %v1314_v8 = vadd.f32 %v1313_v6, %v1312_v5  ;;  %v2754_v6 = vsub.s32 %v973_v62, %v975_v63 }
 0x105   :  { %v484_v9 = vadd.f32 %v1314_v8, %v404_v7 }
 0x117   :  { %v1347_v10 = vpop.f32.mrb[6].mxu0 }
 0x118   :  { %v1348_v11 = vpop.f32.mrb[7].mxu0 }
 0x119   :  { %v1388_v12 = vpop.f32.mrb[6].mxu1  ;;  %v1349_v13 = vadd.f32 %v1348_v11, %v1347_v10 }
 0x11a   :  { %v1389_v14 = vpop.f32.mrb[7].mxu1 }
 0x11b   :  { %v1390_v15 = vadd.f32 %v1389_v14, %v1388_v12  ;;  %v554_v16 = vadd.f32 %v1349_v13, %v474_v57  ;;  %v1350_v17 = vpop.f32.mrb[8].mxu0 }
 0x11c   :  { %v1351_v18 = vpop.f32.mrb[9].mxu0 }
 0x11d   :  { %v1391_v19 = vpop.f32.mrb[8].mxu1  ;;  %v634_v20 = vadd.f32 %v1390_v15, %v554_v16  ;;  %v1352_v21 = vadd.f32 %v1351_v18, %v1350_v17 }
 0x11e   :  { %v1392_v22 = vpop.f32.mrb[9].mxu1 }
 0x11f   :  { %v1393_v23 = vadd.f32 %v1392_v22, %v1391_v19  ;;  %v559_v24 = vadd.f32 %v1352_v21, %v479_v3  ;;  %v1353_v25 = vpop.f32.mrb[10].mxu0 }
 0x120   :  { %v1354_v26 = vpop.f32.mrb[11].mxu0 }
 0x121   :  { %v1394_v27 = vpop.f32.mrb[10].mxu1  ;;  %v639_v28 = vadd.f32 %v1393_v23, %v559_v24  ;;  %v1355_v29 = vadd.f32 %v1354_v26, %v1353_v25 }
 0x122   :  { %v1395_v30 = vpop.f32.mrb[11].mxu1 }
 0x123   :  { %v1396_v31 = vadd.f32 %v1395_v30, %v1394_v27  ;;  %v564_v32 = vadd.f32 %v1355_v29, %v484_v9 }
 0x125   :  { %v644_v33 = vadd.f32 %v1396_v31, %v564_v32 }
 0x137   :  { %v1429_v34 = vpop.f32.mrb[12].mxu0 }
 0x138   :  { %v1430_v35 = vpop.f32.mrb[13].mxu0 }
 0x139   :  { %v1470_v36 = vpop.f32.mrb[12].mxu1  ;;  %v1431_v37 = vadd.f32 %v1430_v35, %v1429_v34 }
 0x13a   :  { %v1471_v38 = vpop.f32.mrb[13].mxu1 }
 0x13b   :  { %v1472_v39 = vadd.f32 %v1471_v38, %v1470_v36  ;;  %v714_v40 = vadd.f32 %v1431_v37, %v634_v20  ;;  %v1432_v41 = vpop.f32.mrb[14].mxu0 }
 0x13c   :  { %v1433_v42 = vpop.f32.mrb[15].mxu0 }
 0x13d   :  { %v1473_v43 = vpop.f32.mrb[14].mxu1  ;;  %v794_v44 = vadd.f32 %v1472_v39, %v714_v40  ;;  %v1434_v45 = vadd.f32 %v1433_v42, %v1432_v41 }
 0x13e   :  { %v1474_v46 = vpop.f32.mrb[15].mxu1 }
 0x13f   :  { %v1475_v47 = vadd.f32 %v1474_v46, %v1473_v43  ;;  %v719_v48 = vadd.f32 %v1434_v45, %v639_v28  ;;  %v1435_v49 = vpop.f32.mrb[16].mxu0 }
 0x140   :  { %v1436_v50 = vpop.f32.mrb[17].mxu0 }
 0x141   :  { %v1476_v51 = vpop.f32.mrb[16].mxu1  ;;  %v799_v52 = vadd.f32 %v1475_v47, %v719_v48  ;;  %v1437_v53 = vadd.f32 %v1436_v50, %v1435_v49 }
 0x142   :  { %v1477_v54 = vpop.f32.mrb[17].mxu1 }
 0x143   :  { %v1478_v55 = vadd.f32 %v1477_v54, %v1476_v51  ;;  %v724_v56 = vadd.f32 %v1437_v53, %v644_v33 }
 0x145   :  { %v804_v57 = vadd.f32 %v1478_v55, %v724_v56 }
 0x157   :  { %v1511_v61 = vpop.f32.mrb[18].mxu0 }
 0x158   :  { %v1512_v0 = vpop.f32.mrb[19].mxu0 }
 0x159   :  { %v1552_v1 = vpop.f32.mrb[18].mxu1  ;;  %v1513_v2 = vadd.f32 %v1512_v0, %v1511_v61 }
 0x15a   :  { %v1553_v3 = vpop.f32.mrb[19].mxu1 }
 0x15b   :  { %v1554_v4 = vadd.f32 %v1553_v3, %v1552_v1  ;;  %v874_v5 = vadd.f32 %v1513_v2, %v794_v44  ;;  %v1514_v7 = vpop.f32.mrb[20].mxu0 }
 0x15c   :  { %v1515_v8 = vpop.f32.mrb[21].mxu0 }
 0x15d   :  { %v1555_v9 = vpop.f32.mrb[20].mxu1  ;;  %v954_v10 = vadd.f32 %v1554_v4, %v874_v5  ;;  %v1516_v11 = vadd.f32 %v1515_v8, %v1514_v7 }
 0x15e   :  { %v1556_v12 = vpop.f32.mrb[21].mxu1 }
 0x15f   :  { %v1557_v13 = vadd.f32 %v1556_v12, %v1555_v9  ;;  %v970_v14 = vcombine.high %v954_v10, %v954_v10  ;;  %v977_v15 = vrot.slane %v954_v10, %v2754_v6  ;;  %v879_v16 = vadd.f32 %v1516_v11, %v799_v52  ;;  %v1517_v17 = vpop.f32.mrb[22].mxu0 }
 0x160   :  { %v1518_v18 = vpop.f32.mrb[23].mxu0 }
 0x161   :  { %v1558_v19 = vpop.f32.mrb[22].mxu1  ;;  %v984_v20 = vrot.slane %v970_v14, %v2754_v6  ;;  %v985_v21 = vcombine.high %v977_v15, %v977_v15  ;;  %v959_v22 = vadd.f32 %v1557_v13, %v879_v16  ;;  %v1519_v24 = vadd.f32 %v1518_v18, %v1517_v17 }
 0x162   :  { %v1559_v23 = vpop.f32.mrb[23].mxu1  ;;  %v993_v27 = vrot.slane %v977_v15, %v2754_v6 }
 0x163   :  { %v1560_v25 = vadd.f32 %v1559_v23, %v1558_v19  ;;  %v986_v26 = vcombine.high %v984_v20, %v984_v20  ;;  %v1007_v28 = vrot.slane %v985_v21, %v2754_v6  ;;  %v1019_v29 = vcombine.high %v959_v22, %v959_v22 }
 0x164   :  { %v1000_v30 = vrot.slane %v984_v20, %v2754_v6  ;;  %v1026_v31 = vrot.slane %v959_v22, %v2754_v6  ;;  %v884_v32 = vadd.f32 %v1519_v24, %v804_v57 }
 0x165   :  { %v1014_v33 = vrot.slane %v986_v26, %v2754_v6  ;;  %v1090_v34 = vcombine.low %v993_v27, %v1007_v28  ;;  %v1231_v35 = vcombine.high %v993_v27, %v1007_v28  ;;  %v1033_v36 = vrot.slane %v1019_v29, %v2754_v6 }
 0x166   :  { %v1034_v37 = vcombine.high %v1026_v31, %v1026_v31  ;;  %v1042_v38 = vrot.slane %v1026_v31, %v2754_v6  ;;  %v964_v39 = vadd.f32 %v1560_v25, %v884_v32 }
 0x167   :  { %v1092_v40 = vcombine.low %v1000_v30, %v1014_v33  ;;  %v1232_v41 = vcombine.high %v1000_v30, %v1014_v33  ;;  %v1100_v42 = vrot.slane %v1090_v34, %v2754_v6  ;;  %v1107_v43 = vrot.slane %v1231_v35, %v2754_v6 }
 0x168   :  { %v1035_v44 = vcombine.high %v1033_v36, %v1033_v36  ;;  %v1049_v45 = vrot.slane %v1033_v36, %v2754_v6  ;;  %v1056_v46 = vrot.slane %v1034_v37, %v2754_v6  ;;  %v1064_v47 = vcombine.high %v1042_v38, %v1042_v38 }
 0x169   :  { %v1114_v48 = vrot.slane %v1092_v40, %v2754_v6  ;;  %v1121_v49 = vrot.slane %v1232_v41, %v2754_v6  ;;  %v1122_v50 = vcombine.low %v1100_v42, %v1107_v43  ;;  %v1145_v51 = vrot.slane %v1042_v38, %v2754_v6 }
 0x16a   :  { %v1063_v52 = vrot.slane %v1035_v44, %v2754_v6  ;;  %v1065_v53 = vcombine.high %v1049_v45, %v1049_v45  ;;  %v1066_v54 = vcombine.high %v1056_v46, %v1056_v46  ;;  %v1153_v57 = vcombine.low %v1056_v46, %v1064_v47 }
 0x16b   :  { %v1123_v55 = vcombine.low %v1114_v48, %v1121_v49  ;;  %v1152_v56 = vrot.slane %v1145_v51, %v2754_v6  ;;  %v1074_v58 = vrot.slane %v964_v39, %v2754_v6  ;;  %v1130_v59 = vrot.slane %v1122_v50, %v2754_v6 }
 0x16c   :  { %v1154_v60 = vcombine.low %v1066_v54, %v1049_v45  ;;  %v1067_v61 = vcombine.high %v1063_v52, %v1063_v52  ;;  %v1155_v63 = vcombine.low %v1063_v52, %v1065_v53  ;;  %v1163_v4 = vrot.slane %v1153_v57, %v2754_v6 }
 0x16d   :  { %v1137_v62 = vrot.slane %v1123_v55, %v2754_v6  ;;  %1223 = vst.msk [vmem:[%s2806_s3 + $0x8] sm:$0x1] %vm1222_vm0, %v1152_v56  ;;  %v1075_v0 = vcombine.high %v1074_v58, %v1074_v58  ;;  %v1082_v1 = vrot.slane %v1074_v58, %v2754_v6 }
 0x16e   :  { %v1170_v2 = vrot.slane %v1154_v60, %v2754_v6  ;;  %v1177_v9 = vrot.slane %v1155_v63, %v2754_v6 }
 0x16f   :  { %v1138_v3 = vcombine.low %v1130_v59, %v1137_v62  ;;  %v1089_v5 = vrot.slane %v1075_v0, %v2754_v6  ;;  %v1156_v7 = vcombine.low %v1067_v61, %v1082_v1 }
 0x170   :  { %v1185_v8 = vcombine.low %v1163_v4, %v1170_v2 }
 0x171   :  { %1221 = vst.msk [vmem:[%s2806_s3] sm:$0xff] %vm1220_vm1, %v1138_v3  ;;  %v1184_v10 = vrot.slane %v1156_v7, %v2754_v6  ;;  %v1208_v11 = vrot.slane %v1089_v5, %v2754_v6 }
 0x172   :  { %v1193_v14 = vrot.slane %v1185_v8, %v2754_v6 }
 0x173   :  { %v1186_v12 = vcombine.low %v1177_v9, %v1184_v10  ;;  %v1215_v13 = vrot.slane %v1208_v11, %v2754_v6 }
 0x175   :  { %v1200_v15 = vrot.slane %v1186_v12, %v2754_v6  ;;  %1225 = vst.msk [vmem:[%s2806_s3 + $0x18] sm:$0x1] %vm1222_vm0, %v1215_v13 }
 0x177   :  { %v1201_v16 = vcombine.low %v1193_v14, %v1200_v15 }
 0x179   :  { %1224 = vst.msk [vmem:[%s2806_s3 + $0x10] sm:$0xff] %vm1220_vm1, %v1201_v16 }

</bundles_post_ra>
